<compile_context>
chip_gen: v5e
topology: v5e:2x2
jax: 0.10.0
libtpu: 0.0.40
codegen_flags: <defaults>
</compile_context>

<pallas_src>
import jax
import jax.numpy as jnp
from jax.experimental import pallas as pl

# ----------------------------- model config ---------------------------------
VOCAB = 64      # vocab size
D_MODEL = 32    # hidden size
N_HEADS = 2
D_HEAD = D_MODEL // N_HEADS
D_FF = 64
SEQ = 8         # encoder / decoder (max) sequence length
PAD_ID = 0      # also decoder start token (T5 convention)
EPS = 1e-6
NEG = -1e9      # additive attention-mask value
NEG_BIG = -1e30 # "minus infinity" for row-select / argmax emulation


# --------------------- in-kernel math helpers (on values) --------------------
def _rms(x, w):
    var = jnp.mean(x * x, axis=-1, keepdims=True)
    return x * jax.lax.rsqrt(var + EPS) * w


def _mha(q, k, v, mask):
    """Multi-head attention on (S, D) values; heads are static lane slices."""
    outs = []
    for h in range(N_HEADS):
        sl = slice(h * D_HEAD, (h + 1) * D_HEAD)
        qh, kh, vh = q[:, sl], k[:, sl], v[:, sl]
        # scores = qh @ kh.T  (T5: no 1/sqrt(d) scaling)
        s = jax.lax.dot_general(qh, kh, (((1,), (1,)), ((), ())),
                                preferred_element_type=jnp.float32)
        if mask is not None:
            s = s + mask
        m = jnp.max(s, axis=-1, keepdims=True)
        p = jnp.exp(s - m)
        p = p * pl.reciprocal(jnp.sum(p, axis=-1, keepdims=True), approx=True)
        outs.append(jnp.dot(p, vh, preferred_element_type=jnp.float32))
    return jnp.concatenate(outs, axis=-1)


def _ffn(x, w1, w2):
    h = jnp.maximum(jnp.dot(x, w1, preferred_element_type=jnp.float32), 0.0)
    return jnp.dot(h, w2, preferred_element_type=jnp.float32)


def _causal_mask():
    r = jax.lax.broadcasted_iota(jnp.int32, (SEQ, SEQ), 0)
    c = jax.lax.broadcasted_iota(jnp.int32, (SEQ, SEQ), 1)
    return jnp.where(c <= r, 0.0, NEG).astype(jnp.float32)


def _encoder_stack(x, ln1, wqkv, wo, ln2, w1, w2, lnf):
    h = _rms(x, ln1)
    qkv = jnp.dot(h, wqkv, preferred_element_type=jnp.float32)
    q = qkv[:, :D_MODEL]
    k = qkv[:, D_MODEL:2 * D_MODEL]
    v = qkv[:, 2 * D_MODEL:]
    x = x + jnp.dot(_mha(q, k, v, None), wo, preferred_element_type=jnp.float32)
    h = _rms(x, ln2)
    x = x + _ffn(h, w1, w2)
    return _rms(x, lnf)


def _decoder_stack(x, enc_k, enc_v, ln1, wqkv, wo, ln2, cq, co,
                   ln3, w1, w2, lnf, causal):
    # self-attention (fused QKV projection)
    h = _rms(x, ln1)
    qkv = jnp.dot(h, wqkv, preferred_element_type=jnp.float32)
    q = qkv[:, :D_MODEL]
    k = qkv[:, D_MODEL:2 * D_MODEL]
    v = qkv[:, 2 * D_MODEL:]
    x = x + jnp.dot(_mha(q, k, v, causal), wo, preferred_element_type=jnp.float32)
    # cross-attention (enc K/V precomputed by the caller)
    h = _rms(x, ln2)
    qc = jnp.dot(h, cq, preferred_element_type=jnp.float32)
    x = x + jnp.dot(_mha(qc, enc_k, enc_v, None), co,
                    preferred_element_type=jnp.float32)
    # FFN
    h = _rms(x, ln3)
    x = x + _ffn(h, w1, w2)
    return _rms(x, lnf)


# ----------------------------- Pallas kernels --------------------------------
def _generate_kernel(ids_in_ref, embed_ref,
                     e_ln1_ref, e_wqkv_ref, e_wo_ref, e_ln2_ref, e_w1_ref,
                     e_w2_ref, e_lnf_ref,
                     d_ln1_ref, d_wqkv_ref, d_wo_ref, d_ln2_ref, d_cq_ref,
                     d_ckv_ref, d_co_ref, d_ln3_ref, d_w1_ref, d_w2_ref,
                     d_lnf_ref, lmh_ref, ids_out_ref):
    """Encoder + whole greedy decode (SEQ-1 steps), fused into one kernel."""
    embed = embed_ref[...]
    lane_iota = jax.lax.broadcasted_iota(jnp.int32, (SEQ, VOCAB), 1)
    row_iota = jax.lax.broadcasted_iota(jnp.int32, (SEQ, VOCAB), 0)
    lane_1v = jax.lax.broadcasted_iota(jnp.int32, (1, VOCAB), 1)

    # --- encoder: embedding "gather" as an in-kernel one-hot matmul ---------
    enc_onehot = (lane_iota == ids_in_ref[...]).astype(jnp.float32)      # (S,V)
    x_enc = jnp.dot(enc_onehot, embed, preferred_element_type=jnp.float32)
    enc_out = _encoder_stack(x_enc, e_ln1_ref[...], e_wqkv_ref[...],
                             e_wo_ref[...], e_ln2_ref[...], e_w1_ref[...],
                             e_w2_ref[...], e_lnf_ref[...])

    # cross-attention K/V from the encoder are loop-invariant: compute ONCE.
    enc_kv = jnp.dot(enc_out, d_ckv_ref[...], preferred_element_type=jnp.float32)
    enc_k = enc_kv[:, :D_MODEL]
    enc_v = enc_kv[:, D_MODEL:]

    ln1 = d_ln1_ref[...]; wqkv = d_wqkv_ref[...]; wo = d_wo_ref[...]
    ln2 = d_ln2_ref[...]; cq = d_cq_ref[...]; co = d_co_ref[...]
    ln3 = d_ln3_ref[...]; w1 = d_w1_ref[...]; w2 = d_w2_ref[...]
    lnf = d_lnf_ref[...]; lmh = lmh_ref[...]
    causal = _causal_mask()

    # decoder tokens carried as a one-hot (SEQ, VOCAB); start token = PAD_ID.
    onehot0 = (lane_iota == PAD_ID).astype(jnp.float32)

    def step(t, onehot):
        x = jnp.dot(onehot, embed, preferred_element_type=jnp.float32)   # (S, D)
        hfin = _decoder_stack(x, enc_k, enc_v, ln1, wqkv, wo, ln2, cq, co,
                              ln3, w1, w2, lnf, causal)
        logits = jnp.dot(hfin, lmh, preferred_element_type=jnp.float32)  # (S, V)
        # greedy argmax of row t, fully vectorized (no dynamic slicing)
        row = jnp.max(jnp.where(row_iota == t, logits, NEG_BIG),
                      axis=0, keepdims=True)                             # (1, V)
        m = jnp.max(row, axis=-1, keepdims=True)
        nxt_id = jnp.min(jnp.where(row == m, lane_1v, VOCAB))            # first max
        nxt_onehot = (lane_1v == nxt_id).astype(jnp.float32)             # (1, V)
        write = row_iota == (t + 1)
        return jnp.where(write, jnp.broadcast_to(nxt_onehot, (SEQ, VOCAB)),
                         onehot)

    onehot = jax.lax.fori_loop(0, SEQ - 1, step, onehot0, unroll=True)
    ids = jnp.sum(onehot * lane_iota.astype(jnp.float32), axis=-1, keepdims=True)
    ids_out_ref[...] = ids.astype(jnp.int32)                             # (S, 1)


def _loss_kernel(ids_in_ref, lab_ref, embed_ref,
                 e_ln1_ref, e_wqkv_ref, e_wo_ref, e_ln2_ref, e_w1_ref,
                 e_w2_ref, e_lnf_ref,
                 d_ln1_ref, d_wqkv_ref, d_wo_ref, d_ln2_ref, d_cq_ref,
                 d_ckv_ref, d_co_ref, d_ln3_ref, d_w1_ref, d_w2_ref,
                 d_lnf_ref, lmh_ref, loss_ref):
    """Encoder + decoder + tied LM head + pad-masked cross-entropy, fused."""
    embed = embed_ref[...]
    lane = jax.lax.broadcasted_iota(jnp.int32, (SEQ, VOCAB), 1)
    row = jax.lax.broadcasted_iota(jnp.int32, (SEQ, VOCAB), 0)

    # --- encoder -------------------------------------------------------------
    enc_onehot = (lane == ids_in_ref[...]).astype(jnp.float32)           # (S,V)
    x_enc = jnp.dot(enc_onehot, embed, preferred_element_type=jnp.float32)
    enc_out = _encoder_stack(x_enc, e_ln1_ref[...], e_wqkv_ref[...],
                             e_wo_ref[...], e_ln2_ref[...], e_w1_ref[...],
                             e_w2_ref[...], e_lnf_ref[...])

    enc_kv = jnp.dot(enc_out, d_ckv_ref[...], preferred_element_type=jnp.float32)
    enc_k = enc_kv[:, :D_MODEL]
    enc_v = enc_kv[:, D_MODEL:]

    # --- T5 shift-right inside the kernel ------------------------------------
    # dec_onehot[t] = onehot(labels[t-1]) for t>=1, onehot(start=PAD) for t=0
    lab = lab_ref[...]                                                    # (S,1)
    lab_onehot = (lane == lab).astype(jnp.float32)                        # (S,V)
    r2 = jax.lax.broadcasted_iota(jnp.int32, (SEQ, SEQ), 0)
    c2 = jax.lax.broadcasted_iota(jnp.int32, (SEQ, SEQ), 1)
    shift = (c2 == r2 - 1).astype(jnp.float32)                            # (S,S)
    dec_onehot = jnp.dot(shift, lab_onehot, preferred_element_type=jnp.float32)
    dec_onehot = jnp.where(row == 0, (lane == PAD_ID).astype(jnp.float32),
                           dec_onehot)
    dec_x = jnp.dot(dec_onehot, embed, preferred_element_type=jnp.float32)

    # --- decoder + LM head ----------------------------------------------------
    hfin = _decoder_stack(dec_x, enc_k, enc_v, d_ln1_ref[...], d_wqkv_ref[...],
                          d_wo_ref[...], d_ln2_ref[...], d_cq_ref[...],
                          d_co_ref[...], d_ln3_ref[...], d_w1_ref[...],
                          d_w2_ref[...], d_lnf_ref[...], _causal_mask())
    logits = jnp.dot(hfin, lmh_ref[...], preferred_element_type=jnp.float32)

    # --- pad-masked mean token cross-entropy ----------------------------------
    m = jnp.max(logits, axis=-1, keepdims=True)
    lse = jnp.log(jnp.sum(jnp.exp(logits - m), axis=-1, keepdims=True)) + m
    gold = jnp.sum(jnp.where(lane == lab, logits, 0.0), axis=-1, keepdims=True)
    valid = (lab != PAD_ID).astype(jnp.float32)   # HF-style: ignore pad labels
    loss_ref[0, 0] = jnp.sum((lse - gold) * valid) / jnp.maximum(
        jnp.sum(valid), 1.0)


# ----------------------------- params (glue) ----------------------------------
def _init_params(key):
    def dense(k, shape):
        return jax.random.normal(k, shape, jnp.float32) * 0.02

    keys = jax.random.split(key, 24)
    ki = iter(keys)
    ones = lambda: jnp.ones((1, D_MODEL), jnp.float32)

    embed = dense(next(ki), (VOCAB, D_MODEL))
    enc = (
        ones(),                                                              # ln1
        jnp.concatenate([dense(next(ki), (D_MODEL, D_MODEL))
                         for _ in range(3)], axis=1),                        # wqkv
        dense(next(ki), (D_MODEL, D_MODEL)),                                 # wo
        ones(),                                                              # ln2
        dense(next(ki), (D_MODEL, D_FF)),                                    # w1
        dense(next(ki), (D_FF, D_MODEL)),                                    # w2
        ones(),                                                              # ln_f
    )
    dec = (
        ones(),                                                              # ln1
        jnp.concatenate([dense(next(ki), (D_MODEL, D_MODEL))
                         for _ in range(3)], axis=1),                        # wqkv
        dense(next(ki), (D_MODEL, D_MODEL)),                                 # wo
        ones(),                                                              # ln2
        dense(next(ki), (D_MODEL, D_MODEL)),                                 # cq
        jnp.concatenate([dense(next(ki), (D_MODEL, D_MODEL))
                         for _ in range(2)], axis=1),                        # ckv
        dense(next(ki), (D_MODEL, D_MODEL)),                                 # co
        ones(),                                                              # ln3
        dense(next(ki), (D_MODEL, D_FF)),                                    # w1
        dense(next(ki), (D_FF, D_MODEL)),                                    # w2
        ones(),                                                              # ln_f
    )
    return {
        'embed': embed,
        # tied LM head: pre-transposed, T5 d_model**-0.5 scale folded in (hoisted)
        'lm_head': embed.T * (D_MODEL ** -0.5),
        'enc': enc,
        'dec': dec,
    }


# ----------------------------- forward (glue) ----------------------------------
@jax.jit
def generate_ids(params, input_ids):
    ids = pl.pallas_call(
        _generate_kernel,
        out_shape=jax.ShapeDtypeStruct((SEQ, 1), jnp.int32),
    )(input_ids[:, None].astype(jnp.int32), params['embed'],
      *params['enc'], *params['dec'], params['lm_head'])
    return ids[:, 0][None, 1:]                           # drop start token


@jax.jit
def seq2seq_loss(params, input_ids, labels):
    loss = pl.pallas_call(
        _loss_kernel,
        out_shape=jax.ShapeDtypeStruct((1, 1), jnp.float32),
    )(input_ids[:, None].astype(jnp.int32), labels[:, None].astype(jnp.int32),
      params['embed'], *params['enc'], *params['dec'], params['lm_head'])
    return loss[0, 0]


def text_decoder_forward(params, encoded_text, target_ids=None):
    """Mirrors TextDecoder.forward: returns generated ids if target is None,
    else the seq2seq cross-entropy loss."""
    input_ids = encoded_text[0]                          # batch=1
    if target_ids is None:
        return generate_ids(params, input_ids)
    return seq2seq_loss(params, input_ids, target_ids[0])


# --------------------------------- main ---------------------------------------
if __name__ == "__main__":
    key = jax.random.PRNGKey(0)
    params = _init_params(key)

    # analogue of `encoded_text = torch.tensor([[1, 2, 3, 4, 5]])`, padded to SEQ
    encoded_text = jnp.array([[1, 2, 3, 4, 5, 2, PAD_ID, PAD_ID]], jnp.int32)
    # analogue of tokenizer.encode('This is an example target text.')
    target_ids = jnp.array([[7, 11, 23, 42, 5, 9, 2, PAD_ID]], jnp.int32)

    # generation branch
    generated_ids = jax.block_until_ready(
        text_decoder_forward(params, encoded_text, None))

    # loss branch
    loss = jax.block_until_ready(
        text_decoder_forward(params, encoded_text, target_ids))

    assert generated_ids.shape == (1, SEQ - 1)
    assert bool(jnp.isfinite(loss))
    print("KERNEL_OK")
</pallas_src>

<mosaic_0001>
module attributes {stable_mosaic.version = 11 : i64} {
  func.func @_generate_kernel(%arg0: memref<8x1xi32, #tpu.memory_space<vmem>>, %arg1: memref<64x32xf32, #tpu.memory_space<vmem>>, %arg2: memref<1x32xf32, #tpu.memory_space<vmem>>, %arg3: memref<32x96xf32, #tpu.memory_space<vmem>>, %arg4: memref<32x32xf32, #tpu.memory_space<vmem>>, %arg5: memref<1x32xf32, #tpu.memory_space<vmem>>, %arg6: memref<32x64xf32, #tpu.memory_space<vmem>>, %arg7: memref<64x32xf32, #tpu.memory_space<vmem>>, %arg8: memref<1x32xf32, #tpu.memory_space<vmem>>, %arg9: memref<1x32xf32, #tpu.memory_space<vmem>>, %arg10: memref<32x96xf32, #tpu.memory_space<vmem>>, %arg11: memref<32x32xf32, #tpu.memory_space<vmem>>, %arg12: memref<1x32xf32, #tpu.memory_space<vmem>>, %arg13: memref<32x32xf32, #tpu.memory_space<vmem>>, %arg14: memref<32x64xf32, #tpu.memory_space<vmem>>, %arg15: memref<32x32xf32, #tpu.memory_space<vmem>>, %arg16: memref<1x32xf32, #tpu.memory_space<vmem>>, %arg17: memref<32x64xf32, #tpu.memory_space<vmem>>, %arg18: memref<64x32xf32, #tpu.memory_space<vmem>>, %arg19: memref<1x32xf32, #tpu.memory_space<vmem>>, %arg20: memref<32x64xf32, #tpu.memory_space<vmem>>, %arg21: memref<8x1xi32, #tpu.memory_space<vmem>>) attributes {dimension_semantics = [], scalar_prefetch = 0 : i64, scratch_operands = 0 : i64, tpu.core_type = #tpu.core_type<tc>} {
    %c0 = arith.constant 0 : index
    %c0_0 = arith.constant 0 : index
    %0 = vector.load %arg1[%c0, %c0_0] : memref<64x32xf32, #tpu.memory_space<vmem>>, vector<64x32xf32>
    %1 = tpu.iota {dimensions = array<i32: 1>} : vector<8x64xi32>
    %2 = tpu.iota {dimensions = array<i32: 0>} : vector<8x64xi32>
    %3 = tpu.iota {dimensions = array<i32: 1>} : vector<1x64xi32>
    %c0_1 = arith.constant 0 : index
    %c0_2 = arith.constant 0 : index
    %4 = vector.load %arg0[%c0_1, %c0_2] : memref<8x1xi32, #tpu.memory_space<vmem>>, vector<8x1xi32>
    %5 = vector.broadcast %4 : vector<8x1xi32> to vector<8x64xi32>
    %6 = arith.cmpi eq, %1, %5 : vector<8x64xi32>
    %7 = arith.extui %6 : vector<8x64xi1> to vector<8x64xi32>
    %8 = arith.sitofp %7 : vector<8x64xi32> to vector<8x64xf32>
    %cst = arith.constant dense<0.000000e+00> : vector<8x32xf32>
    %9 = tpu.matmul %8, %0, %cst {dimension_numbers = #tpu.dot_dimension_numbers<[1], [0], [0], [1], [0, 0, 1, 1], [], []>} : vector<8x64xf32>, vector<64x32xf32>, vector<8x32xf32> -> vector<8x32xf32>
    %c0_3 = arith.constant 0 : index
    %c0_4 = arith.constant 0 : index
    %10 = vector.load %arg2[%c0_3, %c0_4] : memref<1x32xf32, #tpu.memory_space<vmem>>, vector<1x32xf32>
    %c0_5 = arith.constant 0 : index
    %c0_6 = arith.constant 0 : index
    %11 = vector.load %arg3[%c0_5, %c0_6] : memref<32x96xf32, #tpu.memory_space<vmem>>, vector<32x96xf32>
    %c0_7 = arith.constant 0 : index
    %c0_8 = arith.constant 0 : index
    %12 = vector.load %arg4[%c0_7, %c0_8] : memref<32x32xf32, #tpu.memory_space<vmem>>, vector<32x32xf32>
    %c0_9 = arith.constant 0 : index
    %c0_10 = arith.constant 0 : index
    %13 = vector.load %arg5[%c0_9, %c0_10] : memref<1x32xf32, #tpu.memory_space<vmem>>, vector<1x32xf32>
    %c0_11 = arith.constant 0 : index
    %c0_12 = arith.constant 0 : index
    %14 = vector.load %arg6[%c0_11, %c0_12] : memref<32x64xf32, #tpu.memory_space<vmem>>, vector<32x64xf32>
    %c0_13 = arith.constant 0 : index
    %c0_14 = arith.constant 0 : index
    %15 = vector.load %arg7[%c0_13, %c0_14] : memref<64x32xf32, #tpu.memory_space<vmem>>, vector<64x32xf32>
    %c0_15 = arith.constant 0 : index
    %c0_16 = arith.constant 0 : index
    %16 = vector.load %arg8[%c0_15, %c0_16] : memref<1x32xf32, #tpu.memory_space<vmem>>, vector<1x32xf32>
    %17 = arith.mulf %9, %9 : vector<8x32xf32>
    %cst_17 = arith.constant dense<0.000000e+00> : vector<8xf32>
    %18 = vector.multi_reduction <add>, %17, %cst_17 [1] : vector<8x32xf32> to vector<8xf32>
    %19 = vector.shape_cast %18 : vector<8xf32> to vector<8x1xf32>
    %cst_18 = arith.constant 3.200000e+01 : f32
    %20 = vector.broadcast %cst_18 : f32 to vector<8x1xf32>
    %21 = arith.divf %19, %20 : vector<8x1xf32>
    %cst_19 = arith.constant 9.99999997E-7 : f32
    %22 = vector.broadcast %cst_19 : f32 to vector<8x1xf32>
    %23 = arith.addf %21, %22 : vector<8x1xf32>
    %24 = math.rsqrt %23 : vector<8x1xf32>
    %25 = vector.broadcast %24 : vector<8x1xf32> to vector<8x32xf32>
    %26 = arith.mulf %9, %25 : vector<8x32xf32>
    %27 = vector.broadcast %10 : vector<1x32xf32> to vector<8x32xf32>
    %28 = arith.mulf %26, %27 : vector<8x32xf32>
    %cst_20 = arith.constant dense<0.000000e+00> : vector<8x96xf32>
    %29 = tpu.matmul %28, %11, %cst_20 {dimension_numbers = #tpu.dot_dimension_numbers<[1], [0], [0], [1], [0, 0, 1, 1], [], []>} : vector<8x32xf32>, vector<32x96xf32>, vector<8x96xf32> -> vector<8x96xf32>
    %30 = vector.extract_strided_slice %29 {offsets = [0, 0], sizes = [8, 32], strides = [1, 1]} : vector<8x96xf32> to vector<8x32xf32>
    %31 = vector.extract_strided_slice %29 {offsets = [0, 32], sizes = [8, 32], strides = [1, 1]} : vector<8x96xf32> to vector<8x32xf32>
    %32 = vector.extract_strided_slice %29 {offsets = [0, 64], sizes = [8, 32], strides = [1, 1]} : vector<8x96xf32> to vector<8x32xf32>
    %33 = vector.extract_strided_slice %30 {offsets = [0, 0], sizes = [8, 16], strides = [1, 1]} : vector<8x32xf32> to vector<8x16xf32>
    %34 = vector.extract_strided_slice %31 {offsets = [0, 0], sizes = [8, 16], strides = [1, 1]} : vector<8x32xf32> to vector<8x16xf32>
    %35 = vector.extract_strided_slice %32 {offsets = [0, 0], sizes = [8, 16], strides = [1, 1]} : vector<8x32xf32> to vector<8x16xf32>
    %cst_21 = arith.constant dense<0.000000e+00> : vector<8x8xf32>
    %36 = tpu.matmul %33, %34, %cst_21 {dimension_numbers = #tpu.dot_dimension_numbers<[1], [1], [0], [0], [0, 0, 1, 0], [], []>} : vector<8x16xf32>, vector<8x16xf32>, vector<8x8xf32> -> vector<8x8xf32>
    %cst_22 = arith.constant dense<0xFF800000> : vector<8xf32>
    %37 = vector.multi_reduction <maximumf>, %36, %cst_22 [1] : vector<8x8xf32> to vector<8xf32>
    %38 = vector.shape_cast %37 : vector<8xf32> to vector<8x1xf32>
    %39 = vector.broadcast %38 : vector<8x1xf32> to vector<8x8xf32>
    %40 = arith.subf %36, %39 : vector<8x8xf32>
    %41 = math.exp %40 : vector<8x8xf32>
    %cst_23 = arith.constant dense<0.000000e+00> : vector<8xf32>
    %42 = vector.multi_reduction <add>, %41, %cst_23 [1] : vector<8x8xf32> to vector<8xf32>
    %43 = vector.shape_cast %42 : vector<8xf32> to vector<8x1xf32>
    %44 = tpu.reciprocal %43 {approx = true} : vector<8x1xf32> -> vector<8x1xf32>
    %45 = vector.broadcast %44 : vector<8x1xf32> to vector<8x8xf32>
    %46 = arith.mulf %41, %45 : vector<8x8xf32>
    %cst_24 = arith.constant dense<0.000000e+00> : vector<8x16xf32>
    %47 = tpu.matmul %46, %35, %cst_24 {dimension_numbers = #tpu.dot_dimension_numbers<[1], [0], [0], [1], [0, 0, 1, 1], [], []>} : vector<8x8xf32>, vector<8x16xf32>, vector<8x16xf32> -> vector<8x16xf32>
    %48 = vector.extract_strided_slice %30 {offsets = [0, 16], sizes = [8, 16], strides = [1, 1]} : vector<8x32xf32> to vector<8x16xf32>
    %49 = vector.extract_strided_slice %31 {offsets = [0, 16], sizes = [8, 16], strides = [1, 1]} : vector<8x32xf32> to vector<8x16xf32>
    %50 = vector.extract_strided_slice %32 {offsets = [0, 16], sizes = [8, 16], strides = [1, 1]} : vector<8x32xf32> to vector<8x16xf32>
    %cst_25 = arith.constant dense<0.000000e+00> : vector<8x8xf32>
    %51 = tpu.matmul %48, %49, %cst_25 {dimension_numbers = #tpu.dot_dimension_numbers<[1], [1], [0], [0], [0, 0, 1, 0], [], []>} : vector<8x16xf32>, vector<8x16xf32>, vector<8x8xf32> -> vector<8x8xf32>
    %cst_26 = arith.constant dense<0xFF800000> : vector<8xf32>
    %52 = vector.multi_reduction <maximumf>, %51, %cst_26 [1] : vector<8x8xf32> to vector<8xf32>
    %53 = vector.shape_cast %52 : vector<8xf32> to vector<8x1xf32>
    %54 = vector.broadcast %53 : vector<8x1xf32> to vector<8x8xf32>
    %55 = arith.subf %51, %54 : vector<8x8xf32>
    %56 = math.exp %55 : vector<8x8xf32>
    %cst_27 = arith.constant dense<0.000000e+00> : vector<8xf32>
    %57 = vector.multi_reduction <add>, %56, %cst_27 [1] : vector<8x8xf32> to vector<8xf32>
    %58 = vector.shape_cast %57 : vector<8xf32> to vector<8x1xf32>
    %59 = tpu.reciprocal %58 {approx = true} : vector<8x1xf32> -> vector<8x1xf32>
    %60 = vector.broadcast %59 : vector<8x1xf32> to vector<8x8xf32>
    %61 = arith.mulf %56, %60 : vector<8x8xf32>
    %cst_28 = arith.constant dense<0.000000e+00> : vector<8x16xf32>
    %62 = tpu.matmul %61, %50, %cst_28 {dimension_numbers = #tpu.dot_dimension_numbers<[1], [0], [0], [1], [0, 0, 1, 1], [], []>} : vector<8x8xf32>, vector<8x16xf32>, vector<8x16xf32> -> vector<8x16xf32>
    %63 = tpu.concatenate %47, %62 in 1 : vector<8x16xf32>, vector<8x16xf32> -> vector<8x32xf32>
    %cst_29 = arith.constant dense<0.000000e+00> : vector<8x32xf32>
    %64 = tpu.matmul %63, %12, %cst_29 {dimension_numbers = #tpu.dot_dimension_numbers<[1], [0], [0], [1], [0, 0, 1, 1], [], []>} : vector<8x32xf32>, vector<32x32xf32>, vector<8x32xf32> -> vector<8x32xf32>
    %65 = arith.addf %9, %64 : vector<8x32xf32>
    %66 = arith.mulf %65, %65 : vector<8x32xf32>
    %cst_30 = arith.constant dense<0.000000e+00> : vector<8xf32>
    %67 = vector.multi_reduction <add>, %66, %cst_30 [1] : vector<8x32xf32> to vector<8xf32>
    %68 = vector.shape_cast %67 : vector<8xf32> to vector<8x1xf32>
    %cst_31 = arith.constant 3.200000e+01 : f32
    %69 = vector.broadcast %cst_31 : f32 to vector<8x1xf32>
    %70 = arith.divf %68, %69 : vector<8x1xf32>
    %cst_32 = arith.constant 9.99999997E-7 : f32
    %71 = vector.broadcast %cst_32 : f32 to vector<8x1xf32>
    %72 = arith.addf %70, %71 : vector<8x1xf32>
    %73 = math.rsqrt %72 : vector<8x1xf32>
    %74 = vector.broadcast %73 : vector<8x1xf32> to vector<8x32xf32>
    %75 = arith.mulf %65, %74 : vector<8x32xf32>
    %76 = vector.broadcast %13 : vector<1x32xf32> to vector<8x32xf32>
    %77 = arith.mulf %75, %76 : vector<8x32xf32>
    %cst_33 = arith.constant dense<0.000000e+00> : vector<8x64xf32>
    %78 = tpu.matmul %77, %14, %cst_33 {dimension_numbers = #tpu.dot_dimension_numbers<[1], [0], [0], [1], [0, 0, 1, 1], [], []>} : vector<8x32xf32>, vector<32x64xf32>, vector<8x64xf32> -> vector<8x64xf32>
    %cst_34 = arith.constant 0.000000e+00 : f32
    %79 = vector.broadcast %cst_34 : f32 to vector<8x64xf32>
    %80 = arith.maximumf %78, %79 : vector<8x64xf32>
    %cst_35 = arith.constant dense<0.000000e+00> : vector<8x32xf32>
    %81 = tpu.matmul %80, %15, %cst_35 {dimension_numbers = #tpu.dot_dimension_numbers<[1], [0], [0], [1], [0, 0, 1, 1], [], []>} : vector<8x64xf32>, vector<64x32xf32>, vector<8x32xf32> -> vector<8x32xf32>
    %82 = arith.addf %65, %81 : vector<8x32xf32>
    %83 = arith.mulf %82, %82 : vector<8x32xf32>
    %cst_36 = arith.constant dense<0.000000e+00> : vector<8xf32>
    %84 = vector.multi_reduction <add>, %83, %cst_36 [1] : vector<8x32xf32> to vector<8xf32>
    %85 = vector.shape_cast %84 : vector<8xf32> to vector<8x1xf32>
    %cst_37 = arith.constant 3.200000e+01 : f32
    %86 = vector.broadcast %cst_37 : f32 to vector<8x1xf32>
    %87 = arith.divf %85, %86 : vector<8x1xf32>
    %cst_38 = arith.constant 9.99999997E-7 : f32
    %88 = vector.broadcast %cst_38 : f32 to vector<8x1xf32>
    %89 = arith.addf %87, %88 : vector<8x1xf32>
    %90 = math.rsqrt %89 : vector<8x1xf32>
    %91 = vector.broadcast %90 : vector<8x1xf32> to vector<8x32xf32>
    %92 = arith.mulf %82, %91 : vector<8x32xf32>
    %93 = vector.broadcast %16 : vector<1x32xf32> to vector<8x32xf32>
    %94 = arith.mulf %92, %93 : vector<8x32xf32>
    %c0_39 = arith.constant 0 : index
    %c0_40 = arith.constant 0 : index
    %95 = vector.load %arg14[%c0_39, %c0_40] : memref<32x64xf32, #tpu.memory_space<vmem>>, vector<32x64xf32>
    %cst_41 = arith.constant dense<0.000000e+00> : vector<8x64xf32>
    %96 = tpu.matmul %94, %95, %cst_41 {dimension_numbers = #tpu.dot_dimension_numbers<[1], [0], [0], [1], [0, 0, 1, 1], [], []>} : vector<8x32xf32>, vector<32x64xf32>, vector<8x64xf32> -> vector<8x64xf32>
    %97 = vector.extract_strided_slice %96 {offsets = [0, 0], sizes = [8, 32], strides = [1, 1]} : vector<8x64xf32> to vector<8x32xf32>
    %98 = vector.extract_strided_slice %96 {offsets = [0, 32], sizes = [8, 32], strides = [1, 1]} : vector<8x64xf32> to vector<8x32xf32>
    %c0_42 = arith.constant 0 : index
    %c0_43 = arith.constant 0 : index
    %99 = vector.load %arg9[%c0_42, %c0_43] : memref<1x32xf32, #tpu.memory_space<vmem>>, vector<1x32xf32>
    %c0_44 = arith.constant 0 : index
    %c0_45 = arith.constant 0 : index
    %100 = vector.load %arg10[%c0_44, %c0_45] : memref<32x96xf32, #tpu.memory_space<vmem>>, vector<32x96xf32>
    %c0_46 = arith.constant 0 : index
    %c0_47 = arith.constant 0 : index
    %101 = vector.load %arg11[%c0_46, %c0_47] : memref<32x32xf32, #tpu.memory_space<vmem>>, vector<32x32xf32>
    %c0_48 = arith.constant 0 : index
    %c0_49 = arith.constant 0 : index
    %102 = vector.load %arg12[%c0_48, %c0_49] : memref<1x32xf32, #tpu.memory_space<vmem>>, vector<1x32xf32>
    %c0_50 = arith.constant 0 : index
    %c0_51 = arith.constant 0 : index
    %103 = vector.load %arg13[%c0_50, %c0_51] : memref<32x32xf32, #tpu.memory_space<vmem>>, vector<32x32xf32>
    %c0_52 = arith.constant 0 : index
    %c0_53 = arith.constant 0 : index
    %104 = vector.load %arg15[%c0_52, %c0_53] : memref<32x32xf32, #tpu.memory_space<vmem>>, vector<32x32xf32>
    %c0_54 = arith.constant 0 : index
    %c0_55 = arith.constant 0 : index
    %105 = vector.load %arg16[%c0_54, %c0_55] : memref<1x32xf32, #tpu.memory_space<vmem>>, vector<1x32xf32>
    %c0_56 = arith.constant 0 : index
    %c0_57 = arith.constant 0 : index
    %106 = vector.load %arg17[%c0_56, %c0_57] : memref<32x64xf32, #tpu.memory_space<vmem>>, vector<32x64xf32>
    %c0_58 = arith.constant 0 : index
    %c0_59 = arith.constant 0 : index
    %107 = vector.load %arg18[%c0_58, %c0_59] : memref<64x32xf32, #tpu.memory_space<vmem>>, vector<64x32xf32>
    %c0_60 = arith.constant 0 : index
    %c0_61 = arith.constant 0 : index
    %108 = vector.load %arg19[%c0_60, %c0_61] : memref<1x32xf32, #tpu.memory_space<vmem>>, vector<1x32xf32>
    %c0_62 = arith.constant 0 : index
    %c0_63 = arith.constant 0 : index
    %109 = vector.load %arg20[%c0_62, %c0_63] : memref<32x64xf32, #tpu.memory_space<vmem>>, vector<32x64xf32>
    %110 = tpu.iota {dimensions = array<i32: 0>} : vector<8x8xi32>
    %111 = tpu.iota {dimensions = array<i32: 1>} : vector<8x8xi32>
    %112 = arith.cmpi sle, %111, %110 : vector<8x8xi32>
    %cst_64 = arith.constant 0.000000e+00 : f32
    %cst_65 = arith.constant -1.000000e+09 : f32
    %113 = vector.broadcast %cst_64 : f32 to vector<8x8xf32>
    %114 = vector.broadcast %cst_65 : f32 to vector<8x8xf32>
    %115 = arith.select %112, %113, %114 : vector<8x8xi1>, vector<8x8xf32>
    %c0_i32 = arith.constant 0 : i32
    %116 = vector.broadcast %c0_i32 : i32 to vector<8x64xi32>
    %117 = arith.cmpi eq, %1, %116 : vector<8x64xi32>
    %118 = arith.extui %117 : vector<8x64xi1> to vector<8x64xi32>
    %119 = arith.sitofp %118 : vector<8x64xi32> to vector<8x64xf32>
    %c0_i32_66 = arith.constant 0 : i32
    %cst_67 = arith.constant dense<0.000000e+00> : vector<8x32xf32>
    %120 = tpu.matmul %119, %0, %cst_67 {dimension_numbers = #tpu.dot_dimension_numbers<[1], [0], [0], [1], [0, 0, 1, 1], [], []>} : vector<8x64xf32>, vector<64x32xf32>, vector<8x32xf32> -> vector<8x32xf32>
    %121 = arith.mulf %120, %120 : vector<8x32xf32>
    %cst_68 = arith.constant dense<0.000000e+00> : vector<8xf32>
    %122 = vector.multi_reduction <add>, %121, %cst_68 [1] : vector<8x32xf32> to vector<8xf32>
    %123 = vector.shape_cast %122 : vector<8xf32> to vector<8x1xf32>
    %cst_69 = arith.constant 3.200000e+01 : f32
    %124 = vector.broadcast %cst_69 : f32 to vector<8x1xf32>
    %125 = arith.divf %123, %124 : vector<8x1xf32>
    %cst_70 = arith.constant 9.99999997E-7 : f32
    %126 = vector.broadcast %cst_70 : f32 to vector<8x1xf32>
    %127 = arith.addf %125, %126 : vector<8x1xf32>
    %128 = math.rsqrt %127 : vector<8x1xf32>
    %129 = vector.broadcast %128 : vector<8x1xf32> to vector<8x32xf32>
    %130 = arith.mulf %120, %129 : vector<8x32xf32>
    %131 = vector.broadcast %99 : vector<1x32xf32> to vector<8x32xf32>
    %132 = arith.mulf %130, %131 : vector<8x32xf32>
    %cst_71 = arith.constant dense<0.000000e+00> : vector<8x96xf32>
    %133 = tpu.matmul %132, %100, %cst_71 {dimension_numbers = #tpu.dot_dimension_numbers<[1], [0], [0], [1], [0, 0, 1, 1], [], []>} : vector<8x32xf32>, vector<32x96xf32>, vector<8x96xf32> -> vector<8x96xf32>
    %134 = vector.extract_strided_slice %133 {offsets = [0, 0], sizes = [8, 32], strides = [1, 1]} : vector<8x96xf32> to vector<8x32xf32>
    %135 = vector.extract_strided_slice %133 {offsets = [0, 32], sizes = [8, 32], strides = [1, 1]} : vector<8x96xf32> to vector<8x32xf32>
    %136 = vector.extract_strided_slice %133 {offsets = [0, 64], sizes = [8, 32], strides = [1, 1]} : vector<8x96xf32> to vector<8x32xf32>
    %137 = vector.extract_strided_slice %134 {offsets = [0, 0], sizes = [8, 16], strides = [1, 1]} : vector<8x32xf32> to vector<8x16xf32>
    %138 = vector.extract_strided_slice %135 {offsets = [0, 0], sizes = [8, 16], strides = [1, 1]} : vector<8x32xf32> to vector<8x16xf32>
    %139 = vector.extract_strided_slice %136 {offsets = [0, 0], sizes = [8, 16], strides = [1, 1]} : vector<8x32xf32> to vector<8x16xf32>
    %cst_72 = arith.constant dense<0.000000e+00> : vector<8x8xf32>
    %140 = tpu.matmul %137, %138, %cst_72 {dimension_numbers = #tpu.dot_dimension_numbers<[1], [1], [0], [0], [0, 0, 1, 0], [], []>} : vector<8x16xf32>, vector<8x16xf32>, vector<8x8xf32> -> vector<8x8xf32>
    %141 = arith.addf %140, %115 : vector<8x8xf32>
    %cst_73 = arith.constant dense<0xFF800000> : vector<8xf32>
    %142 = vector.multi_reduction <maximumf>, %141, %cst_73 [1] : vector<8x8xf32> to vector<8xf32>
    %143 = vector.shape_cast %142 : vector<8xf32> to vector<8x1xf32>
    %144 = vector.broadcast %143 : vector<8x1xf32> to vector<8x8xf32>
    %145 = arith.subf %141, %144 : vector<8x8xf32>
    %146 = math.exp %145 : vector<8x8xf32>
    %cst_74 = arith.constant dense<0.000000e+00> : vector<8xf32>
    %147 = vector.multi_reduction <add>, %146, %cst_74 [1] : vector<8x8xf32> to vector<8xf32>
    %148 = vector.shape_cast %147 : vector<8xf32> to vector<8x1xf32>
    %149 = tpu.reciprocal %148 {approx = true} : vector<8x1xf32> -> vector<8x1xf32>
    %150 = vector.broadcast %149 : vector<8x1xf32> to vector<8x8xf32>
    %151 = arith.mulf %146, %150 : vector<8x8xf32>
    %cst_75 = arith.constant dense<0.000000e+00> : vector<8x16xf32>
    %152 = tpu.matmul %151, %139, %cst_75 {dimension_numbers = #tpu.dot_dimension_numbers<[1], [0], [0], [1], [0, 0, 1, 1], [], []>} : vector<8x8xf32>, vector<8x16xf32>, vector<8x16xf32> -> vector<8x16xf32>
    %153 = vector.extract_strided_slice %134 {offsets = [0, 16], sizes = [8, 16], strides = [1, 1]} : vector<8x32xf32> to vector<8x16xf32>
    %154 = vector.extract_strided_slice %135 {offsets = [0, 16], sizes = [8, 16], strides = [1, 1]} : vector<8x32xf32> to vector<8x16xf32>
    %155 = vector.extract_strided_slice %136 {offsets = [0, 16], sizes = [8, 16], strides = [1, 1]} : vector<8x32xf32> to vector<8x16xf32>
    %cst_76 = arith.constant dense<0.000000e+00> : vector<8x8xf32>
    %156 = tpu.matmul %153, %154, %cst_76 {dimension_numbers = #tpu.dot_dimension_numbers<[1], [1], [0], [0], [0, 0, 1, 0], [], []>} : vector<8x16xf32>, vector<8x16xf32>, vector<8x8xf32> -> vector<8x8xf32>
    %157 = arith.addf %156, %115 : vector<8x8xf32>
    %cst_77 = arith.constant dense<0xFF800000> : vector<8xf32>
    %158 = vector.multi_reduction <maximumf>, %157, %cst_77 [1] : vector<8x8xf32> to vector<8xf32>
    %159 = vector.shape_cast %158 : vector<8xf32> to vector<8x1xf32>
    %160 = vector.broadcast %159 : vector<8x1xf32> to vector<8x8xf32>
    %161 = arith.subf %157, %160 : vector<8x8xf32>
    %162 = math.exp %161 : vector<8x8xf32>
    %cst_78 = arith.constant dense<0.000000e+00> : vector<8xf32>
    %163 = vector.multi_reduction <add>, %162, %cst_78 [1] : vector<8x8xf32> to vector<8xf32>
    %164 = vector.shape_cast %163 : vector<8xf32> to vector<8x1xf32>
    %165 = tpu.reciprocal %164 {approx = true} : vector<8x1xf32> -> vector<8x1xf32>
    %166 = vector.broadcast %165 : vector<8x1xf32> to vector<8x8xf32>
    %167 = arith.mulf %162, %166 : vector<8x8xf32>
    %cst_79 = arith.constant dense<0.000000e+00> : vector<8x16xf32>
    %168 = tpu.matmul %167, %155, %cst_79 {dimension_numbers = #tpu.dot_dimension_numbers<[1], [0], [0], [1], [0, 0, 1, 1], [], []>} : vector<8x8xf32>, vector<8x16xf32>, vector<8x16xf32> -> vector<8x16xf32>
    %169 = tpu.concatenate %152, %168 in 1 : vector<8x16xf32>, vector<8x16xf32> -> vector<8x32xf32>
    %cst_80 = arith.constant dense<0.000000e+00> : vector<8x32xf32>
    %170 = tpu.matmul %169, %101, %cst_80 {dimension_numbers = #tpu.dot_dimension_numbers<[1], [0], [0], [1], [0, 0, 1, 1], [], []>} : vector<8x32xf32>, vector<32x32xf32>, vector<8x32xf32> -> vector<8x32xf32>
    %171 = arith.addf %120, %170 : vector<8x32xf32>
    %172 = arith.mulf %171, %171 : vector<8x32xf32>
    %cst_81 = arith.constant dense<0.000000e+00> : vector<8xf32>
    %173 = vector.multi_reduction <add>, %172, %cst_81 [1] : vector<8x32xf32> to vector<8xf32>
    %174 = vector.shape_cast %173 : vector<8xf32> to vector<8x1xf32>
    %cst_82 = arith.constant 3.200000e+01 : f32
    %175 = vector.broadcast %cst_82 : f32 to vector<8x1xf32>
    %176 = arith.divf %174, %175 : vector<8x1xf32>
    %cst_83 = arith.constant 9.99999997E-7 : f32
    %177 = vector.broadcast %cst_83 : f32 to vector<8x1xf32>
    %178 = arith.addf %176, %177 : vector<8x1xf32>
    %179 = math.rsqrt %178 : vector<8x1xf32>
    %180 = vector.broadcast %179 : vector<8x1xf32> to vector<8x32xf32>
    %181 = arith.mulf %171, %180 : vector<8x32xf32>
    %182 = vector.broadcast %102 : vector<1x32xf32> to vector<8x32xf32>
    %183 = arith.mulf %181, %182 : vector<8x32xf32>
    %cst_84 = arith.constant dense<0.000000e+00> : vector<8x32xf32>
    %184 = tpu.matmul %183, %103, %cst_84 {dimension_numbers = #tpu.dot_dimension_numbers<[1], [0], [0], [1], [0, 0, 1, 1], [], []>} : vector<8x32xf32>, vector<32x32xf32>, vector<8x32xf32> -> vector<8x32xf32>
    %185 = vector.extract_strided_slice %184 {offsets = [0, 0], sizes = [8, 16], strides = [1, 1]} : vector<8x32xf32> to vector<8x16xf32>
    %186 = vector.extract_strided_slice %97 {offsets = [0, 0], sizes = [8, 16], strides = [1, 1]} : vector<8x32xf32> to vector<8x16xf32>
    %187 = vector.extract_strided_slice %98 {offsets = [0, 0], sizes = [8, 16], strides = [1, 1]} : vector<8x32xf32> to vector<8x16xf32>
    %cst_85 = arith.constant dense<0.000000e+00> : vector<8x8xf32>
    %188 = tpu.matmul %185, %186, %cst_85 {dimension_numbers = #tpu.dot_dimension_numbers<[1], [1], [0], [0], [0, 0, 1, 0], [], []>} : vector<8x16xf32>, vector<8x16xf32>, vector<8x8xf32> -> vector<8x8xf32>
    %cst_86 = arith.constant dense<0xFF800000> : vector<8xf32>
    %189 = vector.multi_reduction <maximumf>, %188, %cst_86 [1] : vector<8x8xf32> to vector<8xf32>
    %190 = vector.shape_cast %189 : vector<8xf32> to vector<8x1xf32>
    %191 = vector.broadcast %190 : vector<8x1xf32> to vector<8x8xf32>
    %192 = arith.subf %188, %191 : vector<8x8xf32>
    %193 = math.exp %192 : vector<8x8xf32>
    %cst_87 = arith.constant dense<0.000000e+00> : vector<8xf32>
    %194 = vector.multi_reduction <add>, %193, %cst_87 [1] : vector<8x8xf32> to vector<8xf32>
    %195 = vector.shape_cast %194 : vector<8xf32> to vector<8x1xf32>
    %196 = tpu.reciprocal %195 {approx = true} : vector<8x1xf32> -> vector<8x1xf32>
    %197 = vector.broadcast %196 : vector<8x1xf32> to vector<8x8xf32>
    %198 = arith.mulf %193, %197 : vector<8x8xf32>
    %cst_88 = arith.constant dense<0.000000e+00> : vector<8x16xf32>
    %199 = tpu.matmul %198, %187, %cst_88 {dimension_numbers = #tpu.dot_dimension_numbers<[1], [0], [0], [1], [0, 0, 1, 1], [], []>} : vector<8x8xf32>, vector<8x16xf32>, vector<8x16xf32> -> vector<8x16xf32>
    %200 = vector.extract_strided_slice %184 {offsets = [0, 16], sizes = [8, 16], strides = [1, 1]} : vector<8x32xf32> to vector<8x16xf32>
    %201 = vector.extract_strided_slice %97 {offsets = [0, 16], sizes = [8, 16], strides = [1, 1]} : vector<8x32xf32> to vector<8x16xf32>
    %202 = vector.extract_strided_slice %98 {offsets = [0, 16], sizes = [8, 16], strides = [1, 1]} : vector<8x32xf32> to vector<8x16xf32>
    %cst_89 = arith.constant dense<0.000000e+00> : vector<8x8xf32>
    %203 = tpu.matmul %200, %201, %cst_89 {dimension_numbers = #tpu.dot_dimension_numbers<[1], [1], [0], [0], [0, 0, 1, 0], [], []>} : vector<8x16xf32>, vector<8x16xf32>, vector<8x8xf32> -> vector<8x8xf32>
    %cst_90 = arith.constant dense<0xFF800000> : vector<8xf32>
    %204 = vector.multi_reduction <maximumf>, %203, %cst_90 [1] : vector<8x8xf32> to vector<8xf32>
    %205 = vector.shape_cast %204 : vector<8xf32> to vector<8x1xf32>
    %206 = vector.broadcast %205 : vector<8x1xf32> to vector<8x8xf32>
    %207 = arith.subf %203, %206 : vector<8x8xf32>
    %208 = math.exp %207 : vector<8x8xf32>
    %cst_91 = arith.constant dense<0.000000e+00> : vector<8xf32>
    %209 = vector.multi_reduction <add>, %208, %cst_91 [1] : vector<8x8xf32> to vector<8xf32>
    %210 = vector.shape_cast %209 : vector<8xf32> to vector<8x1xf32>
    %211 = tpu.reciprocal %210 {approx = true} : vector<8x1xf32> -> vector<8x1xf32>
    %212 = vector.broadcast %211 : vector<8x1xf32> to vector<8x8xf32>
    %213 = arith.mulf %208, %212 : vector<8x8xf32>
    %cst_92 = arith.constant dense<0.000000e+00> : vector<8x16xf32>
    %214 = tpu.matmul %213, %202, %cst_92 {dimension_numbers = #tpu.dot_dimension_numbers<[1], [0], [0], [1], [0, 0, 1, 1], [], []>} : vector<8x8xf32>, vector<8x16xf32>, vector<8x16xf32> -> vector<8x16xf32>
    %215 = tpu.concatenate %199, %214 in 1 : vector<8x16xf32>, vector<8x16xf32> -> vector<8x32xf32>
    %cst_93 = arith.constant dense<0.000000e+00> : vector<8x32xf32>
    %216 = tpu.matmul %215, %104, %cst_93 {dimension_numbers = #tpu.dot_dimension_numbers<[1], [0], [0], [1], [0, 0, 1, 1], [], []>} : vector<8x32xf32>, vector<32x32xf32>, vector<8x32xf32> -> vector<8x32xf32>
    %217 = arith.addf %171, %216 : vector<8x32xf32>
    %218 = arith.mulf %217, %217 : vector<8x32xf32>
    %cst_94 = arith.constant dense<0.000000e+00> : vector<8xf32>
    %219 = vector.multi_reduction <add>, %218, %cst_94 [1] : vector<8x32xf32> to vector<8xf32>
    %220 = vector.shape_cast %219 : vector<8xf32> to vector<8x1xf32>
    %cst_95 = arith.constant 3.200000e+01 : f32
    %221 = vector.broadcast %cst_95 : f32 to vector<8x1xf32>
    %222 = arith.divf %220, %221 : vector<8x1xf32>
    %cst_96 = arith.constant 9.99999997E-7 : f32
    %223 = vector.broadcast %cst_96 : f32 to vector<8x1xf32>
    %224 = arith.addf %222, %223 : vector<8x1xf32>
    %225 = math.rsqrt %224 : vector<8x1xf32>
    %226 = vector.broadcast %225 : vector<8x1xf32> to vector<8x32xf32>
    %227 = arith.mulf %217, %226 : vector<8x32xf32>
    %228 = vector.broadcast %105 : vector<1x32xf32> to vector<8x32xf32>
    %229 = arith.mulf %227, %228 : vector<8x32xf32>
    %cst_97 = arith.constant dense<0.000000e+00> : vector<8x64xf32>
    %230 = tpu.matmul %229, %106, %cst_97 {dimension_numbers = #tpu.dot_dimension_numbers<[1], [0], [0], [1], [0, 0, 1, 1], [], []>} : vector<8x32xf32>, vector<32x64xf32>, vector<8x64xf32> -> vector<8x64xf32>
    %cst_98 = arith.constant 0.000000e+00 : f32
    %231 = vector.broadcast %cst_98 : f32 to vector<8x64xf32>
    %232 = arith.maximumf %230, %231 : vector<8x64xf32>
    %cst_99 = arith.constant dense<0.000000e+00> : vector<8x32xf32>
    %233 = tpu.matmul %232, %107, %cst_99 {dimension_numbers = #tpu.dot_dimension_numbers<[1], [0], [0], [1], [0, 0, 1, 1], [], []>} : vector<8x64xf32>, vector<64x32xf32>, vector<8x32xf32> -> vector<8x32xf32>
    %234 = arith.addf %217, %233 : vector<8x32xf32>
    %235 = arith.mulf %234, %234 : vector<8x32xf32>
    %cst_100 = arith.constant dense<0.000000e+00> : vector<8xf32>
    %236 = vector.multi_reduction <add>, %235, %cst_100 [1] : vector<8x32xf32> to vector<8xf32>
    %237 = vector.shape_cast %236 : vector<8xf32> to vector<8x1xf32>
    %cst_101 = arith.constant 3.200000e+01 : f32
    %238 = vector.broadcast %cst_101 : f32 to vector<8x1xf32>
    %239 = arith.divf %237, %238 : vector<8x1xf32>
    %cst_102 = arith.constant 9.99999997E-7 : f32
    %240 = vector.broadcast %cst_102 : f32 to vector<8x1xf32>
    %241 = arith.addf %239, %240 : vector<8x1xf32>
    %242 = math.rsqrt %241 : vector<8x1xf32>
    %243 = vector.broadcast %242 : vector<8x1xf32> to vector<8x32xf32>
    %244 = arith.mulf %234, %243 : vector<8x32xf32>
    %245 = vector.broadcast %108 : vector<1x32xf32> to vector<8x32xf32>
    %246 = arith.mulf %244, %245 : vector<8x32xf32>
    %cst_103 = arith.constant dense<0.000000e+00> : vector<8x64xf32>
    %247 = tpu.matmul %246, %109, %cst_103 {dimension_numbers = #tpu.dot_dimension_numbers<[1], [0], [0], [1], [0, 0, 1, 1], [], []>} : vector<8x32xf32>, vector<32x64xf32>, vector<8x64xf32> -> vector<8x64xf32>
    %248 = vector.broadcast %c0_i32_66 : i32 to vector<8x64xi32>
    %249 = arith.cmpi eq, %2, %248 : vector<8x64xi32>
    %cst_104 = arith.constant -1.000000e+30 : f32
    %250 = vector.broadcast %cst_104 : f32 to vector<8x64xf32>
    %251 = arith.select %249, %247, %250 : vector<8x64xi1>, vector<8x64xf32>
    %cst_105 = arith.constant dense<0xFF800000> : vector<64xf32>
    %252 = vector.multi_reduction <maximumf>, %251, %cst_105 [0] : vector<8x64xf32> to vector<64xf32>
    %253 = vector.shape_cast %252 : vector<64xf32> to vector<1x64xf32>
    %cst_106 = arith.constant dense<0xFF800000> : vector<1xf32>
    %254 = vector.multi_reduction <maximumf>, %253, %cst_106 [1] : vector<1x64xf32> to vector<1xf32>
    %255 = vector.shape_cast %254 : vector<1xf32> to vector<1x1xf32>
    %256 = vector.broadcast %255 : vector<1x1xf32> to vector<1x64xf32>
    %257 = arith.cmpf oeq, %253, %256 : vector<1x64xf32>
    %c64_i32 = arith.constant 64 : i32
    %258 = vector.broadcast %c64_i32 : i32 to vector<1x64xi32>
    %259 = arith.select %257, %3, %258 : vector<1x64xi1>, vector<1x64xi32>
    %260 = vector.shape_cast %259 : vector<1x64xi32> to vector<1x1x64xi32>
    %cst_107 = arith.constant dense<2147483647> : vector<1xi32>
    %261 = vector.multi_reduction <minsi>, %260, %cst_107 [1, 2] : vector<1x1x64xi32> to vector<1xi32>
    %262 = vector.shape_cast %261 : vector<1xi32> to vector<1x1x1xi32>
    %263 = vector.extract %262[0, 0, 0] : i32 from vector<1x1x1xi32>
    %264 = vector.broadcast %263 : i32 to vector<1x64xi32>
    %265 = arith.cmpi eq, %3, %264 : vector<1x64xi32>
    %266 = arith.extui %265 : vector<1x64xi1> to vector<1x64xi32>
    %267 = arith.sitofp %266 : vector<1x64xi32> to vector<1x64xf32>
    %c1_i32 = arith.constant 1 : i32
    %268 = arith.addi %c0_i32_66, %c1_i32 : i32
    %269 = vector.broadcast %268 : i32 to vector<8x64xi32>
    %270 = arith.cmpi eq, %2, %269 : vector<8x64xi32>
    %271 = vector.shape_cast %267 : vector<1x64xf32> to vector<1x64xf32>
    %272 = vector.broadcast %271 : vector<1x64xf32> to vector<8x64xf32>
    %273 = arith.select %270, %272, %119 : vector<8x64xi1>, vector<8x64xf32>
    %c1_i32_108 = arith.constant 1 : i32
    %cst_109 = arith.constant dense<0.000000e+00> : vector<8x32xf32>
    %274 = tpu.matmul %273, %0, %cst_109 {dimension_numbers = #tpu.dot_dimension_numbers<[1], [0], [0], [1], [0, 0, 1, 1], [], []>} : vector<8x64xf32>, vector<64x32xf32>, vector<8x32xf32> -> vector<8x32xf32>
    %275 = arith.mulf %274, %274 : vector<8x32xf32>
    %cst_110 = arith.constant dense<0.000000e+00> : vector<8xf32>
    %276 = vector.multi_reduction <add>, %275, %cst_110 [1] : vector<8x32xf32> to vector<8xf32>
    %277 = vector.shape_cast %276 : vector<8xf32> to vector<8x1xf32>
    %cst_111 = arith.constant 3.200000e+01 : f32
    %278 = vector.broadcast %cst_111 : f32 to vector<8x1xf32>
    %279 = arith.divf %277, %278 : vector<8x1xf32>
    %cst_112 = arith.constant 9.99999997E-7 : f32
    %280 = vector.broadcast %cst_112 : f32 to vector<8x1xf32>
    %281 = arith.addf %279, %280 : vector<8x1xf32>
    %282 = math.rsqrt %281 : vector<8x1xf32>
    %283 = vector.broadcast %282 : vector<8x1xf32> to vector<8x32xf32>
    %284 = arith.mulf %274, %283 : vector<8x32xf32>
    %285 = vector.broadcast %99 : vector<1x32xf32> to vector<8x32xf32>
    %286 = arith.mulf %284, %285 : vector<8x32xf32>
    %cst_113 = arith.constant dense<0.000000e+00> : vector<8x96xf32>
    %287 = tpu.matmul %286, %100, %cst_113 {dimension_numbers = #tpu.dot_dimension_numbers<[1], [0], [0], [1], [0, 0, 1, 1], [], []>} : vector<8x32xf32>, vector<32x96xf32>, vector<8x96xf32> -> vector<8x96xf32>
    %288 = vector.extract_strided_slice %287 {offsets = [0, 0], sizes = [8, 32], strides = [1, 1]} : vector<8x96xf32> to vector<8x32xf32>
    %289 = vector.extract_strided_slice %287 {offsets = [0, 32], sizes = [8, 32], strides = [1, 1]} : vector<8x96xf32> to vector<8x32xf32>
    %290 = vector.extract_strided_slice %287 {offsets = [0, 64], sizes = [8, 32], strides = [1, 1]} : vector<8x96xf32> to vector<8x32xf32>
    %291 = vector.extract_strided_slice %288 {offsets = [0, 0], sizes = [8, 16], strides = [1, 1]} : vector<8x32xf32> to vector<8x16xf32>
    %292 = vector.extract_strided_slice %289 {offsets = [0, 0], sizes = [8, 16], strides = [1, 1]} : vector<8x32xf32> to vector<8x16xf32>
    %293 = vector.extract_strided_slice %290 {offsets = [0, 0], sizes = [8, 16], strides = [1, 1]} : vector<8x32xf32> to vector<8x16xf32>
    %cst_114 = arith.constant dense<0.000000e+00> : vector<8x8xf32>
    %294 = tpu.matmul %291, %292, %cst_114 {dimension_numbers = #tpu.dot_dimension_numbers<[1], [1], [0], [0], [0, 0, 1, 0], [], []>} : vector<8x16xf32>, vector<8x16xf32>, vector<8x8xf32> -> vector<8x8xf32>
    %295 = arith.addf %294, %115 : vector<8x8xf32>
    %cst_115 = arith.constant dense<0xFF800000> : vector<8xf32>
    %296 = vector.multi_reduction <maximumf>, %295, %cst_115 [1] : vector<8x8xf32> to vector<8xf32>
    %297 = vector.shape_cast %296 : vector<8xf32> to vector<8x1xf32>
    %298 = vector.broadcast %297 : vector<8x1xf32> to vector<8x8xf32>
    %299 = arith.subf %295, %298 : vector<8x8xf32>
    %300 = math.exp %299 : vector<8x8xf32>
    %cst_116 = arith.constant dense<0.000000e+00> : vector<8xf32>
    %301 = vector.multi_reduction <add>, %300, %cst_116 [1] : vector<8x8xf32> to vector<8xf32>
    %302 = vector.shape_cast %301 : vector<8xf32> to vector<8x1xf32>
    %303 = tpu.reciprocal %302 {approx = true} : vector<8x1xf32> -> vector<8x1xf32>
    %304 = vector.broadcast %303 : vector<8x1xf32> to vector<8x8xf32>
    %305 = arith.mulf %300, %304 : vector<8x8xf32>
    %cst_117 = arith.constant dense<0.000000e+00> : vector<8x16xf32>
    %306 = tpu.matmul %305, %293, %cst_117 {dimension_numbers = #tpu.dot_dimension_numbers<[1], [0], [0], [1], [0, 0, 1, 1], [], []>} : vector<8x8xf32>, vector<8x16xf32>, vector<8x16xf32> -> vector<8x16xf32>
    %307 = vector.extract_strided_slice %288 {offsets = [0, 16], sizes = [8, 16], strides = [1, 1]} : vector<8x32xf32> to vector<8x16xf32>
    %308 = vector.extract_strided_slice %289 {offsets = [0, 16], sizes = [8, 16], strides = [1, 1]} : vector<8x32xf32> to vector<8x16xf32>
    %309 = vector.extract_strided_slice %290 {offsets = [0, 16], sizes = [8, 16], strides = [1, 1]} : vector<8x32xf32> to vector<8x16xf32>
    %cst_118 = arith.constant dense<0.000000e+00> : vector<8x8xf32>
    %310 = tpu.matmul %307, %308, %cst_118 {dimension_numbers = #tpu.dot_dimension_numbers<[1], [1], [0], [0], [0, 0, 1, 0], [], []>} : vector<8x16xf32>, vector<8x16xf32>, vector<8x8xf32> -> vector<8x8xf32>
    %311 = arith.addf %310, %115 : vector<8x8xf32>
    %cst_119 = arith.constant dense<0xFF800000> : vector<8xf32>
    %312 = vector.multi_reduction <maximumf>, %311, %cst_119 [1] : vector<8x8xf32> to vector<8xf32>
    %313 = vector.shape_cast %312 : vector<8xf32> to vector<8x1xf32>
    %314 = vector.broadcast %313 : vector<8x1xf32> to vector<8x8xf32>
    %315 = arith.subf %311, %314 : vector<8x8xf32>
    %316 = math.exp %315 : vector<8x8xf32>
    %cst_120 = arith.constant dense<0.000000e+00> : vector<8xf32>
    %317 = vector.multi_reduction <add>, %316, %cst_120 [1] : vector<8x8xf32> to vector<8xf32>
    %318 = vector.shape_cast %317 : vector<8xf32> to vector<8x1xf32>
    %319 = tpu.reciprocal %318 {approx = true} : vector<8x1xf32> -> vector<8x1xf32>
    %320 = vector.broadcast %319 : vector<8x1xf32> to vector<8x8xf32>
    %321 = arith.mulf %316, %320 : vector<8x8xf32>
    %cst_121 = arith.constant dense<0.000000e+00> : vector<8x16xf32>
    %322 = tpu.matmul %321, %309, %cst_121 {dimension_numbers = #tpu.dot_dimension_numbers<[1], [0], [0], [1], [0, 0, 1, 1], [], []>} : vector<8x8xf32>, vector<8x16xf32>, vector<8x16xf32> -> vector<8x16xf32>
    %323 = tpu.concatenate %306, %322 in 1 : vector<8x16xf32>, vector<8x16xf32> -> vector<8x32xf32>
    %cst_122 = arith.constant dense<0.000000e+00> : vector<8x32xf32>
    %324 = tpu.matmul %323, %101, %cst_122 {dimension_numbers = #tpu.dot_dimension_numbers<[1], [0], [0], [1], [0, 0, 1, 1], [], []>} : vector<8x32xf32>, vector<32x32xf32>, vector<8x32xf32> -> vector<8x32xf32>
    %325 = arith.addf %274, %324 : vector<8x32xf32>
    %326 = arith.mulf %325, %325 : vector<8x32xf32>
    %cst_123 = arith.constant dense<0.000000e+00> : vector<8xf32>
    %327 = vector.multi_reduction <add>, %326, %cst_123 [1] : vector<8x32xf32> to vector<8xf32>
    %328 = vector.shape_cast %327 : vector<8xf32> to vector<8x1xf32>
    %cst_124 = arith.constant 3.200000e+01 : f32
    %329 = vector.broadcast %cst_124 : f32 to vector<8x1xf32>
    %330 = arith.divf %328, %329 : vector<8x1xf32>
    %cst_125 = arith.constant 9.99999997E-7 : f32
    %331 = vector.broadcast %cst_125 : f32 to vector<8x1xf32>
    %332 = arith.addf %330, %331 : vector<8x1xf32>
    %333 = math.rsqrt %332 : vector<8x1xf32>
    %334 = vector.broadcast %333 : vector<8x1xf32> to vector<8x32xf32>
    %335 = arith.mulf %325, %334 : vector<8x32xf32>
    %336 = vector.broadcast %102 : vector<1x32xf32> to vector<8x32xf32>
    %337 = arith.mulf %335, %336 : vector<8x32xf32>
    %cst_126 = arith.constant dense<0.000000e+00> : vector<8x32xf32>
    %338 = tpu.matmul %337, %103, %cst_126 {dimension_numbers = #tpu.dot_dimension_numbers<[1], [0], [0], [1], [0, 0, 1, 1], [], []>} : vector<8x32xf32>, vector<32x32xf32>, vector<8x32xf32> -> vector<8x32xf32>
    %339 = vector.extract_strided_slice %338 {offsets = [0, 0], sizes = [8, 16], strides = [1, 1]} : vector<8x32xf32> to vector<8x16xf32>
    %340 = vector.extract_strided_slice %97 {offsets = [0, 0], sizes = [8, 16], strides = [1, 1]} : vector<8x32xf32> to vector<8x16xf32>
    %341 = vector.extract_strided_slice %98 {offsets = [0, 0], sizes = [8, 16], strides = [1, 1]} : vector<8x32xf32> to vector<8x16xf32>
    %cst_127 = arith.constant dense<0.000000e+00> : vector<8x8xf32>
    %342 = tpu.matmul %339, %340, %cst_127 {dimension_numbers = #tpu.dot_dimension_numbers<[1], [1], [0], [0], [0, 0, 1, 0], [], []>} : vector<8x16xf32>, vector<8x16xf32>, vector<8x8xf32> -> vector<8x8xf32>
    %cst_128 = arith.constant dense<0xFF800000> : vector<8xf32>
    %343 = vector.multi_reduction <maximumf>, %342, %cst_128 [1] : vector<8x8xf32> to vector<8xf32>
    %344 = vector.shape_cast %343 : vector<8xf32> to vector<8x1xf32>
    %345 = vector.broadcast %344 : vector<8x1xf32> to vector<8x8xf32>
    %346 = arith.subf %342, %345 : vector<8x8xf32>
    %347 = math.exp %346 : vector<8x8xf32>
    %cst_129 = arith.constant dense<0.000000e+00> : vector<8xf32>
    %348 = vector.multi_reduction <add>, %347, %cst_129 [1] : vector<8x8xf32> to vector<8xf32>
    %349 = vector.shape_cast %348 : vector<8xf32> to vector<8x1xf32>
    %350 = tpu.reciprocal %349 {approx = true} : vector<8x1xf32> -> vector<8x1xf32>
    %351 = vector.broadcast %350 : vector<8x1xf32> to vector<8x8xf32>
    %352 = arith.mulf %347, %351 : vector<8x8xf32>
    %cst_130 = arith.constant dense<0.000000e+00> : vector<8x16xf32>
    %353 = tpu.matmul %352, %341, %cst_130 {dimension_numbers = #tpu.dot_dimension_numbers<[1], [0], [0], [1], [0, 0, 1, 1], [], []>} : vector<8x8xf32>, vector<8x16xf32>, vector<8x16xf32> -> vector<8x16xf32>
    %354 = vector.extract_strided_slice %338 {offsets = [0, 16], sizes = [8, 16], strides = [1, 1]} : vector<8x32xf32> to vector<8x16xf32>
    %355 = vector.extract_strided_slice %97 {offsets = [0, 16], sizes = [8, 16], strides = [1, 1]} : vector<8x32xf32> to vector<8x16xf32>
    %356 = vector.extract_strided_slice %98 {offsets = [0, 16], sizes = [8, 16], strides = [1, 1]} : vector<8x32xf32> to vector<8x16xf32>
    %cst_131 = arith.constant dense<0.000000e+00> : vector<8x8xf32>
    %357 = tpu.matmul %354, %355, %cst_131 {dimension_numbers = #tpu.dot_dimension_numbers<[1], [1], [0], [0], [0, 0, 1, 0], [], []>} : vector<8x16xf32>, vector<8x16xf32>, vector<8x8xf32> -> vector<8x8xf32>
    %cst_132 = arith.constant dense<0xFF800000> : vector<8xf32>
    %358 = vector.multi_reduction <maximumf>, %357, %cst_132 [1] : vector<8x8xf32> to vector<8xf32>
    %359 = vector.shape_cast %358 : vector<8xf32> to vector<8x1xf32>
    %360 = vector.broadcast %359 : vector<8x1xf32> to vector<8x8xf32>
    %361 = arith.subf %357, %360 : vector<8x8xf32>
    %362 = math.exp %361 : vector<8x8xf32>
    %cst_133 = arith.constant dense<0.000000e+00> : vector<8xf32>
    %363 = vector.multi_reduction <add>, %362, %cst_133 [1] : vector<8x8xf32> to vector<8xf32>
    %364 = vector.shape_cast %363 : vector<8xf32> to vector<8x1xf32>
    %365 = tpu.reciprocal %364 {approx = true} : vector<8x1xf32> -> vector<8x1xf32>
    %366 = vector.broadcast %365 : vector<8x1xf32> to vector<8x8xf32>
    %367 = arith.mulf %362, %366 : vector<8x8xf32>
    %cst_134 = arith.constant dense<0.000000e+00> : vector<8x16xf32>
    %368 = tpu.matmul %367, %356, %cst_134 {dimension_numbers = #tpu.dot_dimension_numbers<[1], [0], [0], [1], [0, 0, 1, 1], [], []>} : vector<8x8xf32>, vector<8x16xf32>, vector<8x16xf32> -> vector<8x16xf32>
    %369 = tpu.concatenate %353, %368 in 1 : vector<8x16xf32>, vector<8x16xf32> -> vector<8x32xf32>
    %cst_135 = arith.constant dense<0.000000e+00> : vector<8x32xf32>
    %370 = tpu.matmul %369, %104, %cst_135 {dimension_numbers = #tpu.dot_dimension_numbers<[1], [0], [0], [1], [0, 0, 1, 1], [], []>} : vector<8x32xf32>, vector<32x32xf32>, vector<8x32xf32> -> vector<8x32xf32>
    %371 = arith.addf %325, %370 : vector<8x32xf32>
    %372 = arith.mulf %371, %371 : vector<8x32xf32>
    %cst_136 = arith.constant dense<0.000000e+00> : vector<8xf32>
    %373 = vector.multi_reduction <add>, %372, %cst_136 [1] : vector<8x32xf32> to vector<8xf32>
    %374 = vector.shape_cast %373 : vector<8xf32> to vector<8x1xf32>
    %cst_137 = arith.constant 3.200000e+01 : f32
    %375 = vector.broadcast %cst_137 : f32 to vector<8x1xf32>
    %376 = arith.divf %374, %375 : vector<8x1xf32>
    %cst_138 = arith.constant 9.99999997E-7 : f32
    %377 = vector.broadcast %cst_138 : f32 to vector<8x1xf32>
    %378 = arith.addf %376, %377 : vector<8x1xf32>
    %379 = math.rsqrt %378 : vector<8x1xf32>
    %380 = vector.broadcast %379 : vector<8x1xf32> to vector<8x32xf32>
    %381 = arith.mulf %371, %380 : vector<8x32xf32>
    %382 = vector.broadcast %105 : vector<1x32xf32> to vector<8x32xf32>
    %383 = arith.mulf %381, %382 : vector<8x32xf32>
    %cst_139 = arith.constant dense<0.000000e+00> : vector<8x64xf32>
    %384 = tpu.matmul %383, %106, %cst_139 {dimension_numbers = #tpu.dot_dimension_numbers<[1], [0], [0], [1], [0, 0, 1, 1], [], []>} : vector<8x32xf32>, vector<32x64xf32>, vector<8x64xf32> -> vector<8x64xf32>
    %cst_140 = arith.constant 0.000000e+00 : f32
    %385 = vector.broadcast %cst_140 : f32 to vector<8x64xf32>
    %386 = arith.maximumf %384, %385 : vector<8x64xf32>
    %cst_141 = arith.constant dense<0.000000e+00> : vector<8x32xf32>
    %387 = tpu.matmul %386, %107, %cst_141 {dimension_numbers = #tpu.dot_dimension_numbers<[1], [0], [0], [1], [0, 0, 1, 1], [], []>} : vector<8x64xf32>, vector<64x32xf32>, vector<8x32xf32> -> vector<8x32xf32>
    %388 = arith.addf %371, %387 : vector<8x32xf32>
    %389 = arith.mulf %388, %388 : vector<8x32xf32>
    %cst_142 = arith.constant dense<0.000000e+00> : vector<8xf32>
    %390 = vector.multi_reduction <add>, %389, %cst_142 [1] : vector<8x32xf32> to vector<8xf32>
    %391 = vector.shape_cast %390 : vector<8xf32> to vector<8x1xf32>
    %cst_143 = arith.constant 3.200000e+01 : f32
    %392 = vector.broadcast %cst_143 : f32 to vector<8x1xf32>
    %393 = arith.divf %391, %392 : vector<8x1xf32>
    %cst_144 = arith.constant 9.99999997E-7 : f32
    %394 = vector.broadcast %cst_144 : f32 to vector<8x1xf32>
    %395 = arith.addf %393, %394 : vector<8x1xf32>
    %396 = math.rsqrt %395 : vector<8x1xf32>
    %397 = vector.broadcast %396 : vector<8x1xf32> to vector<8x32xf32>
    %398 = arith.mulf %388, %397 : vector<8x32xf32>
    %399 = vector.broadcast %108 : vector<1x32xf32> to vector<8x32xf32>
    %400 = arith.mulf %398, %399 : vector<8x32xf32>
    %cst_145 = arith.constant dense<0.000000e+00> : vector<8x64xf32>
    %401 = tpu.matmul %400, %109, %cst_145 {dimension_numbers = #tpu.dot_dimension_numbers<[1], [0], [0], [1], [0, 0, 1, 1], [], []>} : vector<8x32xf32>, vector<32x64xf32>, vector<8x64xf32> -> vector<8x64xf32>
    %402 = vector.broadcast %c1_i32_108 : i32 to vector<8x64xi32>
    %403 = arith.cmpi eq, %2, %402 : vector<8x64xi32>
    %cst_146 = arith.constant -1.000000e+30 : f32
    %404 = vector.broadcast %cst_146 : f32 to vector<8x64xf32>
    %405 = arith.select %403, %401, %404 : vector<8x64xi1>, vector<8x64xf32>
    %cst_147 = arith.constant dense<0xFF800000> : vector<64xf32>
    %406 = vector.multi_reduction <maximumf>, %405, %cst_147 [0] : vector<8x64xf32> to vector<64xf32>
    %407 = vector.shape_cast %406 : vector<64xf32> to vector<1x64xf32>
    %cst_148 = arith.constant dense<0xFF800000> : vector<1xf32>
    %408 = vector.multi_reduction <maximumf>, %407, %cst_148 [1] : vector<1x64xf32> to vector<1xf32>
    %409 = vector.shape_cast %408 : vector<1xf32> to vector<1x1xf32>
    %410 = vector.broadcast %409 : vector<1x1xf32> to vector<1x64xf32>
    %411 = arith.cmpf oeq, %407, %410 : vector<1x64xf32>
    %c64_i32_149 = arith.constant 64 : i32
    %412 = vector.broadcast %c64_i32_149 : i32 to vector<1x64xi32>
    %413 = arith.select %411, %3, %412 : vector<1x64xi1>, vector<1x64xi32>
    %414 = vector.shape_cast %413 : vector<1x64xi32> to vector<1x1x64xi32>
    %cst_150 = arith.constant dense<2147483647> : vector<1xi32>
    %415 = vector.multi_reduction <minsi>, %414, %cst_150 [1, 2] : vector<1x1x64xi32> to vector<1xi32>
    %416 = vector.shape_cast %415 : vector<1xi32> to vector<1x1x1xi32>
    %417 = vector.extract %416[0, 0, 0] : i32 from vector<1x1x1xi32>
    %418 = vector.broadcast %417 : i32 to vector<1x64xi32>
    %419 = arith.cmpi eq, %3, %418 : vector<1x64xi32>
    %420 = arith.extui %419 : vector<1x64xi1> to vector<1x64xi32>
    %421 = arith.sitofp %420 : vector<1x64xi32> to vector<1x64xf32>
    %c1_i32_151 = arith.constant 1 : i32
    %422 = arith.addi %c1_i32_108, %c1_i32_151 : i32
    %423 = vector.broadcast %422 : i32 to vector<8x64xi32>
    %424 = arith.cmpi eq, %2, %423 : vector<8x64xi32>
    %425 = vector.shape_cast %421 : vector<1x64xf32> to vector<1x64xf32>
    %426 = vector.broadcast %425 : vector<1x64xf32> to vector<8x64xf32>
    %427 = arith.select %424, %426, %273 : vector<8x64xi1>, vector<8x64xf32>
    %c2_i32 = arith.constant 2 : i32
    %cst_152 = arith.constant dense<0.000000e+00> : vector<8x32xf32>
    %428 = tpu.matmul %427, %0, %cst_152 {dimension_numbers = #tpu.dot_dimension_numbers<[1], [0], [0], [1], [0, 0, 1, 1], [], []>} : vector<8x64xf32>, vector<64x32xf32>, vector<8x32xf32> -> vector<8x32xf32>
    %429 = arith.mulf %428, %428 : vector<8x32xf32>
    %cst_153 = arith.constant dense<0.000000e+00> : vector<8xf32>
    %430 = vector.multi_reduction <add>, %429, %cst_153 [1] : vector<8x32xf32> to vector<8xf32>
    %431 = vector.shape_cast %430 : vector<8xf32> to vector<8x1xf32>
    %cst_154 = arith.constant 3.200000e+01 : f32
    %432 = vector.broadcast %cst_154 : f32 to vector<8x1xf32>
    %433 = arith.divf %431, %432 : vector<8x1xf32>
    %cst_155 = arith.constant 9.99999997E-7 : f32
    %434 = vector.broadcast %cst_155 : f32 to vector<8x1xf32>
    %435 = arith.addf %433, %434 : vector<8x1xf32>
    %436 = math.rsqrt %435 : vector<8x1xf32>
    %437 = vector.broadcast %436 : vector<8x1xf32> to vector<8x32xf32>
    %438 = arith.mulf %428, %437 : vector<8x32xf32>
    %439 = vector.broadcast %99 : vector<1x32xf32> to vector<8x32xf32>
    %440 = arith.mulf %438, %439 : vector<8x32xf32>
    %cst_156 = arith.constant dense<0.000000e+00> : vector<8x96xf32>
    %441 = tpu.matmul %440, %100, %cst_156 {dimension_numbers = #tpu.dot_dimension_numbers<[1], [0], [0], [1], [0, 0, 1, 1], [], []>} : vector<8x32xf32>, vector<32x96xf32>, vector<8x96xf32> -> vector<8x96xf32>
    %442 = vector.extract_strided_slice %441 {offsets = [0, 0], sizes = [8, 32], strides = [1, 1]} : vector<8x96xf32> to vector<8x32xf32>
    %443 = vector.extract_strided_slice %441 {offsets = [0, 32], sizes = [8, 32], strides = [1, 1]} : vector<8x96xf32> to vector<8x32xf32>
    %444 = vector.extract_strided_slice %441 {offsets = [0, 64], sizes = [8, 32], strides = [1, 1]} : vector<8x96xf32> to vector<8x32xf32>
    %445 = vector.extract_strided_slice %442 {offsets = [0, 0], sizes = [8, 16], strides = [1, 1]} : vector<8x32xf32> to vector<8x16xf32>
    %446 = vector.extract_strided_slice %443 {offsets = [0, 0], sizes = [8, 16], strides = [1, 1]} : vector<8x32xf32> to vector<8x16xf32>
    %447 = vector.extract_strided_slice %444 {offsets = [0, 0], sizes = [8, 16], strides = [1, 1]} : vector<8x32xf32> to vector<8x16xf32>
    %cst_157 = arith.constant dense<0.000000e+00> : vector<8x8xf32>
    %448 = tpu.matmul %445, %446, %cst_157 {dimension_numbers = #tpu.dot_dimension_numbers<[1], [1], [0], [0], [0, 0, 1, 0], [], []>} : vector<8x16xf32>, vector<8x16xf32>, vector<8x8xf32> -> vector<8x8xf32>
    %449 = arith.addf %448, %115 : vector<8x8xf32>
    %cst_158 = arith.constant dense<0xFF800000> : vector<8xf32>
    %450 = vector.multi_reduction <maximumf>, %449, %cst_158 [1] : vector<8x8xf32> to vector<8xf32>
    %451 = vector.shape_cast %450 : vector<8xf32> to vector<8x1xf32>
    %452 = vector.broadcast %451 : vector<8x1xf32> to vector<8x8xf32>
    %453 = arith.subf %449, %452 : vector<8x8xf32>
    %454 = math.exp %453 : vector<8x8xf32>
    %cst_159 = arith.constant dense<0.000000e+00> : vector<8xf32>
    %455 = vector.multi_reduction <add>, %454, %cst_159 [1] : vector<8x8xf32> to vector<8xf32>
    %456 = vector.shape_cast %455 : vector<8xf32> to vector<8x1xf32>
    %457 = tpu.reciprocal %456 {approx = true} : vector<8x1xf32> -> vector<8x1xf32>
    %458 = vector.broadcast %457 : vector<8x1xf32> to vector<8x8xf32>
    %459 = arith.mulf %454, %458 : vector<8x8xf32>
    %cst_160 = arith.constant dense<0.000000e+00> : vector<8x16xf32>
    %460 = tpu.matmul %459, %447, %cst_160 {dimension_numbers = #tpu.dot_dimension_numbers<[1], [0], [0], [1], [0, 0, 1, 1], [], []>} : vector<8x8xf32>, vector<8x16xf32>, vector<8x16xf32> -> vector<8x16xf32>
    %461 = vector.extract_strided_slice %442 {offsets = [0, 16], sizes = [8, 16], strides = [1, 1]} : vector<8x32xf32> to vector<8x16xf32>
    %462 = vector.extract_strided_slice %443 {offsets = [0, 16], sizes = [8, 16], strides = [1, 1]} : vector<8x32xf32> to vector<8x16xf32>
    %463 = vector.extract_strided_slice %444 {offsets = [0, 16], sizes = [8, 16], strides = [1, 1]} : vector<8x32xf32> to vector<8x16xf32>
    %cst_161 = arith.constant dense<0.000000e+00> : vector<8x8xf32>
    %464 = tpu.matmul %461, %462, %cst_161 {dimension_numbers = #tpu.dot_dimension_numbers<[1], [1], [0], [0], [0, 0, 1, 0], [], []>} : vector<8x16xf32>, vector<8x16xf32>, vector<8x8xf32> -> vector<8x8xf32>
    %465 = arith.addf %464, %115 : vector<8x8xf32>
    %cst_162 = arith.constant dense<0xFF800000> : vector<8xf32>
    %466 = vector.multi_reduction <maximumf>, %465, %cst_162 [1] : vector<8x8xf32> to vector<8xf32>
    %467 = vector.shape_cast %466 : vector<8xf32> to vector<8x1xf32>
    %468 = vector.broadcast %467 : vector<8x1xf32> to vector<8x8xf32>
    %469 = arith.subf %465, %468 : vector<8x8xf32>
    %470 = math.exp %469 : vector<8x8xf32>
    %cst_163 = arith.constant dense<0.000000e+00> : vector<8xf32>
    %471 = vector.multi_reduction <add>, %470, %cst_163 [1] : vector<8x8xf32> to vector<8xf32>
    %472 = vector.shape_cast %471 : vector<8xf32> to vector<8x1xf32>
    %473 = tpu.reciprocal %472 {approx = true} : vector<8x1xf32> -> vector<8x1xf32>
    %474 = vector.broadcast %473 : vector<8x1xf32> to vector<8x8xf32>
    %475 = arith.mulf %470, %474 : vector<8x8xf32>
    %cst_164 = arith.constant dense<0.000000e+00> : vector<8x16xf32>
    %476 = tpu.matmul %475, %463, %cst_164 {dimension_numbers = #tpu.dot_dimension_numbers<[1], [0], [0], [1], [0, 0, 1, 1], [], []>} : vector<8x8xf32>, vector<8x16xf32>, vector<8x16xf32> -> vector<8x16xf32>
    %477 = tpu.concatenate %460, %476 in 1 : vector<8x16xf32>, vector<8x16xf32> -> vector<8x32xf32>
    %cst_165 = arith.constant dense<0.000000e+00> : vector<8x32xf32>
    %478 = tpu.matmul %477, %101, %cst_165 {dimension_numbers = #tpu.dot_dimension_numbers<[1], [0], [0], [1], [0, 0, 1, 1], [], []>} : vector<8x32xf32>, vector<32x32xf32>, vector<8x32xf32> -> vector<8x32xf32>
    %479 = arith.addf %428, %478 : vector<8x32xf32>
    %480 = arith.mulf %479, %479 : vector<8x32xf32>
    %cst_166 = arith.constant dense<0.000000e+00> : vector<8xf32>
    %481 = vector.multi_reduction <add>, %480, %cst_166 [1] : vector<8x32xf32> to vector<8xf32>
    %482 = vector.shape_cast %481 : vector<8xf32> to vector<8x1xf32>
    %cst_167 = arith.constant 3.200000e+01 : f32
    %483 = vector.broadcast %cst_167 : f32 to vector<8x1xf32>
    %484 = arith.divf %482, %483 : vector<8x1xf32>
    %cst_168 = arith.constant 9.99999997E-7 : f32
    %485 = vector.broadcast %cst_168 : f32 to vector<8x1xf32>
    %486 = arith.addf %484, %485 : vector<8x1xf32>
    %487 = math.rsqrt %486 : vector<8x1xf32>
    %488 = vector.broadcast %487 : vector<8x1xf32> to vector<8x32xf32>
    %489 = arith.mulf %479, %488 : vector<8x32xf32>
    %490 = vector.broadcast %102 : vector<1x32xf32> to vector<8x32xf32>
    %491 = arith.mulf %489, %490 : vector<8x32xf32>
    %cst_169 = arith.constant dense<0.000000e+00> : vector<8x32xf32>
    %492 = tpu.matmul %491, %103, %cst_169 {dimension_numbers = #tpu.dot_dimension_numbers<[1], [0], [0], [1], [0, 0, 1, 1], [], []>} : vector<8x32xf32>, vector<32x32xf32>, vector<8x32xf32> -> vector<8x32xf32>
    %493 = vector.extract_strided_slice %492 {offsets = [0, 0], sizes = [8, 16], strides = [1, 1]} : vector<8x32xf32> to vector<8x16xf32>
    %494 = vector.extract_strided_slice %97 {offsets = [0, 0], sizes = [8, 16], strides = [1, 1]} : vector<8x32xf32> to vector<8x16xf32>
    %495 = vector.extract_strided_slice %98 {offsets = [0, 0], sizes = [8, 16], strides = [1, 1]} : vector<8x32xf32> to vector<8x16xf32>
    %cst_170 = arith.constant dense<0.000000e+00> : vector<8x8xf32>
    %496 = tpu.matmul %493, %494, %cst_170 {dimension_numbers = #tpu.dot_dimension_numbers<[1], [1], [0], [0], [0, 0, 1, 0], [], []>} : vector<8x16xf32>, vector<8x16xf32>, vector<8x8xf32> -> vector<8x8xf32>
    %cst_171 = arith.constant dense<0xFF800000> : vector<8xf32>
    %497 = vector.multi_reduction <maximumf>, %496, %cst_171 [1] : vector<8x8xf32> to vector<8xf32>
    %498 = vector.shape_cast %497 : vector<8xf32> to vector<8x1xf32>
    %499 = vector.broadcast %498 : vector<8x1xf32> to vector<8x8xf32>
    %500 = arith.subf %496, %499 : vector<8x8xf32>
    %501 = math.exp %500 : vector<8x8xf32>
    %cst_172 = arith.constant dense<0.000000e+00> : vector<8xf32>
    %502 = vector.multi_reduction <add>, %501, %cst_172 [1] : vector<8x8xf32> to vector<8xf32>
    %503 = vector.shape_cast %502 : vector<8xf32> to vector<8x1xf32>
    %504 = tpu.reciprocal %503 {approx = true} : vector<8x1xf32> -> vector<8x1xf32>
    %505 = vector.broadcast %504 : vector<8x1xf32> to vector<8x8xf32>
    %506 = arith.mulf %501, %505 : vector<8x8xf32>
    %cst_173 = arith.constant dense<0.000000e+00> : vector<8x16xf32>
    %507 = tpu.matmul %506, %495, %cst_173 {dimension_numbers = #tpu.dot_dimension_numbers<[1], [0], [0], [1], [0, 0, 1, 1], [], []>} : vector<8x8xf32>, vector<8x16xf32>, vector<8x16xf32> -> vector<8x16xf32>
    %508 = vector.extract_strided_slice %492 {offsets = [0, 16], sizes = [8, 16], strides = [1, 1]} : vector<8x32xf32> to vector<8x16xf32>
    %509 = vector.extract_strided_slice %97 {offsets = [0, 16], sizes = [8, 16], strides = [1, 1]} : vector<8x32xf32> to vector<8x16xf32>
    %510 = vector.extract_strided_slice %98 {offsets = [0, 16], sizes = [8, 16], strides = [1, 1]} : vector<8x32xf32> to vector<8x16xf32>
    %cst_174 = arith.constant dense<0.000000e+00> : vector<8x8xf32>
    %511 = tpu.matmul %508, %509, %cst_174 {dimension_numbers = #tpu.dot_dimension_numbers<[1], [1], [0], [0], [0, 0, 1, 0], [], []>} : vector<8x16xf32>, vector<8x16xf32>, vector<8x8xf32> -> vector<8x8xf32>
    %cst_175 = arith.constant dense<0xFF800000> : vector<8xf32>
    %512 = vector.multi_reduction <maximumf>, %511, %cst_175 [1] : vector<8x8xf32> to vector<8xf32>
    %513 = vector.shape_cast %512 : vector<8xf32> to vector<8x1xf32>
    %514 = vector.broadcast %513 : vector<8x1xf32> to vector<8x8xf32>
    %515 = arith.subf %511, %514 : vector<8x8xf32>
    %516 = math.exp %515 : vector<8x8xf32>
    %cst_176 = arith.constant dense<0.000000e+00> : vector<8xf32>
    %517 = vector.multi_reduction <add>, %516, %cst_176 [1] : vector<8x8xf32> to vector<8xf32>
    %518 = vector.shape_cast %517 : vector<8xf32> to vector<8x1xf32>
    %519 = tpu.reciprocal %518 {approx = true} : vector<8x1xf32> -> vector<8x1xf32>
    %520 = vector.broadcast %519 : vector<8x1xf32> to vector<8x8xf32>
    %521 = arith.mulf %516, %520 : vector<8x8xf32>
    %cst_177 = arith.constant dense<0.000000e+00> : vector<8x16xf32>
    %522 = tpu.matmul %521, %510, %cst_177 {dimension_numbers = #tpu.dot_dimension_numbers<[1], [0], [0], [1], [0, 0, 1, 1], [], []>} : vector<8x8xf32>, vector<8x16xf32>, vector<8x16xf32> -> vector<8x16xf32>
    %523 = tpu.concatenate %507, %522 in 1 : vector<8x16xf32>, vector<8x16xf32> -> vector<8x32xf32>
    %cst_178 = arith.constant dense<0.000000e+00> : vector<8x32xf32>
    %524 = tpu.matmul %523, %104, %cst_178 {dimension_numbers = #tpu.dot_dimension_numbers<[1], [0], [0], [1], [0, 0, 1, 1], [], []>} : vector<8x32xf32>, vector<32x32xf32>, vector<8x32xf32> -> vector<8x32xf32>
    %525 = arith.addf %479, %524 : vector<8x32xf32>
    %526 = arith.mulf %525, %525 : vector<8x32xf32>
    %cst_179 = arith.constant dense<0.000000e+00> : vector<8xf32>
    %527 = vector.multi_reduction <add>, %526, %cst_179 [1] : vector<8x32xf32> to vector<8xf32>
    %528 = vector.shape_cast %527 : vector<8xf32> to vector<8x1xf32>
    %cst_180 = arith.constant 3.200000e+01 : f32
    %529 = vector.broadcast %cst_180 : f32 to vector<8x1xf32>
    %530 = arith.divf %528, %529 : vector<8x1xf32>
    %cst_181 = arith.constant 9.99999997E-7 : f32
    %531 = vector.broadcast %cst_181 : f32 to vector<8x1xf32>
    %532 = arith.addf %530, %531 : vector<8x1xf32>
    %533 = math.rsqrt %532 : vector<8x1xf32>
    %534 = vector.broadcast %533 : vector<8x1xf32> to vector<8x32xf32>
    %535 = arith.mulf %525, %534 : vector<8x32xf32>
    %536 = vector.broadcast %105 : vector<1x32xf32> to vector<8x32xf32>
    %537 = arith.mulf %535, %536 : vector<8x32xf32>
    %cst_182 = arith.constant dense<0.000000e+00> : vector<8x64xf32>
    %538 = tpu.matmul %537, %106, %cst_182 {dimension_numbers = #tpu.dot_dimension_numbers<[1], [0], [0], [1], [0, 0, 1, 1], [], []>} : vector<8x32xf32>, vector<32x64xf32>, vector<8x64xf32> -> vector<8x64xf32>
    %cst_183 = arith.constant 0.000000e+00 : f32
    %539 = vector.broadcast %cst_183 : f32 to vector<8x64xf32>
    %540 = arith.maximumf %538, %539 : vector<8x64xf32>
    %cst_184 = arith.constant dense<0.000000e+00> : vector<8x32xf32>
    %541 = tpu.matmul %540, %107, %cst_184 {dimension_numbers = #tpu.dot_dimension_numbers<[1], [0], [0], [1], [0, 0, 1, 1], [], []>} : vector<8x64xf32>, vector<64x32xf32>, vector<8x32xf32> -> vector<8x32xf32>
    %542 = arith.addf %525, %541 : vector<8x32xf32>
    %543 = arith.mulf %542, %542 : vector<8x32xf32>
    %cst_185 = arith.constant dense<0.000000e+00> : vector<8xf32>
    %544 = vector.multi_reduction <add>, %543, %cst_185 [1] : vector<8x32xf32> to vector<8xf32>
    %545 = vector.shape_cast %544 : vector<8xf32> to vector<8x1xf32>
    %cst_186 = arith.constant 3.200000e+01 : f32
    %546 = vector.broadcast %cst_186 : f32 to vector<8x1xf32>
    %547 = arith.divf %545, %546 : vector<8x1xf32>
    %cst_187 = arith.constant 9.99999997E-7 : f32
    %548 = vector.broadcast %cst_187 : f32 to vector<8x1xf32>
    %549 = arith.addf %547, %548 : vector<8x1xf32>
    %550 = math.rsqrt %549 : vector<8x1xf32>
    %551 = vector.broadcast %550 : vector<8x1xf32> to vector<8x32xf32>
    %552 = arith.mulf %542, %551 : vector<8x32xf32>
    %553 = vector.broadcast %108 : vector<1x32xf32> to vector<8x32xf32>
    %554 = arith.mulf %552, %553 : vector<8x32xf32>
    %cst_188 = arith.constant dense<0.000000e+00> : vector<8x64xf32>
    %555 = tpu.matmul %554, %109, %cst_188 {dimension_numbers = #tpu.dot_dimension_numbers<[1], [0], [0], [1], [0, 0, 1, 1], [], []>} : vector<8x32xf32>, vector<32x64xf32>, vector<8x64xf32> -> vector<8x64xf32>
    %556 = vector.broadcast %c2_i32 : i32 to vector<8x64xi32>
    %557 = arith.cmpi eq, %2, %556 : vector<8x64xi32>
    %cst_189 = arith.constant -1.000000e+30 : f32
    %558 = vector.broadcast %cst_189 : f32 to vector<8x64xf32>
    %559 = arith.select %557, %555, %558 : vector<8x64xi1>, vector<8x64xf32>
    %cst_190 = arith.constant dense<0xFF800000> : vector<64xf32>
    %560 = vector.multi_reduction <maximumf>, %559, %cst_190 [0] : vector<8x64xf32> to vector<64xf32>
    %561 = vector.shape_cast %560 : vector<64xf32> to vector<1x64xf32>
    %cst_191 = arith.constant dense<0xFF800000> : vector<1xf32>
    %562 = vector.multi_reduction <maximumf>, %561, %cst_191 [1] : vector<1x64xf32> to vector<1xf32>
    %563 = vector.shape_cast %562 : vector<1xf32> to vector<1x1xf32>
    %564 = vector.broadcast %563 : vector<1x1xf32> to vector<1x64xf32>
    %565 = arith.cmpf oeq, %561, %564 : vector<1x64xf32>
    %c64_i32_192 = arith.constant 64 : i32
    %566 = vector.broadcast %c64_i32_192 : i32 to vector<1x64xi32>
    %567 = arith.select %565, %3, %566 : vector<1x64xi1>, vector<1x64xi32>
    %568 = vector.shape_cast %567 : vector<1x64xi32> to vector<1x1x64xi32>
    %cst_193 = arith.constant dense<2147483647> : vector<1xi32>
    %569 = vector.multi_reduction <minsi>, %568, %cst_193 [1, 2] : vector<1x1x64xi32> to vector<1xi32>
    %570 = vector.shape_cast %569 : vector<1xi32> to vector<1x1x1xi32>
    %571 = vector.extract %570[0, 0, 0] : i32 from vector<1x1x1xi32>
    %572 = vector.broadcast %571 : i32 to vector<1x64xi32>
    %573 = arith.cmpi eq, %3, %572 : vector<1x64xi32>
    %574 = arith.extui %573 : vector<1x64xi1> to vector<1x64xi32>
    %575 = arith.sitofp %574 : vector<1x64xi32> to vector<1x64xf32>
    %c1_i32_194 = arith.constant 1 : i32
    %576 = arith.addi %c2_i32, %c1_i32_194 : i32
    %577 = vector.broadcast %576 : i32 to vector<8x64xi32>
    %578 = arith.cmpi eq, %2, %577 : vector<8x64xi32>
    %579 = vector.shape_cast %575 : vector<1x64xf32> to vector<1x64xf32>
    %580 = vector.broadcast %579 : vector<1x64xf32> to vector<8x64xf32>
    %581 = arith.select %578, %580, %427 : vector<8x64xi1>, vector<8x64xf32>
    %c3_i32 = arith.constant 3 : i32
    %cst_195 = arith.constant dense<0.000000e+00> : vector<8x32xf32>
    %582 = tpu.matmul %581, %0, %cst_195 {dimension_numbers = #tpu.dot_dimension_numbers<[1], [0], [0], [1], [0, 0, 1, 1], [], []>} : vector<8x64xf32>, vector<64x32xf32>, vector<8x32xf32> -> vector<8x32xf32>
    %583 = arith.mulf %582, %582 : vector<8x32xf32>
    %cst_196 = arith.constant dense<0.000000e+00> : vector<8xf32>
    %584 = vector.multi_reduction <add>, %583, %cst_196 [1] : vector<8x32xf32> to vector<8xf32>
    %585 = vector.shape_cast %584 : vector<8xf32> to vector<8x1xf32>
    %cst_197 = arith.constant 3.200000e+01 : f32
    %586 = vector.broadcast %cst_197 : f32 to vector<8x1xf32>
    %587 = arith.divf %585, %586 : vector<8x1xf32>
    %cst_198 = arith.constant 9.99999997E-7 : f32
    %588 = vector.broadcast %cst_198 : f32 to vector<8x1xf32>
    %589 = arith.addf %587, %588 : vector<8x1xf32>
    %590 = math.rsqrt %589 : vector<8x1xf32>
    %591 = vector.broadcast %590 : vector<8x1xf32> to vector<8x32xf32>
    %592 = arith.mulf %582, %591 : vector<8x32xf32>
    %593 = vector.broadcast %99 : vector<1x32xf32> to vector<8x32xf32>
    %594 = arith.mulf %592, %593 : vector<8x32xf32>
    %cst_199 = arith.constant dense<0.000000e+00> : vector<8x96xf32>
    %595 = tpu.matmul %594, %100, %cst_199 {dimension_numbers = #tpu.dot_dimension_numbers<[1], [0], [0], [1], [0, 0, 1, 1], [], []>} : vector<8x32xf32>, vector<32x96xf32>, vector<8x96xf32> -> vector<8x96xf32>
    %596 = vector.extract_strided_slice %595 {offsets = [0, 0], sizes = [8, 32], strides = [1, 1]} : vector<8x96xf32> to vector<8x32xf32>
    %597 = vector.extract_strided_slice %595 {offsets = [0, 32], sizes = [8, 32], strides = [1, 1]} : vector<8x96xf32> to vector<8x32xf32>
    %598 = vector.extract_strided_slice %595 {offsets = [0, 64], sizes = [8, 32], strides = [1, 1]} : vector<8x96xf32> to vector<8x32xf32>
    %599 = vector.extract_strided_slice %596 {offsets = [0, 0], sizes = [8, 16], strides = [1, 1]} : vector<8x32xf32> to vector<8x16xf32>
    %600 = vector.extract_strided_slice %597 {offsets = [0, 0], sizes = [8, 16], strides = [1, 1]} : vector<8x32xf32> to vector<8x16xf32>
    %601 = vector.extract_strided_slice %598 {offsets = [0, 0], sizes = [8, 16], strides = [1, 1]} : vector<8x32xf32> to vector<8x16xf32>
    %cst_200 = arith.constant dense<0.000000e+00> : vector<8x8xf32>
    %602 = tpu.matmul %599, %600, %cst_200 {dimension_numbers = #tpu.dot_dimension_numbers<[1], [1], [0], [0], [0, 0, 1, 0], [], []>} : vector<8x16xf32>, vector<8x16xf32>, vector<8x8xf32> -> vector<8x8xf32>
    %603 = arith.addf %602, %115 : vector<8x8xf32>
    %cst_201 = arith.constant dense<0xFF800000> : vector<8xf32>
    %604 = vector.multi_reduction <maximumf>, %603, %cst_201 [1] : vector<8x8xf32> to vector<8xf32>
    %605 = vector.shape_cast %604 : vector<8xf32> to vector<8x1xf32>
    %606 = vector.broadcast %605 : vector<8x1xf32> to vector<8x8xf32>
    %607 = arith.subf %603, %606 : vector<8x8xf32>
    %608 = math.exp %607 : vector<8x8xf32>
    %cst_202 = arith.constant dense<0.000000e+00> : vector<8xf32>
    %609 = vector.multi_reduction <add>, %608, %cst_202 [1] : vector<8x8xf32> to vector<8xf32>
    %610 = vector.shape_cast %609 : vector<8xf32> to vector<8x1xf32>
    %611 = tpu.reciprocal %610 {approx = true} : vector<8x1xf32> -> vector<8x1xf32>
    %612 = vector.broadcast %611 : vector<8x1xf32> to vector<8x8xf32>
    %613 = arith.mulf %608, %612 : vector<8x8xf32>
    %cst_203 = arith.constant dense<0.000000e+00> : vector<8x16xf32>
    %614 = tpu.matmul %613, %601, %cst_203 {dimension_numbers = #tpu.dot_dimension_numbers<[1], [0], [0], [1], [0, 0, 1, 1], [], []>} : vector<8x8xf32>, vector<8x16xf32>, vector<8x16xf32> -> vector<8x16xf32>
    %615 = vector.extract_strided_slice %596 {offsets = [0, 16], sizes = [8, 16], strides = [1, 1]} : vector<8x32xf32> to vector<8x16xf32>
    %616 = vector.extract_strided_slice %597 {offsets = [0, 16], sizes = [8, 16], strides = [1, 1]} : vector<8x32xf32> to vector<8x16xf32>
    %617 = vector.extract_strided_slice %598 {offsets = [0, 16], sizes = [8, 16], strides = [1, 1]} : vector<8x32xf32> to vector<8x16xf32>
    %cst_204 = arith.constant dense<0.000000e+00> : vector<8x8xf32>
    %618 = tpu.matmul %615, %616, %cst_204 {dimension_numbers = #tpu.dot_dimension_numbers<[1], [1], [0], [0], [0, 0, 1, 0], [], []>} : vector<8x16xf32>, vector<8x16xf32>, vector<8x8xf32> -> vector<8x8xf32>
    %619 = arith.addf %618, %115 : vector<8x8xf32>
    %cst_205 = arith.constant dense<0xFF800000> : vector<8xf32>
    %620 = vector.multi_reduction <maximumf>, %619, %cst_205 [1] : vector<8x8xf32> to vector<8xf32>
    %621 = vector.shape_cast %620 : vector<8xf32> to vector<8x1xf32>
    %622 = vector.broadcast %621 : vector<8x1xf32> to vector<8x8xf32>
    %623 = arith.subf %619, %622 : vector<8x8xf32>
    %624 = math.exp %623 : vector<8x8xf32>
    %cst_206 = arith.constant dense<0.000000e+00> : vector<8xf32>
    %625 = vector.multi_reduction <add>, %624, %cst_206 [1] : vector<8x8xf32> to vector<8xf32>
    %626 = vector.shape_cast %625 : vector<8xf32> to vector<8x1xf32>
    %627 = tpu.reciprocal %626 {approx = true} : vector<8x1xf32> -> vector<8x1xf32>
    %628 = vector.broadcast %627 : vector<8x1xf32> to vector<8x8xf32>
    %629 = arith.mulf %624, %628 : vector<8x8xf32>
    %cst_207 = arith.constant dense<0.000000e+00> : vector<8x16xf32>
    %630 = tpu.matmul %629, %617, %cst_207 {dimension_numbers = #tpu.dot_dimension_numbers<[1], [0], [0], [1], [0, 0, 1, 1], [], []>} : vector<8x8xf32>, vector<8x16xf32>, vector<8x16xf32> -> vector<8x16xf32>
    %631 = tpu.concatenate %614, %630 in 1 : vector<8x16xf32>, vector<8x16xf32> -> vector<8x32xf32>
    %cst_208 = arith.constant dense<0.000000e+00> : vector<8x32xf32>
    %632 = tpu.matmul %631, %101, %cst_208 {dimension_numbers = #tpu.dot_dimension_numbers<[1], [0], [0], [1], [0, 0, 1, 1], [], []>} : vector<8x32xf32>, vector<32x32xf32>, vector<8x32xf32> -> vector<8x32xf32>
    %633 = arith.addf %582, %632 : vector<8x32xf32>
    %634 = arith.mulf %633, %633 : vector<8x32xf32>
    %cst_209 = arith.constant dense<0.000000e+00> : vector<8xf32>
    %635 = vector.multi_reduction <add>, %634, %cst_209 [1] : vector<8x32xf32> to vector<8xf32>
    %636 = vector.shape_cast %635 : vector<8xf32> to vector<8x1xf32>
    %cst_210 = arith.constant 3.200000e+01 : f32
    %637 = vector.broadcast %cst_210 : f32 to vector<8x1xf32>
    %638 = arith.divf %636, %637 : vector<8x1xf32>
    %cst_211 = arith.constant 9.99999997E-7 : f32
    %639 = vector.broadcast %cst_211 : f32 to vector<8x1xf32>
    %640 = arith.addf %638, %639 : vector<8x1xf32>
    %641 = math.rsqrt %640 : vector<8x1xf32>
    %642 = vector.broadcast %641 : vector<8x1xf32> to vector<8x32xf32>
    %643 = arith.mulf %633, %642 : vector<8x32xf32>
    %644 = vector.broadcast %102 : vector<1x32xf32> to vector<8x32xf32>
    %645 = arith.mulf %643, %644 : vector<8x32xf32>
    %cst_212 = arith.constant dense<0.000000e+00> : vector<8x32xf32>
    %646 = tpu.matmul %645, %103, %cst_212 {dimension_numbers = #tpu.dot_dimension_numbers<[1], [0], [0], [1], [0, 0, 1, 1], [], []>} : vector<8x32xf32>, vector<32x32xf32>, vector<8x32xf32> -> vector<8x32xf32>
    %647 = vector.extract_strided_slice %646 {offsets = [0, 0], sizes = [8, 16], strides = [1, 1]} : vector<8x32xf32> to vector<8x16xf32>
    %648 = vector.extract_strided_slice %97 {offsets = [0, 0], sizes = [8, 16], strides = [1, 1]} : vector<8x32xf32> to vector<8x16xf32>
    %649 = vector.extract_strided_slice %98 {offsets = [0, 0], sizes = [8, 16], strides = [1, 1]} : vector<8x32xf32> to vector<8x16xf32>
    %cst_213 = arith.constant dense<0.000000e+00> : vector<8x8xf32>
    %650 = tpu.matmul %647, %648, %cst_213 {dimension_numbers = #tpu.dot_dimension_numbers<[1], [1], [0], [0], [0, 0, 1, 0], [], []>} : vector<8x16xf32>, vector<8x16xf32>, vector<8x8xf32> -> vector<8x8xf32>
    %cst_214 = arith.constant dense<0xFF800000> : vector<8xf32>
    %651 = vector.multi_reduction <maximumf>, %650, %cst_214 [1] : vector<8x8xf32> to vector<8xf32>
    %652 = vector.shape_cast %651 : vector<8xf32> to vector<8x1xf32>
    %653 = vector.broadcast %652 : vector<8x1xf32> to vector<8x8xf32>
    %654 = arith.subf %650, %653 : vector<8x8xf32>
    %655 = math.exp %654 : vector<8x8xf32>
    %cst_215 = arith.constant dense<0.000000e+00> : vector<8xf32>
    %656 = vector.multi_reduction <add>, %655, %cst_215 [1] : vector<8x8xf32> to vector<8xf32>
    %657 = vector.shape_cast %656 : vector<8xf32> to vector<8x1xf32>
    %658 = tpu.reciprocal %657 {approx = true} : vector<8x1xf32> -> vector<8x1xf32>
    %659 = vector.broadcast %658 : vector<8x1xf32> to vector<8x8xf32>
    %660 = arith.mulf %655, %659 : vector<8x8xf32>
    %cst_216 = arith.constant dense<0.000000e+00> : vector<8x16xf32>
    %661 = tpu.matmul %660, %649, %cst_216 {dimension_numbers = #tpu.dot_dimension_numbers<[1], [0], [0], [1], [0, 0, 1, 1], [], []>} : vector<8x8xf32>, vector<8x16xf32>, vector<8x16xf32> -> vector<8x16xf32>
    %662 = vector.extract_strided_slice %646 {offsets = [0, 16], sizes = [8, 16], strides = [1, 1]} : vector<8x32xf32> to vector<8x16xf32>
    %663 = vector.extract_strided_slice %97 {offsets = [0, 16], sizes = [8, 16], strides = [1, 1]} : vector<8x32xf32> to vector<8x16xf32>
    %664 = vector.extract_strided_slice %98 {offsets = [0, 16], sizes = [8, 16], strides = [1, 1]} : vector<8x32xf32> to vector<8x16xf32>
    %cst_217 = arith.constant dense<0.000000e+00> : vector<8x8xf32>
    %665 = tpu.matmul %662, %663, %cst_217 {dimension_numbers = #tpu.dot_dimension_numbers<[1], [1], [0], [0], [0, 0, 1, 0], [], []>} : vector<8x16xf32>, vector<8x16xf32>, vector<8x8xf32> -> vector<8x8xf32>
    %cst_218 = arith.constant dense<0xFF800000> : vector<8xf32>
    %666 = vector.multi_reduction <maximumf>, %665, %cst_218 [1] : vector<8x8xf32> to vector<8xf32>
    %667 = vector.shape_cast %666 : vector<8xf32> to vector<8x1xf32>
    %668 = vector.broadcast %667 : vector<8x1xf32> to vector<8x8xf32>
    %669 = arith.subf %665, %668 : vector<8x8xf32>
    %670 = math.exp %669 : vector<8x8xf32>
    %cst_219 = arith.constant dense<0.000000e+00> : vector<8xf32>
    %671 = vector.multi_reduction <add>, %670, %cst_219 [1] : vector<8x8xf32> to vector<8xf32>
    %672 = vector.shape_cast %671 : vector<8xf32> to vector<8x1xf32>
    %673 = tpu.reciprocal %672 {approx = true} : vector<8x1xf32> -> vector<8x1xf32>
    %674 = vector.broadcast %673 : vector<8x1xf32> to vector<8x8xf32>
    %675 = arith.mulf %670, %674 : vector<8x8xf32>
    %cst_220 = arith.constant dense<0.000000e+00> : vector<8x16xf32>
    %676 = tpu.matmul %675, %664, %cst_220 {dimension_numbers = #tpu.dot_dimension_numbers<[1], [0], [0], [1], [0, 0, 1, 1], [], []>} : vector<8x8xf32>, vector<8x16xf32>, vector<8x16xf32> -> vector<8x16xf32>
    %677 = tpu.concatenate %661, %676 in 1 : vector<8x16xf32>, vector<8x16xf32> -> vector<8x32xf32>
    %cst_221 = arith.constant dense<0.000000e+00> : vector<8x32xf32>
    %678 = tpu.matmul %677, %104, %cst_221 {dimension_numbers = #tpu.dot_dimension_numbers<[1], [0], [0], [1], [0, 0, 1, 1], [], []>} : vector<8x32xf32>, vector<32x32xf32>, vector<8x32xf32> -> vector<8x32xf32>
    %679 = arith.addf %633, %678 : vector<8x32xf32>
    %680 = arith.mulf %679, %679 : vector<8x32xf32>
    %cst_222 = arith.constant dense<0.000000e+00> : vector<8xf32>
    %681 = vector.multi_reduction <add>, %680, %cst_222 [1] : vector<8x32xf32> to vector<8xf32>
    %682 = vector.shape_cast %681 : vector<8xf32> to vector<8x1xf32>
    %cst_223 = arith.constant 3.200000e+01 : f32
    %683 = vector.broadcast %cst_223 : f32 to vector<8x1xf32>
    %684 = arith.divf %682, %683 : vector<8x1xf32>
    %cst_224 = arith.constant 9.99999997E-7 : f32
    %685 = vector.broadcast %cst_224 : f32 to vector<8x1xf32>
    %686 = arith.addf %684, %685 : vector<8x1xf32>
    %687 = math.rsqrt %686 : vector<8x1xf32>
    %688 = vector.broadcast %687 : vector<8x1xf32> to vector<8x32xf32>
    %689 = arith.mulf %679, %688 : vector<8x32xf32>
    %690 = vector.broadcast %105 : vector<1x32xf32> to vector<8x32xf32>
    %691 = arith.mulf %689, %690 : vector<8x32xf32>
    %cst_225 = arith.constant dense<0.000000e+00> : vector<8x64xf32>
    %692 = tpu.matmul %691, %106, %cst_225 {dimension_numbers = #tpu.dot_dimension_numbers<[1], [0], [0], [1], [0, 0, 1, 1], [], []>} : vector<8x32xf32>, vector<32x64xf32>, vector<8x64xf32> -> vector<8x64xf32>
    %cst_226 = arith.constant 0.000000e+00 : f32
    %693 = vector.broadcast %cst_226 : f32 to vector<8x64xf32>
    %694 = arith.maximumf %692, %693 : vector<8x64xf32>
    %cst_227 = arith.constant dense<0.000000e+00> : vector<8x32xf32>
    %695 = tpu.matmul %694, %107, %cst_227 {dimension_numbers = #tpu.dot_dimension_numbers<[1], [0], [0], [1], [0, 0, 1, 1], [], []>} : vector<8x64xf32>, vector<64x32xf32>, vector<8x32xf32> -> vector<8x32xf32>
    %696 = arith.addf %679, %695 : vector<8x32xf32>
    %697 = arith.mulf %696, %696 : vector<8x32xf32>
    %cst_228 = arith.constant dense<0.000000e+00> : vector<8xf32>
    %698 = vector.multi_reduction <add>, %697, %cst_228 [1] : vector<8x32xf32> to vector<8xf32>
    %699 = vector.shape_cast %698 : vector<8xf32> to vector<8x1xf32>
    %cst_229 = arith.constant 3.200000e+01 : f32
    %700 = vector.broadcast %cst_229 : f32 to vector<8x1xf32>
    %701 = arith.divf %699, %700 : vector<8x1xf32>
    %cst_230 = arith.constant 9.99999997E-7 : f32
    %702 = vector.broadcast %cst_230 : f32 to vector<8x1xf32>
    %703 = arith.addf %701, %702 : vector<8x1xf32>
    %704 = math.rsqrt %703 : vector<8x1xf32>
    %705 = vector.broadcast %704 : vector<8x1xf32> to vector<8x32xf32>
    %706 = arith.mulf %696, %705 : vector<8x32xf32>
    %707 = vector.broadcast %108 : vector<1x32xf32> to vector<8x32xf32>
    %708 = arith.mulf %706, %707 : vector<8x32xf32>
    %cst_231 = arith.constant dense<0.000000e+00> : vector<8x64xf32>
    %709 = tpu.matmul %708, %109, %cst_231 {dimension_numbers = #tpu.dot_dimension_numbers<[1], [0], [0], [1], [0, 0, 1, 1], [], []>} : vector<8x32xf32>, vector<32x64xf32>, vector<8x64xf32> -> vector<8x64xf32>
    %710 = vector.broadcast %c3_i32 : i32 to vector<8x64xi32>
    %711 = arith.cmpi eq, %2, %710 : vector<8x64xi32>
    %cst_232 = arith.constant -1.000000e+30 : f32
    %712 = vector.broadcast %cst_232 : f32 to vector<8x64xf32>
    %713 = arith.select %711, %709, %712 : vector<8x64xi1>, vector<8x64xf32>
    %cst_233 = arith.constant dense<0xFF800000> : vector<64xf32>
    %714 = vector.multi_reduction <maximumf>, %713, %cst_233 [0] : vector<8x64xf32> to vector<64xf32>
    %715 = vector.shape_cast %714 : vector<64xf32> to vector<1x64xf32>
    %cst_234 = arith.constant dense<0xFF800000> : vector<1xf32>
    %716 = vector.multi_reduction <maximumf>, %715, %cst_234 [1] : vector<1x64xf32> to vector<1xf32>
    %717 = vector.shape_cast %716 : vector<1xf32> to vector<1x1xf32>
    %718 = vector.broadcast %717 : vector<1x1xf32> to vector<1x64xf32>
    %719 = arith.cmpf oeq, %715, %718 : vector<1x64xf32>
    %c64_i32_235 = arith.constant 64 : i32
    %720 = vector.broadcast %c64_i32_235 : i32 to vector<1x64xi32>
    %721 = arith.select %719, %3, %720 : vector<1x64xi1>, vector<1x64xi32>
    %722 = vector.shape_cast %721 : vector<1x64xi32> to vector<1x1x64xi32>
    %cst_236 = arith.constant dense<2147483647> : vector<1xi32>
    %723 = vector.multi_reduction <minsi>, %722, %cst_236 [1, 2] : vector<1x1x64xi32> to vector<1xi32>
    %724 = vector.shape_cast %723 : vector<1xi32> to vector<1x1x1xi32>
    %725 = vector.extract %724[0, 0, 0] : i32 from vector<1x1x1xi32>
    %726 = vector.broadcast %725 : i32 to vector<1x64xi32>
    %727 = arith.cmpi eq, %3, %726 : vector<1x64xi32>
    %728 = arith.extui %727 : vector<1x64xi1> to vector<1x64xi32>
    %729 = arith.sitofp %728 : vector<1x64xi32> to vector<1x64xf32>
    %c1_i32_237 = arith.constant 1 : i32
    %730 = arith.addi %c3_i32, %c1_i32_237 : i32
    %731 = vector.broadcast %730 : i32 to vector<8x64xi32>
    %732 = arith.cmpi eq, %2, %731 : vector<8x64xi32>
    %733 = vector.shape_cast %729 : vector<1x64xf32> to vector<1x64xf32>
    %734 = vector.broadcast %733 : vector<1x64xf32> to vector<8x64xf32>
    %735 = arith.select %732, %734, %581 : vector<8x64xi1>, vector<8x64xf32>
    %c4_i32 = arith.constant 4 : i32
    %cst_238 = arith.constant dense<0.000000e+00> : vector<8x32xf32>
    %736 = tpu.matmul %735, %0, %cst_238 {dimension_numbers = #tpu.dot_dimension_numbers<[1], [0], [0], [1], [0, 0, 1, 1], [], []>} : vector<8x64xf32>, vector<64x32xf32>, vector<8x32xf32> -> vector<8x32xf32>
    %737 = arith.mulf %736, %736 : vector<8x32xf32>
    %cst_239 = arith.constant dense<0.000000e+00> : vector<8xf32>
    %738 = vector.multi_reduction <add>, %737, %cst_239 [1] : vector<8x32xf32> to vector<8xf32>
    %739 = vector.shape_cast %738 : vector<8xf32> to vector<8x1xf32>
    %cst_240 = arith.constant 3.200000e+01 : f32
    %740 = vector.broadcast %cst_240 : f32 to vector<8x1xf32>
    %741 = arith.divf %739, %740 : vector<8x1xf32>
    %cst_241 = arith.constant 9.99999997E-7 : f32
    %742 = vector.broadcast %cst_241 : f32 to vector<8x1xf32>
    %743 = arith.addf %741, %742 : vector<8x1xf32>
    %744 = math.rsqrt %743 : vector<8x1xf32>
    %745 = vector.broadcast %744 : vector<8x1xf32> to vector<8x32xf32>
    %746 = arith.mulf %736, %745 : vector<8x32xf32>
    %747 = vector.broadcast %99 : vector<1x32xf32> to vector<8x32xf32>
    %748 = arith.mulf %746, %747 : vector<8x32xf32>
    %cst_242 = arith.constant dense<0.000000e+00> : vector<8x96xf32>
    %749 = tpu.matmul %748, %100, %cst_242 {dimension_numbers = #tpu.dot_dimension_numbers<[1], [0], [0], [1], [0, 0, 1, 1], [], []>} : vector<8x32xf32>, vector<32x96xf32>, vector<8x96xf32> -> vector<8x96xf32>
    %750 = vector.extract_strided_slice %749 {offsets = [0, 0], sizes = [8, 32], strides = [1, 1]} : vector<8x96xf32> to vector<8x32xf32>
    %751 = vector.extract_strided_slice %749 {offsets = [0, 32], sizes = [8, 32], strides = [1, 1]} : vector<8x96xf32> to vector<8x32xf32>
    %752 = vector.extract_strided_slice %749 {offsets = [0, 64], sizes = [8, 32], strides = [1, 1]} : vector<8x96xf32> to vector<8x32xf32>
    %753 = vector.extract_strided_slice %750 {offsets = [0, 0], sizes = [8, 16], strides = [1, 1]} : vector<8x32xf32> to vector<8x16xf32>
    %754 = vector.extract_strided_slice %751 {offsets = [0, 0], sizes = [8, 16], strides = [1, 1]} : vector<8x32xf32> to vector<8x16xf32>
    %755 = vector.extract_strided_slice %752 {offsets = [0, 0], sizes = [8, 16], strides = [1, 1]} : vector<8x32xf32> to vector<8x16xf32>
    %cst_243 = arith.constant dense<0.000000e+00> : vector<8x8xf32>
    %756 = tpu.matmul %753, %754, %cst_243 {dimension_numbers = #tpu.dot_dimension_numbers<[1], [1], [0], [0], [0, 0, 1, 0], [], []>} : vector<8x16xf32>, vector<8x16xf32>, vector<8x8xf32> -> vector<8x8xf32>
    %757 = arith.addf %756, %115 : vector<8x8xf32>
    %cst_244 = arith.constant dense<0xFF800000> : vector<8xf32>
    %758 = vector.multi_reduction <maximumf>, %757, %cst_244 [1] : vector<8x8xf32> to vector<8xf32>
    %759 = vector.shape_cast %758 : vector<8xf32> to vector<8x1xf32>
    %760 = vector.broadcast %759 : vector<8x1xf32> to vector<8x8xf32>
    %761 = arith.subf %757, %760 : vector<8x8xf32>
    %762 = math.exp %761 : vector<8x8xf32>
    %cst_245 = arith.constant dense<0.000000e+00> : vector<8xf32>
    %763 = vector.multi_reduction <add>, %762, %cst_245 [1] : vector<8x8xf32> to vector<8xf32>
    %764 = vector.shape_cast %763 : vector<8xf32> to vector<8x1xf32>
    %765 = tpu.reciprocal %764 {approx = true} : vector<8x1xf32> -> vector<8x1xf32>
    %766 = vector.broadcast %765 : vector<8x1xf32> to vector<8x8xf32>
    %767 = arith.mulf %762, %766 : vector<8x8xf32>
    %cst_246 = arith.constant dense<0.000000e+00> : vector<8x16xf32>
    %768 = tpu.matmul %767, %755, %cst_246 {dimension_numbers = #tpu.dot_dimension_numbers<[1], [0], [0], [1], [0, 0, 1, 1], [], []>} : vector<8x8xf32>, vector<8x16xf32>, vector<8x16xf32> -> vector<8x16xf32>
    %769 = vector.extract_strided_slice %750 {offsets = [0, 16], sizes = [8, 16], strides = [1, 1]} : vector<8x32xf32> to vector<8x16xf32>
    %770 = vector.extract_strided_slice %751 {offsets = [0, 16], sizes = [8, 16], strides = [1, 1]} : vector<8x32xf32> to vector<8x16xf32>
    %771 = vector.extract_strided_slice %752 {offsets = [0, 16], sizes = [8, 16], strides = [1, 1]} : vector<8x32xf32> to vector<8x16xf32>
    %cst_247 = arith.constant dense<0.000000e+00> : vector<8x8xf32>
    %772 = tpu.matmul %769, %770, %cst_247 {dimension_numbers = #tpu.dot_dimension_numbers<[1], [1], [0], [0], [0, 0, 1, 0], [], []>} : vector<8x16xf32>, vector<8x16xf32>, vector<8x8xf32> -> vector<8x8xf32>
    %773 = arith.addf %772, %115 : vector<8x8xf32>
    %cst_248 = arith.constant dense<0xFF800000> : vector<8xf32>
    %774 = vector.multi_reduction <maximumf>, %773, %cst_248 [1] : vector<8x8xf32> to vector<8xf32>
    %775 = vector.shape_cast %774 : vector<8xf32> to vector<8x1xf32>
    %776 = vector.broadcast %775 : vector<8x1xf32> to vector<8x8xf32>
    %777 = arith.subf %773, %776 : vector<8x8xf32>
    %778 = math.exp %777 : vector<8x8xf32>
    %cst_249 = arith.constant dense<0.000000e+00> : vector<8xf32>
    %779 = vector.multi_reduction <add>, %778, %cst_249 [1] : vector<8x8xf32> to vector<8xf32>
    %780 = vector.shape_cast %779 : vector<8xf32> to vector<8x1xf32>
    %781 = tpu.reciprocal %780 {approx = true} : vector<8x1xf32> -> vector<8x1xf32>
    %782 = vector.broadcast %781 : vector<8x1xf32> to vector<8x8xf32>
    %783 = arith.mulf %778, %782 : vector<8x8xf32>
    %cst_250 = arith.constant dense<0.000000e+00> : vector<8x16xf32>
    %784 = tpu.matmul %783, %771, %cst_250 {dimension_numbers = #tpu.dot_dimension_numbers<[1], [0], [0], [1], [0, 0, 1, 1], [], []>} : vector<8x8xf32>, vector<8x16xf32>, vector<8x16xf32> -> vector<8x16xf32>
    %785 = tpu.concatenate %768, %784 in 1 : vector<8x16xf32>, vector<8x16xf32> -> vector<8x32xf32>
    %cst_251 = arith.constant dense<0.000000e+00> : vector<8x32xf32>
    %786 = tpu.matmul %785, %101, %cst_251 {dimension_numbers = #tpu.dot_dimension_numbers<[1], [0], [0], [1], [0, 0, 1, 1], [], []>} : vector<8x32xf32>, vector<32x32xf32>, vector<8x32xf32> -> vector<8x32xf32>
    %787 = arith.addf %736, %786 : vector<8x32xf32>
    %788 = arith.mulf %787, %787 : vector<8x32xf32>
    %cst_252 = arith.constant dense<0.000000e+00> : vector<8xf32>
    %789 = vector.multi_reduction <add>, %788, %cst_252 [1] : vector<8x32xf32> to vector<8xf32>
    %790 = vector.shape_cast %789 : vector<8xf32> to vector<8x1xf32>
    %cst_253 = arith.constant 3.200000e+01 : f32
    %791 = vector.broadcast %cst_253 : f32 to vector<8x1xf32>
    %792 = arith.divf %790, %791 : vector<8x1xf32>
    %cst_254 = arith.constant 9.99999997E-7 : f32
    %793 = vector.broadcast %cst_254 : f32 to vector<8x1xf32>
    %794 = arith.addf %792, %793 : vector<8x1xf32>
    %795 = math.rsqrt %794 : vector<8x1xf32>
    %796 = vector.broadcast %795 : vector<8x1xf32> to vector<8x32xf32>
    %797 = arith.mulf %787, %796 : vector<8x32xf32>
    %798 = vector.broadcast %102 : vector<1x32xf32> to vector<8x32xf32>
    %799 = arith.mulf %797, %798 : vector<8x32xf32>
    %cst_255 = arith.constant dense<0.000000e+00> : vector<8x32xf32>
    %800 = tpu.matmul %799, %103, %cst_255 {dimension_numbers = #tpu.dot_dimension_numbers<[1], [0], [0], [1], [0, 0, 1, 1], [], []>} : vector<8x32xf32>, vector<32x32xf32>, vector<8x32xf32> -> vector<8x32xf32>
    %801 = vector.extract_strided_slice %800 {offsets = [0, 0], sizes = [8, 16], strides = [1, 1]} : vector<8x32xf32> to vector<8x16xf32>
    %802 = vector.extract_strided_slice %97 {offsets = [0, 0], sizes = [8, 16], strides = [1, 1]} : vector<8x32xf32> to vector<8x16xf32>
    %803 = vector.extract_strided_slice %98 {offsets = [0, 0], sizes = [8, 16], strides = [1, 1]} : vector<8x32xf32> to vector<8x16xf32>
    %cst_256 = arith.constant dense<0.000000e+00> : vector<8x8xf32>
    %804 = tpu.matmul %801, %802, %cst_256 {dimension_numbers = #tpu.dot_dimension_numbers<[1], [1], [0], [0], [0, 0, 1, 0], [], []>} : vector<8x16xf32>, vector<8x16xf32>, vector<8x8xf32> -> vector<8x8xf32>
    %cst_257 = arith.constant dense<0xFF800000> : vector<8xf32>
    %805 = vector.multi_reduction <maximumf>, %804, %cst_257 [1] : vector<8x8xf32> to vector<8xf32>
    %806 = vector.shape_cast %805 : vector<8xf32> to vector<8x1xf32>
    %807 = vector.broadcast %806 : vector<8x1xf32> to vector<8x8xf32>
    %808 = arith.subf %804, %807 : vector<8x8xf32>
    %809 = math.exp %808 : vector<8x8xf32>
    %cst_258 = arith.constant dense<0.000000e+00> : vector<8xf32>
    %810 = vector.multi_reduction <add>, %809, %cst_258 [1] : vector<8x8xf32> to vector<8xf32>
    %811 = vector.shape_cast %810 : vector<8xf32> to vector<8x1xf32>
    %812 = tpu.reciprocal %811 {approx = true} : vector<8x1xf32> -> vector<8x1xf32>
    %813 = vector.broadcast %812 : vector<8x1xf32> to vector<8x8xf32>
    %814 = arith.mulf %809, %813 : vector<8x8xf32>
    %cst_259 = arith.constant dense<0.000000e+00> : vector<8x16xf32>
    %815 = tpu.matmul %814, %803, %cst_259 {dimension_numbers = #tpu.dot_dimension_numbers<[1], [0], [0], [1], [0, 0, 1, 1], [], []>} : vector<8x8xf32>, vector<8x16xf32>, vector<8x16xf32> -> vector<8x16xf32>
    %816 = vector.extract_strided_slice %800 {offsets = [0, 16], sizes = [8, 16], strides = [1, 1]} : vector<8x32xf32> to vector<8x16xf32>
    %817 = vector.extract_strided_slice %97 {offsets = [0, 16], sizes = [8, 16], strides = [1, 1]} : vector<8x32xf32> to vector<8x16xf32>
    %818 = vector.extract_strided_slice %98 {offsets = [0, 16], sizes = [8, 16], strides = [1, 1]} : vector<8x32xf32> to vector<8x16xf32>
    %cst_260 = arith.constant dense<0.000000e+00> : vector<8x8xf32>
    %819 = tpu.matmul %816, %817, %cst_260 {dimension_numbers = #tpu.dot_dimension_numbers<[1], [1], [0], [0], [0, 0, 1, 0], [], []>} : vector<8x16xf32>, vector<8x16xf32>, vector<8x8xf32> -> vector<8x8xf32>
    %cst_261 = arith.constant dense<0xFF800000> : vector<8xf32>
    %820 = vector.multi_reduction <maximumf>, %819, %cst_261 [1] : vector<8x8xf32> to vector<8xf32>
    %821 = vector.shape_cast %820 : vector<8xf32> to vector<8x1xf32>
    %822 = vector.broadcast %821 : vector<8x1xf32> to vector<8x8xf32>
    %823 = arith.subf %819, %822 : vector<8x8xf32>
    %824 = math.exp %823 : vector<8x8xf32>
    %cst_262 = arith.constant dense<0.000000e+00> : vector<8xf32>
    %825 = vector.multi_reduction <add>, %824, %cst_262 [1] : vector<8x8xf32> to vector<8xf32>
    %826 = vector.shape_cast %825 : vector<8xf32> to vector<8x1xf32>
    %827 = tpu.reciprocal %826 {approx = true} : vector<8x1xf32> -> vector<8x1xf32>
    %828 = vector.broadcast %827 : vector<8x1xf32> to vector<8x8xf32>
    %829 = arith.mulf %824, %828 : vector<8x8xf32>
    %cst_263 = arith.constant dense<0.000000e+00> : vector<8x16xf32>
    %830 = tpu.matmul %829, %818, %cst_263 {dimension_numbers = #tpu.dot_dimension_numbers<[1], [0], [0], [1], [0, 0, 1, 1], [], []>} : vector<8x8xf32>, vector<8x16xf32>, vector<8x16xf32> -> vector<8x16xf32>
    %831 = tpu.concatenate %815, %830 in 1 : vector<8x16xf32>, vector<8x16xf32> -> vector<8x32xf32>
    %cst_264 = arith.constant dense<0.000000e+00> : vector<8x32xf32>
    %832 = tpu.matmul %831, %104, %cst_264 {dimension_numbers = #tpu.dot_dimension_numbers<[1], [0], [0], [1], [0, 0, 1, 1], [], []>} : vector<8x32xf32>, vector<32x32xf32>, vector<8x32xf32> -> vector<8x32xf32>
    %833 = arith.addf %787, %832 : vector<8x32xf32>
    %834 = arith.mulf %833, %833 : vector<8x32xf32>
    %cst_265 = arith.constant dense<0.000000e+00> : vector<8xf32>
    %835 = vector.multi_reduction <add>, %834, %cst_265 [1] : vector<8x32xf32> to vector<8xf32>
    %836 = vector.shape_cast %835 : vector<8xf32> to vector<8x1xf32>
    %cst_266 = arith.constant 3.200000e+01 : f32
    %837 = vector.broadcast %cst_266 : f32 to vector<8x1xf32>
    %838 = arith.divf %836, %837 : vector<8x1xf32>
    %cst_267 = arith.constant 9.99999997E-7 : f32
    %839 = vector.broadcast %cst_267 : f32 to vector<8x1xf32>
    %840 = arith.addf %838, %839 : vector<8x1xf32>
    %841 = math.rsqrt %840 : vector<8x1xf32>
    %842 = vector.broadcast %841 : vector<8x1xf32> to vector<8x32xf32>
    %843 = arith.mulf %833, %842 : vector<8x32xf32>
    %844 = vector.broadcast %105 : vector<1x32xf32> to vector<8x32xf32>
    %845 = arith.mulf %843, %844 : vector<8x32xf32>
    %cst_268 = arith.constant dense<0.000000e+00> : vector<8x64xf32>
    %846 = tpu.matmul %845, %106, %cst_268 {dimension_numbers = #tpu.dot_dimension_numbers<[1], [0], [0], [1], [0, 0, 1, 1], [], []>} : vector<8x32xf32>, vector<32x64xf32>, vector<8x64xf32> -> vector<8x64xf32>
    %cst_269 = arith.constant 0.000000e+00 : f32
    %847 = vector.broadcast %cst_269 : f32 to vector<8x64xf32>
    %848 = arith.maximumf %846, %847 : vector<8x64xf32>
    %cst_270 = arith.constant dense<0.000000e+00> : vector<8x32xf32>
    %849 = tpu.matmul %848, %107, %cst_270 {dimension_numbers = #tpu.dot_dimension_numbers<[1], [0], [0], [1], [0, 0, 1, 1], [], []>} : vector<8x64xf32>, vector<64x32xf32>, vector<8x32xf32> -> vector<8x32xf32>
    %850 = arith.addf %833, %849 : vector<8x32xf32>
    %851 = arith.mulf %850, %850 : vector<8x32xf32>
    %cst_271 = arith.constant dense<0.000000e+00> : vector<8xf32>
    %852 = vector.multi_reduction <add>, %851, %cst_271 [1] : vector<8x32xf32> to vector<8xf32>
    %853 = vector.shape_cast %852 : vector<8xf32> to vector<8x1xf32>
    %cst_272 = arith.constant 3.200000e+01 : f32
    %854 = vector.broadcast %cst_272 : f32 to vector<8x1xf32>
    %855 = arith.divf %853, %854 : vector<8x1xf32>
    %cst_273 = arith.constant 9.99999997E-7 : f32
    %856 = vector.broadcast %cst_273 : f32 to vector<8x1xf32>
    %857 = arith.addf %855, %856 : vector<8x1xf32>
    %858 = math.rsqrt %857 : vector<8x1xf32>
    %859 = vector.broadcast %858 : vector<8x1xf32> to vector<8x32xf32>
    %860 = arith.mulf %850, %859 : vector<8x32xf32>
    %861 = vector.broadcast %108 : vector<1x32xf32> to vector<8x32xf32>
    %862 = arith.mulf %860, %861 : vector<8x32xf32>
    %cst_274 = arith.constant dense<0.000000e+00> : vector<8x64xf32>
    %863 = tpu.matmul %862, %109, %cst_274 {dimension_numbers = #tpu.dot_dimension_numbers<[1], [0], [0], [1], [0, 0, 1, 1], [], []>} : vector<8x32xf32>, vector<32x64xf32>, vector<8x64xf32> -> vector<8x64xf32>
    %864 = vector.broadcast %c4_i32 : i32 to vector<8x64xi32>
    %865 = arith.cmpi eq, %2, %864 : vector<8x64xi32>
    %cst_275 = arith.constant -1.000000e+30 : f32
    %866 = vector.broadcast %cst_275 : f32 to vector<8x64xf32>
    %867 = arith.select %865, %863, %866 : vector<8x64xi1>, vector<8x64xf32>
    %cst_276 = arith.constant dense<0xFF800000> : vector<64xf32>
    %868 = vector.multi_reduction <maximumf>, %867, %cst_276 [0] : vector<8x64xf32> to vector<64xf32>
    %869 = vector.shape_cast %868 : vector<64xf32> to vector<1x64xf32>
    %cst_277 = arith.constant dense<0xFF800000> : vector<1xf32>
    %870 = vector.multi_reduction <maximumf>, %869, %cst_277 [1] : vector<1x64xf32> to vector<1xf32>
    %871 = vector.shape_cast %870 : vector<1xf32> to vector<1x1xf32>
    %872 = vector.broadcast %871 : vector<1x1xf32> to vector<1x64xf32>
    %873 = arith.cmpf oeq, %869, %872 : vector<1x64xf32>
    %c64_i32_278 = arith.constant 64 : i32
    %874 = vector.broadcast %c64_i32_278 : i32 to vector<1x64xi32>
    %875 = arith.select %873, %3, %874 : vector<1x64xi1>, vector<1x64xi32>
    %876 = vector.shape_cast %875 : vector<1x64xi32> to vector<1x1x64xi32>
    %cst_279 = arith.constant dense<2147483647> : vector<1xi32>
    %877 = vector.multi_reduction <minsi>, %876, %cst_279 [1, 2] : vector<1x1x64xi32> to vector<1xi32>
    %878 = vector.shape_cast %877 : vector<1xi32> to vector<1x1x1xi32>
    %879 = vector.extract %878[0, 0, 0] : i32 from vector<1x1x1xi32>
    %880 = vector.broadcast %879 : i32 to vector<1x64xi32>
    %881 = arith.cmpi eq, %3, %880 : vector<1x64xi32>
    %882 = arith.extui %881 : vector<1x64xi1> to vector<1x64xi32>
    %883 = arith.sitofp %882 : vector<1x64xi32> to vector<1x64xf32>
    %c1_i32_280 = arith.constant 1 : i32
    %884 = arith.addi %c4_i32, %c1_i32_280 : i32
    %885 = vector.broadcast %884 : i32 to vector<8x64xi32>
    %886 = arith.cmpi eq, %2, %885 : vector<8x64xi32>
    %887 = vector.shape_cast %883 : vector<1x64xf32> to vector<1x64xf32>
    %888 = vector.broadcast %887 : vector<1x64xf32> to vector<8x64xf32>
    %889 = arith.select %886, %888, %735 : vector<8x64xi1>, vector<8x64xf32>
    %c5_i32 = arith.constant 5 : i32
    %cst_281 = arith.constant dense<0.000000e+00> : vector<8x32xf32>
    %890 = tpu.matmul %889, %0, %cst_281 {dimension_numbers = #tpu.dot_dimension_numbers<[1], [0], [0], [1], [0, 0, 1, 1], [], []>} : vector<8x64xf32>, vector<64x32xf32>, vector<8x32xf32> -> vector<8x32xf32>
    %891 = arith.mulf %890, %890 : vector<8x32xf32>
    %cst_282 = arith.constant dense<0.000000e+00> : vector<8xf32>
    %892 = vector.multi_reduction <add>, %891, %cst_282 [1] : vector<8x32xf32> to vector<8xf32>
    %893 = vector.shape_cast %892 : vector<8xf32> to vector<8x1xf32>
    %cst_283 = arith.constant 3.200000e+01 : f32
    %894 = vector.broadcast %cst_283 : f32 to vector<8x1xf32>
    %895 = arith.divf %893, %894 : vector<8x1xf32>
    %cst_284 = arith.constant 9.99999997E-7 : f32
    %896 = vector.broadcast %cst_284 : f32 to vector<8x1xf32>
    %897 = arith.addf %895, %896 : vector<8x1xf32>
    %898 = math.rsqrt %897 : vector<8x1xf32>
    %899 = vector.broadcast %898 : vector<8x1xf32> to vector<8x32xf32>
    %900 = arith.mulf %890, %899 : vector<8x32xf32>
    %901 = vector.broadcast %99 : vector<1x32xf32> to vector<8x32xf32>
    %902 = arith.mulf %900, %901 : vector<8x32xf32>
    %cst_285 = arith.constant dense<0.000000e+00> : vector<8x96xf32>
    %903 = tpu.matmul %902, %100, %cst_285 {dimension_numbers = #tpu.dot_dimension_numbers<[1], [0], [0], [1], [0, 0, 1, 1], [], []>} : vector<8x32xf32>, vector<32x96xf32>, vector<8x96xf32> -> vector<8x96xf32>
    %904 = vector.extract_strided_slice %903 {offsets = [0, 0], sizes = [8, 32], strides = [1, 1]} : vector<8x96xf32> to vector<8x32xf32>
    %905 = vector.extract_strided_slice %903 {offsets = [0, 32], sizes = [8, 32], strides = [1, 1]} : vector<8x96xf32> to vector<8x32xf32>
    %906 = vector.extract_strided_slice %903 {offsets = [0, 64], sizes = [8, 32], strides = [1, 1]} : vector<8x96xf32> to vector<8x32xf32>
    %907 = vector.extract_strided_slice %904 {offsets = [0, 0], sizes = [8, 16], strides = [1, 1]} : vector<8x32xf32> to vector<8x16xf32>
    %908 = vector.extract_strided_slice %905 {offsets = [0, 0], sizes = [8, 16], strides = [1, 1]} : vector<8x32xf32> to vector<8x16xf32>
    %909 = vector.extract_strided_slice %906 {offsets = [0, 0], sizes = [8, 16], strides = [1, 1]} : vector<8x32xf32> to vector<8x16xf32>
    %cst_286 = arith.constant dense<0.000000e+00> : vector<8x8xf32>
    %910 = tpu.matmul %907, %908, %cst_286 {dimension_numbers = #tpu.dot_dimension_numbers<[1], [1], [0], [0], [0, 0, 1, 0], [], []>} : vector<8x16xf32>, vector<8x16xf32>, vector<8x8xf32> -> vector<8x8xf32>
    %911 = arith.addf %910, %115 : vector<8x8xf32>
    %cst_287 = arith.constant dense<0xFF800000> : vector<8xf32>
    %912 = vector.multi_reduction <maximumf>, %911, %cst_287 [1] : vector<8x8xf32> to vector<8xf32>
    %913 = vector.shape_cast %912 : vector<8xf32> to vector<8x1xf32>
    %914 = vector.broadcast %913 : vector<8x1xf32> to vector<8x8xf32>
    %915 = arith.subf %911, %914 : vector<8x8xf32>
    %916 = math.exp %915 : vector<8x8xf32>
    %cst_288 = arith.constant dense<0.000000e+00> : vector<8xf32>
    %917 = vector.multi_reduction <add>, %916, %cst_288 [1] : vector<8x8xf32> to vector<8xf32>
    %918 = vector.shape_cast %917 : vector<8xf32> to vector<8x1xf32>
    %919 = tpu.reciprocal %918 {approx = true} : vector<8x1xf32> -> vector<8x1xf32>
    %920 = vector.broadcast %919 : vector<8x1xf32> to vector<8x8xf32>
    %921 = arith.mulf %916, %920 : vector<8x8xf32>
    %cst_289 = arith.constant dense<0.000000e+00> : vector<8x16xf32>
    %922 = tpu.matmul %921, %909, %cst_289 {dimension_numbers = #tpu.dot_dimension_numbers<[1], [0], [0], [1], [0, 0, 1, 1], [], []>} : vector<8x8xf32>, vector<8x16xf32>, vector<8x16xf32> -> vector<8x16xf32>
    %923 = vector.extract_strided_slice %904 {offsets = [0, 16], sizes = [8, 16], strides = [1, 1]} : vector<8x32xf32> to vector<8x16xf32>
    %924 = vector.extract_strided_slice %905 {offsets = [0, 16], sizes = [8, 16], strides = [1, 1]} : vector<8x32xf32> to vector<8x16xf32>
    %925 = vector.extract_strided_slice %906 {offsets = [0, 16], sizes = [8, 16], strides = [1, 1]} : vector<8x32xf32> to vector<8x16xf32>
    %cst_290 = arith.constant dense<0.000000e+00> : vector<8x8xf32>
    %926 = tpu.matmul %923, %924, %cst_290 {dimension_numbers = #tpu.dot_dimension_numbers<[1], [1], [0], [0], [0, 0, 1, 0], [], []>} : vector<8x16xf32>, vector<8x16xf32>, vector<8x8xf32> -> vector<8x8xf32>
    %927 = arith.addf %926, %115 : vector<8x8xf32>
    %cst_291 = arith.constant dense<0xFF800000> : vector<8xf32>
    %928 = vector.multi_reduction <maximumf>, %927, %cst_291 [1] : vector<8x8xf32> to vector<8xf32>
    %929 = vector.shape_cast %928 : vector<8xf32> to vector<8x1xf32>
    %930 = vector.broadcast %929 : vector<8x1xf32> to vector<8x8xf32>
    %931 = arith.subf %927, %930 : vector<8x8xf32>
    %932 = math.exp %931 : vector<8x8xf32>
    %cst_292 = arith.constant dense<0.000000e+00> : vector<8xf32>
    %933 = vector.multi_reduction <add>, %932, %cst_292 [1] : vector<8x8xf32> to vector<8xf32>
    %934 = vector.shape_cast %933 : vector<8xf32> to vector<8x1xf32>
    %935 = tpu.reciprocal %934 {approx = true} : vector<8x1xf32> -> vector<8x1xf32>
    %936 = vector.broadcast %935 : vector<8x1xf32> to vector<8x8xf32>
    %937 = arith.mulf %932, %936 : vector<8x8xf32>
    %cst_293 = arith.constant dense<0.000000e+00> : vector<8x16xf32>
    %938 = tpu.matmul %937, %925, %cst_293 {dimension_numbers = #tpu.dot_dimension_numbers<[1], [0], [0], [1], [0, 0, 1, 1], [], []>} : vector<8x8xf32>, vector<8x16xf32>, vector<8x16xf32> -> vector<8x16xf32>
    %939 = tpu.concatenate %922, %938 in 1 : vector<8x16xf32>, vector<8x16xf32> -> vector<8x32xf32>
    %cst_294 = arith.constant dense<0.000000e+00> : vector<8x32xf32>
    %940 = tpu.matmul %939, %101, %cst_294 {dimension_numbers = #tpu.dot_dimension_numbers<[1], [0], [0], [1], [0, 0, 1, 1], [], []>} : vector<8x32xf32>, vector<32x32xf32>, vector<8x32xf32> -> vector<8x32xf32>
    %941 = arith.addf %890, %940 : vector<8x32xf32>
    %942 = arith.mulf %941, %941 : vector<8x32xf32>
    %cst_295 = arith.constant dense<0.000000e+00> : vector<8xf32>
    %943 = vector.multi_reduction <add>, %942, %cst_295 [1] : vector<8x32xf32> to vector<8xf32>
    %944 = vector.shape_cast %943 : vector<8xf32> to vector<8x1xf32>
    %cst_296 = arith.constant 3.200000e+01 : f32
    %945 = vector.broadcast %cst_296 : f32 to vector<8x1xf32>
    %946 = arith.divf %944, %945 : vector<8x1xf32>
    %cst_297 = arith.constant 9.99999997E-7 : f32
    %947 = vector.broadcast %cst_297 : f32 to vector<8x1xf32>
    %948 = arith.addf %946, %947 : vector<8x1xf32>
    %949 = math.rsqrt %948 : vector<8x1xf32>
    %950 = vector.broadcast %949 : vector<8x1xf32> to vector<8x32xf32>
    %951 = arith.mulf %941, %950 : vector<8x32xf32>
    %952 = vector.broadcast %102 : vector<1x32xf32> to vector<8x32xf32>
    %953 = arith.mulf %951, %952 : vector<8x32xf32>
    %cst_298 = arith.constant dense<0.000000e+00> : vector<8x32xf32>
    %954 = tpu.matmul %953, %103, %cst_298 {dimension_numbers = #tpu.dot_dimension_numbers<[1], [0], [0], [1], [0, 0, 1, 1], [], []>} : vector<8x32xf32>, vector<32x32xf32>, vector<8x32xf32> -> vector<8x32xf32>
    %955 = vector.extract_strided_slice %954 {offsets = [0, 0], sizes = [8, 16], strides = [1, 1]} : vector<8x32xf32> to vector<8x16xf32>
    %956 = vector.extract_strided_slice %97 {offsets = [0, 0], sizes = [8, 16], strides = [1, 1]} : vector<8x32xf32> to vector<8x16xf32>
    %957 = vector.extract_strided_slice %98 {offsets = [0, 0], sizes = [8, 16], strides = [1, 1]} : vector<8x32xf32> to vector<8x16xf32>
    %cst_299 = arith.constant dense<0.000000e+00> : vector<8x8xf32>
    %958 = tpu.matmul %955, %956, %cst_299 {dimension_numbers = #tpu.dot_dimension_numbers<[1], [1], [0], [0], [0, 0, 1, 0], [], []>} : vector<8x16xf32>, vector<8x16xf32>, vector<8x8xf32> -> vector<8x8xf32>
    %cst_300 = arith.constant dense<0xFF800000> : vector<8xf32>
    %959 = vector.multi_reduction <maximumf>, %958, %cst_300 [1] : vector<8x8xf32> to vector<8xf32>
    %960 = vector.shape_cast %959 : vector<8xf32> to vector<8x1xf32>
    %961 = vector.broadcast %960 : vector<8x1xf32> to vector<8x8xf32>
    %962 = arith.subf %958, %961 : vector<8x8xf32>
    %963 = math.exp %962 : vector<8x8xf32>
    %cst_301 = arith.constant dense<0.000000e+00> : vector<8xf32>
    %964 = vector.multi_reduction <add>, %963, %cst_301 [1] : vector<8x8xf32> to vector<8xf32>
    %965 = vector.shape_cast %964 : vector<8xf32> to vector<8x1xf32>
    %966 = tpu.reciprocal %965 {approx = true} : vector<8x1xf32> -> vector<8x1xf32>
    %967 = vector.broadcast %966 : vector<8x1xf32> to vector<8x8xf32>
    %968 = arith.mulf %963, %967 : vector<8x8xf32>
    %cst_302 = arith.constant dense<0.000000e+00> : vector<8x16xf32>
    %969 = tpu.matmul %968, %957, %cst_302 {dimension_numbers = #tpu.dot_dimension_numbers<[1], [0], [0], [1], [0, 0, 1, 1], [], []>} : vector<8x8xf32>, vector<8x16xf32>, vector<8x16xf32> -> vector<8x16xf32>
    %970 = vector.extract_strided_slice %954 {offsets = [0, 16], sizes = [8, 16], strides = [1, 1]} : vector<8x32xf32> to vector<8x16xf32>
    %971 = vector.extract_strided_slice %97 {offsets = [0, 16], sizes = [8, 16], strides = [1, 1]} : vector<8x32xf32> to vector<8x16xf32>
    %972 = vector.extract_strided_slice %98 {offsets = [0, 16], sizes = [8, 16], strides = [1, 1]} : vector<8x32xf32> to vector<8x16xf32>
    %cst_303 = arith.constant dense<0.000000e+00> : vector<8x8xf32>
    %973 = tpu.matmul %970, %971, %cst_303 {dimension_numbers = #tpu.dot_dimension_numbers<[1], [1], [0], [0], [0, 0, 1, 0], [], []>} : vector<8x16xf32>, vector<8x16xf32>, vector<8x8xf32> -> vector<8x8xf32>
    %cst_304 = arith.constant dense<0xFF800000> : vector<8xf32>
    %974 = vector.multi_reduction <maximumf>, %973, %cst_304 [1] : vector<8x8xf32> to vector<8xf32>
    %975 = vector.shape_cast %974 : vector<8xf32> to vector<8x1xf32>
    %976 = vector.broadcast %975 : vector<8x1xf32> to vector<8x8xf32>
    %977 = arith.subf %973, %976 : vector<8x8xf32>
    %978 = math.exp %977 : vector<8x8xf32>
    %cst_305 = arith.constant dense<0.000000e+00> : vector<8xf32>
    %979 = vector.multi_reduction <add>, %978, %cst_305 [1] : vector<8x8xf32> to vector<8xf32>
    %980 = vector.shape_cast %979 : vector<8xf32> to vector<8x1xf32>
    %981 = tpu.reciprocal %980 {approx = true} : vector<8x1xf32> -> vector<8x1xf32>
    %982 = vector.broadcast %981 : vector<8x1xf32> to vector<8x8xf32>
    %983 = arith.mulf %978, %982 : vector<8x8xf32>
    %cst_306 = arith.constant dense<0.000000e+00> : vector<8x16xf32>
    %984 = tpu.matmul %983, %972, %cst_306 {dimension_numbers = #tpu.dot_dimension_numbers<[1], [0], [0], [1], [0, 0, 1, 1], [], []>} : vector<8x8xf32>, vector<8x16xf32>, vector<8x16xf32> -> vector<8x16xf32>
    %985 = tpu.concatenate %969, %984 in 1 : vector<8x16xf32>, vector<8x16xf32> -> vector<8x32xf32>
    %cst_307 = arith.constant dense<0.000000e+00> : vector<8x32xf32>
    %986 = tpu.matmul %985, %104, %cst_307 {dimension_numbers = #tpu.dot_dimension_numbers<[1], [0], [0], [1], [0, 0, 1, 1], [], []>} : vector<8x32xf32>, vector<32x32xf32>, vector<8x32xf32> -> vector<8x32xf32>
    %987 = arith.addf %941, %986 : vector<8x32xf32>
    %988 = arith.mulf %987, %987 : vector<8x32xf32>
    %cst_308 = arith.constant dense<0.000000e+00> : vector<8xf32>
    %989 = vector.multi_reduction <add>, %988, %cst_308 [1] : vector<8x32xf32> to vector<8xf32>
    %990 = vector.shape_cast %989 : vector<8xf32> to vector<8x1xf32>
    %cst_309 = arith.constant 3.200000e+01 : f32
    %991 = vector.broadcast %cst_309 : f32 to vector<8x1xf32>
    %992 = arith.divf %990, %991 : vector<8x1xf32>
    %cst_310 = arith.constant 9.99999997E-7 : f32
    %993 = vector.broadcast %cst_310 : f32 to vector<8x1xf32>
    %994 = arith.addf %992, %993 : vector<8x1xf32>
    %995 = math.rsqrt %994 : vector<8x1xf32>
    %996 = vector.broadcast %995 : vector<8x1xf32> to vector<8x32xf32>
    %997 = arith.mulf %987, %996 : vector<8x32xf32>
    %998 = vector.broadcast %105 : vector<1x32xf32> to vector<8x32xf32>
    %999 = arith.mulf %997, %998 : vector<8x32xf32>
    %cst_311 = arith.constant dense<0.000000e+00> : vector<8x64xf32>
    %1000 = tpu.matmul %999, %106, %cst_311 {dimension_numbers = #tpu.dot_dimension_numbers<[1], [0], [0], [1], [0, 0, 1, 1], [], []>} : vector<8x32xf32>, vector<32x64xf32>, vector<8x64xf32> -> vector<8x64xf32>
    %cst_312 = arith.constant 0.000000e+00 : f32
    %1001 = vector.broadcast %cst_312 : f32 to vector<8x64xf32>
    %1002 = arith.maximumf %1000, %1001 : vector<8x64xf32>
    %cst_313 = arith.constant dense<0.000000e+00> : vector<8x32xf32>
    %1003 = tpu.matmul %1002, %107, %cst_313 {dimension_numbers = #tpu.dot_dimension_numbers<[1], [0], [0], [1], [0, 0, 1, 1], [], []>} : vector<8x64xf32>, vector<64x32xf32>, vector<8x32xf32> -> vector<8x32xf32>
    %1004 = arith.addf %987, %1003 : vector<8x32xf32>
    %1005 = arith.mulf %1004, %1004 : vector<8x32xf32>
    %cst_314 = arith.constant dense<0.000000e+00> : vector<8xf32>
    %1006 = vector.multi_reduction <add>, %1005, %cst_314 [1] : vector<8x32xf32> to vector<8xf32>
    %1007 = vector.shape_cast %1006 : vector<8xf32> to vector<8x1xf32>
    %cst_315 = arith.constant 3.200000e+01 : f32
    %1008 = vector.broadcast %cst_315 : f32 to vector<8x1xf32>
    %1009 = arith.divf %1007, %1008 : vector<8x1xf32>
    %cst_316 = arith.constant 9.99999997E-7 : f32
    %1010 = vector.broadcast %cst_316 : f32 to vector<8x1xf32>
    %1011 = arith.addf %1009, %1010 : vector<8x1xf32>
    %1012 = math.rsqrt %1011 : vector<8x1xf32>
    %1013 = vector.broadcast %1012 : vector<8x1xf32> to vector<8x32xf32>
    %1014 = arith.mulf %1004, %1013 : vector<8x32xf32>
    %1015 = vector.broadcast %108 : vector<1x32xf32> to vector<8x32xf32>
    %1016 = arith.mulf %1014, %1015 : vector<8x32xf32>
    %cst_317 = arith.constant dense<0.000000e+00> : vector<8x64xf32>
    %1017 = tpu.matmul %1016, %109, %cst_317 {dimension_numbers = #tpu.dot_dimension_numbers<[1], [0], [0], [1], [0, 0, 1, 1], [], []>} : vector<8x32xf32>, vector<32x64xf32>, vector<8x64xf32> -> vector<8x64xf32>
    %1018 = vector.broadcast %c5_i32 : i32 to vector<8x64xi32>
    %1019 = arith.cmpi eq, %2, %1018 : vector<8x64xi32>
    %cst_318 = arith.constant -1.000000e+30 : f32
    %1020 = vector.broadcast %cst_318 : f32 to vector<8x64xf32>
    %1021 = arith.select %1019, %1017, %1020 : vector<8x64xi1>, vector<8x64xf32>
    %cst_319 = arith.constant dense<0xFF800000> : vector<64xf32>
    %1022 = vector.multi_reduction <maximumf>, %1021, %cst_319 [0] : vector<8x64xf32> to vector<64xf32>
    %1023 = vector.shape_cast %1022 : vector<64xf32> to vector<1x64xf32>
    %cst_320 = arith.constant dense<0xFF800000> : vector<1xf32>
    %1024 = vector.multi_reduction <maximumf>, %1023, %cst_320 [1] : vector<1x64xf32> to vector<1xf32>
    %1025 = vector.shape_cast %1024 : vector<1xf32> to vector<1x1xf32>
    %1026 = vector.broadcast %1025 : vector<1x1xf32> to vector<1x64xf32>
    %1027 = arith.cmpf oeq, %1023, %1026 : vector<1x64xf32>
    %c64_i32_321 = arith.constant 64 : i32
    %1028 = vector.broadcast %c64_i32_321 : i32 to vector<1x64xi32>
    %1029 = arith.select %1027, %3, %1028 : vector<1x64xi1>, vector<1x64xi32>
    %1030 = vector.shape_cast %1029 : vector<1x64xi32> to vector<1x1x64xi32>
    %cst_322 = arith.constant dense<2147483647> : vector<1xi32>
    %1031 = vector.multi_reduction <minsi>, %1030, %cst_322 [1, 2] : vector<1x1x64xi32> to vector<1xi32>
    %1032 = vector.shape_cast %1031 : vector<1xi32> to vector<1x1x1xi32>
    %1033 = vector.extract %1032[0, 0, 0] : i32 from vector<1x1x1xi32>
    %1034 = vector.broadcast %1033 : i32 to vector<1x64xi32>
    %1035 = arith.cmpi eq, %3, %1034 : vector<1x64xi32>
    %1036 = arith.extui %1035 : vector<1x64xi1> to vector<1x64xi32>
    %1037 = arith.sitofp %1036 : vector<1x64xi32> to vector<1x64xf32>
    %c1_i32_323 = arith.constant 1 : i32
    %1038 = arith.addi %c5_i32, %c1_i32_323 : i32
    %1039 = vector.broadcast %1038 : i32 to vector<8x64xi32>
    %1040 = arith.cmpi eq, %2, %1039 : vector<8x64xi32>
    %1041 = vector.shape_cast %1037 : vector<1x64xf32> to vector<1x64xf32>
    %1042 = vector.broadcast %1041 : vector<1x64xf32> to vector<8x64xf32>
    %1043 = arith.select %1040, %1042, %889 : vector<8x64xi1>, vector<8x64xf32>
    %c6_i32 = arith.constant 6 : i32
    %cst_324 = arith.constant dense<0.000000e+00> : vector<8x32xf32>
    %1044 = tpu.matmul %1043, %0, %cst_324 {dimension_numbers = #tpu.dot_dimension_numbers<[1], [0], [0], [1], [0, 0, 1, 1], [], []>} : vector<8x64xf32>, vector<64x32xf32>, vector<8x32xf32> -> vector<8x32xf32>
    %1045 = arith.mulf %1044, %1044 : vector<8x32xf32>
    %cst_325 = arith.constant dense<0.000000e+00> : vector<8xf32>
    %1046 = vector.multi_reduction <add>, %1045, %cst_325 [1] : vector<8x32xf32> to vector<8xf32>
    %1047 = vector.shape_cast %1046 : vector<8xf32> to vector<8x1xf32>
    %cst_326 = arith.constant 3.200000e+01 : f32
    %1048 = vector.broadcast %cst_326 : f32 to vector<8x1xf32>
    %1049 = arith.divf %1047, %1048 : vector<8x1xf32>
    %cst_327 = arith.constant 9.99999997E-7 : f32
    %1050 = vector.broadcast %cst_327 : f32 to vector<8x1xf32>
    %1051 = arith.addf %1049, %1050 : vector<8x1xf32>
    %1052 = math.rsqrt %1051 : vector<8x1xf32>
    %1053 = vector.broadcast %1052 : vector<8x1xf32> to vector<8x32xf32>
    %1054 = arith.mulf %1044, %1053 : vector<8x32xf32>
    %1055 = vector.broadcast %99 : vector<1x32xf32> to vector<8x32xf32>
    %1056 = arith.mulf %1054, %1055 : vector<8x32xf32>
    %cst_328 = arith.constant dense<0.000000e+00> : vector<8x96xf32>
    %1057 = tpu.matmul %1056, %100, %cst_328 {dimension_numbers = #tpu.dot_dimension_numbers<[1], [0], [0], [1], [0, 0, 1, 1], [], []>} : vector<8x32xf32>, vector<32x96xf32>, vector<8x96xf32> -> vector<8x96xf32>
    %1058 = vector.extract_strided_slice %1057 {offsets = [0, 0], sizes = [8, 32], strides = [1, 1]} : vector<8x96xf32> to vector<8x32xf32>
    %1059 = vector.extract_strided_slice %1057 {offsets = [0, 32], sizes = [8, 32], strides = [1, 1]} : vector<8x96xf32> to vector<8x32xf32>
    %1060 = vector.extract_strided_slice %1057 {offsets = [0, 64], sizes = [8, 32], strides = [1, 1]} : vector<8x96xf32> to vector<8x32xf32>
    %1061 = vector.extract_strided_slice %1058 {offsets = [0, 0], sizes = [8, 16], strides = [1, 1]} : vector<8x32xf32> to vector<8x16xf32>
    %1062 = vector.extract_strided_slice %1059 {offsets = [0, 0], sizes = [8, 16], strides = [1, 1]} : vector<8x32xf32> to vector<8x16xf32>
    %1063 = vector.extract_strided_slice %1060 {offsets = [0, 0], sizes = [8, 16], strides = [1, 1]} : vector<8x32xf32> to vector<8x16xf32>
    %cst_329 = arith.constant dense<0.000000e+00> : vector<8x8xf32>
    %1064 = tpu.matmul %1061, %1062, %cst_329 {dimension_numbers = #tpu.dot_dimension_numbers<[1], [1], [0], [0], [0, 0, 1, 0], [], []>} : vector<8x16xf32>, vector<8x16xf32>, vector<8x8xf32> -> vector<8x8xf32>
    %1065 = arith.addf %1064, %115 : vector<8x8xf32>
    %cst_330 = arith.constant dense<0xFF800000> : vector<8xf32>
    %1066 = vector.multi_reduction <maximumf>, %1065, %cst_330 [1] : vector<8x8xf32> to vector<8xf32>
    %1067 = vector.shape_cast %1066 : vector<8xf32> to vector<8x1xf32>
    %1068 = vector.broadcast %1067 : vector<8x1xf32> to vector<8x8xf32>
    %1069 = arith.subf %1065, %1068 : vector<8x8xf32>
    %1070 = math.exp %1069 : vector<8x8xf32>
    %cst_331 = arith.constant dense<0.000000e+00> : vector<8xf32>
    %1071 = vector.multi_reduction <add>, %1070, %cst_331 [1] : vector<8x8xf32> to vector<8xf32>
    %1072 = vector.shape_cast %1071 : vector<8xf32> to vector<8x1xf32>
    %1073 = tpu.reciprocal %1072 {approx = true} : vector<8x1xf32> -> vector<8x1xf32>
    %1074 = vector.broadcast %1073 : vector<8x1xf32> to vector<8x8xf32>
    %1075 = arith.mulf %1070, %1074 : vector<8x8xf32>
    %cst_332 = arith.constant dense<0.000000e+00> : vector<8x16xf32>
    %1076 = tpu.matmul %1075, %1063, %cst_332 {dimension_numbers = #tpu.dot_dimension_numbers<[1], [0], [0], [1], [0, 0, 1, 1], [], []>} : vector<8x8xf32>, vector<8x16xf32>, vector<8x16xf32> -> vector<8x16xf32>
    %1077 = vector.extract_strided_slice %1058 {offsets = [0, 16], sizes = [8, 16], strides = [1, 1]} : vector<8x32xf32> to vector<8x16xf32>
    %1078 = vector.extract_strided_slice %1059 {offsets = [0, 16], sizes = [8, 16], strides = [1, 1]} : vector<8x32xf32> to vector<8x16xf32>
    %1079 = vector.extract_strided_slice %1060 {offsets = [0, 16], sizes = [8, 16], strides = [1, 1]} : vector<8x32xf32> to vector<8x16xf32>
    %cst_333 = arith.constant dense<0.000000e+00> : vector<8x8xf32>
    %1080 = tpu.matmul %1077, %1078, %cst_333 {dimension_numbers = #tpu.dot_dimension_numbers<[1], [1], [0], [0], [0, 0, 1, 0], [], []>} : vector<8x16xf32>, vector<8x16xf32>, vector<8x8xf32> -> vector<8x8xf32>
    %1081 = arith.addf %1080, %115 : vector<8x8xf32>
    %cst_334 = arith.constant dense<0xFF800000> : vector<8xf32>
    %1082 = vector.multi_reduction <maximumf>, %1081, %cst_334 [1] : vector<8x8xf32> to vector<8xf32>
    %1083 = vector.shape_cast %1082 : vector<8xf32> to vector<8x1xf32>
    %1084 = vector.broadcast %1083 : vector<8x1xf32> to vector<8x8xf32>
    %1085 = arith.subf %1081, %1084 : vector<8x8xf32>
    %1086 = math.exp %1085 : vector<8x8xf32>
    %cst_335 = arith.constant dense<0.000000e+00> : vector<8xf32>
    %1087 = vector.multi_reduction <add>, %1086, %cst_335 [1] : vector<8x8xf32> to vector<8xf32>
    %1088 = vector.shape_cast %1087 : vector<8xf32> to vector<8x1xf32>
    %1089 = tpu.reciprocal %1088 {approx = true} : vector<8x1xf32> -> vector<8x1xf32>
    %1090 = vector.broadcast %1089 : vector<8x1xf32> to vector<8x8xf32>
    %1091 = arith.mulf %1086, %1090 : vector<8x8xf32>
    %cst_336 = arith.constant dense<0.000000e+00> : vector<8x16xf32>
    %1092 = tpu.matmul %1091, %1079, %cst_336 {dimension_numbers = #tpu.dot_dimension_numbers<[1], [0], [0], [1], [0, 0, 1, 1], [], []>} : vector<8x8xf32>, vector<8x16xf32>, vector<8x16xf32> -> vector<8x16xf32>
    %1093 = tpu.concatenate %1076, %1092 in 1 : vector<8x16xf32>, vector<8x16xf32> -> vector<8x32xf32>
    %cst_337 = arith.constant dense<0.000000e+00> : vector<8x32xf32>
    %1094 = tpu.matmul %1093, %101, %cst_337 {dimension_numbers = #tpu.dot_dimension_numbers<[1], [0], [0], [1], [0, 0, 1, 1], [], []>} : vector<8x32xf32>, vector<32x32xf32>, vector<8x32xf32> -> vector<8x32xf32>
    %1095 = arith.addf %1044, %1094 : vector<8x32xf32>
    %1096 = arith.mulf %1095, %1095 : vector<8x32xf32>
    %cst_338 = arith.constant dense<0.000000e+00> : vector<8xf32>
    %1097 = vector.multi_reduction <add>, %1096, %cst_338 [1] : vector<8x32xf32> to vector<8xf32>
    %1098 = vector.shape_cast %1097 : vector<8xf32> to vector<8x1xf32>
    %cst_339 = arith.constant 3.200000e+01 : f32
    %1099 = vector.broadcast %cst_339 : f32 to vector<8x1xf32>
    %1100 = arith.divf %1098, %1099 : vector<8x1xf32>
    %cst_340 = arith.constant 9.99999997E-7 : f32
    %1101 = vector.broadcast %cst_340 : f32 to vector<8x1xf32>
    %1102 = arith.addf %1100, %1101 : vector<8x1xf32>
    %1103 = math.rsqrt %1102 : vector<8x1xf32>
    %1104 = vector.broadcast %1103 : vector<8x1xf32> to vector<8x32xf32>
    %1105 = arith.mulf %1095, %1104 : vector<8x32xf32>
    %1106 = vector.broadcast %102 : vector<1x32xf32> to vector<8x32xf32>
    %1107 = arith.mulf %1105, %1106 : vector<8x32xf32>
    %cst_341 = arith.constant dense<0.000000e+00> : vector<8x32xf32>
    %1108 = tpu.matmul %1107, %103, %cst_341 {dimension_numbers = #tpu.dot_dimension_numbers<[1], [0], [0], [1], [0, 0, 1, 1], [], []>} : vector<8x32xf32>, vector<32x32xf32>, vector<8x32xf32> -> vector<8x32xf32>
    %1109 = vector.extract_strided_slice %1108 {offsets = [0, 0], sizes = [8, 16], strides = [1, 1]} : vector<8x32xf32> to vector<8x16xf32>
    %1110 = vector.extract_strided_slice %97 {offsets = [0, 0], sizes = [8, 16], strides = [1, 1]} : vector<8x32xf32> to vector<8x16xf32>
    %1111 = vector.extract_strided_slice %98 {offsets = [0, 0], sizes = [8, 16], strides = [1, 1]} : vector<8x32xf32> to vector<8x16xf32>
    %cst_342 = arith.constant dense<0.000000e+00> : vector<8x8xf32>
    %1112 = tpu.matmul %1109, %1110, %cst_342 {dimension_numbers = #tpu.dot_dimension_numbers<[1], [1], [0], [0], [0, 0, 1, 0], [], []>} : vector<8x16xf32>, vector<8x16xf32>, vector<8x8xf32> -> vector<8x8xf32>
    %cst_343 = arith.constant dense<0xFF800000> : vector<8xf32>
    %1113 = vector.multi_reduction <maximumf>, %1112, %cst_343 [1] : vector<8x8xf32> to vector<8xf32>
    %1114 = vector.shape_cast %1113 : vector<8xf32> to vector<8x1xf32>
    %1115 = vector.broadcast %1114 : vector<8x1xf32> to vector<8x8xf32>
    %1116 = arith.subf %1112, %1115 : vector<8x8xf32>
    %1117 = math.exp %1116 : vector<8x8xf32>
    %cst_344 = arith.constant dense<0.000000e+00> : vector<8xf32>
    %1118 = vector.multi_reduction <add>, %1117, %cst_344 [1] : vector<8x8xf32> to vector<8xf32>
    %1119 = vector.shape_cast %1118 : vector<8xf32> to vector<8x1xf32>
    %1120 = tpu.reciprocal %1119 {approx = true} : vector<8x1xf32> -> vector<8x1xf32>
    %1121 = vector.broadcast %1120 : vector<8x1xf32> to vector<8x8xf32>
    %1122 = arith.mulf %1117, %1121 : vector<8x8xf32>
    %cst_345 = arith.constant dense<0.000000e+00> : vector<8x16xf32>
    %1123 = tpu.matmul %1122, %1111, %cst_345 {dimension_numbers = #tpu.dot_dimension_numbers<[1], [0], [0], [1], [0, 0, 1, 1], [], []>} : vector<8x8xf32>, vector<8x16xf32>, vector<8x16xf32> -> vector<8x16xf32>
    %1124 = vector.extract_strided_slice %1108 {offsets = [0, 16], sizes = [8, 16], strides = [1, 1]} : vector<8x32xf32> to vector<8x16xf32>
    %1125 = vector.extract_strided_slice %97 {offsets = [0, 16], sizes = [8, 16], strides = [1, 1]} : vector<8x32xf32> to vector<8x16xf32>
    %1126 = vector.extract_strided_slice %98 {offsets = [0, 16], sizes = [8, 16], strides = [1, 1]} : vector<8x32xf32> to vector<8x16xf32>
    %cst_346 = arith.constant dense<0.000000e+00> : vector<8x8xf32>
    %1127 = tpu.matmul %1124, %1125, %cst_346 {dimension_numbers = #tpu.dot_dimension_numbers<[1], [1], [0], [0], [0, 0, 1, 0], [], []>} : vector<8x16xf32>, vector<8x16xf32>, vector<8x8xf32> -> vector<8x8xf32>
    %cst_347 = arith.constant dense<0xFF800000> : vector<8xf32>
    %1128 = vector.multi_reduction <maximumf>, %1127, %cst_347 [1] : vector<8x8xf32> to vector<8xf32>
    %1129 = vector.shape_cast %1128 : vector<8xf32> to vector<8x1xf32>
    %1130 = vector.broadcast %1129 : vector<8x1xf32> to vector<8x8xf32>
    %1131 = arith.subf %1127, %1130 : vector<8x8xf32>
    %1132 = math.exp %1131 : vector<8x8xf32>
    %cst_348 = arith.constant dense<0.000000e+00> : vector<8xf32>
    %1133 = vector.multi_reduction <add>, %1132, %cst_348 [1] : vector<8x8xf32> to vector<8xf32>
    %1134 = vector.shape_cast %1133 : vector<8xf32> to vector<8x1xf32>
    %1135 = tpu.reciprocal %1134 {approx = true} : vector<8x1xf32> -> vector<8x1xf32>
    %1136 = vector.broadcast %1135 : vector<8x1xf32> to vector<8x8xf32>
    %1137 = arith.mulf %1132, %1136 : vector<8x8xf32>
    %cst_349 = arith.constant dense<0.000000e+00> : vector<8x16xf32>
    %1138 = tpu.matmul %1137, %1126, %cst_349 {dimension_numbers = #tpu.dot_dimension_numbers<[1], [0], [0], [1], [0, 0, 1, 1], [], []>} : vector<8x8xf32>, vector<8x16xf32>, vector<8x16xf32> -> vector<8x16xf32>
    %1139 = tpu.concatenate %1123, %1138 in 1 : vector<8x16xf32>, vector<8x16xf32> -> vector<8x32xf32>
    %cst_350 = arith.constant dense<0.000000e+00> : vector<8x32xf32>
    %1140 = tpu.matmul %1139, %104, %cst_350 {dimension_numbers = #tpu.dot_dimension_numbers<[1], [0], [0], [1], [0, 0, 1, 1], [], []>} : vector<8x32xf32>, vector<32x32xf32>, vector<8x32xf32> -> vector<8x32xf32>
    %1141 = arith.addf %1095, %1140 : vector<8x32xf32>
    %1142 = arith.mulf %1141, %1141 : vector<8x32xf32>
    %cst_351 = arith.constant dense<0.000000e+00> : vector<8xf32>
    %1143 = vector.multi_reduction <add>, %1142, %cst_351 [1] : vector<8x32xf32> to vector<8xf32>
    %1144 = vector.shape_cast %1143 : vector<8xf32> to vector<8x1xf32>
    %cst_352 = arith.constant 3.200000e+01 : f32
    %1145 = vector.broadcast %cst_352 : f32 to vector<8x1xf32>
    %1146 = arith.divf %1144, %1145 : vector<8x1xf32>
    %cst_353 = arith.constant 9.99999997E-7 : f32
    %1147 = vector.broadcast %cst_353 : f32 to vector<8x1xf32>
    %1148 = arith.addf %1146, %1147 : vector<8x1xf32>
    %1149 = math.rsqrt %1148 : vector<8x1xf32>
    %1150 = vector.broadcast %1149 : vector<8x1xf32> to vector<8x32xf32>
    %1151 = arith.mulf %1141, %1150 : vector<8x32xf32>
    %1152 = vector.broadcast %105 : vector<1x32xf32> to vector<8x32xf32>
    %1153 = arith.mulf %1151, %1152 : vector<8x32xf32>
    %cst_354 = arith.constant dense<0.000000e+00> : vector<8x64xf32>
    %1154 = tpu.matmul %1153, %106, %cst_354 {dimension_numbers = #tpu.dot_dimension_numbers<[1], [0], [0], [1], [0, 0, 1, 1], [], []>} : vector<8x32xf32>, vector<32x64xf32>, vector<8x64xf32> -> vector<8x64xf32>
    %cst_355 = arith.constant 0.000000e+00 : f32
    %1155 = vector.broadcast %cst_355 : f32 to vector<8x64xf32>
    %1156 = arith.maximumf %1154, %1155 : vector<8x64xf32>
    %cst_356 = arith.constant dense<0.000000e+00> : vector<8x32xf32>
    %1157 = tpu.matmul %1156, %107, %cst_356 {dimension_numbers = #tpu.dot_dimension_numbers<[1], [0], [0], [1], [0, 0, 1, 1], [], []>} : vector<8x64xf32>, vector<64x32xf32>, vector<8x32xf32> -> vector<8x32xf32>
    %1158 = arith.addf %1141, %1157 : vector<8x32xf32>
    %1159 = arith.mulf %1158, %1158 : vector<8x32xf32>
    %cst_357 = arith.constant dense<0.000000e+00> : vector<8xf32>
    %1160 = vector.multi_reduction <add>, %1159, %cst_357 [1] : vector<8x32xf32> to vector<8xf32>
    %1161 = vector.shape_cast %1160 : vector<8xf32> to vector<8x1xf32>
    %cst_358 = arith.constant 3.200000e+01 : f32
    %1162 = vector.broadcast %cst_358 : f32 to vector<8x1xf32>
    %1163 = arith.divf %1161, %1162 : vector<8x1xf32>
    %cst_359 = arith.constant 9.99999997E-7 : f32
    %1164 = vector.broadcast %cst_359 : f32 to vector<8x1xf32>
    %1165 = arith.addf %1163, %1164 : vector<8x1xf32>
    %1166 = math.rsqrt %1165 : vector<8x1xf32>
    %1167 = vector.broadcast %1166 : vector<8x1xf32> to vector<8x32xf32>
    %1168 = arith.mulf %1158, %1167 : vector<8x32xf32>
    %1169 = vector.broadcast %108 : vector<1x32xf32> to vector<8x32xf32>
    %1170 = arith.mulf %1168, %1169 : vector<8x32xf32>
    %cst_360 = arith.constant dense<0.000000e+00> : vector<8x64xf32>
    %1171 = tpu.matmul %1170, %109, %cst_360 {dimension_numbers = #tpu.dot_dimension_numbers<[1], [0], [0], [1], [0, 0, 1, 1], [], []>} : vector<8x32xf32>, vector<32x64xf32>, vector<8x64xf32> -> vector<8x64xf32>
    %1172 = vector.broadcast %c6_i32 : i32 to vector<8x64xi32>
    %1173 = arith.cmpi eq, %2, %1172 : vector<8x64xi32>
    %cst_361 = arith.constant -1.000000e+30 : f32
    %1174 = vector.broadcast %cst_361 : f32 to vector<8x64xf32>
    %1175 = arith.select %1173, %1171, %1174 : vector<8x64xi1>, vector<8x64xf32>
    %cst_362 = arith.constant dense<0xFF800000> : vector<64xf32>
    %1176 = vector.multi_reduction <maximumf>, %1175, %cst_362 [0] : vector<8x64xf32> to vector<64xf32>
    %1177 = vector.shape_cast %1176 : vector<64xf32> to vector<1x64xf32>
    %cst_363 = arith.constant dense<0xFF800000> : vector<1xf32>
    %1178 = vector.multi_reduction <maximumf>, %1177, %cst_363 [1] : vector<1x64xf32> to vector<1xf32>
    %1179 = vector.shape_cast %1178 : vector<1xf32> to vector<1x1xf32>
    %1180 = vector.broadcast %1179 : vector<1x1xf32> to vector<1x64xf32>
    %1181 = arith.cmpf oeq, %1177, %1180 : vector<1x64xf32>
    %c64_i32_364 = arith.constant 64 : i32
    %1182 = vector.broadcast %c64_i32_364 : i32 to vector<1x64xi32>
    %1183 = arith.select %1181, %3, %1182 : vector<1x64xi1>, vector<1x64xi32>
    %1184 = vector.shape_cast %1183 : vector<1x64xi32> to vector<1x1x64xi32>
    %cst_365 = arith.constant dense<2147483647> : vector<1xi32>
    %1185 = vector.multi_reduction <minsi>, %1184, %cst_365 [1, 2] : vector<1x1x64xi32> to vector<1xi32>
    %1186 = vector.shape_cast %1185 : vector<1xi32> to vector<1x1x1xi32>
    %1187 = vector.extract %1186[0, 0, 0] : i32 from vector<1x1x1xi32>
    %1188 = vector.broadcast %1187 : i32 to vector<1x64xi32>
    %1189 = arith.cmpi eq, %3, %1188 : vector<1x64xi32>
    %1190 = arith.extui %1189 : vector<1x64xi1> to vector<1x64xi32>
    %1191 = arith.sitofp %1190 : vector<1x64xi32> to vector<1x64xf32>
    %c1_i32_366 = arith.constant 1 : i32
    %1192 = arith.addi %c6_i32, %c1_i32_366 : i32
    %1193 = vector.broadcast %1192 : i32 to vector<8x64xi32>
    %1194 = arith.cmpi eq, %2, %1193 : vector<8x64xi32>
    %1195 = vector.shape_cast %1191 : vector<1x64xf32> to vector<1x64xf32>
    %1196 = vector.broadcast %1195 : vector<1x64xf32> to vector<8x64xf32>
    %1197 = arith.select %1194, %1196, %1043 : vector<8x64xi1>, vector<8x64xf32>
    %c7_i32 = arith.constant 7 : i32
    %1198 = arith.sitofp %1 : vector<8x64xi32> to vector<8x64xf32>
    %1199 = arith.mulf %1197, %1198 : vector<8x64xf32>
    %cst_367 = arith.constant dense<0.000000e+00> : vector<8xf32>
    %1200 = vector.multi_reduction <add>, %1199, %cst_367 [1] : vector<8x64xf32> to vector<8xf32>
    %1201 = vector.shape_cast %1200 : vector<8xf32> to vector<8x1xf32>
    %1202 = arith.fptosi %1201 : vector<8x1xf32> to vector<8x1xi32>
    %c0_368 = arith.constant 0 : index
    %c0_369 = arith.constant 0 : index
    %1203 = vector.load %arg21[%c0_368, %c0_369] : memref<8x1xi32, #tpu.memory_space<vmem>>, vector<8x1xi32>
    tpu.vector_store %arg21[%c0_368, %c0_369], %1202 {strides = array<i32>} : memref<8x1xi32, #tpu.memory_space<vmem>>, vector<8x1xi32>,
    return
  }
}

</mosaic_0001>

<bundles_post_ra>
// kernel: generate_ids.1
= control target key start
LH: loop header
LB: loop body
LE: loop exit
PB: predicated region body
PF: predicated region fallthrough
CT: control target
= control target key end

     0   :  { %s6757_s0 = inlined_call_operand.vmem [shape: s32[8,1], index: 0, kind: input, shape index: {}]   ;;  %s6758_s1 = inlined_call_operand.vmem [shape: f32[64,32], index: 1, kind: input, shape index: {}]   ;;  %s6759_s2 = inlined_call_operand.vmem [shape: f32[1,32], index: 2, kind: input, shape index: {}]   ;;  %s6760_s3 = inlined_call_operand.vmem [shape: f32[32,96], index: 3, kind: input, shape index: {}]   ;;  %s6761_s4 = inlined_call_operand.vmem [shape: f32[32,32], index: 4, kind: input, shape index: {}]   ;;  %s6762_s5 = inlined_call_operand.vmem [shape: f32[1,32], index: 5, kind: input, shape index: {}]   ;;  %s6763_s6 = inlined_call_operand.vmem [shape: f32[32,64], index: 6, kind: input, shape index: {}]   ;;  %s6764_s7 = inlined_call_operand.vmem [shape: f32[64,32], index: 7, kind: input, shape index: {}]   ;;  %s6765_s8 = inlined_call_operand.vmem [shape: f32[1,32], index: 8, kind: input, shape index: {}]   ;;  %s6766_s9 = inlined_call_operand.vmem [shape: f32[1,32], index: 9, kind: input, shape index: {}]   ;;  %s6767_s10 = inlined_call_operand.vmem [shape: f32[32,96], index: 10, kind: input, shape index: {}]   ;;  %s6768_s11 = inlined_call_operand.vmem [shape: f32[32,32], index: 11, kind: input, shape index: {}]   ;;  %s6769_s12 = inlined_call_operand.vmem [shape: f32[1,32], index: 12, kind: input, shape index: {}]   ;;  %s6770_s13 = inlined_call_operand.vmem [shape: f32[32,32], index: 13, kind: input, shape index: {}]   ;;  %s6771_s14 = inlined_call_operand.vmem [shape: f32[32,64], index: 14, kind: input, shape index: {}]   ;;  %s6772_s15 = inlined_call_operand.hbm [shape: f32[32,32], index: 15, kind: input, shape index: {}]   ;;  %s6773_s16 = inlined_call_operand.vmem [shape: f32[1,32], index: 16, kind: input, shape index: {}]   ;;  %s6774_s17 = inlined_call_operand.hbm [shape: f32[32,64], index: 17, kind: input, shape index: {}]   ;;  %s6775_s18 = inlined_call_operand.vmem [shape: f32[64,32], index: 18, kind: input, shape index: {}]   ;;  %s6776_s19 = inlined_call_operand.vmem [shape: f32[1,32], index: 19, kind: input, shape index: {}]   ;;  %s6777_s20 = inlined_call_operand.hbm [shape: f32[32,64], index: 20, kind: input, shape index: {}]   ;;  %s6778_s21 = inlined_call_operand.vmem [shape: s32[8,1], index: 21, kind: output, shape index: {}]  }
   0x1   :  { %6782 = sst [smem:[#allocation9_spill]] %s6757_s0 }
   0x2   :  { %6783 = sst [smem:[#allocation10_spill]] %s6758_s1 }
   0x3   :  { %6784 = sst [smem:[#allocation11_spill]] %s6759_s2 }
   0x4   :  { %6785 = sst [smem:[#allocation12_spill]] %s6760_s3 }
   0x5   :  { %6786 = sst [smem:[#allocation13_spill]] %s6761_s4 }
   0x6   :  { %6787 = sst [smem:[#allocation14_spill]] %s6762_s5 }
   0x7   :  { %26 = vsyncpa [#allocation3], 0 }
   0x8   :  { %27 = vsyncpa [#allocation5], 0  ;;  %s77_s26 = sshll.u32 %s6774_s17, 4  ;;  %s5005_s27 = smov [#allocation4]   ;;  %s78_s26 = int_to_ptr.hbm [resolvable:$true] %s77_s26 }
   0x9   :  { %s79_s3 = sshll.u32 %s5005_s27, 4  ;;  %s62_s0 = sshll.u32 %s6772_s15, 4  ;;  %s80_s3 = int_to_ptr.vmem [resolvable:$true] %s79_s3  ;;  %s63_s0 = int_to_ptr.hbm [resolvable:$true] %s62_s0 }
   0xa   :  { %s5006_s4 = smov 128   ;;  %s5007_s30 = smov 8  }
   0xb   :  { %85 = dma.hbm_to_vmem [thread:$0]  %s78_s26, 512, %s80_s3, [#allocation5], %s5006_s4, %s5006_s4, %s5007_s30  }
   0xc   :  { %s5008_s5 = smov [#allocation2]   ;;  %s94_s24 = sshll.u32 %s6777_s20, 4  ;;  %s95_s24 = int_to_ptr.hbm [resolvable:$true] %s94_s24 }
   0xd   :  { %s64_s22 = sshll.u32 %s5008_s5, 4  ;;  %s5009_s17 = smov [#allocation6]   ;;  %s65_s22 = int_to_ptr.vmem [resolvable:$true] %s64_s22 }
   0xe   :  { %70 = dma.hbm_to_vmem [thread:$0]  %s63_s0, 512, %s65_s22, [#allocation3], %s5006_s4, %s5006_s4, %s5007_s30  }
   0xf   :  { %s96_s2 = sshll.u32 %s5009_s17, 4  ;;  %s97_s2 = int_to_ptr.vmem [resolvable:$true] %s96_s2 }
  0x10   :  { %102 = dma.hbm_to_vmem [thread:$0]  %s95_s24, 512, %s97_s2, [#allocation5], %s5006_s4, %s5006_s4, %s5007_s30  }
  0x11   :  { %5001 = dma.done.wait [#allocation3], 512  }
  0x12   :  { %5002 = vsyncadd [#allocation3], 4294966784 }
  0x13   :  { %5003 = dma.done.wait [#allocation5], 1024  }
  0x14   :  { %5004 = vsyncadd [#allocation5], 4294966272  ;;  %v5010_v0 = vmov 0   ;;  %s6788_s26 = sld [smem:[#allocation9_spill]]  ;;  %v123_v10 = vlaneseq  ;;  %vm134_vm0 = vcmask 523264   ;;  %v5011_v13 = vmov 0.0  }
  0x15   :  { %4629 = vset.pattern.permute.xlu0 %v5010_v0  ;;  %s6789_s20 = sld [smem:[#allocation10_spill]]  ;;  %vm182_vm2 = vcmask 261120   ;;  %v5012_v18 = vmov 32.0   ;;  %s5013_s24 = smov 64   ;;  %vm236_vm7 = vcmask 130048   ;;  %vm261_vm8 = vcmask 64512  }
  0x16   :  { %v5191_v11 = vand.u32 127, %v123_v10  ;;  %4637 = vrcp.f32 %v5012_v18  ;;  %s6790_s3 = sld [smem:[#allocation12_spill]]  ;;  %s5014_s17 = smov 96  }
  0x17   :  { %s6791_s1 = sld [smem:[#allocation11_spill]]  ;;  %s5015_s2 = smov 80  }
  0x18   :  { %s5016_s15 = smov 48   ;;  %s5017_s25 = smov 112   ;;  %vm548_vm9 = vcmp.eq.s32.totalorder %v5191_v11, 0 }
  0x19   :  { %s5018_s30 = smov 16   ;;  %s6793_s29 = sld [smem:[#allocation14_spill]] }
  0x1a   :  { %v127_v1 = vld [vmem:[%s6788_s26] sm:$0xff] }
  0x1b   :  { %v5145_v2 = vld [vmem:[%s6789_s20 + $0x38] sm:$0xff]  ;;  %v5150_v3 = vld [vmem:[%s6789_s20 + $0x30] sm:$0xff]  ;;  %129 = vperm.xlu0 %4629, %v127_v1   ;;  %v5156_v4 = vld [vmem:[%s6789_s20 + $0x28] sm:$0xff] }
  0x1c   :  { %146 = vmatpush.msra.mxu0 %v5145_v2  ;;  %v5162_v5 = vld [vmem:[%s6789_s20 + $0x20] sm:$0xff]  ;;  %v5168_v6 = vld [vmem:[%s6789_s20 + $0x18] sm:$0xff]  ;;  %v5174_v7 = vld [vmem:[%s6789_s20 + $0x10] sm:$0xff]  ;;  %v4638_v19 = vpop.eup %4637 }
  0x1d   :  { %v5181_v8 = vld [vmem:[%s6789_s20 + $0x8] sm:$0xff]  ;;  %v5187_v9 = vld [vmem:[%s6789_s20] sm:$0xff]  ;;  %v187_v20 = vmul.f32 32.0, %v4638_v19  ;;  %v162_v22 = vld [vmem:[%s6790_s3 + $0x18] sm:$0xff]  ;;  %vm191_vm3 = vweird.f32 %v4638_v19 }
  0x1e   :  { %147 = vmatpush.msra.mxu0 %v5150_v3  ;;  %v161_v23 = vld [vmem:[%s6790_s3 + $0x10] sm:$0xff]  ;;  %225 = vmatpush.msra.mxu1 %v162_v22  ;;  %v160_v24 = vld [vmem:[%s6790_s3 + $0x8] sm:$0xff]  ;;  %v159_v26 = vld [vmem:[%s6790_s3] sm:$0xff]  ;;  %s6792_s3 = sld [smem:[#allocation13_spill]] }
  0x1f   :  { %v188_v21 = vsub.f32 1.0, %v187_v20  ;;  %v4630_v38 = vld [vmem:[%s6791_s1] ss:$0 sm:$0xff] }
  0x20   :  { %148 = vmatpush.msra.mxu0 %v5156_v4  ;;  %226 = vmatpush.msra.mxu1 %v161_v23 }
  0x21   :  { %v189_v25 = vmul.f32 %v4638_v19, %v188_v21 }
  0x22   :  { %149 = vmatpush.msra.mxu0 %v5162_v5  ;;  %227 = vmatpush.msra.mxu1 %v160_v24 }
  0x23   :  { %v190_v27 = vadd.f32 %v4638_v19, %v189_v25 }
  0x24   :  { %150 = vmatpush.msra.mxu0 %v5168_v6  ;;  %228 = vmatpush.msra.mxu1 %v159_v26  ;;  %v165_v18 = vld [vmem:[%s6792_s3 + $0x10] sm:$0xff]  ;;  %v164_v20 = vld [vmem:[%s6792_s3 + $0x8] sm:$0xff]  ;;  %v163_v22 = vld [vmem:[%s6792_s3] sm:$0xff] }
  0x25   :  { %v5215_v28 = vsel %vm191_vm3, %v4638_v19, %v190_v27  ;;  %v5252_v19 = vsel %vm548_vm9, 1.0, %v5011_v13 }
  0x26   :  { %151 = vmatpush.msra.mxu0 %v5174_v7  ;;  %562 = vmatpush.msrb.mxu1 %v5145_v2 }
  0x28   :  { %152 = vmatpush.msra.mxu0 %v5181_v8  ;;  %563 = vmatpush.msrb.mxu1 %v5150_v3 }
  0x2a   :  { %153 = vmatpush.msra.mxu0 %v5187_v9  ;;  %564 = vmatpush.msrb.mxu1 %v5156_v4 }
  0x2c   :  { %565 = vmatpush.msrb.mxu1 %v5162_v5 }
  0x2e   :  { %566 = vmatpush.msrb.mxu1 %v5168_v6 }
  0x30   :  { %567 = vmatpush.msrb.mxu1 %v5174_v7 }
  0x32   :  { %568 = vmatpush.msrb.mxu1 %v5181_v8 }
  0x34   :  { %569 = vmatpush.msrb.mxu1 %v5187_v9 }
  0x8d   :  { %v130_v12 = vpop.permute.xlu0 %129 }
  0x8e   :  { %vm131_vm1 = vcmp.eq.s32.totalorder %v5191_v11, %v130_v12 }
  0x8f   :  { %v4434_v14 = vsel %vm131_vm1, 1.0, %v5011_v13 }
  0x90   :  { %4435 = vmatmul.msk.f32.vlgmr.msra.gmra.mxu0 %vm134_vm0, %v4434_v14 }
 0x10d   :  { %v5196_v15 = vpop.f32.mrf.mxu0 }
 0x10e   :  { %v181_v16 = vmul.f32 %v5196_v15, %v5196_v15 }
 0x110   :  { %v183_v17 = vsel %vm182_vm2, %v181_v16, 0.0 }
 0x111   :  { %184 = vadd.xlane.f32.xlu0 %v183_v17  ;;  %v166_v17 = vld [vmem:[%s6792_s3 + $0x18] sm:$0xff] }
 0x184   :  { %v185_v29 = vpop.xlane.xlu0 %184 }
 0x185   :  { %v193_v30 = vmul.f32 %v5215_v28, %v185_v29 }
 0x187   :  { %v194_v31 = vadd.f32 1e-06, %v193_v30 }
 0x189   :  { %4639 = vrsqrt.f32 %v194_v31  ;;  %vm201_vm5 = vweird.f32 %v194_v31 }
 0x18f   :  { %v4640_v32 = vpop.eup %4639 }
 0x190   :  { %v196_v33 = vmul.f32 %v4640_v32, %v194_v31  ;;  %vm202_vm4 = vweird.f32 %v4640_v32 }
 0x191   :  { %vm203_vm6 = vmor %vm201_vm5, %vm202_vm4 }
 0x192   :  { %v197_v34 = vmul.f32 %v4640_v32, %v196_v33 }
 0x194   :  { %v198_v35 = vmul.f32 0.5, %v197_v34  ;;  %v171_v34 = vld [vmem:[%s6763_s6 + $0x18] sm:$0xff] }
 0x196   :  { %v199_v36 = vsub.f32 1.5, %v198_v35 }
 0x198   :  { %v200_v37 = vmul.f32 %v4640_v32, %v199_v36  ;;  %v170_v36 = vld [vmem:[%s6763_s6 + $0x10] sm:$0xff] }
 0x19a   :  { %v204_v39 = vsel %vm203_vm6, %v4640_v32, %v200_v37  ;;  %v168_v37 = vld [vmem:[%s6763_s6] sm:$0xff] }
 0x19b   :  { %v205_v40 = vmul.f32 %v204_v39, %v5196_v15  ;;  %v5292_v39 = vld [vmem:[%s6767_s10 + $0x18] sm:$0xff] }
 0x19d   :  { %v209_v41 = vmul.f32 %v4630_v38, %v205_v40  ;;  %v5297_v40 = vld [vmem:[%s6767_s10 + $0x10] sm:$0xff] }
 0x19f   :  { %4436 = vmatmul.msk.f32.vlgmr.msra.gmra.mxu1 %vm182_vm2, %v209_v41  ;;  %v5303_v41 = vld [vmem:[%s6767_s10 + $0x8] sm:$0xff] }
 0x1a7   :  { %4448 = vmatmul.msk.f32.vlgmr.msrb.gmra.mxu1 %vm134_vm0, %v5252_v19 }
 0x21c   :  { %v230_v42 = vpop.f32.mrf.mxu1 }
 0x21d   :  { %273 = vrot.lane.b32.xlu2 %v230_v42, %s5013_s24  ;;  %234 = vrot.lane.b32.xlu1 %v230_v42, %s5014_s17 }
 0x224   :  { %v5263_v23 = vpop.f32.mrf.mxu1 }
 0x225   :  { %301 = vrot.lane.b32.xlu2 %v230_v42, %s5015_s2  ;;  %v574_v24 = vmul.f32 %v5263_v23, %v5263_v23 }
 0x227   :  { %v575_v25 = vsel %vm182_vm2, %v574_v24, 0.0 }
 0x277   :  { %v274_v43 = vpop.permute.xlu2 %273 }
 0x278   :  { %294 = vmatpush.msra.mxu3 %v274_v43 }
 0x27f   :  { %v302_v44 = vpop.permute.xlu2 %301 }
 0x280   :  { %4440 = vmatpush.xpose.msk.msrb.mxu3 %vm236_vm7, %v302_v44 }
 0x28f   :  { %v235_v45 = vpop.permute.xlu1 %234 }
 0x290   :  { %4437 = vmatpush.xpose.msk.msra.mxu2 %vm236_vm7, %v235_v45 }
 0x293   :  { %4438 = vmatmul.msk.f32.vlgmr.msra.gmra.mxu2 %vm236_vm7, %v230_v42 }
 0x316   :  { %v258_v46 = vpop.f32.mrf.mxu2 }
 0x317   :  { %v262_v47 = vsel %vm261_vm8, %v258_v46, -inf }
 0x318   :  { %263 = vmax.xlane.f32.xlu1 %v262_v47  ;;  %v179_v47 = vld [vmem:[%s6764_s7 + $0x38] sm:$0xff] }
 0x331   :  { %338 = vrot.lane.b32.xlu1 %v230_v42, %s5016_s15 }
 0x38b   :  { %v264_v48 = vpop.xlane.xlu1 %263 }
 0x38c   :  { %v265_v49 = vsub.f32 %v258_v46, %v264_v48  ;;  %v178_v48 = vld [vmem:[%s6764_s7 + $0x30] sm:$0xff] }
 0x38e   :  { %v266_v50 = vmul.f32 1.442695, %v265_v49  ;;  %v177_v49 = vld [vmem:[%s6764_s7 + $0x28] sm:$0xff] }
 0x390   :  { %4641 = vpow2.f32 %v266_v50 }
 0x396   :  { %v4642_v51 = vpop.eup %4641 }
 0x397   :  { %v268_v52 = vsel %vm261_vm8, %v4642_v51, 0.0 }
 0x398   :  { %269 = vadd.xlane.f32.xlu2 %v268_v52  ;;  %v175_v52 = vld [vmem:[%s6764_s7 + $0x18] sm:$0xff] }
 0x3a3   :  { %v339_v53 = vpop.permute.xlu1 %338 }
 0x3a4   :  { %359 = vmatpush.msrb.mxu2 %v339_v53 }
 0x3a6   :  { %384 = vmatpush.msra.mxu2 %v166_v17 }
 0x3a8   :  { %385 = vmatpush.msra.mxu2 %v165_v18  ;;  %v5341_v18 = vld [vmem:[%s6766_s9] ss:$0 sm:$0xff] }
 0x3aa   :  { %386 = vmatpush.msra.mxu2 %v164_v20 }
 0x3ac   :  { %387 = vmatpush.msra.mxu2 %v163_v22  ;;  %v172_v22 = vld [vmem:[%s6764_s7] sm:$0xff] }
 0x3b0   :  { %299 = vrot.lane.b32.xlu2 %v230_v42, %s5017_s25  ;;  %v5309_v42 = vld [vmem:[%s6767_s10] sm:$0xff] }
 0x40b   :  { %v270_v54 = vpop.xlane.xlu2 %269 }
 0x40c   :  { %4643 = vrcp.f32 %v270_v54 }
 0x412   :  { %v4644_v55 = vpop.eup %4643 }
 0x413   :  { %v272_v56 = vmul.f32 %v4644_v55, %v4642_v51  ;;  %v300_v57 = vpop.permute.xlu2 %299  ;;  %v176_v51 = vld [vmem:[%s6764_s7 + $0x20] sm:$0xff]  ;;  %v174_v55 = vld [vmem:[%s6764_s7 + $0x10] sm:$0xff] }
 0x415   :  { %4439 = vmatmul.msk.f32.vlgmr.msra.gmra.mxu3 %vm261_vm8, %v272_v56 }
 0x416   :  { %429 = vmatpush.msra.mxu3 %v171_v34 }
 0x418   :  { %430 = vmatpush.msra.mxu3 %v170_v36 }
 0x41d   :  { %4441 = vmatmul.msk.f32.vlgmr.msrb.gmra.mxu3 %vm236_vm7, %v300_v57 }
 0x498   :  { %v296_v58 = vpop.f32.mrf.mxu3 }
 0x4a0   :  { %v324_v59 = vpop.f32.mrf.mxu3 }
 0x4a1   :  { %v327_v60 = vsel %vm261_vm8, %v324_v59, -inf }
 0x4a2   :  { %328 = vmax.xlane.f32.xlu2 %v327_v60 }
 0x515   :  { %v329_v61 = vpop.xlane.xlu2 %328 }
 0x516   :  { %v330_v62 = vsub.f32 %v324_v59, %v329_v61 }
 0x518   :  { %v331_v63 = vmul.f32 1.442695, %v330_v62 }
 0x51a   :  { %4645 = vpow2.f32 %v331_v63  ;;  %v4631_v63 = vld [vmem:[%s6793_s29] ss:$0 sm:$0xff] }
 0x520   :  { %v4646_v0 = vpop.eup %4645 }
 0x521   :  { %v333_v1 = vsel %vm261_vm8, %v4646_v0, 0.0 }
 0x522   :  { %334 = vadd.xlane.f32.xlu0 %v333_v1 }
 0x595   :  { %v335_v12 = vpop.xlane.xlu0 %334 }
 0x596   :  { %4647 = vrcp.f32 %v335_v12 }
 0x59c   :  { %v4648_v14 = vpop.eup %4647 }
 0x59d   :  { %v337_v16 = vmul.f32 %v4648_v14, %v4646_v0 }
 0x59f   :  { %4442 = vmatmul.msk.f32.vlgmr.msrb.gmra.mxu2 %vm261_vm8, %v337_v16 }
 0x5a0   :  { %449 = vmatpush.msrb.mxu2 %v179_v47 }
 0x5a2   :  { %450 = vmatpush.msrb.mxu2 %v178_v48 }
 0x5a4   :  { %451 = vmatpush.msrb.mxu2 %v177_v49 }
 0x5a6   :  { %452 = vmatpush.msrb.mxu2 %v176_v51 }
 0x5a8   :  { %453 = vmatpush.msrb.mxu2 %v175_v52 }
 0x5aa   :  { %454 = vmatpush.msrb.mxu2 %v174_v55 }
 0x622   :  { %v361_v21 = vpop.f32.mrf.mxu2 }
 0x623   :  { %365 = vrot.lane.b32.xlu0 %v361_v21, %s5018_s30  ;;  %v173_v21 = vld [vmem:[%s6764_s7 + $0x8] sm:$0xff] }
 0x624   :  { %455 = vmatpush.msrb.mxu2 %v173_v21 }
 0x626   :  { %456 = vmatpush.msrb.mxu2 %v172_v22 }
 0x64d   :  { %576 = vadd.xlane.f32.xlu0 %v575_v25 }
 0x695   :  { %v366_v26 = vpop.permute.xlu0 %365 }
 0x696   :  { %v368_v27 = vsel %vm236_vm7, %v296_v58, %v366_v26 }
 0x697   :  { %4443 = vmatmul.msk.f32.vlgmr.msra.gmra.mxu2 %vm182_vm2, %v368_v27  ;;  %v486_v27 = vld [vmem:[%s6771_s14 + $0x18] sm:$0xff] }
 0x698   :  { %502 = vmatpush.msrb.mxu0 %v486_v27 }
 0x6c0   :  { %v577_v33 = vpop.xlane.xlu0 %576 }
 0x6c1   :  { %v578_v35 = vmul.f32 %v577_v33, %v5215_v28 }
 0x6c3   :  { %v579_v38 = vadd.f32 1e-06, %v578_v35 }
 0x6c5   :  { %4649 = vrsqrt.f32 %v579_v38  ;;  %vm586_vm11 = vweird.f32 %v579_v38 }
 0x6cb   :  { %v4650_v45 = vpop.eup %4649 }
 0x6cc   :  { %v581_v50 = vmul.f32 %v4650_v45, %v579_v38  ;;  %vm587_vm12 = vweird.f32 %v4650_v45 }
 0x6cd   :  { %vm588_vm15 = vmor %vm586_vm11, %vm587_vm12 }
 0x6ce   :  { %v582_v53 = vmul.f32 %v4650_v45, %v581_v50 }
 0x6d0   :  { %v583_v57 = vmul.f32 0.5, %v582_v53 }
 0x6d2   :  { %v584_v60 = vsub.f32 1.5, %v583_v57 }
 0x6d4   :  { %v585_v0 = vmul.f32 %v4650_v45, %v584_v60 }
 0x6d6   :  { %v589_v16 = vsel %vm588_vm15, %v4650_v45, %v585_v0  ;;  %v5375_v45 = vshrl.u32 %v123_v10, 7  ;;  %v5403_v0 = vld [vmem:[%s6768_s11 + $0x8] sm:$0xff] }
 0x6d7   :  { %v590_v17 = vmul.f32 %v589_v16, %v5263_v23 }
 0x6d8   :  { %vm546_vm1 = vcmp.le.s32.totalorder %v5191_v11, %v5375_v45 }
 0x6d9   :  { %v594_v20 = vmul.f32 %v5341_v18, %v590_v17 }
 0x71a   :  { %v389_v29 = vpop.f32.mrf.mxu2 }
 0x71b   :  { %v5271_v30 = vadd.f32 %v389_v29, %v5196_v15  ;;  %v169_v15 = vld [vmem:[%s6763_s6 + $0x8] sm:$0xff]  ;;  %v485_v29 = vld [vmem:[%s6771_s14 + $0x10] sm:$0xff] }
 0x71c   :  { %431 = vmatpush.msra.mxu3 %v169_v15  ;;  %503 = vmatpush.msrb.mxu0 %v485_v29 }
 0x71d   :  { %v393_v31 = vmul.f32 %v5271_v30, %v5271_v30 }
 0x71e   :  { %432 = vmatpush.msra.mxu3 %v168_v37 }
 0x71f   :  { %v394_v32 = vsel %vm182_vm2, %v393_v31, 0.0  ;;  %v484_v31 = vld [vmem:[%s6771_s14 + $0x8] sm:$0xff] }
 0x720   :  { %395 = vadd.xlane.f32.xlu1 %v394_v32  ;;  %610 = vmatpush.msrb.mxu3 %v5292_v39  ;;  %v483_v32 = vld [vmem:[%s6771_s14] sm:$0xff] }
 0x721   :  { %504 = vmatpush.msrb.mxu0 %v484_v31 }
 0x722   :  { %611 = vmatpush.msrb.mxu3 %v5297_v40 }
 0x723   :  { %505 = vmatpush.msrb.mxu0 %v483_v32 }
 0x724   :  { %612 = vmatpush.msrb.mxu3 %v5303_v41 }
 0x726   :  { %613 = vmatpush.msrb.mxu3 %v5309_v42 }
 0x793   :  { %v396_v43 = vpop.xlane.xlu1 %395 }
 0x794   :  { %v397_v44 = vmul.f32 %v396_v43, %v5215_v28 }
 0x796   :  { %v398_v46 = vadd.f32 1e-06, %v397_v44 }
 0x798   :  { %4651 = vrsqrt.f32 %v398_v46  ;;  %vm405_vm13 = vweird.f32 %v398_v46 }
 0x79e   :  { %v4652_v54 = vpop.eup %4651 }
 0x79f   :  { %v400_v56 = vmul.f32 %v4652_v54, %v398_v46  ;;  %vm406_vm10 = vweird.f32 %v4652_v54  ;;  %v5019_v46 = vmov -1e+09  }
 0x7a0   :  { %vm407_vm14 = vmor %vm405_vm13, %vm406_vm10  ;;  %v5379_v47 = vsel %vm546_vm1, 0.0, %v5019_v46 }
 0x7a1   :  { %v401_v58 = vmul.f32 %v4652_v54, %v400_v56 }
 0x7a3   :  { %v402_v59 = vmul.f32 0.5, %v401_v58  ;;  %v4633_v58 = vld [vmem:[%s6765_s8] ss:$0 sm:$0xff] }
 0x7a5   :  { %v403_v61 = vsub.f32 1.5, %v402_v59 }
 0x7a7   :  { %v404_v62 = vmul.f32 %v4652_v54, %v403_v61 }
 0x7a9   :  { %v408_v1 = vsel %vm407_vm14, %v4652_v54, %v404_v62  ;;  %v5392_v62 = vld [vmem:[%s6768_s11 + $0x18] sm:$0xff] }
 0x7aa   :  { %v409_v12 = vmul.f32 %v408_v1, %v5271_v30  ;;  %767 = vmatpush.msra.mxu1 %v5392_v62  ;;  %v5409_v1 = vld [vmem:[%s6768_s11] sm:$0xff] }
 0x7ac   :  { %v413_v14 = vmul.f32 %v4631_v63, %v409_v12  ;;  %v5397_v63 = vld [vmem:[%s6768_s11 + $0x10] sm:$0xff] }
 0x7ad   :  { %768 = vmatpush.msra.mxu1 %v5397_v63 }
 0x7ae   :  { %4444 = vmatmul.msk.f32.vlgmr.msra.gmra.mxu3 %vm182_vm2, %v413_v14 }
 0x7af   :  { %769 = vmatpush.msra.mxu1 %v5403_v0 }
 0x7b1   :  { %770 = vmatpush.msra.mxu1 %v5409_v1 }
 0x7b6   :  { %4449 = vmatmul.msk.f32.vlgmr.msrb.gmra.mxu3 %vm182_vm2, %v594_v20 }
 0x831   :  { %v434_v24 = vpop.f32.mrf.mxu3 }
 0x832   :  { %v437_v25 = vmax.f32 %v434_v24, 0.0 }
 0x834   :  { %4445 = vmatmul.msk.f32.vlgmr.msrb.gmra.mxu2 %vm134_vm0, %v437_v25 }
 0x839   :  { %v615_v26 = vpop.f32.mrf.mxu3 }
 0x83a   :  { %619 = vrot.lane.b32.xlu0 %v615_v26, %s5014_s17  ;;  %684 = vrot.lane.b32.xlu2 %v615_v26, %s5015_s2 }
 0x842   :  { %721 = vrot.lane.b32.xlu0 %v615_v26, %s5016_s15  ;;  %682 = vrot.lane.b32.xlu2 %v615_v26, %s5017_s25 }
 0x84a   :  { %656 = vrot.lane.b32.xlu0 %v615_v26, %s5013_s24 }
 0x894   :  { %v685_v33 = vpop.permute.xlu2 %684 }
 0x895   :  { %4453 = vmatpush.xpose.msk.msra.mxu2 %vm236_vm7, %v685_v33 }
 0x89c   :  { %v683_v34 = vpop.permute.xlu2 %682 }
 0x89d   :  { %4454 = vmatmul.msk.f32.vlgmr.msra.gmra.mxu2 %vm236_vm7, %v683_v34 }
 0x8ac   :  { %v620_v35 = vpop.permute.xlu0 %619 }
 0x8ad   :  { %4450 = vmatpush.xpose.msk.msra.mxu0 %vm236_vm7, %v620_v35 }
 0x8b4   :  { %v722_v36 = vpop.permute.xlu0 %721 }
 0x8b7   :  { %v458_v15 = vpop.f32.mrf.mxu2 }
 0x8b8   :  { %v461_v37 = vadd.f32 %v458_v15, %v5271_v30 }
 0x8ba   :  { %v462_v38 = vmul.f32 %v461_v37, %v461_v37 }
 0x8bc   :  { %v657_v43 = vpop.permute.xlu0 %656  ;;  %v463_v44 = vsel %vm182_vm2, %v462_v38, 0.0 }
 0x8bd   :  { %464 = vadd.xlane.f32.xlu1 %v463_v44  ;;  %677 = vmatpush.msra.mxu3 %v657_v43 }
 0x920   :  { %v707_v48 = vpop.f32.mrf.mxu2 }
 0x921   :  { %v708_v49 = vadd.f32 %v707_v48, %v5379_v47 }
 0x923   :  { %v710_v30 = vsel %vm261_vm8, %v708_v49, -inf }
 0x924   :  { %711 = vmax.xlane.f32.xlu2 %v710_v30 }
 0x930   :  { %v465_v50 = vpop.xlane.xlu1 %464 }
 0x931   :  { %v466_v51 = vmul.f32 %v465_v50, %v5215_v28 }
 0x933   :  { %v467_v52 = vadd.f32 1e-06, %v466_v51 }
 0x935   :  { %4653 = vrsqrt.f32 %v467_v52  ;;  %vm474_vm4 = vweird.f32 %v467_v52 }
 0x93b   :  { %v4654_v53 = vpop.eup %4653 }
 0x93c   :  { %v469_v10 = vmul.f32 %v4654_v53, %v467_v52  ;;  %vm475_vm3 = vweird.f32 %v4654_v53  ;;  %v5441_v52 = vld [vmem:[%s6770_s13 + $0x18] sm:$0xff] }
 0x93d   :  { %vm476_vm5 = vmor %vm474_vm4, %vm475_vm3  ;;  %812 = vmatpush.msrb.mxu3 %v5441_v52  ;;  %vm1090_vm3 = vcmp.eq.s32.totalorder %v5375_v45, 0 }
 0x93e   :  { %v470_v54 = vmul.f32 %v4654_v53, %v469_v10  ;;  %v5458_v10 = vld [vmem:[%s6770_s13] sm:$0xff] }
 0x940   :  { %v471_v55 = vmul.f32 0.5, %v470_v54 }
 0x942   :  { %v472_v56 = vsub.f32 1.5, %v471_v55 }
 0x944   :  { %v473_v57 = vmul.f32 %v4654_v53, %v472_v56 }
 0x946   :  { %v477_v59 = vsel %vm476_vm5, %v4654_v53, %v473_v57  ;;  %v5447_v53 = vld [vmem:[%s6770_s13 + $0x10] sm:$0xff] }
 0x947   :  { %v478_v60 = vmul.f32 %v477_v59, %v461_v37  ;;  %813 = vmatpush.msrb.mxu3 %v5447_v53 }
 0x949   :  { %v482_v61 = vmul.f32 %v4633_v58, %v478_v60 }
 0x94b   :  { %4446 = vmatmul.msk.f32.vlgmr.msrb.gmra.mxu0 %vm182_vm2, %v482_v61 }
 0x94c   :  { %742 = vmatpush.msrb.mxu0 %v722_v36 }
 0x953   :  { %4451 = vmatmul.msk.f32.vlgmr.msra.gmra.mxu0 %vm236_vm7, %v615_v26 }
 0x997   :  { %v712_v12 = vpop.xlane.xlu2 %711 }
 0x998   :  { %v713_v16 = vsub.f32 %v708_v49, %v712_v12 }
 0x99a   :  { %v714_v17 = vmul.f32 1.442695, %v713_v16  ;;  %v5466_v16 = vld [vmem:[%s6769_s12] ss:$0 sm:$0xff] }
 0x99c   :  { %4655 = vpow2.f32 %v714_v17 }
 0x9a2   :  { %v4656_v24 = vpop.eup %4655 }
 0x9a3   :  { %v716_v25 = vsel %vm261_vm8, %v4656_v24, 0.0 }
 0x9c8   :  { %v5413_v14 = vpop.f32.mrf.mxu0 }
 0x9c9   :  { %4458 = vmatpush.xpose.msk.msrb.mxu2 %vm236_vm7, %v5413_v14  ;;  %885 = vrot.lane.b32.xlu2 %v5413_v14, %s5017_s25 }
 0x9d0   :  { %v642_v20 = vpop.f32.mrf.mxu0 }
 0x9d1   :  { %v643_v21 = vadd.f32 %v642_v20, %v5379_v47 }
 0x9d3   :  { %v645_v22 = vsel %vm261_vm8, %v643_v21, -inf }
 0x9d4   :  { %646 = vmax.xlane.f32.xlu1 %v645_v22 }
 0x9dc   :  { %717 = vadd.xlane.f32.xlu1 %v716_v25 }
 0xa23   :  { %v5422_v26 = vpop.permute.xlu2 %885 }
 0xa24   :  { %4461 = vmatpush.xpose.msk.msrb.mxu1 %vm236_vm7, %v5422_v26 }
 0xa47   :  { %v647_v27 = vpop.xlane.xlu1 %646 }
 0xa48   :  { %v648_v29 = vsub.f32 %v643_v21, %v647_v27 }
 0xa4a   :  { %v649_v31 = vmul.f32 1.442695, %v648_v29 }
 0xa4c   :  { %4657 = vpow2.f32 %v649_v31 }
 0xa4f   :  { %v718_v32 = vpop.xlane.xlu1 %717 }
 0xa50   :  { %4659 = vrcp.f32 %v718_v32 }
 0xa52   :  { %v4658_v33 = vpop.eup %4657 }
 0xa53   :  { %v651_v34 = vsel %vm261_vm8, %v4658_v33, 0.0 }
 0xa54   :  { %652 = vadd.xlane.f32.xlu1 %v651_v34 }
 0xa56   :  { %v4660_v35 = vpop.eup %4659 }
 0xa57   :  { %v720_v36 = vmul.f32 %v4660_v35, %v4656_v24 }
 0xa59   :  { %4455 = vmatmul.msk.f32.vlgmr.msrb.gmra.mxu0 %vm261_vm8, %v720_v36 }
 0xac7   :  { %v653_v15 = vpop.xlane.xlu1 %652 }
 0xac8   :  { %4661 = vrcp.f32 %v653_v15 }
 0xace   :  { %v4662_v37 = vpop.eup %4661 }
 0xacf   :  { %v655_v38 = vmul.f32 %v4662_v37, %v4658_v33 }
 0xad1   :  { %4452 = vmatmul.msk.f32.vlgmr.msra.gmra.mxu3 %vm261_vm8, %v655_v38 }
 0xad6   :  { %v744_v43 = vpop.f32.mrf.mxu0 }
 0xad7   :  { %748 = vrot.lane.b32.xlu1 %v744_v43, %s5018_s30 }
 0xb49   :  { %v749_v44 = vpop.permute.xlu1 %748 }
 0xb54   :  { %v679_v46 = vpop.f32.mrf.mxu3 }
 0xb55   :  { %v751_v48 = vsel %vm236_vm7, %v679_v46, %v749_v44 }
 0xb56   :  { %4456 = vmatmul.msk.f32.vlgmr.msra.gmra.mxu1 %vm182_vm2, %v751_v48 }
 0xbd3   :  { %v772_v49 = vpop.f32.mrf.mxu1 }
 0xbd4   :  { %v5433_v30 = vadd.f32 %v772_v49, %v5263_v23  ;;  %v5453_v23 = vld [vmem:[%s6770_s13 + $0x8] sm:$0xff] }
 0xbd5   :  { %814 = vmatpush.msrb.mxu3 %v5453_v23 }
 0xbd6   :  { %v776_v50 = vmul.f32 %v5433_v30, %v5433_v30 }
 0xbd7   :  { %815 = vmatpush.msrb.mxu3 %v5458_v10 }
 0xbd8   :  { %v777_v51 = vsel %vm182_vm2, %v776_v50, 0.0 }
 0xbd9   :  { %778 = vadd.xlane.f32.xlu0 %v777_v51 }
 0xc4c   :  { %v779_v54 = vpop.xlane.xlu0 %778 }
 0xc4d   :  { %v780_v55 = vmul.f32 %v779_v54, %v5215_v28 }
 0xc4f   :  { %v781_v56 = vadd.f32 1e-06, %v780_v55 }
 0xc51   :  { %4663 = vrsqrt.f32 %v781_v56  ;;  %vm788_vm9 = vweird.f32 %v781_v56 }
 0xc57   :  { %v4664_v57 = vpop.eup %4663 }
 0xc58   :  { %v783_v58 = vmul.f32 %v4664_v57, %v781_v56  ;;  %vm789_vm6 = vweird.f32 %v4664_v57 }
 0xc59   :  { %vm790_vm10 = vmor %vm788_vm9, %vm789_vm6  ;;  %vm1124_vm6 = vcmp.eq.s32.totalorder %v5375_v45, 1 }
 0xc5a   :  { %v784_v59 = vmul.f32 %v4664_v57, %v783_v58  ;;  %v5492_v58 = vld [vmem:[#allocation2 + $0x10] sm:$0xff] }
 0xc5c   :  { %v785_v60 = vmul.f32 0.5, %v784_v59  ;;  %v5495_v59 = vld [vmem:[#allocation2 + $0x8] sm:$0xff] }
 0xc5e   :  { %v786_v61 = vsub.f32 1.5, %v785_v60 }
 0xc60   :  { %v787_v12 = vmul.f32 %v4664_v57, %v786_v61  ;;  %v5500_v61 = vld [vmem:[#allocation2] sm:$0xff] }
 0xc62   :  { %v791_v17 = vsel %vm790_vm10, %v4664_v57, %v787_v12  ;;  %v5490_v57 = vld [vmem:[#allocation2 + $0x18] sm:$0xff] }
 0xc63   :  { %v792_v20 = vmul.f32 %v791_v17, %v5433_v30  ;;  %968 = vmatpush.msra.mxu2 %v5490_v57 }
 0xc65   :  { %v796_v21 = vmul.f32 %v5466_v16, %v792_v20  ;;  %969 = vmatpush.msra.mxu2 %v5492_v58 }
 0xc67   :  { %4457 = vmatmul.msk.f32.vlgmr.msrb.gmra.mxu3 %vm182_vm2, %v796_v21  ;;  %970 = vmatpush.msra.mxu2 %v5495_v59  ;;  %v5539_v21 = vld [vmem:[%s6775_s18 + $0x30] sm:$0xff] }
 0xc69   :  { %971 = vmatpush.msra.mxu2 %v5500_v61 }
 0xcea   :  { %v817_v22 = vpop.f32.mrf.mxu3 }
 0xceb   :  { %883 = vrot.lane.b32.xlu1 %v817_v22, %s5017_s25  ;;  %4459 = vmatmul.msk.f32.vlgmr.msrb.gmra.mxu2 %vm236_vm7, %v817_v22  ;;  %v5546_v22 = vld [vmem:[%s6775_s18 + $0x28] sm:$0xff] }
 0xcec   :  { %1137 = vmatpush.msrb.mxu2 %v5145_v2 }
 0xcee   :  { %1138 = vmatpush.msrb.mxu2 %v5150_v3 }
 0xcf0   :  { %1139 = vmatpush.msrb.mxu2 %v5156_v4 }
 0xcf2   :  { %1140 = vmatpush.msrb.mxu2 %v5162_v5 }
 0xcf4   :  { %1141 = vmatpush.msrb.mxu2 %v5168_v6  ;;  %v5519_v6 = vld [vmem:[#allocation4 + $0x18] sm:$0xff] }
 0xcf6   :  { %1142 = vmatpush.msrb.mxu2 %v5174_v7  ;;  %v5522_v7 = vld [vmem:[#allocation4 + $0x10] sm:$0xff] }
 0xcf8   :  { %1143 = vmatpush.msrb.mxu2 %v5181_v8  ;;  %v5525_v8 = vld [vmem:[#allocation4 + $0x8] sm:$0xff] }
 0xcfa   :  { %1144 = vmatpush.msrb.mxu2 %v5187_v9  ;;  %v5528_v9 = vld [vmem:[#allocation4] sm:$0xff] }
 0xd5d   :  { %v884_v24 = vpop.permute.xlu1 %883 }
 0xd5e   :  { %4462 = vmatmul.msk.f32.vlgmr.msrb.gmra.mxu1 %vm236_vm7, %v884_v24  ;;  %v5553_v24 = vld [vmem:[%s6775_s18 + $0x20] sm:$0xff] }
 0xd6e   :  { %v843_v25 = vpop.f32.mrf.mxu2 }
 0xd6f   :  { %v846_v27 = vsel %vm261_vm8, %v843_v25, -inf }
 0xd70   :  { %847 = vmax.xlane.f32.xlu2 %v846_v27  ;;  %v5561_v27 = vld [vmem:[%s6775_s18 + $0x18] sm:$0xff] }
 0xddb   :  { %v908_v29 = vpop.f32.mrf.mxu1 }
 0xddc   :  { %v911_v31 = vsel %vm261_vm8, %v908_v29, -inf }
 0xddd   :  { %912 = vmax.xlane.f32.xlu1 %v911_v31 }
 0xde3   :  { %v848_v32 = vpop.xlane.xlu2 %847 }
 0xde4   :  { %v849_v33 = vsub.f32 %v843_v25, %v848_v32 }
 0xde6   :  { %v850_v34 = vmul.f32 1.442695, %v849_v33 }
 0xde8   :  { %4665 = vpow2.f32 %v850_v34 }
 0xdee   :  { %v4666_v35 = vpop.eup %4665 }
 0xdef   :  { %v852_v36 = vsel %vm261_vm8, %v4666_v35, 0.0 }
 0xdf0   :  { %853 = vadd.xlane.f32.xlu1 %v852_v36 }
 0xe50   :  { %v913_v15 = vpop.xlane.xlu1 %912 }
 0xe51   :  { %v914_v37 = vsub.f32 %v908_v29, %v913_v15  ;;  %v5568_v29 = vld [vmem:[%s6775_s18 + $0x10] sm:$0xff] }
 0xe53   :  { %v915_v38 = vmul.f32 1.442695, %v914_v37 }
 0xe55   :  { %4667 = vpow2.f32 %v915_v38  ;;  %v5582_v38 = vld [vmem:[%s6775_s18 + $0x8] sm:$0xff] }
 0xe5b   :  { %v4668_v43 = vpop.eup %4667 }
 0xe5c   :  { %v917_v44 = vsel %vm261_vm8, %v4668_v43, 0.0 }
 0xe5d   :  { %918 = vadd.xlane.f32.xlu0 %v917_v44 }
 0xe63   :  { %v854_v48 = vpop.xlane.xlu1 %853 }
 0xe71   :  { %922 = vrot.lane.b32.xlu0 %v5413_v14, %s5015_s2 }
 0xe79   :  { %857 = vrot.lane.b32.xlu0 %v5413_v14, %s5014_s17 }
 0xed0   :  { %v919_v46 = vpop.xlane.xlu0 %918 }
 0xed1   :  { %4669 = vrcp.f32 %v919_v46 }
 0xed2   :  { %4671 = vrcp.f32 %v854_v48 }
 0xed7   :  { %v4670_v49 = vpop.eup %4669 }
 0xed8   :  { %v921_v50 = vmul.f32 %v4670_v49, %v4668_v43  ;;  %v4672_v54 = vpop.eup %4671  ;;  %v5588_v43 = vld [vmem:[%s6775_s18] sm:$0xff] }
 0xed9   :  { %v856_v55 = vmul.f32 %v4672_v54, %v4666_v35 }
 0xee3   :  { %v5482_v51 = vpop.permute.xlu0 %922 }
 0xee4   :  { %943 = vmatpush.msra.mxu3 %v5482_v51 }
 0xee5   :  { %4463 = vmatmul.msk.f32.vlgmr.msra.gmra.mxu3 %vm261_vm8, %v921_v50 }
 0xeeb   :  { %v5486_v56 = vpop.permute.xlu0 %857 }
 0xeec   :  { %878 = vmatpush.msra.mxu0 %v5486_v56 }
 0xeed   :  { %4460 = vmatmul.msk.f32.vlgmr.msra.gmra.mxu0 %vm261_vm8, %v856_v55  ;;  %v5593_v55 = vld [vmem:[#allocation6 + $0x18] sm:$0xff] }
 0xeee   :  { %1013 = vmatpush.msrb.mxu0 %v5519_v6  ;;  %1082 = vmatpush.msrb.mxu3 %v5593_v55 }
 0xef0   :  { %1014 = vmatpush.msrb.mxu0 %v5522_v7 }
 0xef2   :  { %1015 = vmatpush.msrb.mxu0 %v5525_v8 }
 0xef4   :  { %1016 = vmatpush.msrb.mxu0 %v5528_v9 }
 0xef6   :  { %1182 = vmatpush.msra.mxu0 %v5292_v39 }
 0xef8   :  { %1183 = vmatpush.msra.mxu0 %v5297_v40 }
 0xefa   :  { %1184 = vmatpush.msra.mxu0 %v5303_v41 }
 0xefc   :  { %1185 = vmatpush.msra.mxu0 %v5309_v42  ;;  %v5575_v42 = vld [vmem:[%s6773_s16] ss:$0 sm:$0xff] }
 0xf68   :  { %v945_v60 = vpop.f32.mrf.mxu3 }
 0xf69   :  { %949 = vrot.lane.b32.xlu2 %v945_v60, %s5018_s30  ;;  %v5596_v60 = vld [vmem:[#allocation6 + $0x10] sm:$0xff] }
 0xf6a   :  { %v880_v12 = vpop.f32.mrf.mxu0  ;;  %1083 = vmatpush.msrb.mxu3 %v5596_v60 }
 0xfc3   :  { %v950_v17 = vpop.permute.xlu2 %949 }
 0xfc4   :  { %v952_v20 = vsel %vm236_vm7, %v880_v12, %v950_v17  ;;  %v5599_v12 = vld [vmem:[#allocation6 + $0x8] sm:$0xff]  ;;  %v5602_v17 = vld [vmem:[#allocation6] sm:$0xff] }
 0xfc5   :  { %4464 = vmatmul.msk.f32.vlgmr.msra.gmra.mxu2 %vm182_vm2, %v952_v20  ;;  %1084 = vmatpush.msrb.mxu3 %v5599_v12 }
 0xfc6   :  { %1339 = vmatpush.msra.mxu2 %v5392_v62 }
 0xfc7   :  { %1085 = vmatpush.msrb.mxu3 %v5602_v17 }
 0xfc8   :  { %1340 = vmatpush.msra.mxu2 %v5397_v63 }
 0xfca   :  { %1341 = vmatpush.msra.mxu2 %v5403_v0 }
 0xfcc   :  { %1342 = vmatpush.msra.mxu2 %v5409_v1 }
0x1048   :  { %v973_v2 = vpop.f32.mrf.mxu2 }
0x1049   :  { %v976_v3 = vadd.f32 %v973_v2, %v5433_v30  ;;  %v5534_v30 = vld [vmem:[%s6775_s18 + $0x38] sm:$0xff] }
0x104a   :  { %1033 = vmatpush.msra.mxu1 %v5534_v30 }
0x104b   :  { %v977_v4 = vmul.f32 %v976_v3, %v976_v3 }
0x104c   :  { %1034 = vmatpush.msra.mxu1 %v5539_v21 }
0x104d   :  { %v978_v5 = vsel %vm182_vm2, %v977_v4, 0.0 }
0x104e   :  { %979 = vadd.xlane.f32.xlu1 %v978_v5  ;;  %1035 = vmatpush.msra.mxu1 %v5546_v22 }
0x1050   :  { %1036 = vmatpush.msra.mxu1 %v5553_v24 }
0x1052   :  { %1037 = vmatpush.msra.mxu1 %v5561_v27 }
0x1054   :  { %1038 = vmatpush.msra.mxu1 %v5568_v29 }
0x1056   :  { %1039 = vmatpush.msra.mxu1 %v5582_v38 }
0x1058   :  { %1040 = vmatpush.msra.mxu1 %v5588_v43 }
0x10c1   :  { %v980_v25 = vpop.xlane.xlu1 %979 }
0x10c2   :  { %v981_v39 = vmul.f32 %v980_v25, %v5215_v28 }
0x10c4   :  { %v982_v40 = vadd.f32 1e-06, %v981_v39 }
0x10c6   :  { %4673 = vrsqrt.f32 %v982_v40  ;;  %vm989_vm12 = vweird.f32 %v982_v40 }
0x10cc   :  { %v4674_v41 = vpop.eup %4673 }
0x10cd   :  { %v984_v31 = vmul.f32 %v4674_v41, %v982_v40  ;;  %vm990_vm11 = vweird.f32 %v4674_v41 }
0x10ce   :  { %vm991_vm13 = vmor %vm989_vm12, %vm990_vm11 }
0x10cf   :  { %v985_v32 = vmul.f32 %v4674_v41, %v984_v31  ;;  %v5609_v31 = vld [vmem:[%s6776_s19] ss:$0 sm:$0xff] }
0x10d1   :  { %v986_v33 = vmul.f32 0.5, %v985_v32 }
0x10d3   :  { %v987_v34 = vsub.f32 1.5, %v986_v33 }
0x10d5   :  { %v988_v35 = vmul.f32 %v4674_v41, %v987_v34 }
0x10d7   :  { %v992_v36 = vsel %vm991_vm13, %v4674_v41, %v988_v35 }
0x10d8   :  { %v993_v15 = vmul.f32 %v992_v36, %v976_v3 }
0x10da   :  { %v997_v37 = vmul.f32 %v5575_v42, %v993_v15 }
0x10dc   :  { %4465 = vmatmul.msk.f32.vlgmr.msrb.gmra.mxu0 %vm182_vm2, %v997_v37 }
0x1159   :  { %v1018_v44 = vpop.f32.mrf.mxu0 }
0x115a   :  { %v1021_v46 = vmax.f32 %v1018_v44, 0.0 }
0x115c   :  { %4466 = vmatmul.msk.f32.vlgmr.msra.gmra.mxu1 %vm134_vm0, %v1021_v46 }
0x11d9   :  { %v1042_v48 = vpop.f32.mrf.mxu1 }
0x11da   :  { %v1045_v49 = vadd.f32 %v1042_v48, %v976_v3 }
0x11dc   :  { %v1046_v50 = vmul.f32 %v1045_v49, %v1045_v49 }
0x11de   :  { %v1047_v54 = vsel %vm182_vm2, %v1046_v50, 0.0 }
0x11df   :  { %1048 = vadd.xlane.f32.xlu0 %v1047_v54 }
0x1252   :  { %v1049_v20 = vpop.xlane.xlu0 %1048 }
0x1253   :  { %v1050_v2 = vmul.f32 %v1049_v20, %v5215_v28 }
0x1255   :  { %v1051_v3 = vadd.f32 1e-06, %v1050_v2 }
0x1257   :  { %4675 = vrsqrt.f32 %v1051_v3  ;;  %vm1058_vm15 = vweird.f32 %v1051_v3 }
0x125d   :  { %v4676_v4 = vpop.eup %4675 }
0x125e   :  { %v1053_v5 = vmul.f32 %v4676_v4, %v1051_v3  ;;  %vm1059_vm14 = vweird.f32 %v4676_v4 }
0x125f   :  { %vm1060_vm1 = vmor %vm1058_vm15, %vm1059_vm14 }
0x1260   :  { %v1054_v25 = vmul.f32 %v4676_v4, %v1053_v5 }
0x1262   :  { %v1055_v39 = vmul.f32 0.5, %v1054_v25 }
0x1264   :  { %v1056_v40 = vsub.f32 1.5, %v1055_v39 }
0x1266   :  { %v1057_v41 = vmul.f32 %v4676_v4, %v1056_v40 }
0x1268   :  { %v1061_v32 = vsel %vm1060_vm1, %v4676_v4, %v1057_v41 }
0x1269   :  { %v1062_v33 = vmul.f32 %v1061_v32, %v1045_v49 }
0x126b   :  { %v1066_v34 = vmul.f32 %v5609_v31, %v1062_v33 }
0x126d   :  { %4467 = vmatmul.msk.f32.vlgmr.msrb.gmra.mxu3 %vm182_vm2, %v1066_v34 }
0x12f0   :  { %v1087_v35 = vpop.f32.mrf.mxu3 }
0x12f1   :  { %v1091_v36 = vsel %vm1090_vm3, %v1087_v35, -1e+30 }
0x12f2   :  { %v1092_v15 = vsel %vm134_vm0, %v1091_v36, -inf }
0x12f3   :  { %v1093_v37 = vrot.slane %v1092_v15, 4 }
0x12f5   :  { %v1094_v44 = vmax.f32 %v1092_v15, %v1093_v37 }
0x12f7   :  { %v1095_v46 = vrot.slane %v1094_v44, 2 }
0x12f9   :  { %v1096_v48 = vmax.f32 %v1094_v44, %v1095_v46 }
0x12fb   :  { %v1097_v50 = vrot.slane %v1096_v48, 1 }
0x12fd   :  { %v1098_v54 = vmax.f32 %v1096_v48, %v1097_v50 }
0x12ff   :  { %v1099_v20 = vsel %vm134_vm0, %v1098_v54, -inf }
0x1300   :  { %1100 = vmax.xlane.f32.xlu1 %v1099_v20 }
0x1373   :  { %v1101_v49 = vpop.xlane.xlu1 %1100 }
0x1374   :  { %vm1102_vm4 = vcmp.eq.f32.partialorder %v1098_v54, %v1101_v49 }
0x1375   :  { %v1103_v2 = vsel %vm1102_vm4, %v5191_v11, 64 }
0x1376   :  { %v1104_v3 = vsel %vm134_vm0, %v1103_v2, 2147483647 }
0x1377   :  { %v1106_v4 = vshra.s32 %v1104_v3, 16  ;;  %v1105_v25 = vand.u32 65535, %v1104_v3 }
0x1379   :  { %v1108_v5 = vcvt.s32.f32 %v1106_v4  ;;  %v1107_v40 = vcvt.s32.f32 %v1105_v25 }
0x137b   :  { %1109 = vmin.xlane.f32.xlu1 %v1108_v5 }
0x13ee   :  { %v1110_v39 = vpop.xlane.xlu1 %1109 }
0x13ef   :  { %vm1111_vm5 = vcmp.eq.f32.partialorder %v1108_v5, %v1110_v39  ;;  %v1116_v32 = vcvt.f32.s32 %v1110_v39 }
0x13f0   :  { %v1112_v41 = vsel %vm1111_vm5, %v1107_v40, inf }
0x13f1   :  { %1113 = vmin.xlane.f32.xlu2 %v1112_v41  ;;  %v1117_v35 = vshll.u32 %v1116_v32, 16 }
0x1464   :  { %v1114_v33 = vpop.xlane.xlu2 %1113 }
0x1465   :  { %v1115_v34 = vcvt.f32.s32 %v1114_v33 }
0x1467   :  { %v1118_v36 = vadd.s32 %v1117_v35, %v1115_v34 }
0x1469   :  { %4595 = vpush %v1118_v36 }
0x149a   :  { %s4596_s27 = spop %4595 }
0x149b   :  { %v1120_v15 = vstv %s4596_s27 }
0x149c   :  { %vm1121_vm9 = vcmp.eq.s32.totalorder %v5191_v11, %v1120_v15 }
0x149d   :  { %v4468_v37 = vsel %vm1121_vm9, 1.0, %v5011_v13 }
0x149e   :  { %v5624_v44 = vsel %vm1124_vm6, %v4468_v37, %v5252_v19 }
0x149f   :  { %4469 = vmatmul.msk.f32.vlgmr.msrb.gmra.mxu2 %vm134_vm0, %v5624_v44 }
0x14a0   :  { %4482 = vmatpush.xpose.msk.msrb.mxu2 %vm236_vm7, %v5422_v26 }
0x1522   :  { %v5630_v46 = vpop.f32.mrf.mxu2 }
0x1523   :  { %v1149_v48 = vmul.f32 %v5630_v46, %v5630_v46 }
0x1525   :  { %v1150_v50 = vsel %vm182_vm2, %v1149_v48, 0.0 }
0x1526   :  { %1151 = vadd.xlane.f32.xlu1 %v1150_v50 }
0x1599   :  { %v1152_v54 = vpop.xlane.xlu1 %1151 }
0x159a   :  { %v1153_v20 = vmul.f32 %v1152_v54, %v5215_v28 }
0x159c   :  { %v1154_v49 = vadd.f32 1e-06, %v1153_v20 }
0x159e   :  { %4677 = vrsqrt.f32 %v1154_v49  ;;  %vm1161_vm11 = vweird.f32 %v1154_v49 }
0x15a4   :  { %v4678_v19 = vpop.eup %4677 }
0x15a5   :  { %v1156_v2 = vmul.f32 %v4678_v19, %v1154_v49  ;;  %vm1162_vm10 = vweird.f32 %v4678_v19 }
0x15a6   :  { %vm1163_vm12 = vmor %vm1161_vm11, %vm1162_vm10 }
0x15a7   :  { %v1157_v3 = vmul.f32 %v4678_v19, %v1156_v2 }
0x15a9   :  { %v1158_v4 = vmul.f32 0.5, %v1157_v3 }
0x15ab   :  { %v1159_v5 = vsub.f32 1.5, %v1158_v4 }
0x15ad   :  { %v1160_v25 = vmul.f32 %v4678_v19, %v1159_v5 }
0x15af   :  { %v1164_v39 = vsel %vm1163_vm12, %v4678_v19, %v1160_v25  ;;  %vm1673_vm12 = vcmp.eq.s32.totalorder %v5375_v45, 2 }
0x15b0   :  { %v1165_v40 = vmul.f32 %v1164_v39, %v5630_v46 }
0x15b2   :  { %v1166_v41 = vmul.f32 %v5341_v18, %v1165_v40 }
0x15b4   :  { %4470 = vmatmul.msk.f32.vlgmr.msra.gmra.mxu0 %vm182_vm2, %v1166_v41 }
0x1631   :  { %v1187_v32 = vpop.f32.mrf.mxu0 }
0x1632   :  { %1254 = vrot.lane.b32.xlu0 %v1187_v32, %s5017_s25  ;;  %1256 = vrot.lane.b32.xlu1 %v1187_v32, %s5015_s2 }
0x163a   :  { %1191 = vrot.lane.b32.xlu1 %v1187_v32, %s5014_s17 }
0x16a4   :  { %v1257_v33 = vpop.permute.xlu1 %1256  ;;  %v1255_v34 = vpop.permute.xlu0 %1254 }
0x16a5   :  { %4474 = vmatpush.xpose.msk.msrb.mxu1 %vm236_vm7, %v1257_v33 }
0x16a8   :  { %4475 = vmatmul.msk.f32.vlgmr.msrb.gmra.mxu1 %vm236_vm7, %v1255_v34 }
0x16a9   :  { %4479 = vmatpush.xpose.msk.msra.mxu1 %vm236_vm7, %v5413_v14 }
0x16ac   :  { %v1192_v18 = vpop.permute.xlu1 %1191 }
0x16ad   :  { %1524 = vmatpush.msrb.mxu1 %v5490_v57  ;;  %4471 = vmatpush.xpose.msk.msra.mxu3 %vm236_vm7, %v1192_v18 }
0x16af   :  { %1525 = vmatpush.msrb.mxu1 %v5492_v58 }
0x16b0   :  { %4472 = vmatmul.msk.f32.vlgmr.msra.gmra.mxu3 %vm236_vm7, %v1187_v32 }
0x16b1   :  { %1526 = vmatpush.msrb.mxu1 %v5495_v59 }
0x16b3   :  { %1527 = vmatpush.msrb.mxu1 %v5500_v61 }
0x1725   :  { %v1279_v35 = vpop.f32.mrf.mxu1 }
0x1726   :  { %v1280_v36 = vadd.f32 %v1279_v35, %v5379_v47 }
0x1728   :  { %v1282_v15 = vsel %vm261_vm8, %v1280_v36, -inf }
0x1729   :  { %1283 = vmax.xlane.f32.xlu2 %v1282_v15 }
0x1733   :  { %v1214_v37 = vpop.f32.mrf.mxu3 }
0x1734   :  { %v1215_v48 = vadd.f32 %v1214_v37, %v5379_v47 }
0x1736   :  { %v1217_v50 = vsel %vm261_vm8, %v1215_v48, -inf }
0x1737   :  { %1218 = vmax.xlane.f32.xlu0 %v1217_v50 }
0x1741   :  { %1293 = vrot.lane.b32.xlu2 %v1187_v32, %s5016_s15 }
0x174b   :  { %1228 = vrot.lane.b32.xlu0 %v1187_v32, %s5013_s24 }
0x179c   :  { %v1284_v54 = vpop.xlane.xlu2 %1283 }
0x179d   :  { %v1285_v20 = vsub.f32 %v1280_v36, %v1284_v54 }
0x179f   :  { %v1286_v49 = vmul.f32 1.442695, %v1285_v20 }
0x17a1   :  { %4679 = vpow2.f32 %v1286_v49 }
0x17a4   :  { %v1294_v19 = vpop.permute.xlu2 %1293 }
0x17a5   :  { %1314 = vmatpush.msrb.mxu3 %v1294_v19 }
0x17a7   :  { %1441 = vmatpush.msra.mxu3 %v5486_v56  ;;  %v4680_v2 = vpop.eup %4679 }
0x17a8   :  { %v1288_v3 = vsel %vm261_vm8, %v4680_v2, 0.0 }
0x17a9   :  { %1289 = vadd.xlane.f32.xlu1 %v1288_v3 }
0x17aa   :  { %v1219_v4 = vpop.xlane.xlu0 %1218 }
0x17ab   :  { %v1220_v5 = vsub.f32 %v1215_v48, %v1219_v4 }
0x17ad   :  { %v1221_v25 = vmul.f32 1.442695, %v1220_v5 }
0x17af   :  { %4681 = vpow2.f32 %v1221_v25 }
0x17b5   :  { %v4682_v39 = vpop.eup %4681 }
0x17b6   :  { %v1223_v40 = vsel %vm261_vm8, %v4682_v39, 0.0 }
0x17b7   :  { %1224 = vadd.xlane.f32.xlu2 %v1223_v40 }
0x17bd   :  { %v1229_v41 = vpop.permute.xlu0 %1228 }
0x17be   :  { %1249 = vmatpush.msrb.mxu0 %v1229_v41 }
0x17c0   :  { %1381 = vmatpush.msra.mxu0 %v5441_v52 }
0x17c2   :  { %1382 = vmatpush.msra.mxu0 %v5447_v53 }
0x17c4   :  { %1383 = vmatpush.msra.mxu0 %v5453_v23 }
0x17c6   :  { %1384 = vmatpush.msra.mxu0 %v5458_v10 }
0x181c   :  { %v1290_v32 = vpop.xlane.xlu1 %1289 }
0x181d   :  { %4683 = vrcp.f32 %v1290_v32  ;;  %v5702_v32 = vld [vmem:[%s6789_s20 + $0x38] sm:$0xff] }
0x1823   :  { %v4684_v33 = vpop.eup %4683 }
0x1824   :  { %v1292_v34 = vmul.f32 %v4684_v33, %v4680_v2  ;;  %v5714_v33 = vld [vmem:[%s6789_s20 + $0x28] sm:$0xff] }
0x1826   :  { %4476 = vmatmul.msk.f32.vlgmr.msrb.gmra.mxu3 %vm261_vm8, %v1292_v34  ;;  %v5720_v34 = vld [vmem:[%s6789_s20 + $0x20] sm:$0xff] }
0x1827   :  { %1566 = vmatpush.msrb.mxu3 %v5519_v6 }
0x1829   :  { %1567 = vmatpush.msrb.mxu3 %v5522_v7 }
0x182a   :  { %v1225_v18 = vpop.xlane.xlu2 %1224 }
0x182b   :  { %4685 = vrcp.f32 %v1225_v18  ;;  %1568 = vmatpush.msrb.mxu3 %v5525_v8  ;;  %v5726_v18 = vld [vmem:[%s6789_s20 + $0x18] sm:$0xff] }
0x182d   :  { %1569 = vmatpush.msrb.mxu3 %v5528_v9 }
0x1831   :  { %v4686_v52 = vpop.eup %4685 }
0x1832   :  { %v1227_v53 = vmul.f32 %v4686_v52, %v4682_v39  ;;  %v5732_v52 = vld [vmem:[%s6789_s20 + $0x10] sm:$0xff] }
0x1834   :  { %4473 = vmatmul.msk.f32.vlgmr.msrb.gmra.mxu0 %vm261_vm8, %v1227_v53  ;;  %v5738_v53 = vld [vmem:[%s6789_s20 + $0x8] sm:$0xff] }
0x1835   :  { %1499 = vmatpush.msrb.mxu0 %v5482_v51 }
0x18a9   :  { %v1316_v23 = vpop.f32.mrf.mxu3 }
0x18aa   :  { %1320 = vrot.lane.b32.xlu1 %v1316_v23, %s5018_s30  ;;  %v5744_v23 = vld [vmem:[%s6789_s20] sm:$0xff] }
0x18b1   :  { %v1251_v10 = vpop.f32.mrf.mxu0 }
0x191c   :  { %v1321_v35 = vpop.permute.xlu1 %1320 }
0x191d   :  { %v1323_v36 = vsel %vm236_vm7, %v1251_v10, %v1321_v35 }
0x191e   :  { %4477 = vmatmul.msk.f32.vlgmr.msra.gmra.mxu2 %vm182_vm2, %v1323_v36 }
0x191f   :  { %1586 = vmatpush.msra.mxu2 %v5534_v30 }
0x1921   :  { %1587 = vmatpush.msra.mxu2 %v5539_v21 }
0x1923   :  { %1588 = vmatpush.msra.mxu2 %v5546_v22 }
0x1925   :  { %1589 = vmatpush.msra.mxu2 %v5553_v24 }
0x1927   :  { %1590 = vmatpush.msra.mxu2 %v5561_v27 }
0x1929   :  { %1591 = vmatpush.msra.mxu2 %v5568_v29 }
0x192b   :  { %1592 = vmatpush.msra.mxu2 %v5582_v38 }
0x192d   :  { %1593 = vmatpush.msra.mxu2 %v5588_v43 }
0x19a1   :  { %v1344_v15 = vpop.f32.mrf.mxu2 }
0x19a2   :  { %v5684_v37 = vadd.f32 %v1344_v15, %v5630_v46 }
0x19a4   :  { %v1348_v48 = vmul.f32 %v5684_v37, %v5684_v37 }
0x19a6   :  { %v1349_v50 = vsel %vm182_vm2, %v1348_v48, 0.0 }
0x19a7   :  { %1350 = vadd.xlane.f32.xlu0 %v1349_v50 }
0x1a1a   :  { %v1351_v54 = vpop.xlane.xlu0 %1350 }
0x1a1b   :  { %v1352_v20 = vmul.f32 %v1351_v54, %v5215_v28 }
0x1a1d   :  { %v1353_v49 = vadd.f32 1e-06, %v1352_v20 }
0x1a1f   :  { %4687 = vrsqrt.f32 %v1353_v49  ;;  %vm1360_vm14 = vweird.f32 %v1353_v49 }
0x1a25   :  { %v4688_v19 = vpop.eup %4687 }
0x1a26   :  { %v1355_v2 = vmul.f32 %v4688_v19, %v1353_v49  ;;  %vm1361_vm13 = vweird.f32 %v4688_v19 }
0x1a27   :  { %vm1362_vm15 = vmor %vm1360_vm14, %vm1361_vm13 }
0x1a28   :  { %v1356_v3 = vmul.f32 %v4688_v19, %v1355_v2 }
0x1a2a   :  { %v1357_v4 = vmul.f32 0.5, %v1356_v3 }
0x1a2c   :  { %v1358_v5 = vsub.f32 1.5, %v1357_v4 }
0x1a2e   :  { %v1359_v25 = vmul.f32 %v4688_v19, %v1358_v5 }
0x1a30   :  { %v1363_v46 = vsel %vm1362_vm15, %v4688_v19, %v1359_v25 }
0x1a31   :  { %v1364_v39 = vmul.f32 %v1363_v46, %v5684_v37 }
0x1a33   :  { %v1365_v40 = vmul.f32 %v5466_v16, %v1364_v39  ;;  %v5708_v16 = vld [vmem:[%s6789_s20 + $0x30] sm:$0xff] }
0x1a35   :  { %4478 = vmatmul.msk.f32.vlgmr.msra.gmra.mxu0 %vm182_vm2, %v1365_v40 }
0x1a36   :  { %1632 = vmatpush.msra.mxu0 %v5593_v55 }
0x1a38   :  { %1633 = vmatpush.msra.mxu0 %v5596_v60 }
0x1a3a   :  { %1634 = vmatpush.msra.mxu0 %v5599_v12 }
0x1a3c   :  { %1635 = vmatpush.msra.mxu0 %v5602_v17 }
0x1ab2   :  { %v1386_v41 = vpop.f32.mrf.mxu0 }
0x1ab3   :  { %1446 = vrot.lane.b32.xlu1 %v1386_v41, %s5017_s25  ;;  %4480 = vmatmul.msk.f32.vlgmr.msra.gmra.mxu1 %vm236_vm7, %v1386_v41 }
0x1ab4   :  { %1686 = vmatpush.msra.mxu1 %v5702_v32 }
0x1ab6   :  { %1687 = vmatpush.msra.mxu1 %v5708_v16 }
0x1ab8   :  { %1688 = vmatpush.msra.mxu1 %v5714_v33 }
0x1aba   :  { %1689 = vmatpush.msra.mxu1 %v5720_v34 }
0x1abc   :  { %1690 = vmatpush.msra.mxu1 %v5726_v18 }
0x1abe   :  { %1691 = vmatpush.msra.mxu1 %v5732_v52 }
0x1ac0   :  { %1692 = vmatpush.msra.mxu1 %v5738_v53 }
0x1ac2   :  { %1693 = vmatpush.msra.mxu1 %v5744_v23 }
0x1b25   :  { %v1447_v10 = vpop.permute.xlu1 %1446 }
0x1b26   :  { %4483 = vmatmul.msk.f32.vlgmr.msrb.gmra.mxu2 %vm236_vm7, %v1447_v10 }
0x1b30   :  { %v1409_v35 = vpop.f32.mrf.mxu1 }
0x1b31   :  { %v1412_v36 = vsel %vm261_vm8, %v1409_v35, -inf }
0x1b32   :  { %1413 = vmax.xlane.f32.xlu1 %v1412_v36  ;;  %v5757_v36 = vld [vmem:[%s6767_s10 + $0x18] sm:$0xff] }
0x1ba5   :  { %v1414_v50 = vpop.xlane.xlu1 %1413 }
0x1ba6   :  { %v1415_v49 = vsub.f32 %v1409_v35, %v1414_v50  ;;  %v5775_v50 = vld [vmem:[%s6767_s10] sm:$0xff] }
0x1ba8   :  { %v1416_v2 = vmul.f32 1.442695, %v1415_v49 }
0x1ba9   :  { %v1467_v15 = vpop.f32.mrf.mxu2 }
0x1baa   :  { %v1470_v48 = vsel %vm261_vm8, %v1467_v15, -inf }
0x1bab   :  { %1471 = vmax.xlane.f32.xlu2 %v1470_v48  ;;  %v5769_v48 = vld [vmem:[%s6767_s10 + $0x8] sm:$0xff] }
0x1c1e   :  { %v1472_v54 = vpop.xlane.xlu2 %1471 }
0x1c1f   :  { %v1473_v20 = vsub.f32 %v1467_v15, %v1472_v54  ;;  %v5763_v15 = vld [vmem:[%s6767_s10 + $0x10] sm:$0xff] }
0x1c21   :  { %v1474_v19 = vmul.f32 1.442695, %v1473_v20 }
0x1c23   :  { %4689 = vpow2.f32 %v1474_v19 }
0x1c24   :  { %4691 = vpow2.f32 %v1416_v2 }
0x1c29   :  { %v4690_v3 = vpop.eup %4689 }
0x1c2a   :  { %v1476_v4 = vsel %vm261_vm8, %v4690_v3, 0.0  ;;  %v4692_v5 = vpop.eup %4691 }
0x1c2b   :  { %1477 = vadd.xlane.f32.xlu2 %v1476_v4  ;;  %v1418_v25 = vsel %vm261_vm8, %v4692_v5, 0.0 }
0x1c33   :  { %1419 = vadd.xlane.f32.xlu2 %v1418_v25 }
0x1c9e   :  { %v1478_v46 = vpop.xlane.xlu2 %1477 }
0x1c9f   :  { %4693 = vrcp.f32 %v1478_v46 }
0x1ca5   :  { %v4694_v39 = vpop.eup %4693 }
0x1ca6   :  { %v1480_v40 = vmul.f32 %v4694_v39, %v4690_v3  ;;  %v1420_v41 = vpop.xlane.xlu2 %1419 }
0x1ca7   :  { %4695 = vrcp.f32 %v1420_v41 }
0x1ca8   :  { %4484 = vmatmul.msk.f32.vlgmr.msrb.gmra.mxu0 %vm261_vm8, %v1480_v40 }
0x1cad   :  { %v4696_v10 = vpop.eup %4695 }
0x1cae   :  { %v1422_v35 = vmul.f32 %v4696_v10, %v4692_v5 }
0x1cb0   :  { %4481 = vmatmul.msk.f32.vlgmr.msra.gmra.mxu3 %vm261_vm8, %v1422_v35 }
0x1cb1   :  { %1731 = vmatpush.msra.mxu3 %v5757_v36 }
0x1cb3   :  { %1732 = vmatpush.msra.mxu3 %v5763_v15 }
0x1cb5   :  { %1733 = vmatpush.msra.mxu3 %v5769_v48 }
0x1cb7   :  { %1734 = vmatpush.msra.mxu3 %v5775_v50 }
0x1d25   :  { %v1501_v54 = vpop.f32.mrf.mxu0 }
0x1d26   :  { %1505 = vrot.lane.b32.xlu2 %v1501_v54, %s5018_s30 }
0x1d33   :  { %v1443_v20 = vpop.f32.mrf.mxu3 }
0x1d80   :  { %v1506_v49 = vpop.permute.xlu2 %1505 }
0x1d81   :  { %v1508_v19 = vsel %vm236_vm7, %v1443_v20, %v1506_v49 }
0x1d82   :  { %4485 = vmatmul.msk.f32.vlgmr.msrb.gmra.mxu1 %vm182_vm2, %v1508_v19 }
0x1d83   :  { %1888 = vmatpush.msrb.mxu1 %v5392_v62 }
0x1d85   :  { %1889 = vmatpush.msrb.mxu1 %v5397_v63 }
0x1d87   :  { %1890 = vmatpush.msrb.mxu1 %v5403_v0 }
0x1d89   :  { %1891 = vmatpush.msrb.mxu1 %v5409_v1 }
0x1dff   :  { %v1529_v2 = vpop.f32.mrf.mxu1 }
0x1e00   :  { %v1532_v3 = vadd.f32 %v1529_v2, %v5684_v37 }
0x1e02   :  { %v1533_v4 = vmul.f32 %v1532_v3, %v1532_v3 }
0x1e04   :  { %v1534_v5 = vsel %vm182_vm2, %v1533_v4, 0.0 }
0x1e05   :  { %1535 = vadd.xlane.f32.xlu0 %v1534_v5 }
0x1e78   :  { %v1536_v25 = vpop.xlane.xlu0 %1535 }
0x1e79   :  { %v1537_v46 = vmul.f32 %v1536_v25, %v5215_v28 }
0x1e7b   :  { %v1538_v39 = vadd.f32 1e-06, %v1537_v46 }
0x1e7d   :  { %4697 = vrsqrt.f32 %v1538_v39  ;;  %vm1545_vm3 = vweird.f32 %v1538_v39 }
0x1e83   :  { %v4698_v40 = vpop.eup %4697 }
0x1e84   :  { %v1540_v62 = vmul.f32 %v4698_v40, %v1538_v39  ;;  %vm1546_vm1 = vweird.f32 %v4698_v40 }
0x1e85   :  { %vm1547_vm4 = vmor %vm1545_vm3, %vm1546_vm1 }
0x1e86   :  { %v1541_v41 = vmul.f32 %v4698_v40, %v1540_v62 }
0x1e88   :  { %v1542_v63 = vmul.f32 0.5, %v1541_v41 }
0x1e8a   :  { %v1543_v10 = vsub.f32 1.5, %v1542_v63 }
0x1e8c   :  { %v1544_v0 = vmul.f32 %v4698_v40, %v1543_v10 }
0x1e8e   :  { %v1548_v1 = vsel %vm1547_vm4, %v4698_v40, %v1544_v0 }
0x1e8f   :  { %v1549_v37 = vmul.f32 %v1548_v1, %v1532_v3 }
0x1e91   :  { %v1550_v35 = vmul.f32 %v5575_v42, %v1549_v37 }
0x1e93   :  { %4486 = vmatmul.msk.f32.vlgmr.msrb.gmra.mxu3 %vm182_vm2, %v1550_v35 }
0x1f16   :  { %v1571_v54 = vpop.f32.mrf.mxu3 }
0x1f17   :  { %v1574_v20 = vmax.f32 %v1571_v54, 0.0 }
0x1f19   :  { %4487 = vmatmul.msk.f32.vlgmr.msra.gmra.mxu2 %vm134_vm0, %v1574_v20 }
0x1f9c   :  { %v1595_v49 = vpop.f32.mrf.mxu2 }
0x1f9d   :  { %v1598_v19 = vadd.f32 %v1595_v49, %v1532_v3 }
0x1f9f   :  { %v1599_v2 = vmul.f32 %v1598_v19, %v1598_v19 }
0x1fa1   :  { %v1600_v4 = vsel %vm182_vm2, %v1599_v2, 0.0 }
0x1fa2   :  { %1601 = vadd.xlane.f32.xlu0 %v1600_v4 }
0x2015   :  { %v1602_v5 = vpop.xlane.xlu0 %1601 }
0x2016   :  { %v1603_v25 = vmul.f32 %v1602_v5, %v5215_v28 }
0x2018   :  { %v1604_v46 = vadd.f32 1e-06, %v1603_v25 }
0x201a   :  { %4699 = vrsqrt.f32 %v1604_v46  ;;  %vm1611_vm9 = vweird.f32 %v1604_v46 }
0x2020   :  { %v4700_v39 = vpop.eup %4699 }
0x2021   :  { %v1606_v40 = vmul.f32 %v4700_v39, %v1604_v46  ;;  %vm1612_vm5 = vweird.f32 %v4700_v39 }
0x2022   :  { %vm1613_vm10 = vmor %vm1611_vm9, %vm1612_vm5 }
0x2023   :  { %v1607_v42 = vmul.f32 %v4700_v39, %v1606_v40 }
0x2025   :  { %v1608_v62 = vmul.f32 0.5, %v1607_v42 }
0x2027   :  { %v1609_v41 = vsub.f32 1.5, %v1608_v62 }
0x2029   :  { %v1610_v63 = vmul.f32 %v4700_v39, %v1609_v41 }
0x202b   :  { %v1614_v10 = vsel %vm1613_vm10, %v4700_v39, %v1610_v63 }
0x202c   :  { %v1615_v3 = vmul.f32 %v1614_v10, %v1598_v19 }
0x202e   :  { %v1616_v0 = vmul.f32 %v5609_v31, %v1615_v3 }
0x2030   :  { %4488 = vmatmul.msk.f32.vlgmr.msra.gmra.mxu0 %vm182_vm2, %v1616_v0 }
0x20ad   :  { %v1637_v1 = vpop.f32.mrf.mxu0 }
0x20ae   :  { %v1640_v37 = vsel %vm1124_vm6, %v1637_v1, -1e+30 }
0x20af   :  { %v1641_v35 = vsel %vm134_vm0, %v1640_v37, -inf }
0x20b0   :  { %v1642_v54 = vrot.slane %v1641_v35, 4 }
0x20b2   :  { %v1643_v20 = vmax.f32 %v1641_v35, %v1642_v54 }
0x20b4   :  { %v1644_v49 = vrot.slane %v1643_v20, 2 }
0x20b6   :  { %v1645_v2 = vmax.f32 %v1643_v20, %v1644_v49 }
0x20b8   :  { %v1646_v4 = vrot.slane %v1645_v2, 1 }
0x20ba   :  { %v1647_v5 = vmax.f32 %v1645_v2, %v1646_v4 }
0x20bc   :  { %v1648_v25 = vsel %vm134_vm0, %v1647_v5, -inf }
0x20bd   :  { %1649 = vmax.xlane.f32.xlu2 %v1648_v25 }
0x2130   :  { %v1650_v19 = vpop.xlane.xlu2 %1649 }
0x2131   :  { %vm1651_vm11 = vcmp.eq.f32.partialorder %v1647_v5, %v1650_v19 }
0x2132   :  { %v1652_v31 = vsel %vm1651_vm11, %v5191_v11, 64 }
0x2133   :  { %v1653_v46 = vsel %vm134_vm0, %v1652_v31, 2147483647 }
0x2134   :  { %v1655_v39 = vshra.s32 %v1653_v46, 16  ;;  %v1654_v42 = vand.u32 65535, %v1653_v46 }
0x2136   :  { %v1657_v40 = vcvt.s32.f32 %v1655_v39  ;;  %v1656_v41 = vcvt.s32.f32 %v1654_v42 }
0x2138   :  { %1658 = vmin.xlane.f32.xlu1 %v1657_v40 }
0x21ab   :  { %v1659_v62 = vpop.xlane.xlu1 %1658 }
0x21ac   :  { %vm1660_vm6 = vcmp.eq.f32.partialorder %v1657_v40, %v1659_v62  ;;  %v1665_v10 = vcvt.f32.s32 %v1659_v62 }
0x21ad   :  { %v1661_v63 = vsel %vm1660_vm6, %v1656_v41, inf }
0x21ae   :  { %1662 = vmin.xlane.f32.xlu0 %v1661_v63  ;;  %v1666_v0 = vshll.u32 %v1665_v10, 16  ;;  %v5823_v63 = vld [vmem:[%s6766_s9] ss:$0 sm:$0xff] }
0x2221   :  { %v1663_v3 = vpop.xlane.xlu0 %1662 }
0x2222   :  { %v1664_v1 = vcvt.f32.s32 %v1663_v3 }
0x2224   :  { %v1667_v37 = vadd.s32 %v1666_v0, %v1664_v1 }
0x2226   :  { %4597 = vpush %v1667_v37 }
0x2257   :  { %s4598_s1 = spop %4597 }
0x2258   :  { %v1669_v35 = vstv %s4598_s1 }
0x2259   :  { %vm1670_vm13 = vcmp.eq.s32.totalorder %v5191_v11, %v1669_v35 }
0x225a   :  { %v4489_v54 = vsel %vm1670_vm13, 1.0, %v5011_v13 }
0x225b   :  { %v5807_v20 = vsel %vm1673_vm12, %v4489_v54, %v5624_v44 }
0x225c   :  { %4490 = vmatmul.msk.f32.vlgmr.msra.gmra.mxu1 %vm134_vm0, %v5807_v20 }
0x225d   :  { %4503 = vmatpush.xpose.msk.msra.mxu1 %vm236_vm7, %v5422_v26 }
0x22d9   :  { %v5813_v49 = vpop.f32.mrf.mxu1 }
0x22da   :  { %v1698_v2 = vmul.f32 %v5813_v49, %v5813_v49 }
0x22dc   :  { %v1699_v4 = vsel %vm182_vm2, %v1698_v2, 0.0 }
0x22dd   :  { %1700 = vadd.xlane.f32.xlu1 %v1699_v4 }
0x2350   :  { %v1701_v5 = vpop.xlane.xlu1 %1700 }
0x2351   :  { %v1702_v25 = vmul.f32 %v1701_v5, %v5215_v28 }
0x2353   :  { %v1703_v19 = vadd.f32 1e-06, %v1702_v25 }
0x2355   :  { %4701 = vrsqrt.f32 %v1703_v19  ;;  %vm1710_vm15 = vweird.f32 %v1703_v19 }
0x235b   :  { %v4702_v44 = vpop.eup %4701 }
0x235c   :  { %v1705_v31 = vmul.f32 %v4702_v44, %v1703_v19  ;;  %vm1711_vm14 = vweird.f32 %v4702_v44 }
0x235d   :  { %vm1712_vm1 = vmor %vm1710_vm15, %vm1711_vm14 }
0x235e   :  { %v1706_v46 = vmul.f32 %v4702_v44, %v1705_v31 }
0x2360   :  { %v1707_v39 = vmul.f32 0.5, %v1706_v46 }
0x2362   :  { %v1708_v40 = vsub.f32 1.5, %v1707_v39 }
0x2364   :  { %v1709_v42 = vmul.f32 %v4702_v44, %v1708_v40 }
0x2366   :  { %v1713_v62 = vsel %vm1712_vm1, %v4702_v44, %v1709_v42  ;;  %vm2222_vm1 = vcmp.eq.s32.totalorder %v5375_v45, 3 }
0x2367   :  { %v1714_v41 = vmul.f32 %v1713_v62, %v5813_v49 }
0x2369   :  { %v1715_v10 = vmul.f32 %v5823_v63, %v1714_v41  ;;  %v5852_v41 = vld [vmem:[%s6770_s13 + $0x18] sm:$0xff] }
0x236b   :  { %4491 = vmatmul.msk.f32.vlgmr.msra.gmra.mxu3 %vm182_vm2, %v1715_v10  ;;  %v5858_v10 = vld [vmem:[%s6770_s13 + $0x10] sm:$0xff] }
0x23ee   :  { %v1736_v3 = vpop.f32.mrf.mxu3 }
0x23ef   :  { %1803 = vrot.lane.b32.xlu1 %v1736_v3, %s5017_s25  ;;  %1805 = vrot.lane.b32.xlu0 %v1736_v3, %s5015_s2 }
0x23f7   :  { %1740 = vrot.lane.b32.xlu0 %v1736_v3, %s5014_s17 }
0x2461   :  { %v1806_v0 = vpop.permute.xlu0 %1805  ;;  %v1804_v1 = vpop.permute.xlu1 %1803 }
0x2462   :  { %4495 = vmatpush.xpose.msk.msrb.mxu2 %vm236_vm7, %v1806_v0  ;;  %v5870_v0 = vld [vmem:[%s6770_s13] sm:$0xff] }
0x2465   :  { %4496 = vmatmul.msk.f32.vlgmr.msrb.gmra.mxu2 %vm236_vm7, %v1804_v1 }
0x2466   :  { %4500 = vmatpush.xpose.msk.msra.mxu2 %vm236_vm7, %v5413_v14 }
0x2469   :  { %v1741_v37 = vpop.permute.xlu0 %1740 }
0x246a   :  { %2073 = vmatpush.msrb.mxu2 %v5490_v57  ;;  %4492 = vmatpush.xpose.msk.msrb.mxu0 %vm236_vm7, %v1741_v37 }
0x246c   :  { %2074 = vmatpush.msrb.mxu2 %v5492_v58 }
0x246d   :  { %4493 = vmatmul.msk.f32.vlgmr.msrb.gmra.mxu0 %vm236_vm7, %v1736_v3 }
0x246e   :  { %2075 = vmatpush.msrb.mxu2 %v5495_v59 }
0x2470   :  { %2076 = vmatpush.msrb.mxu2 %v5500_v61 }
0x24e8   :  { %v1828_v35 = vpop.f32.mrf.mxu2 }
0x24e9   :  { %v1829_v54 = vadd.f32 %v1828_v35, %v5379_v47 }
0x24ea   :  { %v1763_v2 = vpop.f32.mrf.mxu0 }
0x24eb   :  { %v1764_v4 = vadd.f32 %v1763_v2, %v5379_v47  ;;  %v1831_v5 = vsel %vm261_vm8, %v1829_v54, -inf }
0x24ec   :  { %1832 = vmax.xlane.f32.xlu0 %v1831_v5 }
0x24ed   :  { %v1766_v57 = vsel %vm261_vm8, %v1764_v4, -inf }
0x24ee   :  { %1767 = vmax.xlane.f32.xlu2 %v1766_v57 }
0x2500   :  { %1777 = vrot.lane.b32.xlu0 %v1736_v3, %s5013_s24 }
0x2506   :  { %1842 = vrot.lane.b32.xlu2 %v1736_v3, %s5016_s15  ;;  %v5864_v3 = vld [vmem:[%s6770_s13 + $0x8] sm:$0xff] }
0x255f   :  { %v1833_v58 = vpop.xlane.xlu0 %1832 }
0x2560   :  { %v1834_v59 = vsub.f32 %v1829_v54, %v1833_v58 }
0x2561   :  { %v1768_v61 = vpop.xlane.xlu2 %1767 }
0x2562   :  { %v1835_v25 = vmul.f32 1.442695, %v1834_v59  ;;  %v1769_v19 = vsub.f32 %v1764_v4, %v1768_v61 }
0x2564   :  { %4703 = vpow2.f32 %v1835_v25  ;;  %v1770_v44 = vmul.f32 1.442695, %v1769_v19  ;;  %v5902_v19 = vld [vmem:[%s6769_s12] ss:$0 sm:$0xff] }
0x2566   :  { %4705 = vpow2.f32 %v1770_v44 }
0x2569   :  { %v1843_v31 = vpop.permute.xlu2 %1842 }
0x256a   :  { %v4704_v46 = vpop.eup %4703  ;;  %1863 = vmatpush.msra.mxu0 %v1843_v31 }
0x256b   :  { %v1837_v39 = vsel %vm261_vm8, %v4704_v46, 0.0 }
0x256c   :  { %1990 = vmatpush.msrb.mxu0 %v5486_v56  ;;  %v4706_v40 = vpop.eup %4705  ;;  %1838 = vadd.xlane.f32.xlu1 %v1837_v39 }
0x256d   :  { %v1772_v42 = vsel %vm261_vm8, %v4706_v40, 0.0 }
0x256e   :  { %1773 = vadd.xlane.f32.xlu2 %v1772_v42 }
0x2572   :  { %v1778_v62 = vpop.permute.xlu0 %1777 }
0x2573   :  { %1798 = vmatpush.msrb.mxu3 %v1778_v62 }
0x2575   :  { %1930 = vmatpush.msra.mxu3 %v5852_v41 }
0x2577   :  { %1931 = vmatpush.msra.mxu3 %v5858_v10 }
0x2579   :  { %1932 = vmatpush.msra.mxu3 %v5864_v3 }
0x257b   :  { %1933 = vmatpush.msra.mxu3 %v5870_v0 }
0x25df   :  { %v1839_v1 = vpop.xlane.xlu1 %1838 }
0x25e0   :  { %4707 = vrcp.f32 %v1839_v1 }
0x25e1   :  { %v1774_v37 = vpop.xlane.xlu2 %1773 }
0x25e2   :  { %4709 = vrcp.f32 %v1774_v37 }
0x25e6   :  { %v4708_v35 = vpop.eup %4707 }
0x25e7   :  { %v1841_v54 = vmul.f32 %v4708_v35, %v4704_v46 }
0x25e8   :  { %v4710_v2 = vpop.eup %4709 }
0x25e9   :  { %v1776_v4 = vmul.f32 %v4710_v2, %v4706_v40  ;;  %4497 = vmatmul.msk.f32.vlgmr.msra.gmra.mxu0 %vm261_vm8, %v1841_v54 }
0x25ea   :  { %2115 = vmatpush.msra.mxu0 %v5519_v6 }
0x25eb   :  { %4494 = vmatmul.msk.f32.vlgmr.msrb.gmra.mxu3 %vm261_vm8, %v1776_v4 }
0x25ec   :  { %2048 = vmatpush.msrb.mxu3 %v5482_v51  ;;  %2116 = vmatpush.msra.mxu0 %v5522_v7 }
0x25ee   :  { %2117 = vmatpush.msra.mxu0 %v5525_v8 }
0x25f0   :  { %2118 = vmatpush.msra.mxu0 %v5528_v9 }
0x2666   :  { %v1865_v5 = vpop.f32.mrf.mxu0 }
0x2667   :  { %1869 = vrot.lane.b32.xlu1 %v1865_v5, %s5018_s30 }
0x266e   :  { %v1800_v57 = vpop.f32.mrf.mxu3 }
0x26d9   :  { %v1870_v58 = vpop.permute.xlu1 %1869 }
0x26da   :  { %v1872_v59 = vsel %vm236_vm7, %v1800_v57, %v1870_v58  ;;  %v5937_v58 = vld [vmem:[%s6768_s11 + $0x18] sm:$0xff] }
0x26db   :  { %4498 = vmatmul.msk.f32.vlgmr.msrb.gmra.mxu1 %vm182_vm2, %v1872_v59 }
0x26dc   :  { %2135 = vmatpush.msrb.mxu1 %v5534_v30 }
0x26de   :  { %2136 = vmatpush.msrb.mxu1 %v5539_v21 }
0x26e0   :  { %2137 = vmatpush.msrb.mxu1 %v5546_v22 }
0x26e2   :  { %2138 = vmatpush.msrb.mxu1 %v5553_v24 }
0x26e4   :  { %2139 = vmatpush.msrb.mxu1 %v5561_v27 }
0x26e6   :  { %2140 = vmatpush.msrb.mxu1 %v5568_v29 }
0x26e8   :  { %2141 = vmatpush.msrb.mxu1 %v5582_v38 }
0x26ea   :  { %2142 = vmatpush.msrb.mxu1 %v5588_v43 }
0x2758   :  { %v1893_v6 = vpop.f32.mrf.mxu1 }
0x2759   :  { %v5892_v7 = vadd.f32 %v1893_v6, %v5813_v49 }
0x275b   :  { %v1897_v8 = vmul.f32 %v5892_v7, %v5892_v7 }
0x275d   :  { %v1898_v9 = vsel %vm182_vm2, %v1897_v8, 0.0 }
0x275e   :  { %1899 = vadd.xlane.f32.xlu0 %v1898_v9 }
0x27d1   :  { %v1900_v30 = vpop.xlane.xlu0 %1899 }
0x27d2   :  { %v1901_v21 = vmul.f32 %v1900_v30, %v5215_v28 }
0x27d4   :  { %v1902_v22 = vadd.f32 1e-06, %v1901_v21 }
0x27d6   :  { %4711 = vrsqrt.f32 %v1902_v22  ;;  %vm1909_vm4 = vweird.f32 %v1902_v22 }
0x27dc   :  { %v4712_v24 = vpop.eup %4711 }
0x27dd   :  { %v1904_v27 = vmul.f32 %v4712_v24, %v1902_v22  ;;  %vm1910_vm3 = vweird.f32 %v4712_v24 }
0x27de   :  { %vm1911_vm5 = vmor %vm1909_vm4, %vm1910_vm3 }
0x27df   :  { %v1905_v29 = vmul.f32 %v4712_v24, %v1904_v27 }
0x27e1   :  { %v1906_v38 = vmul.f32 0.5, %v1905_v29 }
0x27e3   :  { %v1907_v43 = vsub.f32 1.5, %v1906_v38 }
0x27e5   :  { %v1908_v61 = vmul.f32 %v4712_v24, %v1907_v43 }
0x27e7   :  { %v1912_v49 = vsel %vm1911_vm5, %v4712_v24, %v1908_v61 }
0x27e8   :  { %v1913_v25 = vmul.f32 %v1912_v49, %v5892_v7  ;;  %v5964_v49 = vld [vmem:[%s6773_s16] ss:$0 sm:$0xff] }
0x27ea   :  { %v1914_v44 = vmul.f32 %v5902_v19, %v1913_v25 }
0x27ec   :  { %4499 = vmatmul.msk.f32.vlgmr.msra.gmra.mxu3 %vm182_vm2, %v1914_v44 }
0x27ed   :  { %2181 = vmatpush.msra.mxu3 %v5593_v55 }
0x27ef   :  { %2182 = vmatpush.msra.mxu3 %v5596_v60 }
0x27f1   :  { %2183 = vmatpush.msra.mxu3 %v5599_v12 }
0x27f3   :  { %2184 = vmatpush.msra.mxu3 %v5602_v17 }
0x286f   :  { %v1935_v31 = vpop.f32.mrf.mxu3 }
0x2870   :  { %1995 = vrot.lane.b32.xlu1 %v1935_v31, %s5017_s25  ;;  %4501 = vmatmul.msk.f32.vlgmr.msra.gmra.mxu2 %vm236_vm7, %v1935_v31 }
0x2871   :  { %2235 = vmatpush.msra.mxu2 %v5702_v32 }
0x2873   :  { %2236 = vmatpush.msra.mxu2 %v5708_v16 }
0x2875   :  { %2237 = vmatpush.msra.mxu2 %v5714_v33 }
0x2877   :  { %2238 = vmatpush.msra.mxu2 %v5720_v34 }
0x2879   :  { %2239 = vmatpush.msra.mxu2 %v5726_v18 }
0x287b   :  { %2240 = vmatpush.msra.mxu2 %v5732_v52 }
0x287d   :  { %2241 = vmatpush.msra.mxu2 %v5738_v53 }
0x287f   :  { %2242 = vmatpush.msra.mxu2 %v5744_v23 }
0x28e2   :  { %v1996_v55 = vpop.permute.xlu1 %1995 }
0x28e3   :  { %4504 = vmatmul.msk.f32.vlgmr.msra.gmra.mxu1 %vm236_vm7, %v1996_v55 }
0x28f3   :  { %v1958_v60 = vpop.f32.mrf.mxu2 }
0x28f4   :  { %v1961_v12 = vsel %vm261_vm8, %v1958_v60, -inf }
0x28f5   :  { %1962 = vmax.xlane.f32.xlu1 %v1961_v12 }
0x2960   :  { %v2016_v17 = vpop.f32.mrf.mxu1 }
0x2961   :  { %v2019_v32 = vsel %vm261_vm8, %v2016_v17, -inf }
0x2962   :  { %2020 = vmax.xlane.f32.xlu2 %v2019_v32 }
0x2968   :  { %v1963_v16 = vpop.xlane.xlu1 %1962 }
0x2969   :  { %v1964_v18 = vsub.f32 %v1958_v60, %v1963_v16 }
0x296b   :  { %v1965_v53 = vmul.f32 1.442695, %v1964_v18 }
0x29d5   :  { %v2021_v33 = vpop.xlane.xlu2 %2020 }
0x29d6   :  { %v2022_v34 = vsub.f32 %v2016_v17, %v2021_v33 }
0x29d8   :  { %v2023_v52 = vmul.f32 1.442695, %v2022_v34 }
0x29da   :  { %4713 = vpow2.f32 %v2023_v52 }
0x29db   :  { %4715 = vpow2.f32 %v1965_v53 }
0x29e0   :  { %v4714_v46 = vpop.eup %4713 }
0x29e1   :  { %v2025_v23 = vsel %vm261_vm8, %v4714_v46, 0.0  ;;  %v4716_v39 = vpop.eup %4715 }
0x29e2   :  { %2026 = vadd.xlane.f32.xlu2 %v2025_v23  ;;  %v1967_v40 = vsel %vm261_vm8, %v4716_v39, 0.0 }
0x29ea   :  { %1968 = vadd.xlane.f32.xlu2 %v1967_v40 }
0x2a55   :  { %v2027_v42 = vpop.xlane.xlu2 %2026 }
0x2a56   :  { %4717 = vrcp.f32 %v2027_v42  ;;  %v5974_v42 = vld [vmem:[%s6776_s19] ss:$0 sm:$0xff] }
0x2a5c   :  { %v4718_v62 = vpop.eup %4717 }
0x2a5d   :  { %v2029_v1 = vmul.f32 %v4718_v62, %v4714_v46  ;;  %v1969_v37 = vpop.xlane.xlu2 %1968 }
0x2a5e   :  { %4719 = vrcp.f32 %v1969_v37 }
0x2a5f   :  { %4505 = vmatmul.msk.f32.vlgmr.msrb.gmra.mxu3 %vm261_vm8, %v2029_v1 }
0x2a64   :  { %v4720_v35 = vpop.eup %4719 }
0x2a65   :  { %v1971_v54 = vmul.f32 %v4720_v35, %v4716_v39 }
0x2a67   :  { %4502 = vmatmul.msk.f32.vlgmr.msrb.gmra.mxu0 %vm261_vm8, %v1971_v54 }
0x2a68   :  { %2280 = vmatpush.msrb.mxu0 %v5757_v36  ;;  %v5943_v36 = vld [vmem:[%s6768_s11 + $0x10] sm:$0xff] }
0x2a6a   :  { %2281 = vmatpush.msrb.mxu0 %v5763_v15  ;;  %v5949_v15 = vld [vmem:[%s6768_s11 + $0x8] sm:$0xff] }
0x2a6c   :  { %2282 = vmatpush.msrb.mxu0 %v5769_v48  ;;  %v5955_v48 = vld [vmem:[%s6768_s11] sm:$0xff] }
0x2a6e   :  { %2283 = vmatpush.msrb.mxu0 %v5775_v50 }
0x2ae2   :  { %v2050_v2 = vpop.f32.mrf.mxu3 }
0x2ae3   :  { %2054 = vrot.lane.b32.xlu2 %v2050_v2, %s5018_s30 }
0x2ae4   :  { %v1992_v4 = vpop.f32.mrf.mxu0 }
0x2b3d   :  { %v2055_v5 = vpop.permute.xlu2 %2054 }
0x2b3e   :  { %v2057_v57 = vsel %vm236_vm7, %v1992_v4, %v2055_v5 }
0x2b3f   :  { %4506 = vmatmul.msk.f32.vlgmr.msrb.gmra.mxu2 %vm182_vm2, %v2057_v57 }
0x2b40   :  { %2437 = vmatpush.msrb.mxu2 %v5937_v58 }
0x2b42   :  { %2438 = vmatpush.msrb.mxu2 %v5943_v36 }
0x2b44   :  { %2439 = vmatpush.msrb.mxu2 %v5949_v15 }
0x2b46   :  { %2440 = vmatpush.msrb.mxu2 %v5955_v48 }
0x2bc2   :  { %v2078_v50 = vpop.f32.mrf.mxu2 }
0x2bc3   :  { %v2081_v59 = vadd.f32 %v2078_v50, %v5892_v7 }
0x2bc5   :  { %v2082_v6 = vmul.f32 %v2081_v59, %v2081_v59 }
0x2bc7   :  { %v2083_v8 = vsel %vm182_vm2, %v2082_v6, 0.0 }
0x2bc8   :  { %2084 = vadd.xlane.f32.xlu0 %v2083_v8 }
0x2c3b   :  { %v2085_v9 = vpop.xlane.xlu0 %2084 }
0x2c3c   :  { %v2086_v30 = vmul.f32 %v2085_v9, %v5215_v28 }
0x2c3e   :  { %v2087_v21 = vadd.f32 1e-06, %v2086_v30 }
0x2c40   :  { %4721 = vrsqrt.f32 %v2087_v21  ;;  %vm2094_vm10 = vweird.f32 %v2087_v21 }
0x2c46   :  { %v4722_v22 = vpop.eup %4721 }
0x2c47   :  { %v2089_v24 = vmul.f32 %v4722_v22, %v2087_v21  ;;  %vm2095_vm9 = vweird.f32 %v4722_v22 }
0x2c48   :  { %vm2096_vm11 = vmor %vm2094_vm10, %vm2095_vm9 }
0x2c49   :  { %v2090_v27 = vmul.f32 %v4722_v22, %v2089_v24 }
0x2c4b   :  { %v2091_v29 = vmul.f32 0.5, %v2090_v27 }
0x2c4d   :  { %v2092_v38 = vsub.f32 1.5, %v2091_v29 }
0x2c4f   :  { %v2093_v43 = vmul.f32 %v4722_v22, %v2092_v38 }
0x2c51   :  { %v2097_v61 = vsel %vm2096_vm11, %v4722_v22, %v2093_v43 }
0x2c52   :  { %v2098_v7 = vmul.f32 %v2097_v61, %v2081_v59 }
0x2c54   :  { %v2099_v25 = vmul.f32 %v5964_v49, %v2098_v7 }
0x2c56   :  { %4507 = vmatmul.msk.f32.vlgmr.msra.gmra.mxu0 %vm182_vm2, %v2099_v25 }
0x2cd3   :  { %v2120_v44 = vpop.f32.mrf.mxu0 }
0x2cd4   :  { %v2123_v31 = vmax.f32 %v2120_v44, 0.0 }
0x2cd6   :  { %4508 = vmatmul.msk.f32.vlgmr.msrb.gmra.mxu1 %vm134_vm0, %v2123_v31 }
0x2d53   :  { %v2144_v55 = vpop.f32.mrf.mxu1 }
0x2d54   :  { %v2147_v60 = vadd.f32 %v2144_v55, %v2081_v59 }
0x2d56   :  { %v2148_v12 = vmul.f32 %v2147_v60, %v2147_v60 }
0x2d58   :  { %v2149_v17 = vsel %vm182_vm2, %v2148_v12, 0.0 }
0x2d59   :  { %2150 = vadd.xlane.f32.xlu0 %v2149_v17 }
0x2dcc   :  { %v2151_v32 = vpop.xlane.xlu0 %2150 }
0x2dcd   :  { %v2152_v16 = vmul.f32 %v2151_v32, %v5215_v28 }
0x2dcf   :  { %v2153_v33 = vadd.f32 1e-06, %v2152_v16 }
0x2dd1   :  { %4723 = vrsqrt.f32 %v2153_v33  ;;  %vm2160_vm13 = vweird.f32 %v2153_v33 }
0x2dd7   :  { %v4724_v34 = vpop.eup %4723 }
0x2dd8   :  { %v2155_v18 = vmul.f32 %v4724_v34, %v2153_v33  ;;  %vm2161_vm6 = vweird.f32 %v4724_v34 }
0x2dd9   :  { %vm2162_vm14 = vmor %vm2160_vm13, %vm2161_vm6 }
0x2dda   :  { %v2156_v52 = vmul.f32 %v4724_v34, %v2155_v18 }
0x2ddc   :  { %v2157_v53 = vmul.f32 0.5, %v2156_v52 }
0x2dde   :  { %v2158_v46 = vsub.f32 1.5, %v2157_v53 }
0x2de0   :  { %v2159_v23 = vmul.f32 %v4724_v34, %v2158_v46 }
0x2de2   :  { %v2163_v39 = vsel %vm2162_vm14, %v4724_v34, %v2159_v23 }
0x2de3   :  { %v2164_v40 = vmul.f32 %v2163_v39, %v2147_v60 }
0x2de5   :  { %v2165_v62 = vmul.f32 %v5974_v42, %v2164_v40 }
0x2de7   :  { %4509 = vmatmul.msk.f32.vlgmr.msra.gmra.mxu3 %vm182_vm2, %v2165_v62 }
0x2e6a   :  { %v2186_v1 = vpop.f32.mrf.mxu3 }
0x2e6b   :  { %v2189_v37 = vsel %vm1673_vm12, %v2186_v1, -1e+30 }
0x2e6c   :  { %v2190_v35 = vsel %vm134_vm0, %v2189_v37, -inf }
0x2e6d   :  { %v2191_v54 = vrot.slane %v2190_v35, 4 }
0x2e6f   :  { %v2192_v2 = vmax.f32 %v2190_v35, %v2191_v54  ;;  %v6012_v35 = vld [vmem:[#allocation2 + $0x18] sm:$0xff] }
0x2e71   :  { %v2193_v4 = vrot.slane %v2192_v2, 2 }
0x2e73   :  { %v2194_v5 = vmax.f32 %v2192_v2, %v2193_v4  ;;  %v6019_v2 = vld [vmem:[#allocation2 + $0x8] sm:$0xff]  ;;  %v6022_v4 = vld [vmem:[#allocation2] sm:$0xff] }
0x2e75   :  { %v2195_v57 = vrot.slane %v2194_v5, 1 }
0x2e77   :  { %v2196_v50 = vmax.f32 %v2194_v5, %v2195_v57 }
0x2e79   :  { %v2197_v59 = vsel %vm134_vm0, %v2196_v50, -inf }
0x2e7a   :  { %2198 = vmax.xlane.f32.xlu0 %v2197_v59 }
0x2eed   :  { %v2199_v6 = vpop.xlane.xlu0 %2198 }
0x2eee   :  { %vm2200_vm15 = vcmp.eq.f32.partialorder %v2196_v50, %v2199_v6 }
0x2eef   :  { %v2201_v8 = vsel %vm2200_vm15, %v5191_v11, 64 }
0x2ef0   :  { %v2202_v9 = vsel %vm134_vm0, %v2201_v8, 2147483647 }
0x2ef1   :  { %v2204_v30 = vshra.s32 %v2202_v9, 16  ;;  %v2203_v22 = vand.u32 65535, %v2202_v9 }
0x2ef3   :  { %v2206_v21 = vcvt.s32.f32 %v2204_v30  ;;  %v2205_v27 = vcvt.s32.f32 %v2203_v22 }
0x2ef5   :  { %2207 = vmin.xlane.f32.xlu1 %v2206_v21 }
0x2f68   :  { %v2208_v24 = vpop.xlane.xlu1 %2207 }
0x2f69   :  { %vm2209_vm12 = vcmp.eq.f32.partialorder %v2206_v21, %v2208_v24  ;;  %v2214_v38 = vcvt.f32.s32 %v2208_v24 }
0x2f6a   :  { %v2210_v29 = vsel %vm2209_vm12, %v2205_v27, inf }
0x2f6b   :  { %2211 = vmin.xlane.f32.xlu2 %v2210_v29  ;;  %v2215_v61 = vshll.u32 %v2214_v38, 16 }
0x2fde   :  { %v2212_v43 = vpop.xlane.xlu2 %2211 }
0x2fdf   :  { %v2213_v7 = vcvt.f32.s32 %v2212_v43 }
0x2fe1   :  { %v2216_v25 = vadd.s32 %v2215_v61, %v2213_v7 }
0x2fe3   :  { %4599 = vpush %v2216_v25 }
0x3014   :  { %s4600_s14 = spop %4599 }
0x3015   :  { %v2218_v44 = vstv %s4600_s14 }
0x3016   :  { %vm2219_vm3 = vcmp.eq.s32.totalorder %v5191_v11, %v2218_v44 }
0x3017   :  { %v4510_v31 = vsel %vm2219_vm3, 1.0, %v5011_v13 }
0x3018   :  { %v5990_v55 = vsel %vm2222_vm1, %v4510_v31, %v5807_v20 }
0x3019   :  { %4511 = vmatmul.msk.f32.vlgmr.msra.gmra.mxu2 %vm134_vm0, %v5990_v55 }
0x301a   :  { %4524 = vmatpush.xpose.msk.msra.mxu2 %vm236_vm7, %v5422_v26 }
0x309c   :  { %v5996_v60 = vpop.f32.mrf.mxu2 }
0x309d   :  { %v2247_v12 = vmul.f32 %v5996_v60, %v5996_v60 }
0x309f   :  { %v2248_v17 = vsel %vm182_vm2, %v2247_v12, 0.0  ;;  %v6049_v12 = vld [vmem:[#allocation4] sm:$0xff] }
0x30a0   :  { %2249 = vadd.xlane.f32.xlu0 %v2248_v17 }
0x3113   :  { %v2250_v32 = vpop.xlane.xlu0 %2249 }
0x3114   :  { %v2251_v16 = vmul.f32 %v2250_v32, %v5215_v28 }
0x3116   :  { %v2252_v33 = vadd.f32 1e-06, %v2251_v16 }
0x3118   :  { %4725 = vrsqrt.f32 %v2252_v33  ;;  %vm2259_vm5 = vweird.f32 %v2252_v33 }
0x311e   :  { %v4726_v20 = vpop.eup %4725 }
0x311f   :  { %v2254_v34 = vmul.f32 %v4726_v20, %v2252_v33  ;;  %vm2260_vm4 = vweird.f32 %v4726_v20 }
0x3120   :  { %vm2261_vm9 = vmor %vm2259_vm5, %vm2260_vm4 }
0x3121   :  { %v2255_v18 = vmul.f32 %v4726_v20, %v2254_v34 }
0x3123   :  { %v2256_v52 = vmul.f32 0.5, %v2255_v18 }
0x3125   :  { %v2257_v53 = vsub.f32 1.5, %v2256_v52  ;;  %v6060_v52 = vld [vmem:[%s6775_s18 + $0x38] sm:$0xff] }
0x3127   :  { %v2258_v46 = vmul.f32 %v4726_v20, %v2257_v53  ;;  %v6066_v53 = vld [vmem:[%s6775_s18 + $0x30] sm:$0xff] }
0x3129   :  { %v2262_v23 = vsel %vm2261_vm9, %v4726_v20, %v2258_v46  ;;  %v6072_v46 = vld [vmem:[%s6775_s18 + $0x28] sm:$0xff]  ;;  %vm2771_vm9 = vcmp.eq.s32.totalorder %v5375_v45, 4 }
0x312a   :  { %v2263_v39 = vmul.f32 %v2262_v23, %v5996_v60  ;;  %v6078_v23 = vld [vmem:[%s6775_s18 + $0x20] sm:$0xff] }
0x312c   :  { %v2264_v40 = vmul.f32 %v5823_v63, %v2263_v39  ;;  %v6015_v63 = vld [vmem:[#allocation2 + $0x10] sm:$0xff]  ;;  %v6084_v39 = vld [vmem:[%s6775_s18 + $0x18] sm:$0xff] }
0x312e   :  { %4512 = vmatmul.msk.f32.vlgmr.msrb.gmra.mxu0 %vm182_vm2, %v2264_v40  ;;  %v6090_v40 = vld [vmem:[%s6775_s18 + $0x10] sm:$0xff] }
0x31ab   :  { %v2285_v62 = vpop.f32.mrf.mxu0 }
0x31ac   :  { %2352 = vrot.lane.b32.xlu0 %v2285_v62, %s5017_s25  ;;  %2354 = vrot.lane.b32.xlu1 %v2285_v62, %s5015_s2 }
0x31b4   :  { %2289 = vrot.lane.b32.xlu1 %v2285_v62, %s5014_s17 }
0x321e   :  { %v2355_v1 = vpop.permute.xlu1 %2354  ;;  %v2353_v37 = vpop.permute.xlu0 %2352 }
0x321f   :  { %4516 = vmatpush.xpose.msk.msra.mxu1 %vm236_vm7, %v2355_v1  ;;  %v6102_v1 = vld [vmem:[%s6775_s18] sm:$0xff] }
0x3222   :  { %4517 = vmatmul.msk.f32.vlgmr.msra.gmra.mxu1 %vm236_vm7, %v2353_v37 }
0x3223   :  { %4521 = vmatpush.xpose.msk.msrb.mxu1 %vm236_vm7, %v5413_v14 }
0x3226   :  { %v2290_v54 = vpop.permute.xlu1 %2289 }
0x3227   :  { %2622 = vmatpush.msra.mxu1 %v6012_v35  ;;  %4513 = vmatpush.xpose.msk.msrb.mxu3 %vm236_vm7, %v2290_v54 }
0x3229   :  { %2623 = vmatpush.msra.mxu1 %v6015_v63 }
0x322a   :  { %4514 = vmatmul.msk.f32.vlgmr.msrb.gmra.mxu3 %vm236_vm7, %v2285_v62 }
0x322b   :  { %2624 = vmatpush.msra.mxu1 %v6019_v2 }
0x322d   :  { %2625 = vmatpush.msra.mxu1 %v6022_v4 }
0x329f   :  { %v2377_v5 = vpop.f32.mrf.mxu1 }
0x32a0   :  { %v2378_v57 = vadd.f32 %v2377_v5, %v5379_v47 }
0x32a2   :  { %v2380_v50 = vsel %vm261_vm8, %v2378_v57, -inf }
0x32a3   :  { %2381 = vmax.xlane.f32.xlu0 %v2380_v50 }
0x32ad   :  { %v2312_v59 = vpop.f32.mrf.mxu3 }
0x32ae   :  { %v2313_v6 = vadd.f32 %v2312_v59, %v5379_v47 }
0x32b0   :  { %v2315_v8 = vsel %vm261_vm8, %v2313_v6, -inf }
0x32b1   :  { %2316 = vmax.xlane.f32.xlu1 %v2315_v8 }
0x32b7   :  { %2326 = vrot.lane.b32.xlu0 %v2285_v62, %s5013_s24 }
0x3316   :  { %v2382_v9 = vpop.xlane.xlu0 %2381 }
0x3317   :  { %v2383_v30 = vsub.f32 %v2378_v57, %v2382_v9 }
0x3319   :  { %v2384_v21 = vmul.f32 1.442695, %v2383_v30 }
0x331b   :  { %4727 = vpow2.f32 %v2384_v21 }
0x3321   :  { %v4728_v22 = vpop.eup %4727 }
0x3322   :  { %v2386_v24 = vsel %vm261_vm8, %v4728_v22, 0.0 }
0x3323   :  { %2387 = vadd.xlane.f32.xlu2 %v2386_v24 }
0x3324   :  { %v2317_v29 = vpop.xlane.xlu1 %2316 }
0x3325   :  { %v2318_v38 = vsub.f32 %v2313_v6, %v2317_v29 }
0x3327   :  { %v2319_v43 = vmul.f32 1.442695, %v2318_v38  ;;  %v6115_v38 = vld [vmem:[#allocation6 + $0x18] sm:$0xff] }
0x3329   :  { %v2327_v27 = vpop.permute.xlu0 %2326  ;;  %4729 = vpow2.f32 %v2319_v43  ;;  %v6118_v43 = vld [vmem:[#allocation6 + $0x10] sm:$0xff] }
0x332a   :  { %2347 = vmatpush.msra.mxu0 %v2327_v27 }
0x332c   :  { %2479 = vmatpush.msrb.mxu0 %v5852_v41 }
0x332e   :  { %2480 = vmatpush.msrb.mxu0 %v5858_v10  ;;  %v6040_v10 = vld [vmem:[#allocation4 + $0x18] sm:$0xff] }
0x332f   :  { %v4730_v61 = vpop.eup %4729 }
0x3330   :  { %2481 = vmatpush.msrb.mxu0 %v5864_v3  ;;  %v2321_v7 = vsel %vm261_vm8, %v4730_v61, 0.0  ;;  %v6043_v3 = vld [vmem:[#allocation4 + $0x10] sm:$0xff] }
0x3332   :  { %2482 = vmatpush.msrb.mxu0 %v5870_v0  ;;  %v6046_v0 = vld [vmem:[#allocation4 + $0x8] sm:$0xff] }
0x333b   :  { %2391 = vrot.lane.b32.xlu2 %v2285_v62, %s5016_s15  ;;  %v6096_v62 = vld [vmem:[%s6775_s18 + $0x8] sm:$0xff] }
0x3364   :  { %2322 = vadd.xlane.f32.xlu2 %v2321_v7  ;;  %v6124_v7 = vld [vmem:[#allocation6] sm:$0xff] }
0x3396   :  { %v2388_v25 = vpop.xlane.xlu2 %2387 }
0x3397   :  { %4731 = vrcp.f32 %v2388_v25 }
0x339d   :  { %v4732_v44 = vpop.eup %4731 }
0x339e   :  { %v2390_v41 = vmul.f32 %v4732_v44, %v4728_v22  ;;  %v2392_v31 = vpop.permute.xlu2 %2391  ;;  %v6138_v44 = vld [vmem:[%s6789_s20 + $0x30] sm:$0xff] }
0x339f   :  { %2412 = vmatpush.msra.mxu3 %v2392_v31  ;;  %v6150_v31 = vld [vmem:[%s6789_s20 + $0x20] sm:$0xff] }
0x33a0   :  { %4518 = vmatmul.msk.f32.vlgmr.msra.gmra.mxu3 %vm261_vm8, %v2390_v41  ;;  %v6144_v41 = vld [vmem:[%s6789_s20 + $0x28] sm:$0xff] }
0x33a1   :  { %2539 = vmatpush.msrb.mxu3 %v5486_v56 }
0x33a3   :  { %2664 = vmatpush.msra.mxu3 %v6040_v10 }
0x33a5   :  { %2665 = vmatpush.msra.mxu3 %v6043_v3 }
0x33a7   :  { %2666 = vmatpush.msra.mxu3 %v6046_v0 }
0x33a9   :  { %2667 = vmatpush.msra.mxu3 %v6049_v12 }
0x33d7   :  { %v2323_v17 = vpop.xlane.xlu2 %2322 }
0x33d8   :  { %4733 = vrcp.f32 %v2323_v17  ;;  %v6156_v17 = vld [vmem:[%s6789_s20 + $0x18] sm:$0xff] }
0x33de   :  { %v4734_v32 = vpop.eup %4733 }
0x33df   :  { %v2325_v16 = vmul.f32 %v4734_v32, %v4730_v61  ;;  %v6121_v61 = vld [vmem:[#allocation6 + $0x8] sm:$0xff]  ;;  %v6162_v32 = vld [vmem:[%s6789_s20 + $0x10] sm:$0xff] }
0x33e1   :  { %4515 = vmatmul.msk.f32.vlgmr.msra.gmra.mxu0 %vm261_vm8, %v2325_v16  ;;  %v6168_v16 = vld [vmem:[%s6789_s20 + $0x8] sm:$0xff] }
0x33e2   :  { %2597 = vmatpush.msra.mxu0 %v5482_v51 }
0x3423   :  { %v2414_v33 = vpop.f32.mrf.mxu3 }
0x3424   :  { %2418 = vrot.lane.b32.xlu1 %v2414_v33, %s5018_s30  ;;  %v6174_v33 = vld [vmem:[%s6789_s20] sm:$0xff] }
0x345e   :  { %v2349_v20 = vpop.f32.mrf.mxu0 }
0x3496   :  { %v2419_v34 = vpop.permute.xlu1 %2418 }
0x3497   :  { %v2421_v18 = vsel %vm236_vm7, %v2349_v20, %v2419_v34 }
0x3498   :  { %4519 = vmatmul.msk.f32.vlgmr.msrb.gmra.mxu2 %vm182_vm2, %v2421_v18 }
0x3499   :  { %2684 = vmatpush.msrb.mxu2 %v6060_v52 }
0x349b   :  { %2685 = vmatpush.msrb.mxu2 %v6066_v53 }
0x349d   :  { %2686 = vmatpush.msrb.mxu2 %v6072_v46 }
0x349f   :  { %2687 = vmatpush.msrb.mxu2 %v6078_v23 }
0x34a1   :  { %2688 = vmatpush.msrb.mxu2 %v6084_v39 }
0x34a3   :  { %2689 = vmatpush.msrb.mxu2 %v6090_v40 }
0x34a5   :  { %2690 = vmatpush.msrb.mxu2 %v6096_v62 }
0x34a7   :  { %2691 = vmatpush.msrb.mxu2 %v6102_v1 }
0x351b   :  { %v2442_v37 = vpop.f32.mrf.mxu2 }
0x351c   :  { %v6106_v54 = vadd.f32 %v2442_v37, %v5996_v60 }
0x351e   :  { %v2446_v5 = vmul.f32 %v6106_v54, %v6106_v54 }
0x3520   :  { %v2447_v57 = vsel %vm182_vm2, %v2446_v5, 0.0 }
0x3521   :  { %2448 = vadd.xlane.f32.xlu0 %v2447_v57 }
0x3594   :  { %v2449_v50 = vpop.xlane.xlu0 %2448 }
0x3595   :  { %v2450_v59 = vmul.f32 %v2449_v50, %v5215_v28 }
0x3597   :  { %v2451_v6 = vadd.f32 1e-06, %v2450_v59 }
0x3599   :  { %4735 = vrsqrt.f32 %v2451_v6  ;;  %vm2458_vm11 = vweird.f32 %v2451_v6 }
0x359f   :  { %v4736_v8 = vpop.eup %4735 }
0x35a0   :  { %v2453_v9 = vmul.f32 %v4736_v8, %v2451_v6  ;;  %vm2459_vm10 = vweird.f32 %v4736_v8 }
0x35a1   :  { %vm2460_vm6 = vmor %vm2458_vm11, %vm2459_vm10 }
0x35a2   :  { %v2454_v30 = vmul.f32 %v4736_v8, %v2453_v9 }
0x35a4   :  { %v2455_v21 = vmul.f32 0.5, %v2454_v30 }
0x35a6   :  { %v2456_v22 = vsub.f32 1.5, %v2455_v21 }
0x35a8   :  { %v2457_v24 = vmul.f32 %v4736_v8, %v2456_v22 }
0x35aa   :  { %v2461_v60 = vsel %vm2460_vm6, %v4736_v8, %v2457_v24 }
0x35ab   :  { %v2462_v27 = vmul.f32 %v2461_v60, %v6106_v54 }
0x35ad   :  { %v2463_v29 = vmul.f32 %v5902_v19, %v2462_v27  ;;  %v6132_v19 = vld [vmem:[%s6789_s20 + $0x38] sm:$0xff] }
0x35af   :  { %4520 = vmatmul.msk.f32.vlgmr.msrb.gmra.mxu0 %vm182_vm2, %v2463_v29 }
0x35b0   :  { %2730 = vmatpush.msrb.mxu0 %v6115_v38 }
0x35b2   :  { %2731 = vmatpush.msrb.mxu0 %v6118_v43 }
0x35b4   :  { %2732 = vmatpush.msrb.mxu0 %v6121_v61 }
0x35b6   :  { %2733 = vmatpush.msrb.mxu0 %v6124_v7 }
0x362c   :  { %v2484_v25 = vpop.f32.mrf.mxu0 }
0x362d   :  { %2544 = vrot.lane.b32.xlu1 %v2484_v25, %s5017_s25  ;;  %4522 = vmatmul.msk.f32.vlgmr.msrb.gmra.mxu1 %vm236_vm7, %v2484_v25 }
0x362e   :  { %2784 = vmatpush.msrb.mxu1 %v6132_v19 }
0x3630   :  { %2785 = vmatpush.msrb.mxu1 %v6138_v44 }
0x3632   :  { %2786 = vmatpush.msrb.mxu1 %v6144_v41 }
0x3634   :  { %2787 = vmatpush.msrb.mxu1 %v6150_v31 }
0x3636   :  { %2788 = vmatpush.msrb.mxu1 %v6156_v17 }
0x3638   :  { %2789 = vmatpush.msrb.mxu1 %v6162_v32 }
0x363a   :  { %2790 = vmatpush.msrb.mxu1 %v6168_v16 }
0x363c   :  { %2791 = vmatpush.msrb.mxu1 %v6174_v33 }
0x369f   :  { %v2545_v20 = vpop.permute.xlu1 %2544 }
0x36a0   :  { %4525 = vmatmul.msk.f32.vlgmr.msra.gmra.mxu2 %vm236_vm7, %v2545_v20 }
0x36aa   :  { %v2507_v34 = vpop.f32.mrf.mxu1 }
0x36ab   :  { %v2510_v18 = vsel %vm261_vm8, %v2507_v34, -inf }
0x36ac   :  { %2511 = vmax.xlane.f32.xlu2 %v2510_v18  ;;  %v6187_v18 = vld [vmem:[%s6767_s10 + $0x18] sm:$0xff] }
0x371f   :  { %v2512_v57 = vpop.xlane.xlu2 %2511 }
0x3720   :  { %v2513_v6 = vsub.f32 %v2507_v34, %v2512_v57  ;;  %v6205_v57 = vld [vmem:[%s6767_s10] sm:$0xff] }
0x3722   :  { %v2514_v9 = vmul.f32 1.442695, %v2513_v6 }
0x3723   :  { %v2565_v37 = vpop.f32.mrf.mxu2 }
0x3724   :  { %v2568_v5 = vsel %vm261_vm8, %v2565_v37, -inf }
0x3725   :  { %2569 = vmax.xlane.f32.xlu1 %v2568_v5  ;;  %v6199_v5 = vld [vmem:[%s6767_s10 + $0x8] sm:$0xff] }
0x3798   :  { %v2570_v50 = vpop.xlane.xlu1 %2569 }
0x3799   :  { %v2571_v59 = vsub.f32 %v2565_v37, %v2570_v50  ;;  %v6193_v37 = vld [vmem:[%s6767_s10 + $0x10] sm:$0xff] }
0x379b   :  { %v2572_v8 = vmul.f32 1.442695, %v2571_v59 }
0x379d   :  { %4737 = vpow2.f32 %v2572_v8 }
0x379e   :  { %4739 = vpow2.f32 %v2514_v9 }
0x37a3   :  { %v4738_v30 = vpop.eup %4737 }
0x37a4   :  { %v2574_v21 = vsel %vm261_vm8, %v4738_v30, 0.0  ;;  %v4740_v22 = vpop.eup %4739 }
0x37a5   :  { %2575 = vadd.xlane.f32.xlu2 %v2574_v21  ;;  %v2516_v24 = vsel %vm261_vm8, %v4740_v22, 0.0 }
0x37ad   :  { %2517 = vadd.xlane.f32.xlu2 %v2516_v24 }
0x3818   :  { %v2576_v60 = vpop.xlane.xlu2 %2575 }
0x3819   :  { %4741 = vrcp.f32 %v2576_v60 }
0x381f   :  { %v4742_v27 = vpop.eup %4741 }
0x3820   :  { %v2578_v29 = vmul.f32 %v4742_v27, %v4738_v30  ;;  %v2518_v25 = vpop.xlane.xlu2 %2517 }
0x3821   :  { %4743 = vrcp.f32 %v2518_v25 }
0x3822   :  { %4526 = vmatmul.msk.f32.vlgmr.msra.gmra.mxu0 %vm261_vm8, %v2578_v29 }
0x3827   :  { %v4744_v20 = vpop.eup %4743 }
0x3828   :  { %v2520_v34 = vmul.f32 %v4744_v20, %v4740_v22 }
0x382a   :  { %4523 = vmatmul.msk.f32.vlgmr.msrb.gmra.mxu3 %vm261_vm8, %v2520_v34 }
0x382b   :  { %2829 = vmatpush.msrb.mxu3 %v6187_v18 }
0x382d   :  { %2830 = vmatpush.msrb.mxu3 %v6193_v37 }
0x382f   :  { %2831 = vmatpush.msrb.mxu3 %v6199_v5 }
0x3831   :  { %2832 = vmatpush.msrb.mxu3 %v6205_v57 }
0x389f   :  { %v2599_v50 = vpop.f32.mrf.mxu0 }
0x38a0   :  { %2603 = vrot.lane.b32.xlu0 %v2599_v50, %s5018_s30 }
0x38ad   :  { %v2541_v59 = vpop.f32.mrf.mxu3 }
0x3912   :  { %v2604_v6 = vpop.permute.xlu0 %2603 }
0x3913   :  { %v2606_v8 = vsel %vm236_vm7, %v2541_v59, %v2604_v6 }
0x3914   :  { %4527 = vmatmul.msk.f32.vlgmr.msra.gmra.mxu1 %vm182_vm2, %v2606_v8 }
0x3915   :  { %2986 = vmatpush.msra.mxu1 %v5937_v58 }
0x3917   :  { %2987 = vmatpush.msra.mxu1 %v5943_v36 }
0x3919   :  { %2988 = vmatpush.msra.mxu1 %v5949_v15 }
0x391b   :  { %2989 = vmatpush.msra.mxu1 %v5955_v48 }
0x3991   :  { %v2627_v9 = vpop.f32.mrf.mxu1 }
0x3992   :  { %v2630_v30 = vadd.f32 %v2627_v9, %v6106_v54 }
0x3994   :  { %v2631_v21 = vmul.f32 %v2630_v30, %v2630_v30 }
0x3996   :  { %v2632_v22 = vsel %vm182_vm2, %v2631_v21, 0.0 }
0x3997   :  { %2633 = vadd.xlane.f32.xlu2 %v2632_v22 }
0x3a0a   :  { %v2634_v24 = vpop.xlane.xlu2 %2633 }
0x3a0b   :  { %v2635_v60 = vmul.f32 %v2634_v24, %v5215_v28 }
0x3a0d   :  { %v2636_v27 = vadd.f32 1e-06, %v2635_v60 }
0x3a0f   :  { %4745 = vrsqrt.f32 %v2636_v27  ;;  %vm2643_vm14 = vweird.f32 %v2636_v27 }
0x3a15   :  { %v4746_v29 = vpop.eup %4745 }
0x3a16   :  { %v2638_v58 = vmul.f32 %v4746_v29, %v2636_v27  ;;  %vm2644_vm13 = vweird.f32 %v4746_v29 }
0x3a17   :  { %vm2645_vm15 = vmor %vm2643_vm14, %vm2644_vm13 }
0x3a18   :  { %v2639_v25 = vmul.f32 %v4746_v29, %v2638_v58 }
0x3a1a   :  { %v2640_v36 = vmul.f32 0.5, %v2639_v25 }
0x3a1c   :  { %v2641_v20 = vsub.f32 1.5, %v2640_v36 }
0x3a1e   :  { %v2642_v15 = vmul.f32 %v4746_v29, %v2641_v20 }
0x3a20   :  { %v2646_v48 = vsel %vm2645_vm15, %v4746_v29, %v2642_v15 }
0x3a21   :  { %v2647_v54 = vmul.f32 %v2646_v48, %v2630_v30 }
0x3a23   :  { %v2648_v34 = vmul.f32 %v5964_v49, %v2647_v54 }
0x3a25   :  { %4528 = vmatmul.msk.f32.vlgmr.msra.gmra.mxu3 %vm182_vm2, %v2648_v34 }
0x3aa8   :  { %v2669_v50 = vpop.f32.mrf.mxu3 }
0x3aa9   :  { %v2672_v59 = vmax.f32 %v2669_v50, 0.0 }
0x3aab   :  { %4529 = vmatmul.msk.f32.vlgmr.msrb.gmra.mxu2 %vm134_vm0, %v2672_v59 }
0x3b2e   :  { %v2693_v6 = vpop.f32.mrf.mxu2 }
0x3b2f   :  { %v2696_v8 = vadd.f32 %v2693_v6, %v2630_v30 }
0x3b31   :  { %v2697_v9 = vmul.f32 %v2696_v8, %v2696_v8 }
0x3b33   :  { %v2698_v21 = vsel %vm182_vm2, %v2697_v9, 0.0 }
0x3b34   :  { %2699 = vadd.xlane.f32.xlu2 %v2698_v21 }
0x3ba7   :  { %v2700_v22 = vpop.xlane.xlu2 %2699 }
0x3ba8   :  { %v2701_v24 = vmul.f32 %v2700_v22, %v5215_v28 }
0x3baa   :  { %v2702_v60 = vadd.f32 1e-06, %v2701_v24 }
0x3bac   :  { %4747 = vrsqrt.f32 %v2702_v60  ;;  %vm2709_vm3 = vweird.f32 %v2702_v60 }
0x3bb2   :  { %v4748_v27 = vpop.eup %4747 }
0x3bb3   :  { %v2704_v29 = vmul.f32 %v4748_v27, %v2702_v60  ;;  %vm2710_vm12 = vweird.f32 %v4748_v27 }
0x3bb4   :  { %vm2711_vm4 = vmor %vm2709_vm3, %vm2710_vm12 }
0x3bb5   :  { %v2705_v49 = vmul.f32 %v4748_v27, %v2704_v29 }
0x3bb7   :  { %v2706_v58 = vmul.f32 0.5, %v2705_v49 }
0x3bb9   :  { %v2707_v25 = vsub.f32 1.5, %v2706_v58 }
0x3bbb   :  { %v2708_v36 = vmul.f32 %v4748_v27, %v2707_v25 }
0x3bbd   :  { %v2712_v20 = vsel %vm2711_vm4, %v4748_v27, %v2708_v36 }
0x3bbe   :  { %v2713_v30 = vmul.f32 %v2712_v20, %v2696_v8 }
0x3bc0   :  { %v2714_v15 = vmul.f32 %v5974_v42, %v2713_v30 }
0x3bc2   :  { %4530 = vmatmul.msk.f32.vlgmr.msrb.gmra.mxu0 %vm182_vm2, %v2714_v15 }
0x3c3f   :  { %v2735_v48 = vpop.f32.mrf.mxu0 }
0x3c40   :  { %v2738_v54 = vsel %vm2222_vm1, %v2735_v48, -1e+30 }
0x3c41   :  { %v2739_v34 = vsel %vm134_vm0, %v2738_v54, -inf }
0x3c42   :  { %v2740_v50 = vrot.slane %v2739_v34, 4 }
0x3c44   :  { %v2741_v59 = vmax.f32 %v2739_v34, %v2740_v50 }
0x3c46   :  { %v2742_v6 = vrot.slane %v2741_v59, 2 }
0x3c48   :  { %v2743_v9 = vmax.f32 %v2741_v59, %v2742_v6 }
0x3c4a   :  { %v2744_v21 = vrot.slane %v2743_v9, 1 }
0x3c4c   :  { %v2745_v22 = vmax.f32 %v2743_v9, %v2744_v21 }
0x3c4e   :  { %v2746_v24 = vsel %vm134_vm0, %v2745_v22, -inf }
0x3c4f   :  { %2747 = vmax.xlane.f32.xlu2 %v2746_v24 }
0x3cc2   :  { %v2748_v8 = vpop.xlane.xlu2 %2747 }
0x3cc3   :  { %vm2749_vm5 = vcmp.eq.f32.partialorder %v2745_v22, %v2748_v8 }
0x3cc4   :  { %v2750_v42 = vsel %vm2749_vm5, %v5191_v11, 64 }
0x3cc5   :  { %v2751_v60 = vsel %vm134_vm0, %v2750_v42, 2147483647 }
0x3cc6   :  { %v2753_v27 = vshra.s32 %v2751_v60, 16  ;;  %v2752_v49 = vand.u32 65535, %v2751_v60 }
0x3cc8   :  { %v2755_v29 = vcvt.s32.f32 %v2753_v27  ;;  %v2754_v25 = vcvt.s32.f32 %v2752_v49 }
0x3cca   :  { %2756 = vmin.xlane.f32.xlu1 %v2755_v29 }
0x3d3d   :  { %v2757_v58 = vpop.xlane.xlu1 %2756 }
0x3d3e   :  { %vm2758_vm1 = vcmp.eq.f32.partialorder %v2755_v29, %v2757_v58  ;;  %v2763_v20 = vcvt.f32.s32 %v2757_v58 }
0x3d3f   :  { %v2759_v36 = vsel %vm2758_vm1, %v2754_v25, inf }
0x3d40   :  { %2760 = vmin.xlane.f32.xlu0 %v2759_v36  ;;  %v2764_v15 = vshll.u32 %v2763_v20, 16  ;;  %v6253_v36 = vld [vmem:[%s6766_s9] ss:$0 sm:$0xff] }
0x3db3   :  { %v2761_v30 = vpop.xlane.xlu0 %2760 }
0x3db4   :  { %v2762_v48 = vcvt.f32.s32 %v2761_v30 }
0x3db6   :  { %v2765_v54 = vadd.s32 %v2764_v15, %v2762_v48 }
0x3db8   :  { %4601 = vpush %v2765_v54 }
0x3de9   :  { %s4602_s3 = spop %4601 }
0x3dea   :  { %v2767_v34 = vstv %s4602_s3 }
0x3deb   :  { %vm2768_vm10 = vcmp.eq.s32.totalorder %v5191_v11, %v2767_v34 }
0x3dec   :  { %v4531_v50 = vsel %vm2768_vm10, 1.0, %v5011_v13 }
0x3ded   :  { %v6237_v59 = vsel %vm2771_vm9, %v4531_v50, %v5990_v55 }
0x3dee   :  { %4532 = vmatmul.msk.f32.vlgmr.msrb.gmra.mxu1 %vm134_vm0, %v6237_v59 }
0x3def   :  { %4545 = vmatpush.xpose.msk.msrb.mxu1 %vm236_vm7, %v5422_v26 }
0x3e6b   :  { %v6243_v6 = vpop.f32.mrf.mxu1 }
0x3e6c   :  { %v2796_v9 = vmul.f32 %v6243_v6, %v6243_v6 }
0x3e6e   :  { %v2797_v21 = vsel %vm182_vm2, %v2796_v9, 0.0 }
0x3e6f   :  { %2798 = vadd.xlane.f32.xlu2 %v2797_v21 }
0x3ee2   :  { %v2799_v22 = vpop.xlane.xlu2 %2798 }
0x3ee3   :  { %v2800_v24 = vmul.f32 %v2799_v22, %v5215_v28 }
0x3ee5   :  { %v2801_v8 = vadd.f32 1e-06, %v2800_v24 }
0x3ee7   :  { %4749 = vrsqrt.f32 %v2801_v8  ;;  %vm2808_vm6 = vweird.f32 %v2801_v8 }
0x3eed   :  { %v4750_v55 = vpop.eup %4749 }
0x3eee   :  { %v2803_v42 = vmul.f32 %v4750_v55, %v2801_v8  ;;  %vm2809_vm11 = vweird.f32 %v4750_v55  ;;  %v6278_v8 = vld [vmem:[%s6770_s13 + $0x18] sm:$0xff] }
0x3eef   :  { %vm2810_vm13 = vmor %vm2808_vm6, %vm2809_vm11 }
0x3ef0   :  { %v2804_v60 = vmul.f32 %v4750_v55, %v2803_v42 }
0x3ef2   :  { %v2805_v27 = vmul.f32 0.5, %v2804_v60  ;;  %v6285_v60 = vld [vmem:[%s6770_s13 + $0x10] sm:$0xff] }
0x3ef4   :  { %v2806_v29 = vsub.f32 1.5, %v2805_v27  ;;  %v6291_v27 = vld [vmem:[%s6770_s13 + $0x8] sm:$0xff] }
0x3ef6   :  { %v2807_v49 = vmul.f32 %v4750_v55, %v2806_v29  ;;  %v6297_v29 = vld [vmem:[%s6770_s13] sm:$0xff] }
0x3ef8   :  { %v2811_v58 = vsel %vm2810_vm13, %v4750_v55, %v2807_v49  ;;  %vm3320_vm13 = vcmp.eq.s32.totalorder %v5375_v45, 5 }
0x3ef9   :  { %v2812_v25 = vmul.f32 %v2811_v58, %v6243_v6 }
0x3efb   :  { %v2813_v20 = vmul.f32 %v6253_v36, %v2812_v25 }
0x3efd   :  { %4533 = vmatmul.msk.f32.vlgmr.msrb.gmra.mxu3 %vm182_vm2, %v2813_v20 }
0x3f80   :  { %v2834_v30 = vpop.f32.mrf.mxu3 }
0x3f81   :  { %2901 = vrot.lane.b32.xlu2 %v2834_v30, %s5017_s25  ;;  %2903 = vrot.lane.b32.xlu1 %v2834_v30, %s5015_s2 }
0x3f89   :  { %2838 = vrot.lane.b32.xlu1 %v2834_v30, %s5014_s17 }
0x3fdb   :  { %v2902_v48 = vpop.permute.xlu2 %2901 }
0x3ff3   :  { %v2904_v15 = vpop.permute.xlu1 %2903 }
0x3ff4   :  { %4537 = vmatpush.xpose.msk.msra.mxu2 %vm236_vm7, %v2904_v15 }
0x3ff7   :  { %4538 = vmatmul.msk.f32.vlgmr.msra.gmra.mxu2 %vm236_vm7, %v2902_v48 }
0x3ff8   :  { %4542 = vmatpush.xpose.msk.msrb.mxu2 %vm236_vm7, %v5413_v14 }
0x3ffb   :  { %v2839_v54 = vpop.permute.xlu1 %2838 }
0x3ffc   :  { %3171 = vmatpush.msra.mxu2 %v6012_v35  ;;  %4534 = vmatpush.xpose.msk.msra.mxu0 %vm236_vm7, %v2839_v54 }
0x3ffe   :  { %3172 = vmatpush.msra.mxu2 %v6015_v63 }
0x3fff   :  { %4535 = vmatmul.msk.f32.vlgmr.msra.gmra.mxu0 %vm236_vm7, %v2834_v30 }
0x4000   :  { %3173 = vmatpush.msra.mxu2 %v6019_v2 }
0x4002   :  { %3174 = vmatpush.msra.mxu2 %v6022_v4 }
0x407a   :  { %v2926_v34 = vpop.f32.mrf.mxu2 }
0x407b   :  { %v2927_v50 = vadd.f32 %v2926_v34, %v5379_v47 }
0x407c   :  { %v2861_v9 = vpop.f32.mrf.mxu0 }
0x407d   :  { %v2862_v21 = vadd.f32 %v2861_v9, %v5379_v47  ;;  %v2929_v22 = vsel %vm261_vm8, %v2927_v50, -inf }
0x407e   :  { %2930 = vmax.xlane.f32.xlu2 %v2929_v22 }
0x407f   :  { %v2864_v35 = vsel %vm261_vm8, %v2862_v21, -inf }
0x4080   :  { %2865 = vmax.xlane.f32.xlu1 %v2864_v35 }
0x4096   :  { %2875 = vrot.lane.b32.xlu2 %v2834_v30, %s5013_s24 }
0x40f1   :  { %v2931_v63 = vpop.xlane.xlu2 %2930 }
0x40f2   :  { %v2932_v2 = vsub.f32 %v2927_v50, %v2931_v63 }
0x40f3   :  { %v2866_v49 = vpop.xlane.xlu1 %2865 }
0x40f4   :  { %v2933_v24 = vmul.f32 1.442695, %v2932_v2  ;;  %v2867_v58 = vsub.f32 %v2862_v21, %v2866_v49 }
0x40f6   :  { %4751 = vpow2.f32 %v2933_v24  ;;  %v2868_v25 = vmul.f32 1.442695, %v2867_v58 }
0x40f8   :  { %4753 = vpow2.f32 %v2868_v25 }
0x40f9   :  { %v2876_v4 = vpop.permute.xlu2 %2875 }
0x40fa   :  { %2896 = vmatpush.msra.mxu3 %v2876_v4 }
0x40fc   :  { %3028 = vmatpush.msrb.mxu3 %v6278_v8  ;;  %v4752_v55 = vpop.eup %4751 }
0x40fd   :  { %v2935_v42 = vsel %vm261_vm8, %v4752_v55, 0.0 }
0x40fe   :  { %3029 = vmatpush.msrb.mxu3 %v6285_v60  ;;  %2936 = vadd.xlane.f32.xlu0 %v2935_v42  ;;  %v4754_v20 = vpop.eup %4753 }
0x40ff   :  { %v2870_v15 = vsel %vm261_vm8, %v4754_v20, 0.0 }
0x4100   :  { %3030 = vmatpush.msrb.mxu3 %v6291_v27 }
0x4102   :  { %3031 = vmatpush.msrb.mxu3 %v6297_v29 }
0x4112   :  { %2940 = vrot.lane.b32.xlu0 %v2834_v30, %s5016_s15 }
0x413c   :  { %2871 = vadd.xlane.f32.xlu0 %v2870_v15 }
0x4171   :  { %v2937_v48 = vpop.xlane.xlu0 %2936 }
0x4172   :  { %4755 = vrcp.f32 %v2937_v48 }
0x4178   :  { %v4756_v54 = vpop.eup %4755 }
0x4179   :  { %v2939_v34 = vmul.f32 %v4756_v54, %v4752_v55  ;;  %v6332_v55 = vld [vmem:[%s6769_s12] ss:$0 sm:$0xff] }
0x4184   :  { %v2941_v50 = vpop.permute.xlu0 %2940 }
0x4185   :  { %2961 = vmatpush.msrb.mxu0 %v2941_v50 }
0x4186   :  { %4539 = vmatmul.msk.f32.vlgmr.msrb.gmra.mxu0 %vm261_vm8, %v2939_v34 }
0x4187   :  { %3088 = vmatpush.msra.mxu0 %v5486_v56 }
0x4189   :  { %3213 = vmatpush.msrb.mxu0 %v6040_v10 }
0x418b   :  { %3214 = vmatpush.msrb.mxu0 %v6043_v3 }
0x418d   :  { %3215 = vmatpush.msrb.mxu0 %v6046_v0 }
0x418f   :  { %3216 = vmatpush.msrb.mxu0 %v6049_v12 }
0x41af   :  { %v2872_v30 = vpop.xlane.xlu0 %2871 }
0x41b0   :  { %4757 = vrcp.f32 %v2872_v30 }
0x41b6   :  { %v4758_v9 = vpop.eup %4757 }
0x41b7   :  { %v2874_v21 = vmul.f32 %v4758_v9, %v4754_v20 }
0x41b9   :  { %4536 = vmatmul.msk.f32.vlgmr.msra.gmra.mxu3 %vm261_vm8, %v2874_v21 }
0x41ba   :  { %3146 = vmatpush.msra.mxu3 %v5482_v51 }
0x4203   :  { %v2963_v22 = vpop.f32.mrf.mxu0 }
0x4204   :  { %2967 = vrot.lane.b32.xlu1 %v2963_v22, %s5018_s30 }
0x423c   :  { %v2898_v35 = vpop.f32.mrf.mxu3 }
0x4276   :  { %v2968_v63 = vpop.permute.xlu1 %2967 }
0x4277   :  { %v2970_v10 = vsel %vm236_vm7, %v2898_v35, %v2968_v63  ;;  %v6367_v63 = vld [vmem:[%s6768_s11 + $0x18] sm:$0xff] }
0x4278   :  { %4540 = vmatmul.msk.f32.vlgmr.msra.gmra.mxu1 %vm182_vm2, %v2970_v10 }
0x4279   :  { %3233 = vmatpush.msra.mxu1 %v6060_v52 }
0x427b   :  { %3234 = vmatpush.msra.mxu1 %v6066_v53 }
0x427d   :  { %3235 = vmatpush.msra.mxu1 %v6072_v46 }
0x427f   :  { %3236 = vmatpush.msra.mxu1 %v6078_v23 }
0x4281   :  { %3237 = vmatpush.msra.mxu1 %v6084_v39 }
0x4283   :  { %3238 = vmatpush.msra.mxu1 %v6090_v40 }
0x4285   :  { %3239 = vmatpush.msra.mxu1 %v6096_v62 }
0x4287   :  { %3240 = vmatpush.msra.mxu1 %v6102_v1 }
0x42f5   :  { %v2991_v3 = vpop.f32.mrf.mxu1 }
0x42f6   :  { %v6322_v0 = vadd.f32 %v2991_v3, %v6243_v6 }
0x42f8   :  { %v2995_v12 = vmul.f32 %v6322_v0, %v6322_v0 }
0x42fa   :  { %v2996_v52 = vsel %vm182_vm2, %v2995_v12, 0.0 }
0x42fb   :  { %2997 = vadd.xlane.f32.xlu2 %v2996_v52 }
0x436e   :  { %v2998_v53 = vpop.xlane.xlu2 %2997 }
0x436f   :  { %v2999_v46 = vmul.f32 %v2998_v53, %v5215_v28 }
0x4371   :  { %v3000_v23 = vadd.f32 1e-06, %v2999_v46 }
0x4373   :  { %4759 = vrsqrt.f32 %v3000_v23  ;;  %vm3007_vm15 = vweird.f32 %v3000_v23 }
0x4379   :  { %v4760_v39 = vpop.eup %4759 }
0x437a   :  { %v3002_v40 = vmul.f32 %v4760_v39, %v3000_v23  ;;  %vm3008_vm14 = vweird.f32 %v4760_v39 }
0x437b   :  { %vm3009_vm12 = vmor %vm3007_vm15, %vm3008_vm14 }
0x437c   :  { %v3003_v62 = vmul.f32 %v4760_v39, %v3002_v40 }
0x437e   :  { %v3004_v2 = vmul.f32 0.5, %v3003_v62 }
0x4380   :  { %v3005_v1 = vsub.f32 1.5, %v3004_v2 }
0x4382   :  { %v3006_v24 = vmul.f32 %v4760_v39, %v3005_v1 }
0x4384   :  { %v3010_v6 = vsel %vm3009_vm12, %v4760_v39, %v3006_v24 }
0x4385   :  { %v3011_v4 = vmul.f32 %v3010_v6, %v6322_v0  ;;  %v6394_v6 = vld [vmem:[%s6773_s16] ss:$0 sm:$0xff] }
0x4387   :  { %v3012_v42 = vmul.f32 %v6332_v55, %v3011_v4 }
0x4389   :  { %4541 = vmatmul.msk.f32.vlgmr.msrb.gmra.mxu3 %vm182_vm2, %v3012_v42 }
0x438a   :  { %3279 = vmatpush.msrb.mxu3 %v6115_v38 }
0x438c   :  { %3280 = vmatpush.msrb.mxu3 %v6118_v43 }
0x438e   :  { %3281 = vmatpush.msrb.mxu3 %v6121_v61 }
0x4390   :  { %3282 = vmatpush.msrb.mxu3 %v6124_v7 }
0x440c   :  { %v3033_v49 = vpop.f32.mrf.mxu3 }
0x440d   :  { %3093 = vrot.lane.b32.xlu1 %v3033_v49, %s5017_s25  ;;  %4543 = vmatmul.msk.f32.vlgmr.msrb.gmra.mxu2 %vm236_vm7, %v3033_v49 }
0x440e   :  { %3333 = vmatpush.msrb.mxu2 %v6132_v19 }
0x4410   :  { %3334 = vmatpush.msrb.mxu2 %v6138_v44 }
0x4412   :  { %3335 = vmatpush.msrb.mxu2 %v6144_v41 }
0x4414   :  { %3336 = vmatpush.msrb.mxu2 %v6150_v31 }
0x4416   :  { %3337 = vmatpush.msrb.mxu2 %v6156_v17 }
0x4418   :  { %3338 = vmatpush.msrb.mxu2 %v6162_v32 }
0x441a   :  { %3339 = vmatpush.msrb.mxu2 %v6168_v16 }
0x441c   :  { %3340 = vmatpush.msrb.mxu2 %v6174_v33 }
0x447f   :  { %v3094_v38 = vpop.permute.xlu1 %3093 }
0x4480   :  { %4546 = vmatmul.msk.f32.vlgmr.msrb.gmra.mxu1 %vm236_vm7, %v3094_v38 }
0x4490   :  { %v3056_v43 = vpop.f32.mrf.mxu2 }
0x4491   :  { %v3059_v61 = vsel %vm261_vm8, %v3056_v43, -inf }
0x4492   :  { %3060 = vmax.xlane.f32.xlu1 %v3059_v61 }
0x44fd   :  { %v3114_v7 = vpop.f32.mrf.mxu1 }
0x44fe   :  { %v3117_v19 = vsel %vm261_vm8, %v3114_v7, -inf }
0x44ff   :  { %3118 = vmax.xlane.f32.xlu0 %v3117_v19 }
0x4505   :  { %v3061_v44 = vpop.xlane.xlu1 %3060 }
0x4506   :  { %v3062_v17 = vsub.f32 %v3056_v43, %v3061_v44 }
0x4508   :  { %v3063_v16 = vmul.f32 1.442695, %v3062_v17 }
0x4572   :  { %v3119_v41 = vpop.xlane.xlu0 %3118 }
0x4573   :  { %v3120_v31 = vsub.f32 %v3114_v7, %v3119_v41 }
0x4575   :  { %v3121_v32 = vmul.f32 1.442695, %v3120_v31 }
0x4577   :  { %4761 = vpow2.f32 %v3121_v32 }
0x4578   :  { %4763 = vpow2.f32 %v3063_v16 }
0x457d   :  { %v4762_v58 = vpop.eup %4761 }
0x457e   :  { %v3123_v33 = vsel %vm261_vm8, %v4762_v58, 0.0  ;;  %v4764_v25 = vpop.eup %4763 }
0x457f   :  { %3124 = vadd.xlane.f32.xlu0 %v3123_v33  ;;  %v3065_v20 = vsel %vm261_vm8, %v4764_v25, 0.0 }
0x4587   :  { %3066 = vadd.xlane.f32.xlu0 %v3065_v20 }
0x45f2   :  { %v3125_v15 = vpop.xlane.xlu0 %3124 }
0x45f3   :  { %4765 = vrcp.f32 %v3125_v15  ;;  %v6404_v15 = vld [vmem:[%s6776_s19] ss:$0 sm:$0xff] }
0x45f9   :  { %v4766_v48 = vpop.eup %4765 }
0x45fa   :  { %v3127_v54 = vmul.f32 %v4766_v48, %v4762_v58  ;;  %v3067_v34 = vpop.xlane.xlu0 %3066 }
0x45fb   :  { %4767 = vrcp.f32 %v3067_v34 }
0x45fc   :  { %4547 = vmatmul.msk.f32.vlgmr.msra.gmra.mxu3 %vm261_vm8, %v3127_v54 }
0x4601   :  { %v4768_v50 = vpop.eup %4767 }
0x4602   :  { %v3069_v30 = vmul.f32 %v4768_v50, %v4764_v25 }
0x4604   :  { %4544 = vmatmul.msk.f32.vlgmr.msra.gmra.mxu0 %vm261_vm8, %v3069_v30 }
0x4605   :  { %3378 = vmatpush.msra.mxu0 %v6187_v18  ;;  %v6373_v18 = vld [vmem:[%s6768_s11 + $0x10] sm:$0xff] }
0x4607   :  { %3379 = vmatpush.msra.mxu0 %v6193_v37  ;;  %v6379_v37 = vld [vmem:[%s6768_s11 + $0x8] sm:$0xff] }
0x4609   :  { %3380 = vmatpush.msra.mxu0 %v6199_v5  ;;  %v6385_v5 = vld [vmem:[%s6768_s11] sm:$0xff] }
0x460b   :  { %3381 = vmatpush.msra.mxu0 %v6205_v57 }
0x467f   :  { %v3148_v9 = vpop.f32.mrf.mxu3 }
0x4680   :  { %3152 = vrot.lane.b32.xlu0 %v3148_v9, %s5018_s30 }
0x4681   :  { %v3090_v21 = vpop.f32.mrf.mxu0 }
0x46f2   :  { %v3153_v22 = vpop.permute.xlu0 %3152 }
0x46f3   :  { %v3155_v35 = vsel %vm236_vm7, %v3090_v21, %v3153_v22 }
0x46f4   :  { %4548 = vmatmul.msk.f32.vlgmr.msra.gmra.mxu2 %vm182_vm2, %v3155_v35 }
0x46f5   :  { %3535 = vmatpush.msra.mxu2 %v6367_v63 }
0x46f7   :  { %3536 = vmatpush.msra.mxu2 %v6373_v18 }
0x46f9   :  { %3537 = vmatpush.msra.mxu2 %v6379_v37 }
0x46fb   :  { %3538 = vmatpush.msra.mxu2 %v6385_v5 }
0x4777   :  { %v3176_v57 = vpop.f32.mrf.mxu2 }
0x4778   :  { %v3179_v10 = vadd.f32 %v3176_v57, %v6322_v0 }
0x477a   :  { %v3180_v3 = vmul.f32 %v3179_v10, %v3179_v10 }
0x477c   :  { %v3181_v12 = vsel %vm182_vm2, %v3180_v3, 0.0 }
0x477d   :  { %3182 = vadd.xlane.f32.xlu2 %v3181_v12 }
0x47f0   :  { %v3183_v52 = vpop.xlane.xlu2 %3182 }
0x47f1   :  { %v3184_v53 = vmul.f32 %v3183_v52, %v5215_v28 }
0x47f3   :  { %v3185_v46 = vadd.f32 1e-06, %v3184_v53 }
0x47f5   :  { %4769 = vrsqrt.f32 %v3185_v46  ;;  %vm3192_vm4 = vweird.f32 %v3185_v46 }
0x47fb   :  { %v4770_v23 = vpop.eup %4769 }
0x47fc   :  { %v3187_v39 = vmul.f32 %v4770_v23, %v3185_v46  ;;  %vm3193_vm3 = vweird.f32 %v4770_v23 }
0x47fd   :  { %vm3194_vm5 = vmor %vm3192_vm4, %vm3193_vm3 }
0x47fe   :  { %v3188_v40 = vmul.f32 %v4770_v23, %v3187_v39 }
0x4800   :  { %v3189_v62 = vmul.f32 0.5, %v3188_v40 }
0x4802   :  { %v3190_v2 = vsub.f32 1.5, %v3189_v62 }
0x4804   :  { %v3191_v1 = vmul.f32 %v4770_v23, %v3190_v2 }
0x4806   :  { %v3195_v24 = vsel %vm3194_vm5, %v4770_v23, %v3191_v1 }
0x4807   :  { %v3196_v0 = vmul.f32 %v3195_v24, %v3179_v10 }
0x4809   :  { %v3197_v4 = vmul.f32 %v6394_v6, %v3196_v0 }
0x480b   :  { %4549 = vmatmul.msk.f32.vlgmr.msrb.gmra.mxu0 %vm182_vm2, %v3197_v4 }
0x4888   :  { %v3218_v42 = vpop.f32.mrf.mxu0 }
0x4889   :  { %v3221_v49 = vmax.f32 %v3218_v42, 0.0 }
0x488b   :  { %4550 = vmatmul.msk.f32.vlgmr.msra.gmra.mxu1 %vm134_vm0, %v3221_v49 }
0x4908   :  { %v3242_v38 = vpop.f32.mrf.mxu1 }
0x4909   :  { %v3245_v43 = vadd.f32 %v3242_v38, %v3179_v10 }
0x490b   :  { %v3246_v61 = vmul.f32 %v3245_v43, %v3245_v43 }
0x490d   :  { %v3247_v7 = vsel %vm182_vm2, %v3246_v61, 0.0 }
0x490e   :  { %3248 = vadd.xlane.f32.xlu2 %v3247_v7 }
0x4981   :  { %v3249_v19 = vpop.xlane.xlu2 %3248 }
0x4982   :  { %v3250_v44 = vmul.f32 %v3249_v19, %v5215_v28 }
0x4984   :  { %v3251_v41 = vadd.f32 1e-06, %v3250_v44 }
0x4986   :  { %4771 = vrsqrt.f32 %v3251_v41  ;;  %vm3258_vm10 = vweird.f32 %v3251_v41 }
0x498c   :  { %v4772_v31 = vpop.eup %4771 }
0x498d   :  { %v3253_v17 = vmul.f32 %v4772_v31, %v3251_v41  ;;  %vm3259_vm1 = vweird.f32 %v4772_v31 }
0x498e   :  { %vm3260_vm11 = vmor %vm3258_vm10, %vm3259_vm1 }
0x498f   :  { %v3254_v32 = vmul.f32 %v4772_v31, %v3253_v17 }
0x4991   :  { %v3255_v16 = vmul.f32 0.5, %v3254_v32 }
0x4993   :  { %v3256_v58 = vsub.f32 1.5, %v3255_v16 }
0x4995   :  { %v3257_v33 = vmul.f32 %v4772_v31, %v3256_v58 }
0x4997   :  { %v3261_v25 = vsel %vm3260_vm11, %v4772_v31, %v3257_v33 }
0x4998   :  { %v3262_v20 = vmul.f32 %v3261_v25, %v3245_v43 }
0x499a   :  { %v3263_v48 = vmul.f32 %v6404_v15, %v3262_v20 }
0x499c   :  { %4551 = vmatmul.msk.f32.vlgmr.msrb.gmra.mxu3 %vm182_vm2, %v3263_v48 }
0x4a1f   :  { %v3284_v54 = vpop.f32.mrf.mxu3 }
0x4a20   :  { %v3287_v34 = vsel %vm2771_vm9, %v3284_v54, -1e+30 }
0x4a21   :  { %v3288_v50 = vsel %vm134_vm0, %v3287_v34, -inf }
0x4a22   :  { %v3289_v30 = vrot.slane %v3288_v50, 4 }
0x4a24   :  { %v3290_v9 = vmax.f32 %v3288_v50, %v3289_v30  ;;  %v6444_v50 = vld [vmem:[#allocation2 + $0x18] sm:$0xff]  ;;  %v6447_v30 = vld [vmem:[#allocation2 + $0x10] sm:$0xff] }
0x4a26   :  { %v3291_v21 = vrot.slane %v3290_v9, 2 }
0x4a28   :  { %v3292_v22 = vmax.f32 %v3290_v9, %v3291_v21  ;;  %v6450_v9 = vld [vmem:[#allocation2 + $0x8] sm:$0xff]  ;;  %v6453_v21 = vld [vmem:[#allocation2] sm:$0xff] }
0x4a2a   :  { %v3293_v35 = vrot.slane %v3292_v22, 1 }
0x4a2c   :  { %v3294_v57 = vmax.f32 %v3292_v22, %v3293_v35 }
0x4a2e   :  { %v3295_v10 = vsel %vm134_vm0, %v3294_v57, -inf }
0x4a2f   :  { %3296 = vmax.xlane.f32.xlu0 %v3295_v10 }
0x4aa2   :  { %v3297_v3 = vpop.xlane.xlu0 %3296 }
0x4aa3   :  { %vm3298_vm6 = vcmp.eq.f32.partialorder %v3294_v57, %v3297_v3 }
0x4aa4   :  { %v3299_v12 = vsel %vm3298_vm6, %v5191_v11, 64 }
0x4aa5   :  { %v3300_v52 = vsel %vm134_vm0, %v3299_v12, 2147483647 }
0x4aa6   :  { %v3302_v53 = vshra.s32 %v3300_v52, 16  ;;  %v3301_v23 = vand.u32 65535, %v3300_v52 }
0x4aa8   :  { %v3304_v46 = vcvt.s32.f32 %v3302_v53  ;;  %v3303_v40 = vcvt.s32.f32 %v3301_v23 }
0x4aaa   :  { %3305 = vmin.xlane.f32.xlu1 %v3304_v46 }
0x4b1d   :  { %v3306_v39 = vpop.xlane.xlu1 %3305 }
0x4b1e   :  { %vm3307_vm9 = vcmp.eq.f32.partialorder %v3304_v46, %v3306_v39  ;;  %v3312_v2 = vcvt.f32.s32 %v3306_v39 }
0x4b1f   :  { %v3308_v62 = vsel %vm3307_vm9, %v3303_v40, inf }
0x4b20   :  { %3309 = vmin.xlane.f32.xlu2 %v3308_v62  ;;  %v3313_v24 = vshll.u32 %v3312_v2, 16 }
0x4b93   :  { %v3310_v1 = vpop.xlane.xlu2 %3309 }
0x4b94   :  { %v3311_v0 = vcvt.f32.s32 %v3310_v1 }
0x4b96   :  { %v3314_v4 = vadd.s32 %v3313_v24, %v3311_v0 }
0x4b98   :  { %4603 = vpush %v3314_v4 }
0x4bc9   :  { %s4604_s1 = spop %4603 }
0x4bca   :  { %v3316_v42 = vstv %s4604_s1 }
0x4bcb   :  { %vm3317_vm14 = vcmp.eq.s32.totalorder %v5191_v11, %v3316_v42 }
0x4bcc   :  { %v4552_v49 = vsel %vm3317_vm14, 1.0, %v5011_v13 }
0x4bcd   :  { %v6420_v38 = vsel %vm3320_vm13, %v4552_v49, %v6237_v59 }
0x4bce   :  { %4553 = vmatmul.msk.f32.vlgmr.msrb.gmra.mxu2 %vm134_vm0, %v6420_v38 }
0x4bcf   :  { %4566 = vmatpush.xpose.msk.msrb.mxu2 %vm236_vm7, %v5422_v26 }
0x4c51   :  { %v6426_v43 = vpop.f32.mrf.mxu2 }
0x4c52   :  { %v3345_v61 = vmul.f32 %v6426_v43, %v6426_v43 }
0x4c54   :  { %v3346_v7 = vsel %vm182_vm2, %v3345_v61, 0.0 }
0x4c55   :  { %3347 = vadd.xlane.f32.xlu1 %v3346_v7 }
0x4cc8   :  { %v3348_v19 = vpop.xlane.xlu1 %3347 }
0x4cc9   :  { %v3349_v44 = vmul.f32 %v3348_v19, %v5215_v28 }
0x4ccb   :  { %v3350_v41 = vadd.f32 1e-06, %v3349_v44 }
0x4ccd   :  { %4773 = vrsqrt.f32 %v3350_v41  ;;  %vm3357_vm12 = vweird.f32 %v3350_v41 }
0x4cd3   :  { %v4774_v59 = vpop.eup %4773 }
0x4cd4   :  { %v3352_v31 = vmul.f32 %v4774_v59, %v3350_v41  ;;  %vm3358_vm15 = vweird.f32 %v4774_v59 }
0x4cd5   :  { %vm3359_vm3 = vmor %vm3357_vm12, %vm3358_vm15 }
0x4cd6   :  { %v3353_v17 = vmul.f32 %v4774_v59, %v3352_v31 }
0x4cd8   :  { %v3354_v32 = vmul.f32 0.5, %v3353_v17 }
0x4cda   :  { %v3355_v16 = vsub.f32 1.5, %v3354_v32  ;;  %v6490_v32 = vld [vmem:[%s6775_s18 + $0x38] sm:$0xff] }
0x4cdc   :  { %v3356_v58 = vmul.f32 %v4774_v59, %v3355_v16  ;;  %v6496_v16 = vld [vmem:[%s6775_s18 + $0x30] sm:$0xff] }
0x4cde   :  { %v3360_v33 = vsel %vm3359_vm3, %v4774_v59, %v3356_v58  ;;  %v6502_v58 = vld [vmem:[%s6775_s18 + $0x28] sm:$0xff]  ;;  %vm3869_vm3 = vcmp.eq.s32.totalorder %v5375_v45, 6 }
0x4cdf   :  { %v3361_v25 = vmul.f32 %v3360_v33, %v6426_v43  ;;  %v6508_v33 = vld [vmem:[%s6775_s18 + $0x20] sm:$0xff] }
0x4ce1   :  { %v3362_v20 = vmul.f32 %v6253_v36, %v3361_v25  ;;  %v6514_v25 = vld [vmem:[%s6775_s18 + $0x18] sm:$0xff] }
0x4ce3   :  { %4554 = vmatmul.msk.f32.vlgmr.msra.gmra.mxu0 %vm182_vm2, %v3362_v20  ;;  %v6520_v20 = vld [vmem:[%s6775_s18 + $0x10] sm:$0xff] }
0x4d60   :  { %v3383_v48 = vpop.f32.mrf.mxu0 }
0x4d61   :  { %3450 = vrot.lane.b32.xlu1 %v3383_v48, %s5017_s25  ;;  %3452 = vrot.lane.b32.xlu2 %v3383_v48, %s5015_s2 }
0x4d69   :  { %3387 = vrot.lane.b32.xlu2 %v3383_v48, %s5014_s17 }
0x4dbb   :  { %v3453_v54 = vpop.permute.xlu2 %3452 }
0x4dbc   :  { %4558 = vmatpush.xpose.msk.msrb.mxu1 %vm236_vm7, %v3453_v54  ;;  %v6532_v54 = vld [vmem:[%s6775_s18] sm:$0xff] }
0x4dc0   :  { %4563 = vmatpush.xpose.msk.msra.mxu1 %vm236_vm7, %v5413_v14 }
0x4dc3   :  { %v3388_v34 = vpop.permute.xlu2 %3387 }
0x4dc4   :  { %4555 = vmatpush.xpose.msk.msra.mxu3 %vm236_vm7, %v3388_v34 }
0x4dc7   :  { %4556 = vmatmul.msk.f32.vlgmr.msra.gmra.mxu3 %vm236_vm7, %v3383_v48 }
0x4dd3   :  { %v3451_v36 = vpop.permute.xlu1 %3450 }
0x4dd4   :  { %4559 = vmatmul.msk.f32.vlgmr.msrb.gmra.mxu1 %vm236_vm7, %v3451_v36 }
0x4dd5   :  { %3720 = vmatpush.msrb.mxu1 %v6444_v50 }
0x4dd7   :  { %3721 = vmatpush.msrb.mxu1 %v6447_v30 }
0x4dd9   :  { %3722 = vmatpush.msrb.mxu1 %v6450_v9 }
0x4ddb   :  { %3723 = vmatpush.msrb.mxu1 %v6453_v21 }
0x4e4a   :  { %v3410_v22 = vpop.f32.mrf.mxu3 }
0x4e4b   :  { %v3411_v35 = vadd.f32 %v3410_v22, %v5379_v47 }
0x4e4d   :  { %v3413_v57 = vsel %vm261_vm8, %v3411_v35, -inf }
0x4e4e   :  { %3414 = vmax.xlane.f32.xlu0 %v3413_v57 }
0x4e51   :  { %v3475_v10 = vpop.f32.mrf.mxu1 }
0x4e52   :  { %v3476_v3 = vadd.f32 %v3475_v10, %v5379_v47 }
0x4e54   :  { %v3478_v12 = vsel %vm261_vm8, %v3476_v3, -inf }
0x4e55   :  { %3479 = vmax.xlane.f32.xlu1 %v3478_v12 }
0x4e62   :  { %3489 = vrot.lane.b32.xlu0 %v3383_v48, %s5016_s15 }
0x4e6e   :  { %3424 = vrot.lane.b32.xlu1 %v3383_v48, %s5013_s24  ;;  %v6526_v48 = vld [vmem:[%s6775_s18 + $0x8] sm:$0xff] }
0x4ec1   :  { %v3415_v52 = vpop.xlane.xlu0 %3414 }
0x4ec2   :  { %v3416_v53 = vsub.f32 %v3411_v35, %v3415_v52 }
0x4ec4   :  { %v3417_v46 = vmul.f32 1.442695, %v3416_v53 }
0x4ec6   :  { %4775 = vpow2.f32 %v3417_v46 }
0x4ec8   :  { %v3480_v23 = vpop.xlane.xlu1 %3479 }
0x4ec9   :  { %v3481_v39 = vsub.f32 %v3476_v3, %v3480_v23 }
0x4ecb   :  { %v3482_v40 = vmul.f32 1.442695, %v3481_v39 }
0x4ecc   :  { %v4776_v62 = vpop.eup %4775 }
0x4ecd   :  { %4777 = vpow2.f32 %v3482_v40  ;;  %v3419_v2 = vsel %vm261_vm8, %v4776_v62, 0.0 }
0x4ece   :  { %3420 = vadd.xlane.f32.xlu0 %v3419_v2  ;;  %v6545_v2 = vld [vmem:[#allocation6 + $0x18] sm:$0xff] }
0x4ed3   :  { %v4778_v1 = vpop.eup %4777 }
0x4ed4   :  { %v3490_v24 = vpop.permute.xlu0 %3489  ;;  %v3484_v0 = vsel %vm261_vm8, %v4778_v1, 0.0 }
0x4ed5   :  { %3485 = vadd.xlane.f32.xlu2 %v3484_v0  ;;  %3510 = vmatpush.msrb.mxu3 %v3490_v24  ;;  %v6551_v24 = vld [vmem:[#allocation6 + $0x8] sm:$0xff]  ;;  %v6554_v0 = vld [vmem:[#allocation6] sm:$0xff] }
0x4ed7   :  { %3637 = vmatpush.msra.mxu3 %v5486_v56 }
0x4ee0   :  { %v3425_v4 = vpop.permute.xlu1 %3424 }
0x4ee1   :  { %3445 = vmatpush.msrb.mxu0 %v3425_v4 }
0x4ee3   :  { %3577 = vmatpush.msra.mxu0 %v6278_v8  ;;  %v6472_v8 = vld [vmem:[#allocation4 + $0x18] sm:$0xff] }
0x4ee5   :  { %3578 = vmatpush.msra.mxu0 %v6285_v60  ;;  %v6475_v60 = vld [vmem:[#allocation4 + $0x10] sm:$0xff] }
0x4ee7   :  { %3579 = vmatpush.msra.mxu0 %v6291_v27  ;;  %v6478_v27 = vld [vmem:[#allocation4 + $0x8] sm:$0xff] }
0x4ee9   :  { %3580 = vmatpush.msra.mxu0 %v6297_v29  ;;  %v6481_v29 = vld [vmem:[#allocation4] sm:$0xff] }
0x4f41   :  { %v3421_v42 = vpop.xlane.xlu0 %3420 }
0x4f42   :  { %4779 = vrcp.f32 %v3421_v42  ;;  %v4910_v42 = vld [vmem:[%s6789_s20 + $0x30] sm:$0xff] }
0x4f48   :  { %v4780_v49 = vpop.eup %4779  ;;  %v3486_v61 = vpop.xlane.xlu2 %3485 }
0x4f49   :  { %v3423_v7 = vmul.f32 %v4780_v49, %v4776_v62  ;;  %4781 = vrcp.f32 %v3486_v61  ;;  %v4911_v49 = vld [vmem:[%s6789_s20 + $0x28] sm:$0xff]  ;;  %v4912_v61 = vld [vmem:[%s6789_s20 + $0x20] sm:$0xff] }
0x4f4b   :  { %4557 = vmatmul.msk.f32.vlgmr.msrb.gmra.mxu0 %vm261_vm8, %v3423_v7  ;;  %v4913_v7 = vld [vmem:[%s6789_s20 + $0x18] sm:$0xff] }
0x4f4c   :  { %3695 = vmatpush.msrb.mxu0 %v5482_v51 }
0x4f4f   :  { %v4782_v19 = vpop.eup %4781 }
0x4f50   :  { %v3488_v44 = vmul.f32 %v4782_v19, %v4778_v1  ;;  %v6548_v1 = vld [vmem:[#allocation6 + $0x10] sm:$0xff] }
0x4f51   :  { %v4914_v19 = vld [vmem:[%s6789_s20 + $0x10] sm:$0xff] }
0x4f52   :  { %4560 = vmatmul.msk.f32.vlgmr.msrb.gmra.mxu3 %vm261_vm8, %v3488_v44  ;;  %v4915_v44 = vld [vmem:[%s6789_s20 + $0x8] sm:$0xff] }
0x4f53   :  { %3762 = vmatpush.msrb.mxu3 %v6472_v8 }
0x4f55   :  { %3763 = vmatpush.msrb.mxu3 %v6475_v60 }
0x4f57   :  { %3764 = vmatpush.msrb.mxu3 %v6478_v27 }
0x4f59   :  { %3765 = vmatpush.msrb.mxu3 %v6481_v29 }
0x4fc8   :  { %v3447_v59 = vpop.f32.mrf.mxu0 }
0x4fd5   :  { %v3512_v41 = vpop.f32.mrf.mxu3 }
0x4fd6   :  { %3516 = vrot.lane.b32.xlu2 %v3512_v41, %s5018_s30  ;;  %v4916_v41 = vld [vmem:[%s6789_s20] sm:$0xff] }
0x5030   :  { %v3517_v31 = vpop.permute.xlu2 %3516 }
0x5031   :  { %v3519_v17 = vsel %vm236_vm7, %v3447_v59, %v3517_v31 }
0x5032   :  { %4561 = vmatmul.msk.f32.vlgmr.msra.gmra.mxu2 %vm182_vm2, %v3519_v17 }
0x5033   :  { %3782 = vmatpush.msra.mxu2 %v6490_v32 }
0x5035   :  { %3783 = vmatpush.msra.mxu2 %v6496_v16 }
0x5037   :  { %3784 = vmatpush.msra.mxu2 %v6502_v58 }
0x5039   :  { %3785 = vmatpush.msra.mxu2 %v6508_v33 }
0x503b   :  { %3786 = vmatpush.msra.mxu2 %v6514_v25 }
0x503d   :  { %3787 = vmatpush.msra.mxu2 %v6520_v20 }
0x503f   :  { %3788 = vmatpush.msra.mxu2 %v6526_v48 }
0x5041   :  { %3789 = vmatpush.msra.mxu2 %v6532_v54 }
0x50b5   :  { %v3540_v34 = vpop.f32.mrf.mxu2 }
0x50b6   :  { %v6536_v36 = vadd.f32 %v3540_v34, %v6426_v43 }
0x50b8   :  { %v3544_v22 = vmul.f32 %v6536_v36, %v6536_v36 }
0x50ba   :  { %v3545_v35 = vsel %vm182_vm2, %v3544_v22, 0.0 }
0x50bb   :  { %3546 = vadd.xlane.f32.xlu1 %v3545_v35 }
0x512e   :  { %v3547_v57 = vpop.xlane.xlu1 %3546 }
0x512f   :  { %v3548_v10 = vmul.f32 %v3547_v57, %v5215_v28 }
0x5131   :  { %v3549_v3 = vadd.f32 1e-06, %v3548_v10 }
0x5133   :  { %4783 = vrsqrt.f32 %v3549_v3  ;;  %vm3556_vm5 = vweird.f32 %v3549_v3 }
0x5139   :  { %v4784_v12 = vpop.eup %4783 }
0x513a   :  { %v3551_v52 = vmul.f32 %v4784_v12, %v3549_v3  ;;  %vm3557_vm4 = vweird.f32 %v4784_v12 }
0x513b   :  { %vm3558_vm1 = vmor %vm3556_vm5, %vm3557_vm4 }
0x513c   :  { %v3552_v53 = vmul.f32 %v4784_v12, %v3551_v52 }
0x513e   :  { %v3553_v46 = vmul.f32 0.5, %v3552_v53 }
0x5140   :  { %v3554_v23 = vsub.f32 1.5, %v3553_v46 }
0x5142   :  { %v3555_v39 = vmul.f32 %v4784_v12, %v3554_v23 }
0x5144   :  { %v3559_v43 = vsel %vm3558_vm1, %v4784_v12, %v3555_v39 }
0x5145   :  { %v3560_v40 = vmul.f32 %v3559_v43, %v6536_v36 }
0x5147   :  { %v3561_v62 = vmul.f32 %v6332_v55, %v3560_v40  ;;  %v4909_v55 = vld [vmem:[%s6789_s20 + $0x38] sm:$0xff] }
0x5149   :  { %4562 = vmatmul.msk.f32.vlgmr.msra.gmra.mxu0 %vm182_vm2, %v3561_v62 }
0x514a   :  { %3828 = vmatpush.msra.mxu0 %v6545_v2 }
0x514c   :  { %3829 = vmatpush.msra.mxu0 %v6548_v1 }
0x514e   :  { %3830 = vmatpush.msra.mxu0 %v6551_v24 }
0x5150   :  { %3831 = vmatpush.msra.mxu0 %v6554_v0 }
0x51c6   :  { %v3582_v4 = vpop.f32.mrf.mxu0 }
0x51c7   :  { %3642 = vrot.lane.b32.xlu2 %v3582_v4, %s5017_s25  ;;  %4564 = vmatmul.msk.f32.vlgmr.msra.gmra.mxu1 %vm236_vm7, %v3582_v4 }
0x51c8   :  { %3882 = vmatpush.msra.mxu1 %v4909_v55 }
0x51ca   :  { %3883 = vmatpush.msra.mxu1 %v4910_v42 }
0x51cc   :  { %3884 = vmatpush.msra.mxu1 %v4911_v49  ;;  %v4917_v49 = vld [vmem:[%s6767_s10 + $0x18] sm:$0xff] }
0x51ce   :  { %3885 = vmatpush.msra.mxu1 %v4912_v61  ;;  %v4918_v61 = vld [vmem:[%s6767_s10 + $0x10] sm:$0xff] }
0x51d0   :  { %3886 = vmatpush.msra.mxu1 %v4913_v7  ;;  %v4919_v7 = vld [vmem:[%s6767_s10 + $0x8] sm:$0xff] }
0x51d2   :  { %3887 = vmatpush.msra.mxu1 %v4914_v19  ;;  %v4920_v19 = vld [vmem:[%s6767_s10] sm:$0xff] }
0x51d4   :  { %3888 = vmatpush.msra.mxu1 %v4915_v44 }
0x51d6   :  { %3889 = vmatpush.msra.mxu1 %v4916_v41 }
0x5221   :  { %v3643_v59 = vpop.permute.xlu2 %3642 }
0x5222   :  { %4567 = vmatmul.msk.f32.vlgmr.msrb.gmra.mxu2 %vm236_vm7, %v3643_v59 }
0x5244   :  { %v3605_v31 = vpop.f32.mrf.mxu1 }
0x5245   :  { %v3608_v17 = vsel %vm261_vm8, %v3605_v31, -inf }
0x5246   :  { %3609 = vmax.xlane.f32.xlu2 %v3608_v17 }
0x52a5   :  { %v3663_v34 = vpop.f32.mrf.mxu2 }
0x52a6   :  { %v3666_v22 = vsel %vm261_vm8, %v3663_v34, -inf }
0x52a7   :  { %3667 = vmax.xlane.f32.xlu0 %v3666_v22 }
0x52b9   :  { %v3610_v35 = vpop.xlane.xlu2 %3609 }
0x52ba   :  { %v3611_v3 = vsub.f32 %v3605_v31, %v3610_v35 }
0x52bc   :  { %v3612_v52 = vmul.f32 1.442695, %v3611_v3 }
0x531a   :  { %v3668_v57 = vpop.xlane.xlu0 %3667 }
0x531b   :  { %v3669_v10 = vsub.f32 %v3663_v34, %v3668_v57 }
0x531d   :  { %v3670_v12 = vmul.f32 1.442695, %v3669_v10 }
0x531f   :  { %4785 = vpow2.f32 %v3670_v12 }
0x5320   :  { %4787 = vpow2.f32 %v3612_v52 }
0x5325   :  { %v4786_v53 = vpop.eup %4785 }
0x5326   :  { %v3672_v46 = vsel %vm261_vm8, %v4786_v53, 0.0  ;;  %v4788_v23 = vpop.eup %4787 }
0x5327   :  { %3673 = vadd.xlane.f32.xlu0 %v3672_v46  ;;  %v3614_v39 = vsel %vm261_vm8, %v4788_v23, 0.0 }
0x532f   :  { %3615 = vadd.xlane.f32.xlu0 %v3614_v39 }
0x539a   :  { %v3674_v43 = vpop.xlane.xlu0 %3673 }
0x539b   :  { %4789 = vrcp.f32 %v3674_v43 }
0x53a1   :  { %v4790_v40 = vpop.eup %4789 }
0x53a2   :  { %v3676_v62 = vmul.f32 %v4790_v40, %v4786_v53  ;;  %v3616_v4 = vpop.xlane.xlu0 %3615 }
0x53a3   :  { %4791 = vrcp.f32 %v3616_v4 }
0x53a4   :  { %4568 = vmatmul.msk.f32.vlgmr.msrb.gmra.mxu0 %vm261_vm8, %v3676_v62 }
0x53a9   :  { %v4792_v55 = vpop.eup %4791 }
0x53aa   :  { %v3618_v42 = vmul.f32 %v4792_v55, %v4788_v23 }
0x53ac   :  { %4565 = vmatmul.msk.f32.vlgmr.msra.gmra.mxu3 %vm261_vm8, %v3618_v42 }
0x53ad   :  { %3927 = vmatpush.msra.mxu3 %v4917_v49 }
0x53af   :  { %3928 = vmatpush.msra.mxu3 %v4918_v61 }
0x53b1   :  { %3929 = vmatpush.msra.mxu3 %v4919_v7 }
0x53b3   :  { %3930 = vmatpush.msra.mxu3 %v4920_v19 }
0x5421   :  { %v3697_v44 = vpop.f32.mrf.mxu0 }
0x5422   :  { %3701 = vrot.lane.b32.xlu0 %v3697_v44, %s5018_s30 }
0x542f   :  { %v3639_v41 = vpop.f32.mrf.mxu3 }
0x5494   :  { %v3702_v59 = vpop.permute.xlu0 %3701 }
0x5495   :  { %v3704_v31 = vsel %vm236_vm7, %v3639_v41, %v3702_v59 }
0x5496   :  { %4569 = vmatmul.msk.f32.vlgmr.msrb.gmra.mxu1 %vm182_vm2, %v3704_v31 }
0x5497   :  { %4084 = vmatpush.msrb.mxu1 %v6367_v63 }
0x5499   :  { %4085 = vmatpush.msrb.mxu1 %v6373_v18 }
0x549b   :  { %4086 = vmatpush.msrb.mxu1 %v6379_v37 }
0x549d   :  { %4087 = vmatpush.msrb.mxu1 %v6385_v5 }
0x5513   :  { %v3725_v17 = vpop.f32.mrf.mxu1 }
0x5514   :  { %v3728_v34 = vadd.f32 %v3725_v17, %v6536_v36 }
0x5516   :  { %v3729_v22 = vmul.f32 %v3728_v34, %v3728_v34 }
0x5518   :  { %v3730_v35 = vsel %vm182_vm2, %v3729_v22, 0.0 }
0x5519   :  { %3731 = vadd.xlane.f32.xlu1 %v3730_v35 }
0x558c   :  { %v3732_v57 = vpop.xlane.xlu1 %3731 }
0x558d   :  { %v3733_v10 = vmul.f32 %v3732_v57, %v5215_v28 }
0x558f   :  { %v3734_v3 = vadd.f32 1e-06, %v3733_v10 }
0x5591   :  { %4793 = vrsqrt.f32 %v3734_v3  ;;  %vm3741_vm11 = vweird.f32 %v3734_v3 }
0x5597   :  { %v4794_v12 = vpop.eup %4793 }
0x5598   :  { %v3736_v63 = vmul.f32 %v4794_v12, %v3734_v3  ;;  %vm3742_vm10 = vweird.f32 %v4794_v12 }
0x5599   :  { %vm3743_vm6 = vmor %vm3741_vm11, %vm3742_vm10 }
0x559a   :  { %v3737_v52 = vmul.f32 %v4794_v12, %v3736_v63 }
0x559c   :  { %v3738_v18 = vmul.f32 0.5, %v3737_v52 }
0x559e   :  { %v3739_v53 = vsub.f32 1.5, %v3738_v18 }
0x55a0   :  { %v3740_v37 = vmul.f32 %v4794_v12, %v3739_v53 }
0x55a2   :  { %v3744_v5 = vsel %vm3743_vm6, %v4794_v12, %v3740_v37 }
0x55a3   :  { %v3745_v36 = vmul.f32 %v3744_v5, %v3728_v34 }
0x55a5   :  { %v3746_v46 = vmul.f32 %v6394_v6, %v3745_v36 }
0x55a7   :  { %4570 = vmatmul.msk.f32.vlgmr.msrb.gmra.mxu3 %vm182_vm2, %v3746_v46 }
0x562a   :  { %v3767_v23 = vpop.f32.mrf.mxu3 }
0x562b   :  { %v3770_v39 = vmax.f32 %v3767_v23, 0.0 }
0x562d   :  { %4571 = vmatmul.msk.f32.vlgmr.msra.gmra.mxu2 %vm134_vm0, %v3770_v39 }
0x56b0   :  { %v3791_v43 = vpop.f32.mrf.mxu2 }
0x56b1   :  { %v3794_v40 = vadd.f32 %v3791_v43, %v3728_v34 }
0x56b3   :  { %v3795_v62 = vmul.f32 %v3794_v40, %v3794_v40 }
0x56b5   :  { %v3796_v4 = vsel %vm182_vm2, %v3795_v62, 0.0 }
0x56b6   :  { %3797 = vadd.xlane.f32.xlu0 %v3796_v4 }
0x5729   :  { %v3798_v55 = vpop.xlane.xlu0 %3797 }
0x572a   :  { %v3799_v42 = vmul.f32 %v3798_v55, %v5215_v28 }
0x572c   :  { %v3800_v49 = vadd.f32 1e-06, %v3799_v42 }
0x572e   :  { %4795 = vrsqrt.f32 %v3800_v49  ;;  %vm3807_vm14 = vweird.f32 %v3800_v49 }
0x5734   :  { %v4796_v61 = vpop.eup %4795 }
0x5735   :  { %v3802_v7 = vmul.f32 %v4796_v61, %v3800_v49  ;;  %vm3808_vm9 = vweird.f32 %v4796_v61 }
0x5736   :  { %vm3809_vm15 = vmor %vm3807_vm14, %vm3808_vm9 }
0x5737   :  { %v3803_v6 = vmul.f32 %v4796_v61, %v3802_v7 }
0x5739   :  { %v3804_v19 = vmul.f32 0.5, %v3803_v6 }
0x573b   :  { %v3805_v44 = vsub.f32 1.5, %v3804_v19 }
0x573d   :  { %v3806_v41 = vmul.f32 %v4796_v61, %v3805_v44 }
0x573f   :  { %v3810_v59 = vsel %vm3809_vm15, %v4796_v61, %v3806_v41 }
0x5740   :  { %v3811_v31 = vmul.f32 %v3810_v59, %v3794_v40 }
0x5742   :  { %v3812_v17 = vmul.f32 %v6404_v15, %v3811_v31 }
0x5744   :  { %4572 = vmatmul.msk.f32.vlgmr.msra.gmra.mxu0 %vm182_vm2, %v3812_v17 }
0x57c1   :  { %v3833_v34 = vpop.f32.mrf.mxu0 }
0x57c2   :  { %v3836_v22 = vsel %vm3320_vm13, %v3833_v34, -1e+30 }
0x57c3   :  { %v3837_v35 = vsel %vm134_vm0, %v3836_v22, -inf }
0x57c4   :  { %v3838_v57 = vrot.slane %v3837_v35, 4 }
0x57c6   :  { %v3839_v10 = vmax.f32 %v3837_v35, %v3838_v57 }
0x57c8   :  { %v3840_v3 = vrot.slane %v3839_v10, 2 }
0x57ca   :  { %v3841_v12 = vmax.f32 %v3839_v10, %v3840_v3  ;;  %v4921_v3 = vld [vmem:[%s6766_s9] ss:$0 sm:$0xff] }
0x57cc   :  { %v3842_v63 = vrot.slane %v3841_v12, 1 }
0x57ce   :  { %v3843_v52 = vmax.f32 %v3841_v12, %v3842_v63 }
0x57d0   :  { %v3844_v18 = vsel %vm134_vm0, %v3843_v52, -inf }
0x57d1   :  { %3845 = vmax.xlane.f32.xlu2 %v3844_v18 }
0x5844   :  { %v3846_v53 = vpop.xlane.xlu2 %3845 }
0x5845   :  { %vm3847_vm12 = vcmp.eq.f32.partialorder %v3843_v52, %v3846_v53 }
0x5846   :  { %v3848_v15 = vsel %vm3847_vm12, %v5191_v11, 64 }
0x5847   :  { %v3849_v37 = vsel %vm134_vm0, %v3848_v15, 2147483647 }
0x5848   :  { %v3851_v5 = vshra.s32 %v3849_v37, 16  ;;  %v3850_v46 = vand.u32 65535, %v3849_v37 }
0x584a   :  { %v3853_v36 = vcvt.s32.f32 %v3851_v5  ;;  %v3852_v39 = vcvt.s32.f32 %v3850_v46 }
0x584c   :  { %3854 = vmin.xlane.f32.xlu1 %v3853_v36 }
0x58bf   :  { %v3855_v23 = vpop.xlane.xlu1 %3854 }
0x58c0   :  { %vm3856_vm13 = vcmp.eq.f32.partialorder %v3853_v36, %v3855_v23  ;;  %v3861_v40 = vcvt.f32.s32 %v3855_v23 }
0x58c1   :  { %v3857_v43 = vsel %vm3856_vm13, %v3852_v39, inf }
0x58c2   :  { %3858 = vmin.xlane.f32.xlu2 %v3857_v43  ;;  %v3862_v4 = vshll.u32 %v3861_v40, 16 }
0x5935   :  { %v3859_v62 = vpop.xlane.xlu2 %3858 }
0x5936   :  { %v3860_v55 = vcvt.f32.s32 %v3859_v62  ;;  %v4922_v62 = vld [vmem:[%s6770_s13 + $0x18] sm:$0xff] }
0x5938   :  { %v3863_v42 = vadd.s32 %v3862_v4, %v3860_v55  ;;  %v4923_v4 = vld [vmem:[%s6770_s13 + $0x10] sm:$0xff] }
0x593a   :  { %4605 = vpush %v3863_v42  ;;  %v4924_v42 = vld [vmem:[%s6770_s13 + $0x8] sm:$0xff] }
0x596b   :  { %s4606_s10 = spop %4605 }
0x596c   :  { %v3865_v49 = vstv %s4606_s10 }
0x596d   :  { %vm3866_vm4 = vcmp.eq.s32.totalorder %v5191_v11, %v3865_v49 }
0x596e   :  { %v4573_v61 = vsel %vm3866_vm4, 1.0, %v5011_v13 }
0x596f   :  { %v6631_v7 = vsel %vm3869_vm3, %v4573_v61, %v6420_v38  ;;  %v4925_v61 = vld [vmem:[%s6770_s13] sm:$0xff] }
0x5970   :  { %4574 = vmatmul.msk.f32.vlgmr.msra.gmra.mxu1 %vm134_vm0, %v6631_v7 }
0x5971   :  { %4587 = vmatpush.xpose.msk.msra.mxu1 %vm236_vm7, %v5422_v26 }
0x59ed   :  { %v6637_v6 = vpop.f32.mrf.mxu1 }
0x59ee   :  { %v3894_v19 = vmul.f32 %v6637_v6, %v6637_v6 }
0x59f0   :  { %v3895_v44 = vsel %vm182_vm2, %v3894_v19, 0.0 }
0x59f1   :  { %3896 = vadd.xlane.f32.xlu1 %v3895_v44 }
0x5a64   :  { %v3897_v41 = vpop.xlane.xlu1 %3896 }
0x5a65   :  { %v3898_v59 = vmul.f32 %v3897_v41, %v5215_v28 }
0x5a67   :  { %v3899_v31 = vadd.f32 1e-06, %v3898_v59 }
0x5a69   :  { %4797 = vrsqrt.f32 %v3899_v31  ;;  %vm3906_vm1 = vweird.f32 %v3899_v31 }
0x5a6f   :  { %v4798_v38 = vpop.eup %4797 }
0x5a70   :  { %v3901_v17 = vmul.f32 %v4798_v38, %v3899_v31  ;;  %vm3907_vm5 = vweird.f32 %v4798_v38 }
0x5a71   :  { %vm3908_vm10 = vmor %vm3906_vm1, %vm3907_vm5 }
0x5a72   :  { %v3902_v34 = vmul.f32 %v4798_v38, %v3901_v17 }
0x5a74   :  { %v3903_v22 = vmul.f32 0.5, %v3902_v34 }
0x5a76   :  { %v3904_v35 = vsub.f32 1.5, %v3903_v22 }
0x5a78   :  { %v3905_v26 = vmul.f32 %v4798_v38, %v3904_v35 }
0x5a7a   :  { %v3909_v57 = vsel %vm3908_vm10, %v4798_v38, %v3905_v26  ;;  %vm4426_vm10 = vcmask 7168  }
0x5a7b   :  { %v3910_v10 = vmul.f32 %v3909_v57, %v6637_v6  ;;  %v4926_v57 = vld [vmem:[%s6769_s12] ss:$0 sm:$0xff] }
0x5a7d   :  { %v3911_v12 = vmul.f32 %v4921_v3, %v3910_v10 }
0x5a7f   :  { %4575 = vmatmul.msk.f32.vlgmr.msra.gmra.mxu3 %vm182_vm2, %v3911_v12 }
0x5b02   :  { %v3932_v63 = vpop.f32.mrf.mxu3 }
0x5b03   :  { %3999 = vrot.lane.b32.xlu1 %v3932_v63, %s5017_s25  ;;  %4001 = vrot.lane.b32.xlu2 %v3932_v63, %s5015_s2 }
0x5b0b   :  { %3936 = vrot.lane.b32.xlu2 %v3932_v63, %s5014_s17 }
0x5b5d   :  { %v4002_v52 = vpop.permute.xlu2 %4001 }
0x5b5e   :  { %4579 = vmatpush.xpose.msk.msrb.mxu2 %vm236_vm7, %v4002_v52 }
0x5b62   :  { %4584 = vmatpush.xpose.msk.msra.mxu2 %vm236_vm7, %v5413_v14 }
0x5b65   :  { %v3937_v18 = vpop.permute.xlu2 %3936 }
0x5b66   :  { %4576 = vmatpush.xpose.msk.msrb.mxu0 %vm236_vm7, %v3937_v18 }
0x5b69   :  { %4577 = vmatmul.msk.f32.vlgmr.msrb.gmra.mxu0 %vm236_vm7, %v3932_v63 }
0x5b75   :  { %v4000_v53 = vpop.permute.xlu1 %3999 }
0x5b76   :  { %4580 = vmatmul.msk.f32.vlgmr.msrb.gmra.mxu2 %vm236_vm7, %v4000_v53 }
0x5b77   :  { %4269 = vmatpush.msrb.mxu2 %v6444_v50 }
0x5b79   :  { %4270 = vmatpush.msrb.mxu2 %v6447_v30 }
0x5b7b   :  { %4271 = vmatpush.msrb.mxu2 %v6450_v9 }
0x5b7d   :  { %4272 = vmatpush.msrb.mxu2 %v6453_v21 }
0x5be6   :  { %v3959_v15 = vpop.f32.mrf.mxu0 }
0x5be7   :  { %v3960_v37 = vadd.f32 %v3959_v15, %v5379_v47 }
0x5be9   :  { %v3962_v14 = vsel %vm261_vm8, %v3960_v37, -inf }
0x5bea   :  { %3963 = vmax.xlane.f32.xlu1 %v3962_v14 }
0x5bf9   :  { %v4024_v5 = vpop.f32.mrf.mxu2 }
0x5bfa   :  { %v4025_v36 = vadd.f32 %v4024_v5, %v5379_v47 }
0x5bfc   :  { %v4027_v46 = vsel %vm261_vm8, %v4025_v36, -inf }
0x5bfd   :  { %4028 = vmax.xlane.f32.xlu0 %v4027_v46 }
0x5c03   :  { %3973 = vrot.lane.b32.xlu1 %v3932_v63, %s5013_s24 }
0x5c11   :  { %4038 = vrot.lane.b32.xlu0 %v3932_v63, %s5016_s15 }
0x5c5d   :  { %v3964_v50 = vpop.xlane.xlu1 %3963 }
0x5c5e   :  { %v3965_v30 = vsub.f32 %v3960_v37, %v3964_v50 }
0x5c60   :  { %v3966_v9 = vmul.f32 1.442695, %v3965_v30 }
0x5c62   :  { %4799 = vpow2.f32 %v3966_v9 }
0x5c68   :  { %v4800_v21 = vpop.eup %4799 }
0x5c69   :  { %v3968_v23 = vsel %vm261_vm8, %v4800_v21, 0.0 }
0x5c6a   :  { %3969 = vadd.xlane.f32.xlu0 %v3968_v23 }
0x5c70   :  { %v4029_v39 = vpop.xlane.xlu0 %4028 }
0x5c71   :  { %v4030_v43 = vsub.f32 %v4025_v36, %v4029_v39 }
0x5c73   :  { %v4031_v40 = vmul.f32 1.442695, %v4030_v43 }
0x5c75   :  { %4801 = vpow2.f32 %v4031_v40  ;;  %v3974_v47 = vpop.permute.xlu1 %3973 }
0x5c76   :  { %3994 = vmatpush.msrb.mxu3 %v3974_v47 }
0x5c78   :  { %4126 = vmatpush.msra.mxu3 %v4922_v62 }
0x5c7a   :  { %4127 = vmatpush.msra.mxu3 %v4923_v4 }
0x5c7b   :  { %v4802_v55 = vpop.eup %4801 }
0x5c7c   :  { %4128 = vmatpush.msra.mxu3 %v4924_v42  ;;  %v4033_v49 = vsel %vm261_vm8, %v4802_v55, 0.0 }
0x5c7d   :  { %4034 = vadd.xlane.f32.xlu2 %v4033_v49 }
0x5c7e   :  { %4129 = vmatpush.msra.mxu3 %v4925_v61 }
0x5c83   :  { %v4039_v19 = vpop.permute.xlu0 %4038 }
0x5c84   :  { %4059 = vmatpush.msra.mxu0 %v4039_v19 }
0x5c86   :  { %4186 = vmatpush.msrb.mxu0 %v5486_v56 }
0x5cdd   :  { %v3970_v44 = vpop.xlane.xlu0 %3969 }
0x5cde   :  { %4803 = vrcp.f32 %v3970_v44 }
0x5ce4   :  { %v4804_v41 = vpop.eup %4803 }
0x5ce5   :  { %v3972_v59 = vmul.f32 %v4804_v41, %v4800_v21 }
0x5ce7   :  { %4578 = vmatmul.msk.f32.vlgmr.msrb.gmra.mxu3 %vm261_vm8, %v3972_v59 }
0x5ce8   :  { %4244 = vmatpush.msrb.mxu3 %v5482_v51 }
0x5cf0   :  { %v4035_v31 = vpop.xlane.xlu2 %4034 }
0x5cf1   :  { %4805 = vrcp.f32 %v4035_v31 }
0x5cf7   :  { %v4806_v38 = vpop.eup %4805 }
0x5cf8   :  { %v4037_v17 = vmul.f32 %v4806_v38, %v4802_v55 }
0x5cfa   :  { %4581 = vmatmul.msk.f32.vlgmr.msra.gmra.mxu0 %vm261_vm8, %v4037_v17 }
0x5cfb   :  { %4311 = vmatpush.msra.mxu0 %v6472_v8 }
0x5cfd   :  { %4312 = vmatpush.msra.mxu0 %v6475_v60 }
0x5cff   :  { %4313 = vmatpush.msra.mxu0 %v6478_v27 }
0x5d01   :  { %4314 = vmatpush.msra.mxu0 %v6481_v29 }
0x5d6a   :  { %v3996_v34 = vpop.f32.mrf.mxu3 }
0x5d77   :  { %v4061_v56 = vpop.f32.mrf.mxu0 }
0x5d78   :  { %4065 = vrot.lane.b32.xlu2 %v4061_v56, %s5018_s30 }
0x5dd2   :  { %v4066_v22 = vpop.permute.xlu2 %4065 }
0x5dd3   :  { %v4068_v51 = vsel %vm236_vm7, %v3996_v34, %v4066_v22 }
0x5dd4   :  { %4582 = vmatmul.msk.f32.vlgmr.msrb.gmra.mxu1 %vm182_vm2, %v4068_v51  ;;  %v4927_v51 = vld [vmem:[%s6773_s16] ss:$0 sm:$0xff] }
0x5dd5   :  { %4331 = vmatpush.msrb.mxu1 %v6490_v32 }
0x5dd7   :  { %4332 = vmatpush.msrb.mxu1 %v6496_v16 }
0x5dd9   :  { %4333 = vmatpush.msrb.mxu1 %v6502_v58 }
0x5ddb   :  { %4334 = vmatpush.msrb.mxu1 %v6508_v33 }
0x5ddd   :  { %4335 = vmatpush.msrb.mxu1 %v6514_v25 }
0x5ddf   :  { %4336 = vmatpush.msrb.mxu1 %v6520_v20 }
0x5de1   :  { %4337 = vmatpush.msrb.mxu1 %v6526_v48 }
0x5de3   :  { %4338 = vmatpush.msrb.mxu1 %v6532_v54 }
0x5e51   :  { %v4089_v8 = vpop.f32.mrf.mxu1 }
0x5e52   :  { %v6701_v60 = vadd.f32 %v4089_v8, %v6637_v6 }
0x5e54   :  { %v4093_v27 = vmul.f32 %v6701_v60, %v6701_v60 }
0x5e56   :  { %v4094_v29 = vsel %vm182_vm2, %v4093_v27, 0.0 }
0x5e57   :  { %4095 = vadd.xlane.f32.xlu1 %v4094_v29 }
0x5eca   :  { %v4096_v32 = vpop.xlane.xlu1 %4095 }
0x5ecb   :  { %v4097_v16 = vmul.f32 %v4096_v32, %v5215_v28 }
0x5ecd   :  { %v4098_v58 = vadd.f32 1e-06, %v4097_v16 }
0x5ecf   :  { %4807 = vrsqrt.f32 %v4098_v58  ;;  %vm4105_vm6 = vweird.f32 %v4098_v58 }
0x5ed5   :  { %v4808_v33 = vpop.eup %4807 }
0x5ed6   :  { %v4100_v25 = vmul.f32 %v4808_v33, %v4098_v58  ;;  %vm4106_vm11 = vweird.f32 %v4808_v33 }
0x5ed7   :  { %vm4107_vm9 = vmor %vm4105_vm6, %vm4106_vm11 }
0x5ed8   :  { %v4101_v20 = vmul.f32 %v4808_v33, %v4100_v25 }
0x5eda   :  { %v4102_v48 = vmul.f32 0.5, %v4101_v20 }
0x5edc   :  { %v4103_v54 = vsub.f32 1.5, %v4102_v48 }
0x5ede   :  { %v4104_v35 = vmul.f32 %v4808_v33, %v4103_v54 }
0x5ee0   :  { %v4108_v6 = vsel %vm4107_vm9, %v4808_v33, %v4104_v35 }
0x5ee1   :  { %v4109_v26 = vmul.f32 %v4108_v6, %v6701_v60 }
0x5ee3   :  { %v4110_v10 = vmul.f32 %v4926_v57, %v4109_v26 }
0x5ee5   :  { %4583 = vmatmul.msk.f32.vlgmr.msra.gmra.mxu3 %vm182_vm2, %v4110_v10 }
0x5ee6   :  { %4377 = vmatpush.msra.mxu3 %v6545_v2 }
0x5ee8   :  { %4378 = vmatpush.msra.mxu3 %v6548_v1 }
0x5eea   :  { %4379 = vmatpush.msra.mxu3 %v6551_v24 }
0x5eec   :  { %4380 = vmatpush.msra.mxu3 %v6554_v0 }
0x5f68   :  { %v4131_v3 = vpop.f32.mrf.mxu3 }
0x5f69   :  { %4191 = vrot.lane.b32.xlu0 %v4131_v3, %s5017_s25  ;;  %4585 = vmatmul.msk.f32.vlgmr.msra.gmra.mxu2 %vm236_vm7, %v4131_v3 }
0x5fdb   :  { %v4192_v12 = vpop.permute.xlu0 %4191 }
0x5fdc   :  { %4588 = vmatmul.msk.f32.vlgmr.msra.gmra.mxu1 %vm236_vm7, %v4192_v12  ;;  %v4928_v12 = vld [vmem:[%s6776_s19] ss:$0 sm:$0xff] }
0x5fec   :  { %v4154_v63 = vpop.f32.mrf.mxu2 }
0x5fed   :  { %v4157_v52 = vsel %vm261_vm8, %v4154_v63, -inf }
0x5fee   :  { %4158 = vmax.xlane.f32.xlu0 %v4157_v52 }
0x6059   :  { %v4212_v18 = vpop.f32.mrf.mxu1 }
0x605a   :  { %v4215_v2 = vsel %vm261_vm8, %v4212_v18, -inf }
0x605b   :  { %4216 = vmax.xlane.f32.xlu2 %v4215_v2 }
0x6061   :  { %v4159_v1 = vpop.xlane.xlu0 %4158 }
0x6062   :  { %v4160_v24 = vsub.f32 %v4154_v63, %v4159_v1 }
0x6064   :  { %v4161_v53 = vmul.f32 1.442695, %v4160_v24 }
0x6066   :  { %4809 = vpow2.f32 %v4161_v53 }
0x606c   :  { %v4810_v0 = vpop.eup %4809 }
0x606d   :  { %v4163_v15 = vsel %vm261_vm8, %v4810_v0, 0.0 }
0x606e   :  { %4164 = vadd.xlane.f32.xlu2 %v4163_v15 }
0x60ce   :  { %v4217_v37 = vpop.xlane.xlu2 %4216 }
0x60cf   :  { %v4218_v14 = vsub.f32 %v4212_v18, %v4217_v37 }
0x60d1   :  { %v4219_v5 = vmul.f32 1.442695, %v4218_v14 }
0x60d3   :  { %4811 = vpow2.f32 %v4219_v5 }
0x60d9   :  { %v4812_v36 = vpop.eup %4811 }
0x60da   :  { %v4221_v46 = vsel %vm261_vm8, %v4812_v36, 0.0 }
0x60db   :  { %4222 = vadd.xlane.f32.xlu1 %v4221_v46 }
0x60e1   :  { %v4165_v50 = vpop.xlane.xlu2 %4164 }
0x60e2   :  { %4813 = vrcp.f32 %v4165_v50 }
0x60e8   :  { %v4814_v30 = vpop.eup %4813 }
0x60e9   :  { %v4167_v9 = vmul.f32 %v4814_v30, %v4810_v0 }
0x60eb   :  { %4586 = vmatmul.msk.f32.vlgmr.msrb.gmra.mxu0 %vm261_vm8, %v4167_v9 }
0x614e   :  { %v4223_v21 = vpop.xlane.xlu1 %4222 }
0x614f   :  { %4815 = vrcp.f32 %v4223_v21 }
0x6155   :  { %v4816_v23 = vpop.eup %4815 }
0x6156   :  { %v4225_v39 = vmul.f32 %v4816_v23, %v4812_v36 }
0x6158   :  { %4589 = vmatmul.msk.f32.vlgmr.msrb.gmra.mxu3 %vm261_vm8, %v4225_v39 }
0x6168   :  { %v4188_v40 = vpop.f32.mrf.mxu0 }
0x61db   :  { %v4246_v43 = vpop.f32.mrf.mxu3 }
0x61dc   :  { %4250 = vrot.lane.b32.xlu1 %v4246_v43, %s5018_s30 }
0x624e   :  { %v4251_v47 = vpop.permute.xlu1 %4250 }
0x624f   :  { %v4253_v62 = vsel %vm236_vm7, %v4188_v40, %v4251_v47 }
0x6250   :  { %4590 = vmatmul.msk.f32.vlgmr.msrb.gmra.mxu2 %vm182_vm2, %v4253_v62 }
0x62d3   :  { %v4274_v4 = vpop.f32.mrf.mxu2 }
0x62d4   :  { %v4277_v55 = vadd.f32 %v4274_v4, %v6701_v60 }
0x62d6   :  { %v4278_v42 = vmul.f32 %v4277_v55, %v4277_v55 }
0x62d8   :  { %v4279_v49 = vsel %vm182_vm2, %v4278_v42, 0.0 }
0x62d9   :  { %4280 = vadd.xlane.f32.xlu2 %v4279_v49 }
0x634c   :  { %v4281_v61 = vpop.xlane.xlu2 %4280 }
0x634d   :  { %v4282_v19 = vmul.f32 %v4281_v61, %v5215_v28 }
0x634f   :  { %v4283_v44 = vadd.f32 1e-06, %v4282_v19 }
0x6351   :  { %4817 = vrsqrt.f32 %v4283_v44  ;;  %vm4290_vm8 = vweird.f32 %v4283_v44 }
0x6357   :  { %v4818_v41 = vpop.eup %4817 }
0x6358   :  { %v4285_v59 = vmul.f32 %v4818_v41, %v4283_v44  ;;  %vm4291_vm7 = vweird.f32 %v4818_v41 }
0x6359   :  { %vm4292_vm14 = vmor %vm4290_vm8, %vm4291_vm7 }
0x635a   :  { %v4286_v31 = vmul.f32 %v4818_v41, %v4285_v59 }
0x635c   :  { %v4287_v38 = vmul.f32 0.5, %v4286_v31 }
0x635e   :  { %v4288_v17 = vsub.f32 1.5, %v4287_v38 }
0x6360   :  { %v4289_v56 = vmul.f32 %v4818_v41, %v4288_v17 }
0x6362   :  { %v4293_v34 = vsel %vm4292_vm14, %v4818_v41, %v4289_v56 }
0x6363   :  { %v4294_v22 = vmul.f32 %v4293_v34, %v4277_v55 }
0x6365   :  { %v4295_v8 = vmul.f32 %v4927_v51, %v4294_v22 }
0x6367   :  { %4591 = vmatmul.msk.f32.vlgmr.msra.gmra.mxu0 %vm182_vm2, %v4295_v8 }
0x63e4   :  { %v4316_v60 = vpop.f32.mrf.mxu0 }
0x63e5   :  { %v4319_v27 = vmax.f32 %v4316_v60, 0.0 }
0x63e7   :  { %4592 = vmatmul.msk.f32.vlgmr.msrb.gmra.mxu1 %vm134_vm0, %v4319_v27 }
0x6464   :  { %v4340_v29 = vpop.f32.mrf.mxu1 }
0x6465   :  { %v4343_v32 = vadd.f32 %v4340_v29, %v4277_v55  ;;  %v4420_v55 = vcvt.s32.f32 %v5191_v11 }
0x6467   :  { %v4344_v16 = vmul.f32 %v4343_v32, %v4343_v32 }
0x6469   :  { %v4345_v58 = vsel %vm182_vm2, %v4344_v16, 0.0 }
0x646a   :  { %4346 = vadd.xlane.f32.xlu2 %v4345_v58 }
0x64dd   :  { %v4347_v33 = vpop.xlane.xlu2 %4346 }
0x64de   :  { %v4348_v25 = vmul.f32 %v4347_v33, %v5215_v28 }
0x64e0   :  { %v4349_v20 = vadd.f32 1e-06, %v4348_v25 }
0x64e2   :  { %4819 = vrsqrt.f32 %v4349_v20  ;;  %vm4356_vm12 = vweird.f32 %v4349_v20 }
0x64e8   :  { %v4820_v48 = vpop.eup %4819 }
0x64e9   :  { %v4351_v54 = vmul.f32 %v4820_v48, %v4349_v20  ;;  %vm4357_vm15 = vweird.f32 %v4820_v48 }
0x64ea   :  { %vm4358_vm13 = vmor %vm4356_vm12, %vm4357_vm15 }
0x64eb   :  { %v4352_v35 = vmul.f32 %v4820_v48, %v4351_v54 }
0x64ed   :  { %v4353_v6 = vmul.f32 0.5, %v4352_v35 }
0x64ef   :  { %v4354_v26 = vsub.f32 1.5, %v4353_v6 }
0x64f1   :  { %v4355_v57 = vmul.f32 %v4820_v48, %v4354_v26 }
0x64f3   :  { %v4359_v10 = vsel %vm4358_vm13, %v4820_v48, %v4355_v57 }
0x64f4   :  { %v4360_v3 = vmul.f32 %v4359_v10, %v4343_v32 }
0x64f6   :  { %v4361_v63 = vmul.f32 %v4928_v12, %v4360_v3 }
0x64f8   :  { %4593 = vmatmul.msk.f32.vlgmr.msra.gmra.mxu3 %vm182_vm2, %v4361_v63 }
0x657b   :  { %v4382_v28 = vpop.f32.mrf.mxu3 }
0x657c   :  { %v4385_v52 = vsel %vm3869_vm3, %v4382_v28, -1e+30  ;;  %vm4418_vm3 = vcmp.eq.s32.totalorder %v5375_v45, 7 }
0x657d   :  { %v4386_v18 = vsel %vm134_vm0, %v4385_v52, -inf }
0x657e   :  { %v4387_v2 = vrot.slane %v4386_v18, 4 }
0x6580   :  { %v4388_v1 = vmax.f32 %v4386_v18, %v4387_v2 }
0x6582   :  { %v4389_v24 = vrot.slane %v4388_v1, 2 }
0x6584   :  { %v4390_v53 = vmax.f32 %v4388_v1, %v4389_v24 }
0x6586   :  { %v4391_v0 = vrot.slane %v4390_v53, 1 }
0x6588   :  { %v4392_v15 = vmax.f32 %v4390_v53, %v4391_v0 }
0x658a   :  { %v4393_v37 = vsel %vm134_vm0, %v4392_v15, -inf }
0x658b   :  { %4394 = vmax.xlane.f32.xlu0 %v4393_v37 }
0x65fe   :  { %v4395_v14 = vpop.xlane.xlu0 %4394 }
0x65ff   :  { %vm4396_vm4 = vcmp.eq.f32.partialorder %v4392_v15, %v4395_v14 }
0x6600   :  { %v4397_v5 = vsel %vm4396_vm4, %v5191_v11, 64 }
0x6601   :  { %v4398_v36 = vsel %vm134_vm0, %v4397_v5, 2147483647 }
0x6602   :  { %v4400_v46 = vshra.s32 %v4398_v36, 16  ;;  %v4399_v30 = vand.u32 65535, %v4398_v36 }
0x6604   :  { %v4402_v50 = vcvt.s32.f32 %v4400_v46  ;;  %v4401_v21 = vcvt.s32.f32 %v4399_v30 }
0x6606   :  { %4403 = vmin.xlane.f32.xlu2 %v4402_v50 }
0x6679   :  { %v4404_v9 = vpop.xlane.xlu2 %4403 }
0x667a   :  { %vm4405_vm2 = vcmp.eq.f32.partialorder %v4402_v50, %v4404_v9  ;;  %v4410_v39 = vcvt.f32.s32 %v4404_v9 }
0x667b   :  { %v4406_v23 = vsel %vm4405_vm2, %v4401_v21, inf }
0x667c   :  { %4407 = vmin.xlane.f32.xlu0 %v4406_v23  ;;  %v4411_v40 = vshll.u32 %v4410_v39, 16 }
0x66ef   :  { %v4408_v43 = vpop.xlane.xlu0 %4407 }
0x66f0   :  { %v4409_v47 = vcvt.f32.s32 %v4408_v43 }
0x66f2   :  { %v4412_v62 = vadd.s32 %v4411_v40, %v4409_v47 }
0x66f4   :  { %4607 = vpush %v4412_v62 }
0x6725   :  { %s4608_s19 = spop %4607 }
0x6726   :  { %v4414_v4 = vstv %s4608_s19 }
0x6727   :  { %vm4415_vm5 = vcmp.eq.s32.totalorder %v5191_v11, %v4414_v4 }
0x6728   :  { %v4594_v42 = vsel %vm4415_vm5, 1.0, %v5011_v13 }
0x6729   :  { %v4419_v49 = vsel %vm4418_vm3, %v4594_v42, %v6631_v7 }
0x672a   :  { %v4421_v61 = vmul.f32 %v4420_v55, %v4419_v49 }
0x672c   :  { %v4422_v19 = vsel %vm134_vm0, %v4421_v61, 0.0 }
0x672d   :  { %4423 = vadd.xlane.f32.xlu1 %v4422_v19 }
0x67a0   :  { %v4424_v44 = vpop.xlane.xlu1 %4423 }
0x67a1   :  { %vm4609_vm1 = vcmp.lt.s32.totalorder %v4424_v44, 0  ;;  %v4610_v41 = vceil.f32 %v4424_v44  ;;  %v4611_v59 = vfloor.f32 %v4424_v44 }
0x67a3   :  { %v4612_v31 = vsel %vm4609_vm1, %v4610_v41, %v4611_v59 }
0x67a4   :  { %v4613_v38 = vcvt.f32.s32 %v4612_v31 }
0x67a6   :  { %4427 = vst.msk [vmem:[%s6778_s21] sm:$0xff] %vm4426_vm10, %v4613_v38 }
0x67a7   :  { %4432 = vsyncpa [#allocation3], 1 }
0x67a8   :  { %4433 = vsyncpa [#allocation5], 1 }

</bundles_post_ra>
